<compile_context>
chip_gen: v7x
topology: tpu7x:2x2x1
jax: 0.10.0
libtpu: 0.0.40
codegen_flags: <defaults>
</compile_context>

<pallas_src>
import functools

import numpy as np
import jax
import jax.numpy as jnp
from jax.experimental import pallas as pl
from jax.experimental.pallas import tpu as pltpu


def _round_up(x, m):
    return ((x + m - 1) // m) * m


# ---------------------------------------------------------------------------
# Pallas kernel 1: conv (stride folded to 1 by the wrapper) + affine + leaky
#   x_ref:  [H, W, Cp]        (Cp multiple of 128, extra channels are zero)
#   w_ref:  [K*K*Cp, Coutp]   bf16 (zero rows/cols for padded channels)
#   scale_ref / bias_ref: [1, Coutp] f32 (folded BN or conv bias)
#   o_ref:  [Hout, Wout, Coutp] f32
# ---------------------------------------------------------------------------
def _conv_kernel(x_ref, w_ref, scale_ref, bias_ref, o_ref, *, K, pad, leaky):
    H, W, Cp = x_ref.shape
    Hout, Wout, Coutp = o_ref.shape

    xs = x_ref[...]
    if pad > 0:
        # fold the (K-1)//2 zero padding into the kernel (no host-side jnp.pad)
        zr = jnp.zeros((pad, W, Cp), xs.dtype)
        xs = jnp.concatenate([zr, xs, zr], axis=0)
        zc = jnp.zeros((H + 2 * pad, pad, Cp), xs.dtype)
        xs = jnp.concatenate([zc, xs, zc], axis=1)

    if K > 1:
        # im2col: concat the K*K taps on the (128-aligned) channel axis, then one matmul
        taps = [xs[kh:kh + Hout, kw:kw + Wout, :]
                for kh in range(K) for kw in range(K)]
        patch = jnp.concatenate(taps, axis=-1)          # [Hout, Wout, K*K*Cp]
    else:
        patch = xs

    lhs = patch.reshape(Hout * Wout, K * K * Cp).astype(jnp.bfloat16)
    y = jnp.dot(lhs, w_ref[...], preferred_element_type=jnp.float32)  # [M, Coutp]
    y = y * scale_ref[...] + bias_ref[...]
    if leaky:
        y = jnp.where(y > 0.0, y, 0.1 * y)
    o_ref[...] = y.reshape(Hout, Wout, Coutp)


def _conv_call(x, w2d, scale_p, bias_p, *, K, pad, Hout, Wout, Coutp, leaky):
    N, H, W, Cp = x.shape
    KKC = w2d.shape[0]
    return pl.pallas_call(
        functools.partial(_conv_kernel, K=K, pad=pad, leaky=leaky),
        out_shape=jax.ShapeDtypeStruct((N, Hout, Wout, Coutp), jnp.float32),
        grid=(N,),
        in_specs=[
            pl.BlockSpec((None, H, W, Cp), lambda n: (n, 0, 0, 0)),
            pl.BlockSpec((KKC, Coutp), lambda n: (0, 0)),
            pl.BlockSpec((1, Coutp), lambda n: (0, 0)),
            pl.BlockSpec((1, Coutp), lambda n: (0, 0)),
        ],
        out_specs=pl.BlockSpec((None, Hout, Wout, Coutp), lambda n: (n, 0, 0, 0)),
        compiler_params=pltpu.CompilerParams(
            dimension_semantics=("parallel",),           # shard batch across TCs (v7x)
            vmem_limit_bytes=32 * 1024 * 1024),
    )(x, w2d, scale_p, bias_p)


def conv_block(x, w, scale, bias, *, K, stride, leaky):
    """Conv2d(K, stride, pad=(K-1)//2) + (folded BN | bias) + optional LeakyReLU(0.1).

    x: [N, H, W, Cp] f32 NHWC with channels zero-padded to a multiple of 128.
    w: [K, K, Cin_real, Cout_real] f32;  scale/bias: [Cout_real] f32.
    Returns [N, Hout, Wout, Coutp] f32 with Coutp = round_up(Cout_real, 128);
    padded output channels are exactly zero.
    """
    N, H, W, Cp = x.shape
    Cin_real, Cout_real = w.shape[2], w.shape[3]
    Coutp = max(128, _round_up(Cout_real, 128))
    pad = (K - 1) // 2
    Hout = (H + 2 * pad - K) // stride + 1
    Wout = (W + 2 * pad - K) // stride + 1

    scale_p = jnp.zeros((1, Coutp), jnp.float32).at[0, :Cout_real].set(scale)
    bias_p = jnp.zeros((1, Coutp), jnp.float32).at[0, :Cout_real].set(bias)

    if stride == 1:
        w2 = jnp.zeros((K, K, Cp, Coutp), jnp.float32)
        w2 = w2.at[:, :, :Cin_real, :Cout_real].set(w)
        w2d = w2.reshape(K * K * Cp, Coutp).astype(jnp.bfloat16)
        return _conv_call(x, w2d, scale_p, bias_p, K=K, pad=pad,
                          Hout=Hout, Wout=Wout, Coutp=Coutp, leaky=leaky)

    # stride > 1: space-to-depth so the kernel always runs a stride-1 "valid" conv
    # (exact; avoids computing/writing 4x the needed output).
    S = stride
    K2 = -(-K // S)                                   # ceil(K / S)
    Hp2 = _round_up(H + 2 * pad, S)
    Wp2 = _round_up(W + 2 * pad, S)
    xp = jnp.pad(x, ((0, 0), (pad, Hp2 - H - pad), (pad, Wp2 - W - pad), (0, 0)))
    x2 = xp.reshape(N, Hp2 // S, S, Wp2 // S, S, Cp)
    x2 = x2.transpose(0, 1, 3, 2, 4, 5).reshape(N, Hp2 // S, Wp2 // S, S * S * Cp)

    wp = jnp.zeros((K2 * S, K2 * S, Cp, Coutp), jnp.float32)
    wp = wp.at[:K, :K, :Cin_real, :Cout_real].set(w)
    w2 = wp.reshape(K2, S, K2, S, Cp, Coutp).transpose(0, 2, 1, 3, 4, 5)
    w2d = w2.reshape(K2 * K2 * S * S * Cp, Coutp).astype(jnp.bfloat16)
    return _conv_call(x2, w2d, scale_p, bias_p, K=K2, pad=0,
                      Hout=Hout, Wout=Wout, Coutp=Coutp, leaky=leaky)


# ---------------------------------------------------------------------------
# Pallas kernel 2: YOLOLayer decode (one grid step over the whole batch).
# Operates directly on the NHWC head output (channel = lane axis, fully dense).
# Per-lane constant vectors carry grid/anchor/stride/mask info.
# ---------------------------------------------------------------------------
def _yolo_kernel(p_ref, grid_ref, mul_ref, iswh_ref, f1_ref, io_ref):
    p = p_ref[...]
    decoded = jnp.where(iswh_ref[...] > 0.5,
                        jnp.exp(p),
                        jax.nn.sigmoid(p) + grid_ref[...])
    decoded = decoded * mul_ref[...]
    io_ref[...] = jnp.where(f1_ref[...] > 0.5, 1.0, decoded)


def yolo_decode(p_nhwc, anchors, nC, img_size):
    """p_nhwc: [bs, nG, nG, Cp] head conv output (channel = a*(nC+5)+c, padded to 128)."""
    bs, nG, _, Cp = p_nhwc.shape
    nA = anchors.shape[0]
    C = nC + 5
    nAC = nA * C
    stride = float(img_size) / float(nG)

    lane = np.arange(Cp)
    a_idx = lane // C
    c_idx = lane % C
    valid = lane < nAC
    is_x = valid & (c_idx == 0)
    is_y = valid & (c_idx == 1)
    is_wh = valid & ((c_idx == 2) | (c_idx == 3))

    anchors_np = np.asarray(anchors, dtype=np.float32)
    mul = np.ones(Cp, np.float32)
    mul[valid & (c_idx < 2)] = stride                                  # io[..., :2] *= stride
    a_safe = np.clip(a_idx, 0, nA - 1)
    wh_dim = np.clip(c_idx - 2, 0, 1)
    mul = np.where(is_wh, anchors_np[a_safe, wh_dim], mul).astype(np.float32)
    force1 = (valid & (c_idx == 5)) if nC == 1 else np.zeros(Cp, bool)

    g = np.arange(nG, dtype=np.float32)
    grid_add = (is_x.astype(np.float32)[None, None, :] * g[None, :, None]
                + is_y.astype(np.float32)[None, None, :] * g[:, None, None])   # [nG,nG,Cp]

    grid_add = jnp.asarray(grid_add[None])                             # [1,nG,nG,Cp]
    mul_l = jnp.asarray(mul.reshape(1, 1, 1, Cp))
    iswh_l = jnp.asarray(is_wh.astype(np.float32).reshape(1, 1, 1, Cp))
    f1_l = jnp.asarray(force1.astype(np.float32).reshape(1, 1, 1, Cp))

    io_nhwc = pl.pallas_call(
        _yolo_kernel,
        out_shape=jax.ShapeDtypeStruct((bs, nG, nG, Cp), jnp.float32),
        grid=(1,),
        in_specs=[
            pl.BlockSpec((bs, nG, nG, Cp), lambda i: (0, 0, 0, 0)),
            pl.BlockSpec((1, nG, nG, Cp), lambda i: (0, 0, 0, 0)),
            pl.BlockSpec((1, 1, 1, Cp), lambda i: (0, 0, 0, 0)),
            pl.BlockSpec((1, 1, 1, Cp), lambda i: (0, 0, 0, 0)),
            pl.BlockSpec((1, 1, 1, Cp), lambda i: (0, 0, 0, 0)),
        ],
        out_specs=pl.BlockSpec((bs, nG, nG, Cp), lambda i: (0, 0, 0, 0)),
    )(p_nhwc, grid_add, mul_l, iswh_l, f1_l)

    # Re-order to the torch output contract (anchor-major); small host reshuffle.
    io = io_nhwc[..., :nAC].reshape(bs, nG, nG, nA, C).transpose(0, 3, 1, 2, 4)
    p_train = p_nhwc[..., :nAC].reshape(bs, nG, nG, nA, C).transpose(0, 3, 1, 2, 4)
    return io.reshape(bs, -1, C), p_train


# ---------------------------------------------------------------------------
# Pallas kernel 3: Darknet53 head (global avg pool + Linear(768, num_classes))
# Output class dim padded to 128 so the store is lane-dense; sliced outside.
# ---------------------------------------------------------------------------
def _head_kernel(x_ref, w_ref, b_ref, o_ref):
    N, H, W, Cf = x_ref.shape
    x = x_ref[...]
    pooled = jnp.mean(x.reshape(N, H * W, Cf), axis=1)                 # [N, Cf]
    o_ref[...] = jnp.dot(pooled, w_ref[...],
                         preferred_element_type=jnp.float32) + b_ref[...]


def darknet53_head(x_nhwc, fc_w, fc_b):
    """x_nhwc: [N, H, W, 768];  fc_w: [num_classes, 768] (torch Linear layout)."""
    N, H, W, Cf = x_nhwc.shape
    ncls = fc_w.shape[0]
    nclsp = max(128, _round_up(ncls, 128))
    wT = jnp.zeros((Cf, nclsp), jnp.float32).at[:, :ncls].set(fc_w.T)
    bp = jnp.zeros((1, nclsp), jnp.float32).at[0, :ncls].set(fc_b)
    out = pl.pallas_call(
        _head_kernel,
        out_shape=jax.ShapeDtypeStruct((N, nclsp), jnp.float32),
        grid=(1,),
        in_specs=[
            pl.BlockSpec((N, H, W, Cf), lambda i: (0, 0, 0, 0)),
            pl.BlockSpec((Cf, nclsp), lambda i: (0, 0)),
            pl.BlockSpec((1, nclsp), lambda i: (0, 0)),
        ],
        out_specs=pl.BlockSpec((N, nclsp), lambda i: (0, 0)),
    )(x_nhwc, wT, bp)
    return out[:, :ncls]


# ---------------------------------------------------------------------------
# Host-side glue: BN fold, xyxy_limit, crop_roi (same host/numpy behaviour as
# torch, which pulls the crop coordinates to .cpu().numpy()).
# ---------------------------------------------------------------------------
def fold_bn(bn, eps=1e-5):
    gamma, beta, mean, var = bn
    scale = gamma / jnp.sqrt(var + eps)
    bias = beta - mean * scale
    return scale, bias


def xyxy_limit(crop_xyxy, nG):
    c = np.round(crop_xyxy.astype(np.float64))
    c[c[:, 2] == nG, 2] -= 1
    c[c[:, 3] == nG, 3] -= 1
    c[c[:, 2] == c[:, 4], 4] += 1
    c[c[:, 3] == c[:, 5], 5] += 1
    c[c[:, 2] < 0, 2] = 0
    c[c[:, 3] < 0, 3] = 0
    c[c[:, 4] > nG, 4] = nG - 1
    c[c[:, 5] > nG, 5] = nG - 1
    return c.astype(int)


def crop_roi(feature_map_nhwc, crop_xyxy, out_size):
    # TODO(synk): could be a single PrefetchScalarGridSpec gather kernel (crop coords
    # in SMEM + pl.ds dynamic windows); kept host-side because the torch reference
    # already syncs the coords to the host and crop sizes are data-dependent.
    fm = feature_map_nhwc
    crops = []
    for i in range(crop_xyxy.shape[0]):
        b = int(crop_xyxy[i, 0])
        x1, y1, x2, y2 = (int(crop_xyxy[i, 2]), int(crop_xyxy[i, 3]),
                          int(crop_xyxy[i, 4]), int(crop_xyxy[i, 5]))
        crop = fm[b, y1:y2, x1:x2, :]                     # [h, w, C]
        h, w = crop.shape[0], crop.shape[1]
        ridx = (np.arange(out_size) * h) // out_size      # F.interpolate 'nearest'
        cidx = (np.arange(out_size) * w) // out_size
        crops.append(crop[ridx][:, cidx])
    return jnp.stack(crops, axis=0)


# ---------------------------------------------------------------------------
# DarknetPlus forward_train composition
# ---------------------------------------------------------------------------
def darknet_plus_forward_train(img_nchw, params, targets_np, LS_targets_np):
    img_size = img_nchw.shape[-1]

    def chan_pad128(t):
        c = t.shape[-1]
        cp = max(128, _round_up(c, 128))
        if cp == c:
            return t
        return jnp.pad(t, ((0, 0), (0, 0), (0, 0), (0, cp - c)))

    # ---- model1 (Darknet stand-in) ----
    x = chan_pad128(jnp.transpose(img_nchw, (0, 2, 3, 1)))              # NHWC, 128 ch
    s, b = fold_bn(params["m1_bn1"])
    x = conv_block(x, params["m1_w1"], s, b, K=3, stride=1, leaky=True)
    s, b = fold_bn(params["m1_bn2"])
    x = conv_block(x, params["m1_w2"], s, b, K=3, stride=2, leaky=True)
    feature_map1 = x                                                    # "layer 103"
    p1 = conv_block(x, params["m1_wh"],
                    jnp.ones((params["m1_wh"].shape[-1],), jnp.float32),
                    params["m1_bh"], K=1, stride=1, leaky=False)
    io1, train_out1 = yolo_decode(p1, params["anchors1"], nC=2, img_size=img_size)

    nG = feature_map1.shape[1]
    img_size2 = nG // 2

    crop_xyxy = np.array(targets_np, dtype=np.float64)
    tx, ty = targets_np[:, 2], targets_np[:, 3]
    tw, th = targets_np[:, 4], targets_np[:, 5]
    crop_xyxy[:, 2], crop_xyxy[:, 3] = tx - tw / 2, ty - th / 2
    crop_xyxy[:, 4], crop_xyxy[:, 5] = tx + tw / 2, ty + th / 2
    crop_xyxy[:, 2:] *= nG
    crop_xyxy = xyxy_limit(crop_xyxy, nG)
    fm1_crops = crop_roi(feature_map1, crop_xyxy, img_size2)            # [nt, 8, 8, 128]

    # ---- model2 (Darknet stand-in) ----
    s, b = fold_bn(params["m2_bn1"])
    x2 = conv_block(fm1_crops, params["m2_w1"], s, b, K=3, stride=1, leaky=True)
    s, b = fold_bn(params["m2_bn2"])
    x2 = conv_block(x2, params["m2_w2"], s, b, K=1, stride=1, leaky=True)
    feature_map2 = x2                                                   # "layer 13", 768ch
    p2 = conv_block(x2, params["m2_wh"],
                    jnp.ones((params["m2_wh"].shape[-1],), jnp.float32),
                    params["m2_bh"], K=1, stride=1, leaky=False)
    io2, train_out2 = yolo_decode(p2, params["anchors2"], nC=1, img_size=img_size2)

    nG2 = feature_map2.shape[1]

    ls = LS_targets_np[LS_targets_np[:, 1] > 2, :]
    if len(ls) == 0:
        return io1, train_out1, io2, train_out2, None
    crop2 = np.array(ls, dtype=np.float64)
    lx, ly, lw, lh = ls[:, 2], ls[:, 3], ls[:, 4], ls[:, 5]
    crop2[:, 2], crop2[:, 3] = lx - lw / 2, ly - lh / 2
    crop2[:, 4], crop2[:, 5] = lx + lw / 2, ly + lh / 2
    crop2[:, 2:] *= nG2
    crop2 = xyxy_limit(crop2, nG)       # matches original (uses self.nG here)
    fm2_crops = crop_roi(feature_map2, crop2, 8)                        # img_size3 = 8

    # ---- model3 (Darknet53 head, exact) ----
    inf_out3 = darknet53_head(fm2_crops, params["fc_w"], params["fc_b"])
    return io1, train_out1, io2, train_out2, inf_out3


# ---------------------------------------------------------------------------
# Deterministic parameter init
# ---------------------------------------------------------------------------
def init_params(key):
    ks = iter(jax.random.split(key, 32))

    def conv_w(k, K, cin, cout):
        return jax.random.normal(k, (K, K, cin, cout), jnp.float32) / np.sqrt(K * K * cin)

    def bn(k, c):
        k1, k2, k3, k4 = jax.random.split(k, 4)
        return (jax.random.uniform(k1, (c,), jnp.float32, 0.5, 1.5),
                jax.random.normal(k2, (c,), jnp.float32) * 0.1,
                jax.random.normal(k3, (c,), jnp.float32) * 0.1,
                jax.random.uniform(k4, (c,), jnp.float32, 0.5, 1.5))

    p = {}
    # model1: 3 -> 16 -> 32, head 32 -> 3*(2+5)=21
    p["m1_w1"], p["m1_bn1"] = conv_w(next(ks), 3, 3, 16), bn(next(ks), 16)
    p["m1_w2"], p["m1_bn2"] = conv_w(next(ks), 3, 16, 32), bn(next(ks), 32)
    p["m1_wh"] = conv_w(next(ks), 1, 32, 21)
    p["m1_bh"] = jax.random.normal(next(ks), (21,), jnp.float32) * 0.1
    p["anchors1"] = jnp.array([[10., 13.], [16., 30.], [33., 23.]], jnp.float32)
    # model2: 32 -> 64 -> 768, head 768 -> 3*(1+5)=18
    p["m2_w1"], p["m2_bn1"] = conv_w(next(ks), 3, 32, 64), bn(next(ks), 64)
    p["m2_w2"], p["m2_bn2"] = conv_w(next(ks), 1, 64, 768), bn(next(ks), 768)
    p["m2_wh"] = conv_w(next(ks), 1, 768, 18)
    p["m2_bh"] = jax.random.normal(next(ks), (18,), jnp.float32) * 0.1
    p["anchors2"] = jnp.array([[1.0, 1.5], [2.0, 2.5], [3.0, 3.5]], jnp.float32)
    # model3: Linear(768, 3)
    p["fc_w"] = jax.random.normal(next(ks), (3, 768), jnp.float32) / np.sqrt(768)
    p["fc_b"] = jax.random.normal(next(ks), (3,), jnp.float32) * 0.1
    return p


if __name__ == "__main__":
    key = jax.random.PRNGKey(0)
    kp, ki = jax.random.split(key)
    params = init_params(kp)

    # small shapes: batch=2, channels=3, spatial=32 (NCHW, like torch)
    img = jax.random.normal(ki, (2, 3, 32, 32), jnp.float32)

    # targets: (image, class, x, y, w, h) normalized
    targets = np.array([[0., 0., 0.50, 0.50, 0.50, 0.50],
                        [1., 0., 0.25, 0.25, 0.40, 0.40],
                        [1., 0., 0.70, 0.60, 0.30, 0.40]], dtype=np.float32)
    # LS_targets: image index refers to the cropped-target batch of model2
    LS_targets = np.array([[0., 3., 0.50, 0.50, 0.60, 0.60],
                           [2., 4., 0.40, 0.50, 0.50, 0.50],
                           [1., 2., 0.50, 0.50, 0.50, 0.50]], dtype=np.float32)

    io1, tr1, io2, tr2, inf3 = darknet_plus_forward_train(img, params, targets, LS_targets)
    jax.block_until_ready((io1, tr1, io2, tr2, inf3))

    assert io1.shape == (2, 3 * 16 * 16, 7)
    assert tr1.shape == (2, 3, 16, 16, 7)
    assert io2.shape == (3, 3 * 8 * 8, 6)
    assert tr2.shape == (3, 3, 8, 8, 6)
    assert inf3.shape == (2, 3)
    assert bool(jnp.all(jnp.isfinite(io1))) and bool(jnp.all(jnp.isfinite(inf3)))
    print("KERNEL_OK")
</pallas_src>

<mosaic_0001>
module attributes {stable_mosaic.version = 11 : i64} {
  func.func @_conv_kernel(%arg0: i32, %arg1: memref<1x32x32x128xf32, #tpu.memory_space<vmem>>, %arg2: memref<1152x128xbf16, #tpu.memory_space<vmem>>, %arg3: memref<1x128xf32, #tpu.memory_space<vmem>>, %arg4: memref<1x128xf32, #tpu.memory_space<vmem>>, %arg5: memref<1x32x32x128xf32, #tpu.memory_space<vmem>>) attributes {dimension_semantics = [#tpu.dimension_semantics<parallel>], iteration_bounds = array<i64: 2>, scalar_prefetch = 0 : i64, scratch_operands = 0 : i64, tpu.core_type = #tpu.core_type<tc>, window_params = [{transform_indices = @transform_0, window_bounds = array<i64: 1, 32, 32, 128>}, {pipeline_mode = #tpu.pipeline_mode<synchronous>, transform_indices = @transform_1, window_bounds = array<i64: 1152, 128>}, {pipeline_mode = #tpu.pipeline_mode<synchronous>, transform_indices = @transform_2, window_bounds = array<i64: 1, 128>}, {pipeline_mode = #tpu.pipeline_mode<synchronous>, transform_indices = @transform_3, window_bounds = array<i64: 1, 128>}, {transform_indices = @transform_4, window_bounds = array<i64: 1, 32, 32, 128>}]} {
    %c0 = arith.constant 0 : index
    %c0_0 = arith.constant 0 : index
    %c0_1 = arith.constant 0 : index
    %c0_2 = arith.constant 0 : index
    %0 = vector.load %arg1[%c0, %c0_0, %c0_1, %c0_2] : memref<1x32x32x128xf32, #tpu.memory_space<vmem>>, vector<1x32x32x128xf32>
    %1 = vector.shape_cast %0 : vector<1x32x32x128xf32> to vector<32x32x128xf32>
    %cst = arith.constant 0.000000e+00 : f32
    %2 = vector.broadcast %cst : f32 to vector<1x32x128xf32>
    %3 = tpu.concatenate %2, %1, %2 in 0 : vector<1x32x128xf32>, vector<32x32x128xf32>, vector<1x32x128xf32> -> vector<34x32x128xf32>
    %cst_3 = arith.constant 0.000000e+00 : f32
    %4 = vector.broadcast %cst_3 : f32 to vector<34x1x128xf32>
    %5 = tpu.concatenate %4, %3, %4 in 1 : vector<34x1x128xf32>, vector<34x32x128xf32>, vector<34x1x128xf32> -> vector<34x34x128xf32>
    %6 = vector.extract_strided_slice %5 {offsets = [0, 0, 0], sizes = [32, 32, 128], strides = [1, 1, 1]} : vector<34x34x128xf32> to vector<32x32x128xf32>
    %7 = vector.extract_strided_slice %5 {offsets = [0, 1, 0], sizes = [32, 32, 128], strides = [1, 1, 1]} : vector<34x34x128xf32> to vector<32x32x128xf32>
    %8 = vector.extract_strided_slice %5 {offsets = [0, 2, 0], sizes = [32, 32, 128], strides = [1, 1, 1]} : vector<34x34x128xf32> to vector<32x32x128xf32>
    %9 = vector.extract_strided_slice %5 {offsets = [1, 0, 0], sizes = [32, 32, 128], strides = [1, 1, 1]} : vector<34x34x128xf32> to vector<32x32x128xf32>
    %10 = vector.extract_strided_slice %5 {offsets = [1, 1, 0], sizes = [32, 32, 128], strides = [1, 1, 1]} : vector<34x34x128xf32> to vector<32x32x128xf32>
    %11 = vector.extract_strided_slice %5 {offsets = [1, 2, 0], sizes = [32, 32, 128], strides = [1, 1, 1]} : vector<34x34x128xf32> to vector<32x32x128xf32>
    %12 = vector.extract_strided_slice %5 {offsets = [2, 0, 0], sizes = [32, 32, 128], strides = [1, 1, 1]} : vector<34x34x128xf32> to vector<32x32x128xf32>
    %13 = vector.extract_strided_slice %5 {offsets = [2, 1, 0], sizes = [32, 32, 128], strides = [1, 1, 1]} : vector<34x34x128xf32> to vector<32x32x128xf32>
    %14 = vector.extract_strided_slice %5 {offsets = [2, 2, 0], sizes = [32, 32, 128], strides = [1, 1, 1]} : vector<34x34x128xf32> to vector<32x32x128xf32>
    %15 = tpu.concatenate %6, %7, %8, %9, %10, %11, %12, %13, %14 in 2 : vector<32x32x128xf32>, vector<32x32x128xf32>, vector<32x32x128xf32>, vector<32x32x128xf32>, vector<32x32x128xf32>, vector<32x32x128xf32>, vector<32x32x128xf32>, vector<32x32x128xf32>, vector<32x32x128xf32> -> vector<32x32x1152xf32>
    %16 = vector.shape_cast %15 : vector<32x32x1152xf32> to vector<1024x1152xf32>
    %17 = arith.truncf %16 : vector<1024x1152xf32> to vector<1024x1152xbf16>
    %c0_4 = arith.constant 0 : index
    %c0_5 = arith.constant 0 : index
    %18 = vector.load %arg2[%c0_4, %c0_5] : memref<1152x128xbf16, #tpu.memory_space<vmem>>, vector<1152x128xbf16>
    %cst_6 = arith.constant dense<0.000000e+00> : vector<1024x128xf32>
    %19 = tpu.matmul %17, %18, %cst_6 {dimension_numbers = #tpu.dot_dimension_numbers<[1], [0], [0], [1], [0, 0, 1, 1], [], []>} : vector<1024x1152xbf16>, vector<1152x128xbf16>, vector<1024x128xf32> -> vector<1024x128xf32>
    %c0_7 = arith.constant 0 : index
    %c0_8 = arith.constant 0 : index
    %20 = vector.load %arg3[%c0_7, %c0_8] : memref<1x128xf32, #tpu.memory_space<vmem>>, vector<1x128xf32>
    %21 = vector.broadcast %20 : vector<1x128xf32> to vector<1024x128xf32>
    %22 = arith.mulf %19, %21 : vector<1024x128xf32>
    %c0_9 = arith.constant 0 : index
    %c0_10 = arith.constant 0 : index
    %23 = vector.load %arg4[%c0_9, %c0_10] : memref<1x128xf32, #tpu.memory_space<vmem>>, vector<1x128xf32>
    %24 = vector.broadcast %23 : vector<1x128xf32> to vector<1024x128xf32>
    %25 = arith.addf %22, %24 : vector<1024x128xf32>
    %cst_11 = arith.constant 0.000000e+00 : f32
    %26 = vector.broadcast %cst_11 : f32 to vector<1024x128xf32>
    %27 = arith.cmpf ogt, %25, %26 : vector<1024x128xf32>
    %cst_12 = arith.constant 1.000000e-01 : f32
    %28 = vector.broadcast %cst_12 : f32 to vector<1024x128xf32>
    %29 = arith.mulf %28, %25 : vector<1024x128xf32>
    %30 = arith.select %27, %25, %29 : vector<1024x128xi1>, vector<1024x128xf32>
    %31 = vector.shape_cast %30 : vector<1024x128xf32> to vector<32x32x128xf32>
    %c0_13 = arith.constant 0 : index
    %c0_14 = arith.constant 0 : index
    %c0_15 = arith.constant 0 : index
    %c0_16 = arith.constant 0 : index
    %32 = vector.load %arg5[%c0_13, %c0_14, %c0_15, %c0_16] : memref<1x32x32x128xf32, #tpu.memory_space<vmem>>, vector<1x32x32x128xf32>
    %33 = vector.shape_cast %32 : vector<1x32x32x128xf32> to vector<32x32x128xf32>
    %34 = vector.shape_cast %31 : vector<32x32x128xf32> to vector<1x32x32x128xf32>
    tpu.vector_store %arg5[%c0_13, %c0_14, %c0_15, %c0_16], %34 {strides = array<i32>} : memref<1x32x32x128xf32, #tpu.memory_space<vmem>>, vector<1x32x32x128xf32>,
    return
  }
  func.func @transform_0(%arg0: i32) -> (i32, i32, i32, i32) {
    %c0_i32 = arith.constant 0 : i32
    %c0_i32_0 = arith.constant 0 : i32
    %c0_i32_1 = arith.constant 0 : i32
    %c0_i32_2 = arith.constant 0 : i32
    return %arg0, %c0_i32, %c0_i32_0, %c0_i32_1 : i32, i32, i32, i32
  }
  func.func @transform_1(%arg0: i32) -> (i32, i32) {
    %c0_i32 = arith.constant 0 : i32
    %c0_i32_0 = arith.constant 0 : i32
    %c0_i32_1 = arith.constant 0 : i32
    return %c0_i32, %c0_i32_0 : i32, i32
  }
  func.func @transform_2(%arg0: i32) -> (i32, i32) {
    %c0_i32 = arith.constant 0 : i32
    %c0_i32_0 = arith.constant 0 : i32
    %c0_i32_1 = arith.constant 0 : i32
    return %c0_i32, %c0_i32_0 : i32, i32
  }
  func.func @transform_3(%arg0: i32) -> (i32, i32) {
    %c0_i32 = arith.constant 0 : i32
    %c0_i32_0 = arith.constant 0 : i32
    %c0_i32_1 = arith.constant 0 : i32
    return %c0_i32, %c0_i32_0 : i32, i32
  }
  func.func @transform_4(%arg0: i32) -> (i32, i32, i32, i32) {
    %c0_i32 = arith.constant 0 : i32
    %c0_i32_0 = arith.constant 0 : i32
    %c0_i32_1 = arith.constant 0 : i32
    %c0_i32_2 = arith.constant 0 : i32
    return %arg0, %c0_i32, %c0_i32_0, %c0_i32_1 : i32, i32, i32, i32
  }
}

</mosaic_0001>

<bundles_post_ra>
// kernel: tpu_custom_call.1
= control target key start
LH: loop header
LB: loop body
LE: loop exit
PB: predicated region body
PF: predicated region fallthrough
CT: control target
= control target key end

     0   :  { %9 = vsyncpa [#allocation3], 0  ;;  %s11888_s0 = inlined_call_operand.hbm [shape: f32[2,32,32,128], index: 0, kind: input, shape index: {}]   ;;  %s11889_s1 = inlined_call_operand.hbm [shape: bf16[1152,128], index: 1, kind: input, shape index: {}]   ;;  %s11890_s2 = inlined_call_operand.vmem [shape: f32[1,128], index: 2, kind: input, shape index: {}]   ;;  %s11891_s3 = inlined_call_operand.vmem [shape: f32[1,128], index: 3, kind: input, shape index: {}]   ;;  %s11892_s4 = inlined_call_operand.hbm [shape: f32[2,32,32,128], index: 4, kind: output, shape index: {}]  }
   0x1   :  { %11 = vsyncpa [#allocation3 + $0x1], 0 }
   0x2   :  { %12 = vsyncpa [#allocation6], 0 }
   0x3   :  { %13 = vsyncpa [#allocation4], 0 }
   0x4   :  { %15 = vsyncpa [#allocation4 + $0x1], 0  ;;  %s7913_s15 = smov 0   ;;  %s7915_s16 = smov 0  }
   0x5   :  { %s7917_s17 = smov 0   ;;  %s7919_s18 = smov 0  }
   0x6 LB: > { %s7934_s19 = sadd.s32 4294967295, %s7874_s18   ;;  %s6240_s20 = sadd.s32 4294967294, %s7874_s18   ;;  %s7874_s18 = sphi %s7919_s18, %s12936_s18   ;;  %s7870_s17 = sphi %s7917_s17, %s12935_s17   ;;  %s7866_s16 = sphi %s7915_s16, %s12934_s16   ;;  %s7862_s15 = sphi %s7913_s15, %s12933_s15  }
   0x7   : > { %p41_p0 = scmp.ne.s32.totalorder %s7866_s16, %s7862_s15  ;;  %p11893_p1 = scmp.eq.s32.totalorder %s7934_s19, 0 }
   0x8   : > { %p134_p3 = scmp.eq.s32.totalorder %s6240_s20, 1  ;;  %p6241_p5 = scmp.ge.s32.totalorder %s7874_s18, 1 }
   0x9   : > { %p7943_p4 = por %p11893_p1, %p41_p0  ;;  %p141_p7 = scmp.lt.s32.totalorder %s7874_s18, 3 }
   0xa   : > { %p7948_p6 = por %p134_p3, %p41_p0  ;;  %s7876_s24 = smov [#allocation5]  }
   0xb   : > { %s12188_s21 = scalar_select %p7943_p4, 1, 0 }
   0xc   : > { %s12189_s22 = scalar_select %p7948_p6, 1, 0 }
   0xd   : > { %p7953_p8 = pnand %p6241_p5, %p141_p7  ;;  %s153_s25 = sshll.u32 %s7876_s24, 4  ;;  %s7957_s25 = int_to_ptr.vmem [resolvable:$true] %s153_s25 }
   0xe   : > { %s7969_s27 = sadd.s32 1, %s7874_s18   ;;  %s28_s28 = sadd.s32 1, %s7870_s17 }
   0xf   : > { %s12190_s23 = scalar_select %p7953_p8, 1, 0 }
  0x10   : > { %p7612_p9 = pneg %p7953_p8  ;;  %s25_s29 = ssub.s32 %s7874_s18, %s7969_s27 }
  0x11   : > { %s7746_s6 = scalar_lea.hbm %s11889_s1, 9216 }
  0x12   : > { %p7964_p11 = pnand %p7612_p9, %p11893_p1  ;;  %p7747_p12 = scmp.ne.s32.totalorder %s11889_s1, %s7746_s6 }
  0x13   : > { %p7753_p5 = scmp.lt.u32.totalorder %s7746_s6, %s11889_s1 }
  0x14   : > { %p7748_p13 = pneg %p7964_p11 }
  0x16   : > { %p7749_p0 = pnand %p7748_p13, %p7747_p12 }
  0x18   : > { %p7750_p3 = pneg %p7749_p0 }
  0x1a   : > { %p7755_p7 = pnand %p7753_p5, %p7750_p3 }
  0x1c   : > { %7758 = shalt.err (!%p7755_p7)
}
  0x1d   : > { %s7759_s11 = scalar_lea.vmem %s7957_s25, 9216  ;;  %p7767_p2 = scmp.lt.s32.totalorder %s7957_s25, %s7957_s25 }
  0x1e   : > { %p7760_p9 = scmp.ne.s32.totalorder %s7957_s25, %s7759_s11  ;;  %p7768_p6 = scmp.lt.s32.totalorder %s7759_s11, %s7759_s11 }
  0x20   : > { %p7762_p10 = pnand %p7760_p9, %p7748_p13  ;;  %p7769_p4 = por %p7768_p6, %p7767_p2 }
  0x22   : > { %p7763_p1 = pneg %p7762_p10 }
  0x24   : > { %p7770_p8 = pnand %p7769_p4, %p7763_p1 }
  0x26   : > { %7773 = shalt.err (!%p7770_p8)
}
  0x27   : > { %s7877_s12 = smov 64   ;;  %s7878_s13 = smov 4  }
  0x28   : > { %7615 = dma.hbm_to_vmem [thread:$0]  (!%p7964_p11), %s11889_s1, 9216, %s7957_s25, [#allocation6], %s7877_s12, %s7877_s12, %s7878_s13  }
  0x29   : > { %p26_p2 = scmp.eq.s32.totalorder %s25_s29, 0  ;;  %p35_p1 = scmp.ne.s32.totalorder %s7870_s17, %s7866_s16 }
  0x2a   : > { %p36_p4 = scmp.eq.s32.totalorder %s7874_s18, 0  ;;  %p7625_p6 = scmp.lt.s32.totalorder %s7874_s18, 2 }
  0x2b   : > { %s8000_s24 = scalar_select %p26_p2, %s7870_s17, %s28_s28  }
  0x2c   : > { %p37_p8 = por %p36_p4, %p35_p1  ;;  %p12192_p10 = scmp.eq.s32.totalorder %s7934_s19, 1 }
  0x2d   : > { %s173_s5 = sand.u32 1, %s7870_s17   ;;  %s6714_s6 = sshll.u32 %s7874_s18, 14 }
  0x2e   : > { %p8004_p12 = por %p12192_p10, %p35_p1  ;;  %s6244_s7 = sshll.u32 %s173_s5, 10 }
  0x2f   : > { %s8013_s9 = scalar_lea.hbm %s11888_s0, %s6714_s6  ;;  %s177_s25 = scalar_lea.vmem [#allocation2], %s6244_s7 }
  0x30   : > { %s184_s28 = sshll.u32 %s177_s25, 4  ;;  %p8015_p11 = pnand %p7625_p6, %p37_p8  ;;  %s8019_s28 = int_to_ptr.vmem [resolvable:$true] %s184_s28 }
  0x31   : > { %s8021_s10 = scalar_lea.sflag [#allocation3], %s173_s5  ;;  %s7774_s11 = scalar_lea.hbm %s8013_s9, 16384 }
  0x32   : > { %p7775_p13 = scmp.ne.s32.totalorder %s8013_s9, %s7774_s11  ;;  %p7776_p0 = pneg %p8015_p11 }
  0x33   : > { %s7779_s14 = scalar_lea.hbm %s11888_s0, 32768  ;;  %p7780_p7 = scmp.lt.u32.totalorder %s8013_s9, %s11888_s0 }
  0x34   : > { %p7777_p3 = pnand %p7776_p0, %p7775_p13  ;;  %p7781_p9 = scmp.lt.u32.totalorder %s7779_s14, %s7774_s11 }
  0x35   : > { %p7783_p1 = scmp.lt.u32.totalorder %s7774_s11, %s8013_s9 }
  0x36   : > { %p7778_p5 = pneg %p7777_p3  ;;  %p7782_p2 = por %p7781_p9, %p7780_p7 }
  0x38   : > { %p7784_p4 = por %p7783_p1, %p7782_p2 }
  0x3a   : > { %p7785_p6 = pnand %p7784_p4, %p7778_p5 }
  0x3c   : > { %7788 = shalt.err (!%p7785_p6)
}
  0x3d   : > { %s7789_s5 = scalar_lea.vmem %s8019_s28, 16384  ;;  %s7879_s7 = smov [#allocation2]  }
  0x3e   : > { %p7790_p8 = scmp.ne.s32.totalorder %s8019_s28, %s7789_s5  ;;  %s7794_s26 = sshll.u32 %s7879_s7, 4  ;;  %s7795_s26 = int_to_ptr.vmem [resolvable:$false] %s7794_s26 }
  0x3f   : > { %s7796_s8 = scalar_lea.vmem %s7795_s26, 32768  ;;  %p7797_p3 = scmp.lt.s32.totalorder %s8019_s28, %s7795_s26 }
  0x40   : > { %p7792_p10 = pnand %p7790_p8, %p7776_p0  ;;  %p7798_p7 = scmp.lt.s32.totalorder %s7796_s8, %s7789_s5 }
  0x42   : > { %p7793_p13 = pneg %p7792_p10  ;;  %p7799_p9 = por %p7798_p7, %p7797_p3 }
  0x44   : > { %p7800_p2 = pnand %p7799_p9, %p7793_p13 }
  0x46   : > { %7803 = shalt.err (!%p7800_p2)
}
  0x47   : > { %s7880_s25 = smov 128   ;;  %s7881_s11 = smov 8  }
  0x48   : > { %7619 = dma.hbm_to_vmem [thread:$0]  (!%p8015_p11), %s8013_s9, 16384, %s8019_s28, %s8021_s10, %s7880_s25, %s7880_s25, %s7881_s11  }
  0x49   : > { %p12195_p0 = scmp.ne.s32.totalorder %s12190_s23, 0 }
  0x4b   : > { %196 = sbr.rel (%p12195_p0) target bundleno = 1540 (0x604), region = 36 }
  0x52   : > { %s8052_s12 = sand.u32 1, %s7866_s16   ;;  %p12196_p5 = scmp.ne.s32.totalorder %s12188_s21, 0 }
  0x53   : > { %s6248_s13 = sshll.u32 %s8052_s12, 10  ;;  %s199_s14 = scalar_lea.sflag [#allocation3], %s8052_s12 }
  0x54   : > { %s8058_s20 = scalar_lea.vmem [#allocation2], %s6248_s13 }
  0x55   : > { %7849 = dma.done.wait (%p12196_p5), %s199_s14, 16384  }
  0x56   : > { %7851 = vsyncadd (%p12196_p5), %s199_s14, 4294950912  ;;  %p12197_p11 = scmp.eq.s32.totalorder %s7934_s19, 0 }
  0x58   : > { %7853 = dma.done.wait (%p12197_p11), [#allocation6], 9216   ;;  %p12198_p1 = pmov %p12197_p11 }
  0x59   : > { %vm489_vm0 = vcmask 1040384   ;;  %v11896_v0 = vmov 0   ;;  %v7883_v1 = vmov 0.0   ;;  %vm1008_vm1 = vcmask 1046528   ;;  %v7670_v12 = vld [vmem:[#allocation5] sm:$0xff]   ;;  %v7672_v18 = vld [vmem:[#allocation5 + $0x8] sm:$0xff]  }
  0x5a   : > { %7855 = vsyncadd (%p12198_p1), [#allocation6], 4294958080  ;;  %2636 = vmatprep.subr.bf16.mxu1 %v11896_v0  ;;  %3181 = vmatprep.subr.bf16.mxu0 %v11896_v0  ;;  %v8070_v2 = vrot.slane %v7883_v1, 7  ;;  %vm1421_vm2 = vcmask 1045504   ;;  %v8092_v16 = vld [vmem:[#allocation5 + $0x80] sm:$0xff]   ;;  %v8099_v19 = vld [vmem:[#allocation5 + $0x88] sm:$0xff]  }
  0x5b   : > { %2637 = vmatpush1.bf16.msra.mxu1 %v7670_v12  ;;  %3182 = vmatpush1.bf16.msra.mxu0 %v8092_v16  ;;  %v7674_v20 = vld [vmem:[#allocation5 + $0x10] sm:$0xff]   ;;  %v7676_v22 = vld [vmem:[#allocation5 + $0x18] sm:$0xff]   ;;  %v7678_v24 = vld [vmem:[#allocation5 + $0x20] sm:$0xff]   ;;  %vm7884_vm4 = vmmov 1   ;;  %s11130_s29 = scalar_lea.vmem [#allocation7], %s6248_s13  ;;  %s6715_s13 = sshll.u32 %s7934_s19, 14 }
  0x5c   : > { %v878_v3 = vsel %vm489_vm0, 0.0, %v8070_v2  ;;  %v1010_v4 = vrot.slane %v8070_v2, 1  ;;  %v8076_v5 = vrot.slane %v8070_v2, 2  ;;  %v8080_v8 = vsel %vm489_vm0, %v8070_v2, 0.0  ;;  %2638 = vmatprep.subr.bf16.mxu1 %v11896_v0  ;;  %3183 = vmatprep.subr.bf16.mxu0 %v11896_v0  ;;  %v8104_v21 = vld [vmem:[#allocation5 + $0x90] sm:$0xff]   ;;  %v8109_v23 = vld [vmem:[#allocation5 + $0x98] sm:$0xff]   ;;  %vm8133_vm3 = vmneg %vm489_vm0  ;;  %s11839_s19 = scalar_lea.hbm %s11892_s4, %s6715_s13 }
  0x5d   : > { %v1009_v6 = vrot.slane %v878_v3, 1  ;;  %v1422_v7 = vrot.slane %v878_v3, 2  ;;  %v1013_v9 = vrot.slane %v8080_v8, 1  ;;  %v8114_v25 = vld [vmem:[#allocation5 + $0xa0] sm:$0xff]   ;;  %v7680_v26 = vld [vmem:[#allocation5 + $0x28] sm:$0xff]   ;;  %v7682_v28 = vld [vmem:[#allocation5 + $0x30] sm:$0xff]   ;;  %v8199_v61 = vpack.c.bf16 %v8070_v2, %v8070_v2 }
  0x5e   : > { %v8119_v27 = vld [vmem:[#allocation5 + $0xa8] sm:$0xff]   ;;  %v8124_v29 = vld [vmem:[#allocation5 + $0xb0] sm:$0xff]   ;;  %v7684_v30 = vld [vmem:[#allocation5 + $0x38] sm:$0xff]   ;;  %s6157_s14 = sshll.u32 %s11130_s29, 4  ;;  %s6144_s23 = scalar_lea.sflag [#allocation4], %s8052_s12  ;;  %s11841_s14 = int_to_ptr.vmem [resolvable:$true] %s6157_s14 }
  0x5f   : > { %v1011_v10 = vsel %vm1008_vm1, %v1009_v6, %v1010_v4  ;;  %v1424_v11 = vsel %vm1421_vm2, %v1422_v7, %v8076_v5  ;;  %v1014_v15 = vsel %vm1008_vm1, %v1010_v4, %v1013_v9  ;;  %2639 = vmatpush1.bf16.msra.mxu1 %v7672_v18  ;;  %3184 = vmatpush1.bf16.msra.mxu0 %v8099_v19  ;;  %v8129_v31 = vld [vmem:[#allocation5 + $0xb8] sm:$0xff]   ;;  %v7686_v33 = vld [vmem:[#allocation5 + $0x40] sm:$0xff]   ;;  %v233_v36 = vld [vmem:[%s8058_s20 + $0x8] sm:$0xff]  ;;  %s7804_s9 = scalar_lea.vmem %s11841_s14, 16384  ;;  %s7885_s28 = smov [#allocation7]  }
  0x60   : > { %v8086_v13 = vpack.c.bf16 %v1010_v4, %v1011_v10  ;;  %v8089_v14 = vpack.c.bf16 %v8076_v5, %v1424_v11  ;;  %v8094_v17 = vpack.c.bf16 %v1014_v15, %v1010_v4  ;;  %2640 = vmatprep.subr.bf16.mxu1 %v11896_v0  ;;  %3185 = vmatprep.subr.bf16.mxu0 %v11896_v0  ;;  %v8139_v34 = vld [vmem:[#allocation5 + $0xc0] sm:$0xff]   ;;  %v493_v38 = vrot.slane %v233_v36, 7  ;;  %v7688_v39 = vld [vmem:[#allocation5 + $0x48] sm:$0xff]   ;;  %vm8153_vm5 = vmpackc.low %vm7884_vm4, %vm8133_vm3  ;;  %p7805_p4 = scmp.ne.s32.totalorder %s11841_s14, %s7804_s9  ;;  %s7808_s10 = sshll.u32 %s7885_s28, 4  ;;  %s7809_s10 = int_to_ptr.vmem [resolvable:$false] %s7808_s10 }
  0x61   : > { %v232_v35 = vld [vmem:[%s8058_s20] sm:$0xff]  ;;  %v8146_v40 = vld [vmem:[#allocation5 + $0xc8] sm:$0xff]   ;;  %v7690_v44 = vld [vmem:[#allocation5 + $0x50] sm:$0xff]   ;;  %12206 = vst [vmem:[#allocation14_spill] sm:$0xff] %v8199_v61  ;;  %v1426_v4 = vrot.slane %v8080_v8, 2  ;;  %s7810_s6 = scalar_lea.vmem %s7809_s10, 32768  ;;  %p7811_p10 = scmp.lt.s32.totalorder %s11841_s14, %s7809_s10 }
  0x62   : > { %12199 = vst [vmem:[#allocation11_spill] sm:$0xff] %v8086_v13  ;;  %12200 = vst [vmem:[#allocation12_spill] sm:$0xff] %v8089_v14  ;;  %2668 = vmatprep.mubr.bf16.mxu1 %v8086_v13  ;;  %v492_v37 = vrot.slane %v232_v35, 7  ;;  %v8166_v45 = vld [vmem:[#allocation5 + $0xd0] sm:$0xff]   ;;  %v7692_v46 = vld [vmem:[#allocation5 + $0x58] sm:$0xff]   ;;  %p7806_p6 = pnand %p7805_p4, %p8004_p12  ;;  %p7812_p13 = scmp.lt.s32.totalorder %s7810_s6, %s7804_s9 }
  0x63   : > { %12201 = vst [vmem:[#allocation13_spill] sm:$0xff] %v8094_v17  ;;  %2641 = vmatpush1.bf16.msra.mxu1 %v7674_v20  ;;  %3186 = vmatpush1.bf16.msra.mxu0 %v8104_v21  ;;  %v8171_v47 = vld [vmem:[#allocation5 + $0xd8] sm:$0xff]   ;;  %v7694_v48 = vld [vmem:[#allocation5 + $0x60] sm:$0xff]   ;;  %v7696_v50 = vld [vmem:[#allocation5 + $0x68] sm:$0xff]   ;;  %v1427_v12 = vsel %vm1421_vm2, %v8076_v5, %v1426_v4 }
  0x64   : > { %2642 = vmatprep.subr.bf16.mxu1 %v11896_v0  ;;  %3187 = vmatprep.subr.bf16.mxu0 %v11896_v0  ;;  %v8149_v41 = vsel %vm489_vm0, %v492_v37, %v493_v38  ;;  %v8176_v49 = vld [vmem:[#allocation5 + $0xe0] sm:$0xff]   ;;  %v8181_v51 = vld [vmem:[#allocation5 + $0xe8] sm:$0xff]   ;;  %v7698_v52 = vld [vmem:[#allocation5 + $0x70] sm:$0xff]   ;;  %v879_v60 = vsel %vm489_vm0, 0.0, %v492_v37  ;;  %v8241_v32 = vpack.c.bf16 %v1427_v12, %v8076_v5  ;;  %p7807_p8 = pneg %p7806_p6  ;;  %p7813_p3 = por %p7812_p13, %p7811_p10 }
  0x65   : > { %v8159_v43 = vpack.c.bf16 %v8149_v41, %v492_v37  ;;  %v234_v53 = vld [vmem:[%s8058_s20 + $0x10] sm:$0xff]  ;;  %v235_v54 = vld [vmem:[%s8058_s20 + $0x18] sm:$0xff]  ;;  %v236_v1 = vld [vmem:[%s8058_s20 + $0x20] sm:$0xff]  ;;  %v1016_v6 = vrot.slane %v8149_v41, 1  ;;  %v1015_v9 = vrot.slane %v879_v60, 1  ;;  %v1428_v37 = vrot.slane %v879_v60, 2 }
  0x66   : > { %v8188_v55 = vld [vmem:[#allocation5 + $0xf0] sm:$0xff]   ;;  %v495_v56 = vrot.slane %v234_v53, 7  ;;  %v497_v57 = vrot.slane %v235_v54, 7  ;;  %v7700_v58 = vld [vmem:[#allocation5 + $0x78] sm:$0xff]   ;;  %v237_v3 = vld [vmem:[%s8058_s20 + $0x28] sm:$0xff]  ;;  %v499_v11 = vrot.slane %v236_v1, 7  ;;  %p7814_p7 = pnand %p7813_p3, %p7807_p8 }
  0x67   : > { %2643 = vmatpush1.bf16.msra.mxu1 %v7676_v22  ;;  %3188 = vmatpush1.bf16.msra.mxu0 %v8109_v23  ;;  %v8193_v59 = vld [vmem:[#allocation5 + $0xf8] sm:$0xff]   ;;  %v7702_v7 = vld [vmem:[#allocation5 + $0x100] sm:$0xff]   ;;  %v500_v8 = vrot.slane %v237_v3, 7  ;;  %v7703_v15 = vld [vmem:[#allocation5 + $0x108] sm:$0xff]   ;;  %v1017_v18 = vsel %vm1008_vm1, %v1015_v9, %v1016_v6  ;;  %12207 = vst [vmem:[#allocation15_spill] sm:$0xff] %v8241_v32 }
  0x68   : > { %2644 = vmatprep.subr.bf16.mxu1 %v11896_v0  ;;  %3189 = vmatprep.subr.bf16.mxu0 %v11896_v0  ;;  %v8202_v62 = vsel %vm489_vm0, %v493_v38, %v495_v56  ;;  %v8205_v63 = vsel %vm489_vm0, %v495_v56, %v497_v57  ;;  %v7704_v38 = vld [vmem:[#allocation5 + $0x110] sm:$0xff]   ;;  %v880_v54 = vsel %vm489_vm0, 0.0, %v499_v11  ;;  %v240_v56 = vld [vmem:[%s8058_s20 + $0x40] sm:$0xff] }
  0x69   : > { %6454 = vmatprep.mubr.msk.bf16.mxu0 %vm8153_vm5, %v8159_v43  ;;  %v1018_v2 = vrot.slane %v8202_v62, 1  ;;  %v8217_v10 = vpack.c.bf16 %v8205_v63, %v8202_v62  ;;  %v8232_v22 = vsel %vm489_vm0, %v499_v11, %v500_v8  ;;  %v1020_v35 = vrot.slane %v8205_v63, 1  ;;  %v266_v13 = vld [vmem:[%s8058_s20 + $0x110] sm:$0xff] }
  0x6a   : > { %v8248_v36 = vpack.c.bf16 %v8232_v22, %v499_v11 }
  0x6b   : > { %2645 = vmatpush1.bf16.msra.mxu1 %v7678_v24  ;;  %3190 = vmatpush1.bf16.msra.mxu0 %v8114_v25  ;;  %v1019_v20 = vsel %vm1008_vm1, %v1016_v6, %v1018_v2  ;;  %v238_v24 = vld [vmem:[%s8058_s20 + $0x30] sm:$0xff]  ;;  %v1024_v6 = vrot.slane %v880_v54, 1 }
  0x6c   : > { %2646 = vmatprep.subr.bf16.mxu1 %v11896_v0  ;;  %3191 = vmatprep.subr.bf16.mxu0 %v11896_v0  ;;  %12208 = vst [vmem:[#allocation16_spill] sm:$0xff] %v8248_v36 }
  0x6f   : > { %2647 = vmatpush1.bf16.msra.mxu1 %v7680_v26  ;;  %3192 = vmatpush1.bf16.msra.mxu0 %v8119_v27  ;;  %v239_v26 = vld [vmem:[%s8058_s20 + $0x38] sm:$0xff] }
  0x70   : > { %2648 = vmatprep.subr.bf16.mxu1 %v11896_v0  ;;  %3193 = vmatprep.subr.bf16.mxu0 %v11896_v0  ;;  %v504_v5 = vrot.slane %v239_v26, 7 }
  0x72   : > { %v913_v12 = vsel %vm489_vm0, %v504_v5, 0.0 }
  0x73   : > { %2649 = vmatpush1.bf16.msra.mxu1 %v7682_v28  ;;  %3194 = vmatpush1.bf16.msra.mxu0 %v8124_v29  ;;  %v1429_v28 = vrot.slane %v8149_v41, 2  ;;  %v502_v41 = vrot.slane %v238_v24, 7 }
  0x74   : > { %2650 = vmatprep.subr.bf16.mxu1 %v11896_v0  ;;  %3195 = vmatprep.subr.bf16.mxu0 %v11896_v0 }
  0x75   : > { %v8266_v53 = vsel %vm489_vm0, %v502_v41, %v504_v5 }
  0x77   : > { %2651 = vmatpush1.bf16.msra.mxu1 %v7684_v30  ;;  %3196 = vmatpush1.bf16.msra.mxu0 %v8129_v31  ;;  %v1431_v30 = vrot.slane %v8202_v62, 2 }
  0x78   : > { %2652 = vmatprep.subr.bf16.mxu1 %v11896_v0  ;;  %3197 = vmatprep.subr.bf16.mxu0 %v11896_v0 }
  0x7b   : > { %2653 = vmatpush1.bf16.msra.mxu1 %v7686_v33  ;;  %3198 = vmatpush1.bf16.msra.mxu0 %v8139_v34  ;;  %v8243_v33 = vpack.c.bf16 %v1019_v20, %v1017_v18  ;;  %v242_v18 = vld [vmem:[%s8058_s20 + $0x50] sm:$0xff]  ;;  %v243_v20 = vld [vmem:[%s8058_s20 + $0x58] sm:$0xff] }
  0x7c   : > { %2654 = vmatprep.subr.bf16.mxu1 %v11896_v0  ;;  %3199 = vmatprep.subr.bf16.mxu0 %v11896_v0 }
  0x7f   : > { %2655 = vmatpush1.bf16.msra.mxu1 %v7688_v39  ;;  %3200 = vmatpush1.bf16.msra.mxu0 %v8146_v40 }
  0x80   : > { %2656 = vmatprep.subr.bf16.mxu1 %v11896_v0  ;;  %3201 = vmatprep.subr.bf16.mxu0 %v11896_v0 }
  0x83   : > { %2657 = vmatpush1.bf16.msra.mxu1 %v7690_v44  ;;  %3202 = vmatpush1.bf16.msra.mxu0 %v8166_v45  ;;  %v1430_v44 = vsel %vm1421_vm2, %v1428_v37, %v1429_v28  ;;  %v1438_v37 = vrot.slane %v8232_v22, 2 }
  0x84   : > { %2658 = vmatprep.subr.bf16.mxu1 %v11896_v0  ;;  %3203 = vmatprep.subr.bf16.mxu0 %v11896_v0 }
  0x87   : > { %2659 = vmatpush1.bf16.msra.mxu1 %v7692_v46  ;;  %3204 = vmatpush1.bf16.msra.mxu0 %v8171_v47  ;;  %v1021_v46 = vsel %vm1008_vm1, %v1018_v2, %v1020_v35  ;;  %v506_v2 = vrot.slane %v240_v56, 7  ;;  %v1442_v56 = vrot.slane %v8266_v53, 2 }
  0x88   : > { %2660 = vmatprep.subr.bf16.mxu1 %v11896_v0  ;;  %3205 = vmatprep.subr.bf16.mxu0 %v11896_v0 }
  0x8b   : > { %2661 = vmatpush1.bf16.msra.mxu1 %v7694_v48  ;;  %3206 = vmatpush1.bf16.msra.mxu0 %v8176_v49 }
  0x8c   : > { %2662 = vmatprep.subr.bf16.mxu1 %v11896_v0  ;;  %3207 = vmatprep.subr.bf16.mxu0 %v11896_v0 }
  0x8f   : > { %2663 = vmatpush1.bf16.msra.mxu1 %v7696_v50  ;;  %3208 = vmatpush1.bf16.msra.mxu0 %v8181_v51  ;;  %v7705_v50 = vld [vmem:[#allocation5 + $0x118] sm:$0xff]  }
  0x90   : > { %2664 = vmatprep.subr.bf16.mxu1 %v11896_v0  ;;  %3209 = vmatprep.subr.bf16.mxu0 %v11896_v0 }
  0x93   : > { %2665 = vmatpush1.bf16.msra.mxu1 %v7698_v52  ;;  %3210 = vmatpush1.bf16.msra.mxu0 %v8188_v55  ;;  %v8263_v52 = vsel %vm489_vm0, %v500_v8, %v502_v41  ;;  %v511_v41 = vrot.slane %v243_v20, 7 }
  0x94   : > { %2666 = vmatprep.subr.bf16.mxu1 %v11896_v0  ;;  %3211 = vmatprep.subr.bf16.mxu0 %v11896_v0  ;;  %v1027_v3 = vrot.slane %v8263_v52, 1  ;;  %v8282_v4 = vpack.c.bf16 %v8266_v53, %v8263_v52  ;;  %v1440_v24 = vrot.slane %v8263_v52, 2  ;;  %v244_v52 = vld [vmem:[%s8058_s20 + $0x60] sm:$0xff] }
  0x96   : > { %12209 = vst [vmem:[#allocation17_spill] sm:$0xff] %v8282_v4 }
  0x97   : > { %2667 = vmatpush1.bf16.msra.mxu1 %v7700_v58  ;;  %3212 = vmatpush1.bf16.msra.mxu0 %v8193_v59  ;;  %v1433_v58 = vrot.slane %v8205_v63, 2 }
  0x98   : > { %6932 = vmatprep.subr.bf16.mxu1 %v11896_v0  ;;  %3726 = vmatprep.subr.bf16.mxu0 %v11896_v0 }
  0x99   : > { %v1434_v63 = vsel %vm1421_vm2, %v1431_v30, %v1433_v58 }
  0x9a   : > { %6326 = vmatmul.mubr.msk.bf16.vlgmr.msra.gmra.mrb[0].mxu1 %vm8153_vm5, %v8199_v61  ;;  %3214 = vmatmul.mubr.bf16.vlgmr.msra.gmra.mrb[0].mxu0 %v8089_v14 }
  0x9b   : > { %6948 = vmatpush1.bf16.msra.mxu1 %v8092_v16  ;;  %3727 = vmatpush1.bf16.msra.mxu0 %v7702_v7  ;;  %v912_v16 = vsel %vm489_vm0, %v497_v57, 0.0  ;;  %v241_v57 = vld [vmem:[%s8058_s20 + $0x48] sm:$0xff]  ;;  %v7706_v7 = vld [vmem:[#allocation5 + $0x120] sm:$0xff]  }
  0x9c   : > { %2676 = vmatprep.mubr.bf16.mxu1 %v8094_v17  ;;  %3221 = vmatprep.mubr.bf16.mxu0 %v8217_v10  ;;  %v1022_v39 = vrot.slane %v912_v16, 1  ;;  %v1435_v1 = vrot.slane %v912_v16, 2  ;;  %v507_v9 = vrot.slane %v241_v57, 7  ;;  %v1029_v16 = vrot.slane %v8266_v53, 1 }
  0x9d   : > { %3728 = vmatprep.subr.bf16.mxu0 %v11896_v0  ;;  %6933 = vmatprep.subr.bf16.mxu1 %v11896_v0  ;;  %v1443_v53 = vsel %vm1421_vm2, %v1440_v24, %v1442_v56 }
  0x9e   : > { %v1023_v48 = vsel %vm1008_vm1, %v1020_v35, %v1022_v39  ;;  %v1436_v11 = vsel %vm1421_vm2, %v1433_v58, %v1435_v1  ;;  %v1437_v35 = vrot.slane %v880_v54, 2  ;;  %v7708_v39 = vld [vmem:[#allocation5 + $0x130] sm:$0xff]   ;;  %v1030_v5 = vsel %vm1008_vm1, %v1027_v3, %v1029_v16  ;;  %v245_v54 = vld [vmem:[%s8058_s20 + $0x68] sm:$0xff] }
  0x9f   : > { %6949 = vmatpush1.bf16.msra.mxu1 %v8099_v19  ;;  %3729 = vmatpush1.bf16.msra.mxu0 %v7703_v15  ;;  %v1432_v19 = vsel %vm1421_vm2, %v1429_v28, %v1431_v30  ;;  %v8277_v62 = vpack.c.bf16 %v1023_v48, %v1021_v46  ;;  %v8300_v15 = vsel %vm489_vm0, %v506_v2, %v507_v9  ;;  %v7709_v46 = vld [vmem:[#allocation5 + $0x138] sm:$0xff]   ;;  %v1444_v1 = vrot.slane %v913_v12, 2 }
  0xa0   : > { %6934 = vmatprep.subr.bf16.mxu1 %v11896_v0  ;;  %3730 = vmatprep.subr.bf16.mxu0 %v11896_v0  ;;  %v8275_v60 = vpack.c.bf16 %v1432_v19, %v1430_v44  ;;  %v8308_v26 = vpack.c.bf16 %v1436_v11, %v1434_v63  ;;  %v8314_v30 = vpack.c.bf16 %v8300_v15, %v506_v2 }
  0xa1   : > { %v1441_v19 = vsel %vm1421_vm2, %v1438_v37, %v1440_v24  ;;  %v1445_v63 = vsel %vm1421_vm2, %v1442_v56, %v1444_v1 }
  0xa2   : > { %2677 = vmatmul.mubr.bf16.gmra.mrb[4].mxu1 %v8199_v61  ;;  %3222 = vmatmul.mubr.bf16.gmra.mrb[4].mxu0 %v8241_v32  ;;  %12211 = vst [vmem:[#allocation19_spill] sm:$0xff] %v8314_v30  ;;  %v8375_v24 = vpack.c.bf16 %v1445_v63, %v1443_v53  ;;  %v265_v61 = vld [vmem:[%s8058_s20 + $0x108] sm:$0xff] }
  0xa3   : > { %2684 = vmatprep.mubr.bf16.mxu1 %v8243_v33  ;;  %6458 = vmatprep.mubr.msk.bf16.mxu0 %vm8153_vm5, %v8248_v36 }
  0xa4   : > { %3731 = vmatpush1.bf16.msra.mxu0 %v7704_v38  ;;  %6950 = vmatpush1.bf16.msra.mxu1 %v8104_v21  ;;  %v1025_v21 = vrot.slane %v8232_v22, 1  ;;  %v1031_v38 = vrot.slane %v913_v12, 1  ;;  %v1439_v22 = vsel %vm1421_vm2, %v1437_v35, %v1438_v37  ;;  %v914_v12 = vsel %vm489_vm0, %v511_v41, 0.0  ;;  %12215 = vst [vmem:[#allocation23_spill] sm:$0xff] %v8375_v24 }
  0xa5   : > { %3732 = vmatprep.subr.bf16.mxu0 %v11896_v0  ;;  %6935 = vmatprep.subr.bf16.mxu1 %v11896_v0  ;;  %v8341_v57 = vpack.c.bf16 %v1441_v19, %v1439_v22 }
  0xa6   : > { %v1026_v8 = vsel %vm1008_vm1, %v1024_v6, %v1025_v21  ;;  %v1032_v44 = vsel %vm1008_vm1, %v1029_v16, %v1031_v38 }
  0xa7   : > { %12212 = vst [vmem:[#allocation20_spill] sm:$0xff] %v8341_v57  ;;  %v8343_v58 = vpack.c.bf16 %v1032_v44, %v1030_v5  ;;  %v7713_v44 = vld [vmem:[#allocation5 + $0x158] sm:$0xff]  }
  0xa8   : > { %3733 = vmatpush1.bf16.msra.mxu0 %v7705_v50  ;;  %6951 = vmatpush1.bf16.msra.mxu1 %v8109_v23  ;;  %v1028_v23 = vsel %vm1008_vm1, %v1025_v21, %v1027_v3  ;;  %v881_v50 = vsel %vm489_vm0, 0.0, %v506_v2  ;;  %v513_v2 = vrot.slane %v244_v52, 7  ;;  %v248_v52 = vld [vmem:[%s8058_s20 + $0x80] sm:$0xff] }
  0xa9   : > { %3734 = vmatprep.subr.bf16.mxu0 %v11896_v0  ;;  %6936 = vmatprep.subr.bf16.mxu1 %v11896_v0  ;;  %v8310_v28 = vpack.c.bf16 %v1028_v23, %v1026_v8  ;;  %12213 = vst [vmem:[#allocation21_spill] sm:$0xff] %v8343_v58  ;;  %v1033_v21 = vrot.slane %v881_v50, 1  ;;  %v7711_v8 = vld [vmem:[#allocation5 + $0x148] sm:$0xff]   ;;  %v1446_v38 = vrot.slane %v881_v50, 2  ;;  %v520_v53 = vrot.slane %v248_v52, 7 }
  0xaa   : > { %6330 = vmatmul.mubr.msk.bf16.gmra.mrb[8].mxu1 %vm8153_vm5, %v8159_v43  ;;  %3230 = vmatmul.mubr.bf16.gmra.mrb[8].mxu0 %v8275_v60  ;;  %v7707_v43 = vld [vmem:[#allocation5 + $0x128] sm:$0xff]   ;;  %v882_v50 = vsel %vm489_vm0, 0.0, %v513_v2 }
  0xab   : > { %2692 = vmatprep.mubr.bf16.mxu1 %v8277_v62  ;;  %3237 = vmatprep.mubr.bf16.mxu0 %v8282_v4  ;;  %12210 = vst [vmem:[#allocation18_spill] sm:$0xff] %v8310_v28 }
  0xac   : > { %3735 = vmatpush1.bf16.msra.mxu0 %v7706_v7  ;;  %6952 = vmatpush1.bf16.msra.mxu1 %v8114_v25  ;;  %v509_v25 = vrot.slane %v242_v18, 7  ;;  %v7710_v7 = vld [vmem:[#allocation5 + $0x140] sm:$0xff]   ;;  %v247_v18 = vld [vmem:[%s8058_s20 + $0x78] sm:$0xff] }
  0xad   : > { %3736 = vmatprep.subr.bf16.mxu0 %v11896_v0  ;;  %6937 = vmatprep.subr.bf16.mxu1 %v11896_v0  ;;  %v518_v5 = vrot.slane %v247_v18, 7  ;;  %v250_v18 = vld [vmem:[%s8058_s20 + $0x90] sm:$0xff] }
  0xae   : > { %v8332_v48 = vsel %vm489_vm0, %v509_v25, %v511_v41 }
  0xaf   : > { %v1038_v20 = vrot.slane %v8332_v48, 1  ;;  %v1451_v56 = vrot.slane %v8332_v48, 2 }
  0xb0   : > { %3737 = vmatpush1.bf16.msra.mxu0 %v7707_v43  ;;  %6953 = vmatpush1.bf16.msra.mxu1 %v8119_v27  ;;  %v1034_v27 = vrot.slane %v8300_v15, 1  ;;  %v246_v43 = vld [vmem:[%s8058_s20 + $0x70] sm:$0xff] }
  0xb1   : > { %3738 = vmatprep.subr.bf16.mxu0 %v11896_v0  ;;  %6938 = vmatprep.subr.bf16.mxu1 %v11896_v0  ;;  %v516_v41 = vrot.slane %v246_v43, 7  ;;  %v915_v43 = vsel %vm489_vm0, %v518_v5, 0.0 }
  0xb2   : > { %2693 = vmatmul.mubr.bf16.gmra.mrb[12].mxu1 %v8217_v10  ;;  %3238 = vmatmul.mubr.bf16.gmra.mrb[12].mxu0 %v8308_v26  ;;  %v8329_v10 = vsel %vm489_vm0, %v507_v9, %v509_v25  ;;  %v514_v9 = vrot.slane %v245_v54, 7  ;;  %v1040_v25 = vrot.slane %v914_v12, 1  ;;  %v249_v54 = vld [vmem:[%s8058_s20 + $0x88] sm:$0xff] }
  0xb3   : > { %2700 = vmatprep.mubr.bf16.mxu1 %v8310_v28  ;;  %6462 = vmatprep.mubr.msk.bf16.mxu0 %vm8153_vm5, %v8314_v30  ;;  %v1036_v3 = vrot.slane %v8329_v10, 1  ;;  %v8348_v6 = vpack.c.bf16 %v8332_v48, %v8329_v10  ;;  %v1449_v16 = vrot.slane %v8329_v10, 2  ;;  %v8400_v10 = vsel %vm489_vm0, %v516_v41, %v518_v5 }
  0xb4   : > { %3739 = vmatpush1.bf16.msra.mxu0 %v7708_v39  ;;  %6954 = vmatpush1.bf16.msra.mxu1 %v8124_v29  ;;  %v1035_v29 = vsel %vm1008_vm1, %v1033_v21, %v1034_v27  ;;  %v8365_v23 = vsel %vm489_vm0, %v513_v2, %v514_v9  ;;  %v1447_v39 = vrot.slane %v8300_v15, 2  ;;  %v1041_v19 = vsel %vm1008_vm1, %v1038_v20, %v1040_v25 }
  0xb5   : > { %3740 = vmatprep.subr.bf16.mxu0 %v11896_v0  ;;  %12214 = vst [vmem:[#allocation22_spill] sm:$0xff] %v8348_v6  ;;  %6939 = vmatprep.subr.bf16.mxu1 %v11896_v0  ;;  %v1037_v11 = vsel %vm1008_vm1, %v1034_v27, %v1036_v3  ;;  %v8380_v37 = vpack.c.bf16 %v8365_v23, %v513_v2  ;;  %v1453_v21 = vrot.slane %v914_v12, 2  ;;  %v1042_v2 = vrot.slane %v882_v50, 1 }
  0xb6   : > { %v8377_v35 = vpack.c.bf16 %v1037_v11, %v1035_v29  ;;  %v1039_v15 = vsel %vm1008_vm1, %v1036_v3, %v1038_v20  ;;  %v1448_v22 = vsel %vm1421_vm2, %v1446_v38, %v1447_v39  ;;  %v521_v63 = vrot.slane %v249_v54, 7  ;;  %v251_v20 = vld [vmem:[%s8058_s20 + $0x98] sm:$0xff] }
  0xb7   : > { %12217 = vst [vmem:[#allocation25_spill] sm:$0xff] %v8380_v37  ;;  %v8411_v3 = vpack.c.bf16 %v1041_v19, %v1039_v15  ;;  %v1452_v48 = vsel %vm1421_vm2, %v1449_v16, %v1451_v56  ;;  %v1454_v29 = vsel %vm1421_vm2, %v1451_v56, %v1453_v21  ;;  %v1456_v5 = vrot.slane %v8365_v23, 2  ;;  %v252_v56 = vld [vmem:[%s8058_s20 + $0xa0] sm:$0xff]  ;;  %v253_v21 = vld [vmem:[%s8058_s20 + $0xa8] sm:$0xff] }
  0xb8   : > { %3741 = vmatpush1.bf16.msra.mxu0 %v7709_v46  ;;  %6955 = vmatpush1.bf16.msra.mxu1 %v8129_v31  ;;  %12216 = vst [vmem:[#allocation24_spill] sm:$0xff] %v8377_v35  ;;  %v7712_v31 = vld [vmem:[#allocation5 + $0x150] sm:$0xff]   ;;  %v8397_v46 = vsel %vm489_vm0, %v514_v9, %v516_v41  ;;  %v7714_v9 = vld [vmem:[#allocation5 + $0x160] sm:$0xff]   ;;  %v8433_v12 = vsel %vm489_vm0, %v520_v53, %v521_v63  ;;  %v1455_v41 = vrot.slane %v882_v50, 2  ;;  %v1049_v15 = vrot.slane %v915_v43, 1 }
  0xb9   : > { %3742 = vmatprep.subr.bf16.mxu0 %v11896_v0  ;;  %6940 = vmatprep.subr.bf16.mxu1 %v11896_v0  ;;  %12219 = vst [vmem:[#allocation27_spill] sm:$0xff] %v8411_v3  ;;  %v1045_v27 = vrot.slane %v8397_v46, 1  ;;  %v1458_v38 = vrot.slane %v8397_v46, 2  ;;  %v883_v54 = vsel %vm489_vm0, 0.0, %v520_v53 }
  0xba   : > { %6334 = vmatmul.mubr.msk.bf16.gmra.mrb[16].mxu1 %vm8153_vm5, %v8248_v36  ;;  %3246 = vmatmul.mubr.bf16.gmra.mrb[16].mxu0 %v8341_v57  ;;  %v1457_v19 = vsel %vm1421_vm2, %v1455_v41, %v1456_v5 }
  0xbb   : > { %2708 = vmatprep.mubr.bf16.mxu1 %v8343_v58  ;;  %3253 = vmatprep.mubr.bf16.mxu0 %v8348_v6 }
  0xbc   : > { %3743 = vmatpush1.bf16.msra.mxu0 %v7710_v7  ;;  %6956 = vmatpush1.bf16.msra.mxu1 %v8139_v34  ;;  %v1450_v34 = vsel %vm1421_vm2, %v1447_v39, %v1449_v16  ;;  %v8416_v7 = vpack.c.bf16 %v8400_v10, %v8397_v46  ;;  %v1047_v16 = vrot.slane %v8400_v10, 1  ;;  %v8443_v39 = vpack.c.bf16 %v1454_v29, %v1452_v48  ;;  %v7717_v46 = vld [vmem:[#allocation5 + $0x178] sm:$0xff]  }
  0xbd   : > { %3744 = vmatprep.subr.bf16.mxu0 %v11896_v0  ;;  %6941 = vmatprep.subr.bf16.mxu1 %v11896_v0  ;;  %v8409_v1 = vpack.c.bf16 %v1450_v34, %v1448_v22  ;;  %v523_v22 = vrot.slane %v250_v18, 7  ;;  %v525_v34 = vrot.slane %v251_v20, 7  ;;  %v1051_v48 = vrot.slane %v883_v54, 1  ;;  %v254_v20 = vld [vmem:[%s8058_s20 + $0xb0] sm:$0xff] }
  0xbe   : > { %12220 = vst [vmem:[#allocation28_spill] sm:$0xff] %v8416_v7  ;;  %12221 = vst [vmem:[#allocation29_spill] sm:$0xff] %v8443_v39  ;;  %v527_v29 = vrot.slane %v252_v56, 7 }
  0xbf   : > { %12218 = vst [vmem:[#allocation26_spill] sm:$0xff] %v8409_v1  ;;  %v8465_v50 = vsel %vm489_vm0, %v521_v63, %v523_v22  ;;  %v8468_v52 = vsel %vm489_vm0, %v523_v22, %v525_v34  ;;  %v916_v18 = vsel %vm489_vm0, %v525_v34, 0.0  ;;  %v1464_v22 = vrot.slane %v883_v54, 2 }
  0xc0   : > { %3745 = vmatpush1.bf16.msra.mxu0 %v7711_v8  ;;  %6957 = vmatpush1.bf16.msra.mxu1 %v8146_v40  ;;  %v1043_v40 = vrot.slane %v8365_v23, 1  ;;  %v7715_v8 = vld [vmem:[#allocation5 + $0x168] sm:$0xff]   ;;  %v1048_v23 = vsel %vm1008_vm1, %v1045_v27, %v1047_v16  ;;  %v1054_v63 = vrot.slane %v8465_v50, 1  ;;  %v1056_v41 = vrot.slane %v8468_v52, 1 }
  0xc1   : > { %3746 = vmatprep.subr.bf16.mxu0 %v11896_v0  ;;  %6942 = vmatprep.subr.bf16.mxu1 %v11896_v0  ;;  %v1058_v34 = vrot.slane %v916_v18, 1  ;;  %v884_v56 = vsel %vm489_vm0, 0.0, %v527_v29 }
  0xc2   : > { %2709 = vmatmul.mubr.bf16.gmra.mrb[20].mxu1 %v8282_v4  ;;  %3254 = vmatmul.mubr.bf16.gmra.mrb[20].mxu0 %v8375_v24  ;;  %v1046_v11 = vsel %vm1008_vm1, %v1043_v40, %v1045_v27  ;;  %v1460_v27 = vrot.slane %v8400_v10, 2  ;;  %v278_v4 = vld [vmem:[%s8058_s20 + $0x170] sm:$0xff] }
  0xc3   : > { %2716 = vmatprep.mubr.bf16.mxu1 %v8377_v35  ;;  %6466 = vmatprep.mubr.msk.bf16.mxu0 %vm8153_vm5, %v8380_v37 }
  0xc4   : > { %3747 = vmatpush1.bf16.msra.mxu0 %v7712_v31  ;;  %6958 = vmatpush1.bf16.msra.mxu1 %v8166_v45  ;;  %v1044_v45 = vsel %vm1008_vm1, %v1042_v2, %v1043_v40  ;;  %v8448_v31 = vpack.c.bf16 %v8433_v12, %v520_v53  ;;  %v8484_v53 = vpack.c.bf16 %v8468_v52, %v8465_v50 }
  0xc5   : > { %3748 = vmatprep.subr.bf16.mxu0 %v11896_v0  ;;  %6943 = vmatprep.subr.bf16.mxu1 %v11896_v0  ;;  %v8445_v25 = vpack.c.bf16 %v1046_v11, %v1044_v45  ;;  %v528_v45 = vrot.slane %v253_v21, 7  ;;  %v1461_v10 = vsel %vm1421_vm2, %v1458_v38, %v1460_v27  ;;  %v256_v21 = vld [vmem:[%s8058_s20 + $0xc0] sm:$0xff] }
  0xc6   : > { %12223 = vst [vmem:[#allocation31_spill] sm:$0xff] %v8448_v31  ;;  %12226 = vst [vmem:[#allocation34_spill] sm:$0xff] %v8484_v53 }
  0xc7   : > { %12222 = vst [vmem:[#allocation30_spill] sm:$0xff] %v8445_v25 }
  0xc8   : > { %3749 = vmatpush1.bf16.msra.mxu0 %v7713_v44  ;;  %6959 = vmatpush1.bf16.msra.mxu1 %v8171_v47  ;;  %v7716_v47 = vld [vmem:[#allocation5 + $0x170] sm:$0xff]   ;;  %v1050_v44 = vsel %vm1008_vm1, %v1047_v16, %v1049_v15  ;;  %v255_v16 = vld [vmem:[%s8058_s20 + $0xb8] sm:$0xff] }
  0xc9   : > { %3750 = vmatprep.subr.bf16.mxu0 %v11896_v0  ;;  %6944 = vmatprep.subr.bf16.mxu1 %v11896_v0  ;;  %v8479_v40 = vpack.c.bf16 %v1050_v44, %v1048_v23  ;;  %v1465_v23 = vrot.slane %v8433_v12, 2 }
  0xca   : > { %6338 = vmatmul.mubr.msk.bf16.gmra.mrb[24].mxu1 %vm8153_vm5, %v8314_v30  ;;  %3262 = vmatmul.mubr.bf16.gmra.mrb[24].mxu0 %v8409_v1  ;;  %v276_v30 = vld [vmem:[%s8058_s20 + $0x160] sm:$0xff] }
  0xcb   : > { %2724 = vmatprep.mubr.bf16.mxu1 %v8411_v3  ;;  %3269 = vmatprep.mubr.bf16.mxu0 %v8416_v7  ;;  %12225 = vst [vmem:[#allocation33_spill] sm:$0xff] %v8479_v40 }
  0xcc   : > { %3751 = vmatpush1.bf16.msra.mxu0 %v7714_v9  ;;  %6960 = vmatpush1.bf16.msra.mxu1 %v8176_v49  ;;  %v1459_v49 = vsel %vm1421_vm2, %v1456_v5, %v1458_v38  ;;  %v1462_v9 = vrot.slane %v915_v43, 2  ;;  %v8501_v43 = vsel %vm489_vm0, %v527_v29, %v528_v45  ;;  %v1467_v5 = vrot.slane %v8465_v50, 2 }
  0xcd   : > { %3752 = vmatprep.subr.bf16.mxu0 %v11896_v0  ;;  %6945 = vmatprep.subr.bf16.mxu1 %v11896_v0  ;;  %v8477_v2 = vpack.c.bf16 %v1459_v49, %v1457_v19  ;;  %v532_v19 = vrot.slane %v255_v16, 7  ;;  %v1466_v49 = vsel %vm1421_vm2, %v1464_v22, %v1465_v23 }
  0xce   : > { %v1463_v11 = vsel %vm1421_vm2, %v1460_v27, %v1462_v9  ;;  %v1468_v44 = vsel %vm1421_vm2, %v1465_v23, %v1467_v5  ;;  %v257_v27 = vld [vmem:[%s8058_s20 + $0xc8] sm:$0xff]  ;;  %v1469_v9 = vrot.slane %v8468_v52, 2  ;;  %v258_v23 = vld [vmem:[%s8058_s20 + $0xd0] sm:$0xff] }
  0xcf   : > { %12224 = vst [vmem:[#allocation32_spill] sm:$0xff] %v8477_v2  ;;  %v8509_v38 = vpack.c.bf16 %v1463_v11, %v1461_v10  ;;  %v1471_v10 = vrot.slane %v916_v18, 2  ;;  %v1060_v11 = vrot.slane %v884_v56, 1  ;;  %v917_v22 = vsel %vm489_vm0, %v532_v19, 0.0 }
  0xd0   : > { %3753 = vmatpush1.bf16.msra.mxu0 %v7715_v8  ;;  %6961 = vmatpush1.bf16.msra.mxu1 %v8181_v51  ;;  %v1052_v51 = vrot.slane %v8433_v12, 1  ;;  %v1057_v12 = vsel %vm1008_vm1, %v1054_v63, %v1056_v41  ;;  %v1470_v52 = vsel %vm1421_vm2, %v1467_v5, %v1469_v9 }
  0xd1   : > { %3754 = vmatprep.subr.bf16.mxu0 %v11896_v0  ;;  %6946 = vmatprep.subr.bf16.mxu1 %v11896_v0  ;;  %12227 = vst [vmem:[#allocation35_spill] sm:$0xff] %v8509_v38  ;;  %v1472_v18 = vsel %vm1421_vm2, %v1469_v9, %v1471_v10 }
  0xd2   : > { %2725 = vmatmul.mubr.bf16.gmra.mrb[28].mxu1 %v8348_v6  ;;  %3270 = vmatmul.mubr.bf16.gmra.mrb[28].mxu0 %v8443_v39  ;;  %v1053_v8 = vsel %vm1008_vm1, %v1051_v48, %v1052_v51  ;;  %v8537_v48 = vpack.c.bf16 %v1468_v44, %v1466_v49  ;;  %v8565_v44 = vpack.c.bf16 %v1472_v18, %v1470_v52  ;;  %v260_v18 = vld [vmem:[%s8058_s20 + $0xe0] sm:$0xff] }
  0xd3   : > { %2732 = vmatprep.mubr.bf16.mxu1 %v8445_v25  ;;  %6470 = vmatprep.mubr.msk.bf16.mxu0 %vm8153_vm5, %v8448_v31 }
  0xd4   : > { %3755 = vmatpush1.bf16.msra.mxu0 %v7716_v47  ;;  %6962 = vmatpush1.bf16.msra.mxu1 %v8188_v55  ;;  %v1055_v55 = vsel %vm1008_vm1, %v1052_v51, %v1054_v63  ;;  %v8514_v47 = vpack.c.bf16 %v8501_v43, %v527_v29  ;;  %12230 = vst [vmem:[#allocation38_spill] sm:$0xff] %v8537_v48  ;;  %v1061_v29 = vrot.slane %v8501_v43, 1  ;;  %12233 = vst [vmem:[#allocation41_spill] sm:$0xff] %v8565_v44 }
  0xd5   : > { %3756 = vmatprep.subr.bf16.mxu0 %v11896_v0  ;;  %6947 = vmatprep.subr.bf16.mxu1 %v11896_v0  ;;  %v8511_v15 = vpack.c.bf16 %v1055_v55, %v1053_v8  ;;  %v534_v8 = vrot.slane %v256_v21, 7  ;;  %v535_v55 = vrot.slane %v257_v27, 7  ;;  %v1474_v21 = vrot.slane %v8501_v43, 2 }
  0xd6   : > { %12229 = vst [vmem:[#allocation37_spill] sm:$0xff] %v8514_v47  ;;  %v1067_v27 = vrot.slane %v917_v22, 1 }
  0xd7   : > { %12228 = vst [vmem:[#allocation36_spill] sm:$0xff] %v8511_v15  ;;  %v885_v52 = vsel %vm489_vm0, 0.0, %v534_v8 }
  0xd8   : > { %3757 = vmatpush1.bf16.msra.mxu0 %v7717_v46  ;;  %6963 = vmatpush1.bf16.msra.mxu1 %v8193_v59  ;;  %v530_v59 = vrot.slane %v254_v20, 7  ;;  %v1059_v46 = vsel %vm1008_vm1, %v1056_v41, %v1058_v34  ;;  %v1062_v20 = vsel %vm1008_vm1, %v1060_v11, %v1061_v29  ;;  %v8558_v41 = vsel %vm489_vm0, %v534_v8, %v535_v55  ;;  %v259_v34 = vld [vmem:[%s8058_s20 + $0xd8] sm:$0xff] }
  0xd9   : > { %4271 = vmatprep.subr.bf16.mxu0 %v11896_v0  ;;  %v8539_v51 = vpack.c.bf16 %v1059_v46, %v1057_v12  ;;  %v8570_v12 = vpack.c.bf16 %v8558_v41, %v534_v8  ;;  %v1473_v46 = vrot.slane %v884_v56, 2  ;;  %v539_v9 = vrot.slane %v259_v34, 7 }
  0xda   : > { %6342 = vmatmul.mubr.msk.bf16.gmra.mrb[32].mxu1 %vm8153_vm5, %v8380_v37  ;;  %3278 = vmatmul.mubr.bf16.gmra.mrb[32].mxu0 %v8477_v2  ;;  %v8528_v50 = vsel %vm489_vm0, %v528_v45, %v530_v59  ;;  %v8531_v54 = vsel %vm489_vm0, %v530_v59, %v532_v19  ;;  %v537_v19 = vrot.slane %v258_v23, 7 }
  0xdb   : > { %2740 = vmatprep.mubr.bf16.mxu1 %v8479_v40  ;;  %3285 = vmatprep.mubr.bf16.mxu0 %v8484_v53  ;;  %12231 = vst [vmem:[#allocation39_spill] sm:$0xff] %v8539_v51  ;;  %v1063_v63 = vrot.slane %v8528_v50, 1  ;;  %v8544_v45 = vpack.c.bf16 %v8531_v54, %v8528_v50  ;;  %v1065_v59 = vrot.slane %v8531_v54, 1  ;;  %v1476_v49 = vrot.slane %v8528_v50, 2  ;;  %12235 = vst [vmem:[#allocation43_spill] sm:$0xff] %v8570_v12 }
  0xdc   : > { %v1475_v50 = vsel %vm1421_vm2, %v1473_v46, %v1474_v21  ;;  %v538_v11 = vsel %vm489_vm0, %v535_v55, %v537_v19  ;;  %v1069_v55 = vrot.slane %v885_v52, 1 }
  0xdd   : > { %12232 = vst [vmem:[#allocation40_spill] sm:$0xff] %v8544_v45  ;;  %v1064_v16 = vsel %vm1008_vm1, %v1061_v29, %v1063_v63  ;;  %v1477_v56 = vsel %vm1421_vm2, %v1474_v21, %v1476_v49  ;;  %v1066_v43 = vsel %vm1008_vm1, %v1063_v63, %v1065_v59  ;;  %v1068_v10 = vsel %vm1008_vm1, %v1065_v59, %v1067_v27 }
  0xde   : > { %v8567_v5 = vpack.c.bf16 %v1064_v16, %v1062_v20  ;;  %v8585_v29 = vsel %vm489_vm0, %v537_v19, %v539_v9  ;;  %v261_v20 = vld [vmem:[%s8058_s20 + $0xe8] sm:$0xff]  ;;  %v1478_v16 = vrot.slane %v8531_v54, 2  ;;  %v8591_v23 = vpack.c.bf16 %v1477_v56, %v1475_v50 }
  0xdf   : > { %v8593_v34 = vpack.c.bf16 %v1068_v10, %v1066_v43  ;;  %v1072_v46 = vrot.slane %v538_v11, 1  ;;  %v8596_v63 = vpack.c.bf16 %v8585_v29, %v538_v11  ;;  %v1480_v59 = vrot.slane %v917_v22, 2  ;;  %v262_v10 = vld [vmem:[%s8058_s20 + $0xf0] sm:$0xff] }
  0xe0   : > { %12234 = vst [vmem:[#allocation42_spill] sm:$0xff] %v8567_v5  ;;  %12236 = vst [vmem:[#allocation44_spill] sm:$0xff] %v8591_v23  ;;  %v1070_v21 = vrot.slane %v8558_v41, 1  ;;  %v541_v27 = vrot.slane %v260_v18, 7  ;;  %v542_v8 = vrot.slane %v261_v20, 7  ;;  %v1479_v54 = vsel %vm1421_vm2, %v1476_v49, %v1478_v16  ;;  %v263_v18 = vld [vmem:[%s8058_s20 + $0xf8] sm:$0xff] }
  0xe1   : > { %12237 = vst [vmem:[#allocation45_spill] sm:$0xff] %v8593_v34  ;;  %12238 = vst [vmem:[#allocation46_spill] sm:$0xff] %v8596_v63  ;;  %v1481_v22 = vsel %vm1421_vm2, %v1478_v16, %v1480_v59  ;;  %v918_v43 = vsel %vm489_vm0, %v539_v9, 0.0  ;;  %v1074_v20 = vrot.slane %v8585_v29, 1  ;;  %v1485_v0 = vrot.slane %v538_v11, 2 }
  0xe2   : > { %2741 = vmatmul.mubr.bf16.gmra.mrb[36].mxu1 %v8416_v7  ;;  %3286 = vmatmul.mubr.bf16.gmra.mrb[36].mxu0 %v8509_v38  ;;  %v1071_v19 = vsel %vm1008_vm1, %v1069_v55, %v1070_v21  ;;  %v1073_v50 = vsel %vm1008_vm1, %v1070_v21, %v1072_v46  ;;  %v8610_v56 = vsel %vm489_vm0, %v541_v27, %v542_v8  ;;  %v1482_v16 = vrot.slane %v885_v52, 2 }
  0xe3   : > { %2748 = vmatprep.mubr.bf16.mxu1 %v8511_v15  ;;  %6474 = vmatprep.mubr.msk.bf16.mxu0 %vm8153_vm5, %v8514_v47  ;;  %v8616_v32 = vpack.c.bf16 %v1481_v22, %v1479_v54  ;;  %v8618_v17 = vpack.c.bf16 %v1073_v50, %v1071_v19  ;;  %v8621_v49 = vpack.c.bf16 %v8610_v56, %v541_v27  ;;  %v1483_v59 = vrot.slane %v8558_v41, 2 }
  0xe4   : > { %v1076_v55 = vrot.slane %v918_v43, 1  ;;  %v544_v21 = vrot.slane %v262_v10, 7  ;;  %v546_v14 = vrot.slane %v263_v18, 7  ;;  %v1075_v52 = vsel %vm1008_vm1, %v1072_v46, %v1074_v20 }
  0xe5   : > { %12239 = vst [vmem:[#allocation47_spill] sm:$0xff] %v8616_v32  ;;  %12240 = vst [vmem:[#allocation48_spill] sm:$0xff] %v8618_v17  ;;  %v1484_v9 = vsel %vm1421_vm2, %v1482_v16, %v1483_v59  ;;  %v1486_v11 = vsel %vm1421_vm2, %v1483_v59, %v1485_v0  ;;  %v8639_v19 = vsel %vm489_vm0, 0.0, %v541_v27  ;;  %v1487_v50 = vrot.slane %v8585_v29, 2 }
  0xe6   : > { %12241 = vst [vmem:[#allocation49_spill] sm:$0xff] %v8621_v49  ;;  %v1077_v41 = vsel %vm1008_vm1, %v1074_v20, %v1076_v55  ;;  %v8635_v54 = vsel %vm489_vm0, %v542_v8, %v544_v21  ;;  %v547_v22 = vsel %vm489_vm0, %v544_v21, %v546_v14  ;;  %v8642_v10 = vpack.c.bf16 %v1486_v11, %v1484_v9 }
  0xe7   : > { %v8644_v18 = vpack.c.bf16 %v1077_v41, %v1075_v52  ;;  %v1489_v16 = vrot.slane %v918_v43, 2  ;;  %v1081_v59 = vrot.slane %v8635_v54, 1  ;;  %v8648_v46 = vpack.c.bf16 %v547_v22, %v8635_v54  ;;  %v264_v41 = vld [vmem:[%s8058_s20 + $0x100] sm:$0xff] }
  0xe8   : > { %12242 = vst [vmem:[#allocation50_spill] sm:$0xff] %v8642_v10  ;;  %v1078_v8 = vrot.slane %v8639_v19, 1  ;;  %v1079_v27 = vrot.slane %v8610_v56, 1  ;;  %v1496_v29 = vrot.slane %v547_v22, 2  ;;  %v1488_v43 = vsel %vm1421_vm2, %v1485_v0, %v1487_v50 }
  0xe9   : > { %12243 = vst [vmem:[#allocation51_spill] sm:$0xff] %v8644_v18  ;;  %12244 = vst [vmem:[#allocation52_spill] sm:$0xff] %v8648_v46  ;;  %v1490_v20 = vsel %vm1421_vm2, %v1487_v50, %v1489_v16  ;;  %v919_v9 = vsel %vm489_vm0, %v546_v14, 0.0  ;;  %v11908_v11 = vrot.slane %v8635_v54, 2  ;;  %v1083_v16 = vrot.slane %v547_v22, 1 }
  0xea   : > { %6346 = vmatmul.mubr.msk.bf16.gmra.mrb[40].mxu1 %vm8153_vm5, %v8448_v31  ;;  %3294 = vmatmul.mubr.bf16.gmra.mrb[40].mxu0 %v8537_v48  ;;  %v1080_v55 = vsel %vm1008_vm1, %v1078_v8, %v1079_v27  ;;  %v1082_v21 = vsel %vm1008_vm1, %v1079_v27, %v1081_v59  ;;  %v1498_v52 = vrot.slane %v919_v9, 2  ;;  %v1085_v8 = vrot.slane %v919_v9, 1 }
  0xeb   : > { %2756 = vmatprep.mubr.bf16.mxu1 %v8539_v51  ;;  %3301 = vmatprep.mubr.bf16.mxu0 %v8544_v45  ;;  %v1497_v0 = vsel %vm1421_vm2, %v11908_v11, %v1496_v29  ;;  %v548_v27 = vrot.slane %v264_v41, 7 }
  0xec   : > { %v1499_v50 = vsel %vm1421_vm2, %v1496_v29, %v1498_v52  ;;  %v1086_v29 = vsel %vm1008_vm1, %v1083_v16, %v1085_v8  ;;  %v12249_v8 = vmov 0  }
  0xed   : > { %v8675_v14 = vpack.c.bf16 %v1499_v50, %v1497_v0  ;;  %v7719_v0 = vld [vmem:[#allocation5 + $0x188] sm:$0xff]  }
  0xef   : > { %12247 = vst [vmem:[#allocation55_spill] sm:$0xff] %v8675_v14 }
  0xf2   : > { %2757 = vmatmul.mubr.bf16.gmra.mrb[44].mxu1 %v8484_v53  ;;  %3302 = vmatmul.mubr.bf16.gmra.mrb[44].mxu0 %v8565_v44  ;;  %v551_v53 = vrot.slane %v266_v13, 7  ;;  %v8690_v13 = vsel %vm489_vm0, 0.0, %v548_v27 }
  0xf3   : > { %2764 = vmatprep.mubr.bf16.mxu1 %v8567_v5  ;;  %6478 = vmatprep.mubr.msk.bf16.mxu0 %vm8153_vm5, %v8570_v12 }
  0xfa   : > { %6350 = vmatmul.mubr.msk.bf16.gmra.mrb[48].mxu1 %vm8153_vm5, %v8514_v47  ;;  %3310 = vmatmul.mubr.bf16.gmra.mrb[48].mxu0 %v8591_v23  ;;  %v549_v47 = vrot.slane %v265_v61, 7  ;;  %v267_v61 = vld [vmem:[%s8058_s20 + $0x118] sm:$0xff] }
  0xfb   : > { %2772 = vmatprep.mubr.bf16.mxu1 %v8593_v34  ;;  %3317 = vmatprep.mubr.bf16.mxu0 %v8596_v63  ;;  %v553_v52 = vrot.slane %v267_v61, 7 }
  0xfc   : > { %v8684_v22 = vsel %vm489_vm0, %v548_v27, %v549_v47 }
  0xfd   : > { %v8707_v50 = vsel %vm489_vm0, %v551_v53, %v553_v52 }
 0x102   : > { %2773 = vmatmul.mubr.bf16.gmra.mrb[52].mxu1 %v8544_v45  ;;  %3318 = vmatmul.mubr.bf16.gmra.mrb[52].mxu0 %v8616_v32  ;;  %v8669_v45 = vpack.c.bf16 %v1082_v21, %v1080_v55  ;;  %v7718_v21 = vld [vmem:[#allocation5 + $0x180] sm:$0xff]  }
 0x103   : > { %2780 = vmatprep.mubr.bf16.mxu1 %v8618_v17  ;;  %6482 = vmatprep.mubr.msk.bf16.mxu0 %vm8153_vm5, %v8621_v49 }
 0x104   : > { %12246 = vst [vmem:[#allocation54_spill] sm:$0xff] %v8669_v45 }
 0x10a   : > { %6354 = vmatmul.mubr.msk.bf16.gmra.mrb[56].mxu1 %vm8153_vm5, %v8570_v12  ;;  %3326 = vmatmul.mubr.bf16.gmra.mrb[56].mxu0 %v8642_v10  ;;  %v8667_v12 = vpack.c.bf16 %v1490_v20, %v1488_v43  ;;  %v1084_v43 = vsel %vm1008_vm1, %v1081_v59, %v1083_v16  ;;  %v8687_v20 = vsel %vm489_vm0, %v549_v47, %v551_v53  ;;  %v1088_v59 = vrot.slane %v8684_v22, 1 }
 0x10b   : > { %2788 = vmatprep.mubr.bf16.mxu1 %v8644_v18  ;;  %3333 = vmatprep.mubr.bf16.mxu0 %v8648_v46  ;;  %v8693_v55 = vpack.c.bf16 %v1086_v29, %v1084_v43  ;;  %v1090_v9 = vrot.slane %v8687_v20, 1  ;;  %v8710_v16 = vsel %vm489_vm0, %v553_v52, 0.0  ;;  %v268_v43 = vld [vmem:[%s8058_s20 + $0x120] sm:$0xff]  ;;  %v270_v29 = vld [vmem:[%s8058_s20 + $0x130] sm:$0xff] }
 0x10c   : > { %12245 = vst [vmem:[#allocation53_spill] sm:$0xff] %v8667_v12  ;;  %v558_v53 = vrot.slane %v270_v29, 7  ;;  %v271_v29 = vld [vmem:[%s8058_s20 + $0x138] sm:$0xff] }
 0x10d   : > { %12248 = vst [vmem:[#allocation56_spill] sm:$0xff] %v8693_v55  ;;  %v1091_v41 = vsel %vm1008_vm1, %v1088_v59, %v1090_v9 }
 0x112   : > { %2789 = vmatmul.mubr.bf16.gmra.mrb[60].mxu1 %v8596_v63  ;;  %3334 = vmatmul.mubr.bf16.gmra.mrb[60].mxu0 %v8667_v12 }
 0x113   : > { %2796 = vmatprep.mubr.bf16.mxu1 %v8669_v45  ;;  %3758 = vmatprep.mubr.bf16.mxu0 %v8275_v60  ;;  %v1087_v60 = vrot.slane %v8690_v13, 1 }
 0x115   : > { %v1089_v47 = vsel %vm1008_vm1, %v1087_v60, %v1088_v59  ;;  %v7720_v60 = vld [vmem:[#allocation5 + $0x190] sm:$0xff]   ;;  %v555_v59 = vrot.slane %v268_v43, 7 }
 0x116   : > { %v8716_v61 = vpack.c.bf16 %v1091_v41, %v1089_v47  ;;  %v7721_v41 = vld [vmem:[#allocation5 + $0x198] sm:$0xff]  }
 0x118   : > { %12250 = vst [vmem:[#allocation57_spill] sm:$0xff] %v8716_v61 }
 0x11a   : > { %6358 = vmatmul.mubr.msk.bf16.gmra.mrb[64].mxu1 %vm8153_vm5, %v8621_v49  ;;  %3759 = vmatmul.mubr.bf16.vlgmr.msra.gmra.mrb[0].mxu0 %v8243_v33  ;;  %v269_v33 = vld [vmem:[%s8058_s20 + $0x128] sm:$0xff] }
 0x11b   : > { %2804 = vmatprep.mubr.bf16.mxu1 %v8693_v55  ;;  %4272 = vmatpush1.bf16.msra.mxu0 %v7718_v21  ;;  %v1094_v21 = vrot.slane %v8710_v16, 1  ;;  %v556_v11 = vrot.slane %v269_v33, 7  ;;  %v8734_v33 = vsel %vm489_vm0, 0.0, %v555_v59  ;;  %v273_v49 = vld [vmem:[%s8058_s20 + $0x148] sm:$0xff] }
 0x11c   : > { %3766 = vmatprep.mubr.bf16.mxu0 %v8308_v26  ;;  %4273 = vmatprep.subr.bf16.mxu0 %v12249_v8  ;;  %v1092_v26 = vrot.slane %v8707_v50, 1 }
 0x11d   : > { %v8731_v43 = vsel %vm489_vm0, %v556_v11, %v558_v53 }
 0x11e   : > { %v1093_v52 = vsel %vm1008_vm1, %v1090_v9, %v1092_v26  ;;  %v1095_v47 = vsel %vm1008_vm1, %v1092_v26, %v1094_v21  ;;  %v1096_v26 = vrot.slane %v8734_v33, 1 }
 0x11f   : > { %4274 = vmatpush1.bf16.msra.mxu0 %v7719_v0  ;;  %v8728_v0 = vsel %vm489_vm0, %v555_v59, %v556_v11  ;;  %v8741_v9 = vpack.c.bf16 %v1095_v47, %v1093_v52  ;;  %v7722_v11 = vld [vmem:[#allocation5 + $0x1a0] sm:$0xff]  }
 0x120   : > { %4275 = vmatprep.subr.bf16.mxu0 %v12249_v8  ;;  %v1097_v21 = vrot.slane %v8728_v0, 1 }
 0x121   : > { %12252 = vst [vmem:[#allocation59_spill] sm:$0xff] %v8741_v9 }
 0x122   : > { %2805 = vmatmul.mubr.bf16.gmra.mrb[68].mxu1 %v8648_v46  ;;  %3767 = vmatmul.mubr.bf16.gmra.mrb[4].mxu0 %v8277_v62  ;;  %v8738_v62 = vpack.c.bf16 %v8684_v22, %v548_v27  ;;  %v1098_v27 = vsel %vm1008_vm1, %v1096_v26, %v1097_v21  ;;  %v272_v46 = vld [vmem:[%s8058_s20 + $0x140] sm:$0xff] }
 0x123   : > { %2812 = vmatprep.mubr.bf16.mxu1 %v8716_v61  ;;  %3774 = vmatprep.mubr.bf16.mxu0 %v8341_v57  ;;  %v560_v57 = vrot.slane %v271_v29, 7  ;;  %v8764_v29 = vpack.c.bf16 %v8707_v50, %v8687_v20 }
 0x124   : > { %4276 = vmatpush1.bf16.msra.mxu0 %v7720_v60  ;;  %12251 = vst [vmem:[#allocation58_spill] sm:$0xff] %v8738_v62  ;;  %v1099_v60 = vrot.slane %v8731_v43, 1 }
 0x125   : > { %4277 = vmatprep.subr.bf16.mxu0 %v12249_v8  ;;  %v8756_v47 = vsel %vm489_vm0, %v558_v53, %v560_v57  ;;  %12253 = vst [vmem:[#allocation60_spill] sm:$0xff] %v8764_v29 }
 0x126   : > { %v1100_v52 = vsel %vm1008_vm1, %v1097_v21, %v1099_v60  ;;  %v1101_v26 = vrot.slane %v8756_v47, 1  ;;  %v562_v21 = vrot.slane %v272_v46, 7  ;;  %v275_v46 = vld [vmem:[%s8058_s20 + $0x158] sm:$0xff]  ;;  %v8813_v6 = vpack.c.bf16 %v8756_v47, %v8731_v43 }
 0x127   : > { %v8769_v63 = vpack.c.bf16 %v1100_v52, %v1098_v27 }
 0x128   : > { %4278 = vmatpush1.bf16.msra.mxu0 %v7721_v41  ;;  %v8759_v41 = vsel %vm489_vm0, %v560_v57, 0.0  ;;  %v1102_v31 = vsel %vm1008_vm1, %v1099_v60, %v1101_v26  ;;  %12257 = vst [vmem:[#allocation64_spill] sm:$0xff] %v8813_v6 }
 0x129   : > { %4279 = vmatprep.subr.bf16.mxu0 %v12249_v8  ;;  %12254 = vst [vmem:[#allocation61_spill] sm:$0xff] %v8769_v63  ;;  %v1103_v53 = vrot.slane %v8759_v41, 1 }
 0x12a   : > { %6362 = vmatmul.mubr.msk.bf16.gmra.mrb[72].mxu1 %vm8153_vm5, %v8738_v62  ;;  %3775 = vmatmul.mubr.bf16.gmra.mrb[8].mxu0 %v8310_v28  ;;  %v280_v28 = vld [vmem:[%s8058_s20 + $0x180] sm:$0xff]  ;;  %v286_v62 = vld [vmem:[%s8058_s20 + $0x1b0] sm:$0xff] }
 0x12b   : > { %2820 = vmatprep.mubr.bf16.mxu1 %v8741_v9  ;;  %3782 = vmatprep.mubr.bf16.mxu0 %v8375_v24  ;;  %v274_v24 = vld [vmem:[%s8058_s20 + $0x150] sm:$0xff]  ;;  %v1104_v27 = vsel %vm1008_vm1, %v1101_v26, %v1103_v53 }
 0x12c   : > { %4280 = vmatpush1.bf16.msra.mxu0 %v7722_v11  ;;  %v563_v11 = vrot.slane %v273_v49, 7  ;;  %v565_v57 = vrot.slane %v274_v24, 7  ;;  %v8786_v24 = vsel %vm489_vm0, 0.0, %v562_v21  ;;  %v8789_v49 = vpack.c.bf16 %v8728_v0, %v555_v59 }
 0x12d   : > { %4281 = vmatprep.subr.bf16.mxu0 %v12249_v8  ;;  %v8792_v37 = vpack.c.bf16 %v1104_v27, %v1102_v31  ;;  %v1105_v60 = vrot.slane %v8786_v24, 1  ;;  %v7723_v31 = vld [vmem:[#allocation5 + $0x1a8] sm:$0xff]  }
 0x12e   : > { %v8780_v52 = vsel %vm489_vm0, %v562_v21, %v563_v11  ;;  %v8783_v7 = vsel %vm489_vm0, %v563_v11, %v565_v57  ;;  %12255 = vst [vmem:[#allocation62_spill] sm:$0xff] %v8789_v49  ;;  %v567_v11 = vrot.slane %v275_v46, 7 }
 0x12f   : > { %12256 = vst [vmem:[#allocation63_spill] sm:$0xff] %v8792_v37  ;;  %v1106_v26 = vrot.slane %v8780_v52, 1  ;;  %v1108_v53 = vrot.slane %v8783_v7, 1 }
 0x130   : > { %v8809_v46 = vsel %vm489_vm0, %v567_v11, 0.0  ;;  %4282 = vmatpush1.bf16.msra.mxu0 %v7723_v31 }
 0x131   : > { %v1107_v59 = vsel %vm1008_vm1, %v1105_v60, %v1106_v26  ;;  %v1109_v27 = vsel %vm1008_vm1, %v1106_v26, %v1108_v53  ;;  %4283 = vmatprep.subr.bf16.mxu0 %v12249_v8  ;;  %v569_v26 = vrot.slane %v276_v30, 7  ;;  %v8839_v30 = vpack.c.bf16 %v8780_v52, %v562_v21 }
 0x132   : > { %2821 = vmatmul.mubr.bf16.gmra.mrb[76].mxu1 %v8764_v29  ;;  %3783 = vmatmul.mubr.bf16.gmra.mrb[12].mxu0 %v8343_v58  ;;  %v572_v58 = vrot.slane %v278_v4, 7 }
 0x133   : > { %2828 = vmatprep.mubr.bf16.mxu1 %v8769_v63  ;;  %3790 = vmatprep.mubr.bf16.mxu0 %v8409_v1  ;;  %v8806_v1 = vsel %vm489_vm0, %v565_v57, %v567_v11  ;;  %v1112_v57 = vrot.slane %v8809_v46, 1  ;;  %v8836_v4 = vsel %vm489_vm0, 0.0, %v569_v26  ;;  %12259 = vst [vmem:[#allocation66_spill] sm:$0xff] %v8839_v30 }
 0x134   : > { %v1110_v60 = vrot.slane %v8806_v1, 1 }
 0x136   : > { %v1111_v31 = vsel %vm1008_vm1, %v1108_v53, %v1110_v60  ;;  %v1114_v53 = vrot.slane %v8836_v4, 1 }
 0x13a   : > { %6366 = vmatmul.mubr.msk.bf16.gmra.mrb[80].mxu1 %vm8153_vm5, %v8789_v49  ;;  %3791 = vmatmul.mubr.bf16.gmra.mrb[16].mxu0 %v8377_v35  ;;  %v277_v35 = vld [vmem:[%s8058_s20 + $0x168] sm:$0xff] }
 0x13b   : > { %2836 = vmatprep.mubr.bf16.mxu1 %v8792_v37  ;;  %3798 = vmatprep.mubr.bf16.mxu0 %v8443_v39  ;;  %v8819_v39 = vpack.c.bf16 %v1109_v27, %v1107_v59  ;;  %v570_v11 = vrot.slane %v277_v35, 7  ;;  %v1113_v59 = vsel %vm1008_vm1, %v1110_v60, %v1112_v57  ;;  %v279_v35 = vld [vmem:[%s8058_s20 + $0x178] sm:$0xff] }
 0x13d   : > { %12258 = vst [vmem:[#allocation65_spill] sm:$0xff] %v8819_v39  ;;  %v8830_v27 = vsel %vm489_vm0, %v569_v26, %v570_v11  ;;  %v8833_v36 = vsel %vm489_vm0, %v570_v11, %v572_v58  ;;  %v574_v11 = vrot.slane %v279_v35, 7  ;;  %v8863_v35 = vpack.c.bf16 %v8806_v1, %v8783_v7 }
 0x13e   : > { %v1115_v60 = vrot.slane %v8830_v27, 1  ;;  %v1117_v57 = vrot.slane %v8833_v36, 1 }
 0x13f   : > { %12261 = vst [vmem:[#allocation68_spill] sm:$0xff] %v8863_v35 }
 0x140   : > { %v1116_v21 = vsel %vm1008_vm1, %v1114_v53, %v1115_v60 }
 0x142   : > { %2837 = vmatmul.mubr.bf16.gmra.mrb[84].mxu1 %v8813_v6  ;;  %3799 = vmatmul.mubr.bf16.gmra.mrb[20].mxu0 %v8411_v3  ;;  %v8859_v3 = vsel %vm489_vm0, %v574_v11, 0.0 }
 0x143   : > { %2844 = vmatprep.mubr.bf16.mxu1 %v8819_v39  ;;  %3806 = vmatprep.mubr.bf16.mxu0 %v8477_v2  ;;  %v8842_v2 = vpack.c.bf16 %v1113_v59, %v1111_v31  ;;  %v1118_v31 = vsel %vm1008_vm1, %v1115_v60, %v1117_v57  ;;  %v8856_v59 = vsel %vm489_vm0, %v572_v58, %v574_v11  ;;  %v1121_v60 = vrot.slane %v8859_v3, 1 }
 0x144   : > { %v8868_v6 = vpack.c.bf16 %v1118_v31, %v1116_v21  ;;  %v1119_v53 = vrot.slane %v8856_v59, 1 }
 0x145   : > { %12260 = vst [vmem:[#allocation67_spill] sm:$0xff] %v8842_v2 }
 0x146   : > { %12262 = vst [vmem:[#allocation69_spill] sm:$0xff] %v8868_v6  ;;  %v1120_v11 = vsel %vm1008_vm1, %v1117_v57, %v1119_v53  ;;  %v1122_v21 = vsel %vm1008_vm1, %v1119_v53, %v1121_v60 }
 0x14a   : > { %6370 = vmatmul.mubr.msk.bf16.gmra.mrb[88].mxu1 %vm8153_vm5, %v8839_v30  ;;  %3807 = vmatmul.mubr.bf16.gmra.mrb[24].mxu0 %v8445_v25  ;;  %v281_v25 = vld [vmem:[%s8058_s20 + $0x188] sm:$0xff]  ;;  %v282_v30 = vld [vmem:[%s8058_s20 + $0x190] sm:$0xff] }
 0x14b   : > { %2852 = vmatprep.mubr.bf16.mxu1 %v8842_v2  ;;  %3814 = vmatprep.mubr.bf16.mxu0 %v8509_v38  ;;  %v576_v38 = vrot.slane %v280_v28, 7  ;;  %v577_v58 = vrot.slane %v281_v25, 7  ;;  %v579_v49 = vrot.slane %v282_v30, 7  ;;  %v8888_v25 = vpack.c.bf16 %v8830_v27, %v569_v26  ;;  %v283_v30 = vld [vmem:[%s8058_s20 + $0x198] sm:$0xff]  ;;  %v7724_v26 = vld [vmem:[#allocation5 + $0x1b0] sm:$0xff]  }
 0x14c   : > { %4284 = vmatpush1.bf16.msra.mxu0 %v7724_v26 }
 0x14d   : > { %v8879_v31 = vsel %vm489_vm0, %v576_v38, %v577_v58  ;;  %v8882_v29 = vsel %vm489_vm0, %v577_v58, %v579_v49  ;;  %v8885_v28 = vsel %vm489_vm0, 0.0, %v576_v38  ;;  %12263 = vst [vmem:[#allocation70_spill] sm:$0xff] %v8888_v25  ;;  %v581_v58 = vrot.slane %v283_v30, 7  ;;  %4285 = vmatprep.subr.bf16.mxu0 %v12249_v8 }
 0x14e   : > { %v1123_v57 = vrot.slane %v8885_v28, 1  ;;  %v1124_v53 = vrot.slane %v8879_v31, 1  ;;  %v1126_v60 = vrot.slane %v8882_v29, 1 }
 0x14f   : > { %v8908_v30 = vsel %vm489_vm0, %v581_v58, 0.0 }
 0x150   : > { %12265 = vst [vmem:[#allocation72_spill] sm:$0xff] %v8908_v30 }
 0x152   : > { %2853 = vmatmul.mubr.bf16.gmra.mrb[92].mxu1 %v8863_v35  ;;  %3815 = vmatmul.mubr.bf16.gmra.mrb[28].mxu0 %v8479_v40  ;;  %v8891_v40 = vpack.c.bf16 %v1122_v21, %v1120_v11  ;;  %v1125_v11 = vsel %vm1008_vm1, %v1123_v57, %v1124_v53  ;;  %v1127_v21 = vsel %vm1008_vm1, %v1124_v53, %v1126_v60  ;;  %v285_v35 = vld [vmem:[%s8058_s20 + $0x1a8] sm:$0xff] }
 0x153   : > { %2860 = vmatprep.mubr.bf16.mxu1 %v8868_v6  ;;  %3822 = vmatprep.mubr.bf16.mxu0 %v8537_v48  ;;  %v8905_v48 = vsel %vm489_vm0, %v579_v49, %v581_v58  ;;  %v1130_v49 = vrot.slane %v8908_v30, 1  ;;  %v584_v58 = vrot.slane %v285_v35, 7  ;;  %v287_v35 = vld [vmem:[%s8058_s20 + $0x1b8] sm:$0xff] }
 0x154   : > { %12264 = vst [vmem:[#allocation71_spill] sm:$0xff] %v8891_v40  ;;  %v1128_v57 = vrot.slane %v8905_v48, 1 }
 0x156   : > { %v1129_v26 = vsel %vm1008_vm1, %v1126_v60, %v1128_v57 }
 0x15a   : > { %6374 = vmatmul.mubr.msk.bf16.gmra.mrb[96].mxu1 %vm8153_vm5, %v8888_v25  ;;  %3823 = vmatmul.mubr.bf16.gmra.mrb[32].mxu0 %v8511_v15  ;;  %v8912_v25 = vpack.c.bf16 %v8856_v59, %v8833_v36  ;;  %v284_v15 = vld [vmem:[%s8058_s20 + $0x1a0] sm:$0xff] }
 0x15b   : > { %2868 = vmatprep.mubr.bf16.mxu1 %v8891_v40  ;;  %3830 = vmatprep.mubr.bf16.mxu0 %v8565_v44  ;;  %v8918_v44 = vpack.c.bf16 %v1127_v21, %v1125_v11  ;;  %v583_v53 = vrot.slane %v284_v15, 7  ;;  %v586_v40 = vrot.slane %v286_v62, 7  ;;  %v1131_v11 = vsel %vm1008_vm1, %v1128_v57, %v1130_v49 }
 0x15c   : > { %12266 = vst [vmem:[#allocation73_spill] sm:$0xff] %v8912_v25  ;;  %v8938_v62 = vpack.c.bf16 %v8879_v31, %v576_v38 }
 0x15d   : > { %12267 = vst [vmem:[#allocation74_spill] sm:$0xff] %v8918_v44  ;;  %v8929_v21 = vsel %vm489_vm0, %v583_v53, %v584_v58  ;;  %v8932_v30 = vsel %vm489_vm0, %v584_v58, %v586_v40  ;;  %v8935_v15 = vsel %vm489_vm0, 0.0, %v583_v53  ;;  %v588_v58 = vrot.slane %v287_v35, 7 }
 0x15e   : > { %12268 = vst [vmem:[#allocation75_spill] sm:$0xff] %v8935_v15  ;;  %12269 = vst [vmem:[#allocation76_spill] sm:$0xff] %v8938_v62  ;;  %v1132_v60 = vrot.slane %v8935_v15, 1  ;;  %v1133_v57 = vrot.slane %v8929_v21, 1  ;;  %v1135_v49 = vrot.slane %v8932_v30, 1 }
 0x15f   : > { %v8960_v35 = vsel %vm489_vm0, %v588_v58, 0.0 }
 0x160   : > { %v1134_v38 = vsel %vm1008_vm1, %v1132_v60, %v1133_v57  ;;  %12272 = vst [vmem:[#allocation79_spill] sm:$0xff] %v8960_v35 }
 0x162   : > { %2869 = vmatmul.mubr.bf16.gmra.mrb[100].mxu1 %v8912_v25  ;;  %3831 = vmatmul.mubr.bf16.gmra.mrb[36].mxu0 %v8539_v51  ;;  %v8941_v51 = vpack.c.bf16 %v1131_v11, %v1129_v26  ;;  %v1136_v26 = vsel %vm1008_vm1, %v1133_v57, %v1135_v49 }
 0x163   : > { %2876 = vmatprep.mubr.bf16.mxu1 %v8918_v44  ;;  %3838 = vmatprep.mubr.bf16.mxu0 %v8591_v23  ;;  %v8957_v23 = vsel %vm489_vm0, %v586_v40, %v588_v58  ;;  %v8971_v60 = vpack.c.bf16 %v1136_v26, %v1134_v38  ;;  %v1139_v40 = vrot.slane %v8960_v35, 1  ;;  %v1492_v35 = vrot.slane %v8610_v56, 2 }
 0x164   : > { %12270 = vst [vmem:[#allocation77_spill] sm:$0xff] %v8941_v51 }
 0x165   : > { %12275 = vst [vmem:[#allocation82_spill] sm:$0xff] %v8971_v60 }
 0x16a   : > { %6378 = vmatmul.mubr.msk.bf16.gmra.mrb[104].mxu1 %vm8153_vm5, %v8938_v62  ;;  %3839 = vmatmul.mubr.bf16.gmra.mrb[40].mxu0 %v8567_v5  ;;  %v8964_v5 = vpack.c.bf16 %v8905_v48, %v8882_v29  ;;  %v288_v62 = vld [vmem:[%s8058_s20 + $0x1c0] sm:$0xff] }
 0x16b   : > { %2884 = vmatprep.mubr.bf16.mxu1 %v8941_v51  ;;  %3846 = vmatprep.mubr.bf16.mxu0 %v8616_v32  ;;  %v289_v51 = vld [vmem:[%s8058_s20 + $0x1c8] sm:$0xff]  ;;  %v290_v32 = vld [vmem:[%s8058_s20 + $0x1d0] sm:$0xff]  ;;  %v8975_v58 = vrot.slane %v288_v62, 7 }
 0x16c   : > { %12273 = vst [vmem:[#allocation80_spill] sm:$0xff] %v8964_v5  ;;  %v593_v15 = vrot.slane %v290_v32, 7 }
 0x16d   : > { %v8954_v11 = vpop.f32.mrb[0].mxu1 }
 0x16e   : > { %12271 = vst [vmem:[#allocation78_spill] sm:$0xff] %v8954_v11  ;;  %v2672_v25 = vpop.f32.mrb[1].mxu1  ;;  %v1137_v11 = vrot.slane %v8957_v23, 1 }
 0x16f   : > { %v8969_v44 = vpop.f32.mrb[2].mxu1  ;;  %v591_v25 = vrot.slane %v289_v51, 7  ;;  %v8994_v51 = vsel %vm489_vm0, 0.0, %v8975_v58 }
 0x170   : > { %12274 = vst [vmem:[#allocation81_spill] sm:$0xff] %v8969_v44  ;;  %v2675_v57 = vpop.f32.mrb[3].mxu1  ;;  %v1138_v38 = vsel %vm1008_vm1, %v1135_v49, %v1137_v11  ;;  %v1140_v26 = vsel %vm1008_vm1, %v1137_v11, %v1139_v40  ;;  %v291_v49 = vld [vmem:[%s8058_s20 + $0x1d8] sm:$0xff] }
 0x171   : > { %v8987_v62 = vsel %vm489_vm0, %v8975_v58, %v591_v25  ;;  %v8990_v32 = vsel %vm489_vm0, %v591_v25, %v593_v15  ;;  %v9002_v11 = vpack.c.bf16 %v1140_v26, %v1138_v38 }
 0x172   : > { %2885 = vmatmul.mubr.bf16.gmra.mrb[108].mxu1 %v8964_v5  ;;  %3847 = vmatmul.mubr.bf16.gmra.mrb[44].mxu0 %v8593_v34  ;;  %v1142_v5 = vrot.slane %v8987_v62, 1  ;;  %v1144_v25 = vrot.slane %v8990_v32, 1 }
 0x173   : > { %2892 = vmatprep.mubr.bf16.mxu1 %v8971_v60  ;;  %3854 = vmatprep.mubr.bf16.mxu0 %v8642_v10  ;;  %v8997_v10 = vpack.c.bf16 %v8929_v21, %v583_v53  ;;  %12279 = vst [vmem:[#allocation86_spill] sm:$0xff] %v9002_v11  ;;  %v1491_v60 = vrot.slane %v8639_v19, 2  ;;  %v7725_v53 = vld [vmem:[#allocation5 + $0x1b8] sm:$0xff]  }
 0x174   : > { %v1145_v19 = vsel %vm1008_vm1, %v1142_v5, %v1144_v25  ;;  %4286 = vmatpush1.bf16.msra.mxu0 %v7725_v53 }
 0x175   : > { %v8983_v57 = vpop.f32.mrb[4].mxu1  ;;  %12277 = vst [vmem:[#allocation84_spill] sm:$0xff] %v8997_v10  ;;  %v1493_v26 = vsel %vm1421_vm2, %v1491_v60, %v1492_v35  ;;  %4287 = vmatprep.subr.bf16.mxu0 %v12249_v8 }
 0x176   : > { %12276 = vst [vmem:[#allocation83_spill] sm:$0xff] %v8983_v57  ;;  %v2680_v44 = vpop.f32.mrb[5].mxu1  ;;  %v1141_v57 = vrot.slane %v8994_v51, 1 }
 0x177   : > { %v9000_v34 = vpop.f32.mrb[6].mxu1  ;;  %v595_v44 = vrot.slane %v291_v49, 7  ;;  %v12281_v49 = vrot.slane %v8635_v54, 2 }
 0x178   : > { %12278 = vst [vmem:[#allocation85_spill] sm:$0xff] %v9000_v34  ;;  %v2683_v40 = vpop.f32.mrb[7].mxu1  ;;  %v1143_v38 = vsel %vm1008_vm1, %v1141_v57, %v1142_v5  ;;  %v9031_v57 = vpack.c.bf16 %v8957_v23, %v8932_v30  ;;  %v292_v5 = vld [vmem:[%s8058_s20 + $0x1e0] sm:$0xff] }
 0x179   : > { %v1495_v40 = vsel %vm1421_vm2, %v1492_v35, %v12281_v49  ;;  %v9024_v34 = vsel %vm489_vm0, %v593_v15, %v595_v44  ;;  %v9039_v35 = vpack.c.bf16 %v1145_v19, %v1143_v38  ;;  %v9045_v53 = vrot.slane %v292_v5, 7 }
 0x17a   : > { %6382 = vmatmul.mubr.msk.bf16.gmra.mrb[112].mxu1 %vm8153_vm5, %v8997_v10  ;;  %3855 = vmatmul.mubr.bf16.gmra.mrb[48].mxu0 %v8618_v17  ;;  %v9027_v17 = vsel %vm489_vm0, %v595_v44, 0.0  ;;  %12283 = vst [vmem:[#allocation89_spill] sm:$0xff] %v9031_v57  ;;  %v294_v10 = vld [vmem:[%s8058_s20 + $0x1f0] sm:$0xff]  ;;  %v9041_v60 = vpack.c.bf16 %v1495_v40, %v1493_v26  ;;  %v1146_v44 = vrot.slane %v9024_v34, 1 }
 0x17b   : > { %2900 = vmatprep.mubr.bf16.mxu1 %v9002_v11  ;;  %3862 = vmatprep.mubr.bf16.mxu0 %v8667_v12  ;;  %12282 = vst [vmem:[#allocation88_spill] sm:$0xff] %v9027_v17  ;;  %12285 = vst [vmem:[#allocation91_spill] sm:$0xff] %v9039_v35  ;;  %v600_v11 = vrot.slane %v294_v10, 7 }
 0x17c   : > { %12286 = vst [vmem:[#allocation92_spill] sm:$0xff] %v9041_v60  ;;  %v1147_v38 = vsel %vm1008_vm1, %v1144_v25, %v1146_v44  ;;  %v295_v25 = vld [vmem:[%s8058_s20 + $0x1f8] sm:$0xff] }
 0x17d   : > { %v9017_v56 = vpop.f32.mrb[8].mxu1 }
 0x17e   : > { %12280 = vst [vmem:[#allocation87_spill] sm:$0xff] %v9017_v56  ;;  %v2688_v12 = vpop.f32.mrb[9].mxu1  ;;  %v293_v56 = vld [vmem:[%s8058_s20 + $0x1e8] sm:$0xff] }
 0x17f   : > { %v9037_v54 = vpop.f32.mrb[10].mxu1  ;;  %v1148_v12 = vrot.slane %v9027_v17, 1  ;;  %v598_v49 = vrot.slane %v293_v56, 7  ;;  %v9064_v56 = vsel %vm489_vm0, 0.0, %v9045_v53 }
 0x180   : > { %12284 = vst [vmem:[#allocation90_spill] sm:$0xff] %v9037_v54  ;;  %v2691_v15 = vpop.f32.mrb[11].mxu1  ;;  %12288 = vst [vmem:[#allocation94_spill] sm:$0xff] %v9064_v56  ;;  %v1150_v54 = vrot.slane %v9064_v56, 1 }
 0x181   : > { %v1149_v19 = vsel %vm1008_vm1, %v1146_v44, %v1148_v12  ;;  %v9057_v40 = vsel %vm489_vm0, %v9045_v53, %v598_v49  ;;  %v9060_v10 = vsel %vm489_vm0, %v598_v49, %v600_v11  ;;  %v9068_v15 = vpack.c.bf16 %v8987_v62, %v8975_v58 }
 0x182   : > { %2901 = vmatmul.mubr.bf16.gmra.mrb[116].mxu1 %v9031_v57  ;;  %3863 = vmatmul.mubr.bf16.gmra.mrb[52].mxu0 %v8644_v18  ;;  %v9073_v12 = vpack.c.bf16 %v1149_v19, %v1147_v38  ;;  %v1151_v49 = vrot.slane %v9057_v40, 1  ;;  %v1153_v18 = vrot.slane %v9060_v10, 1  ;;  %v1500_v57 = vrot.slane %v8690_v13, 2 }
 0x183   : > { %2908 = vmatprep.mubr.bf16.mxu1 %v9039_v35  ;;  %3870 = vmatprep.mubr.bf16.mxu0 %v9041_v60  ;;  %12289 = vst [vmem:[#allocation95_spill] sm:$0xff] %v9068_v15  ;;  %v1503_v58 = vrot.slane %v8687_v20, 2  ;;  %v602_v60 = vrot.slane %v295_v25, 7 }
 0x184   : > { %12291 = vst [vmem:[#allocation97_spill] sm:$0xff] %v9073_v12  ;;  %v1152_v13 = vsel %vm1008_vm1, %v1150_v54, %v1151_v49  ;;  %v296_v54 = vld [vmem:[%s8058_s20 + $0x200] sm:$0xff] }
 0x185   : > { %v9053_v26 = vpop.f32.mrb[12].mxu1  ;;  %v9097_v25 = vsel %vm489_vm0, %v602_v60, 0.0  ;;  %v9116_v35 = vrot.slane %v296_v54, 7 }
 0x186   : > { %12287 = vst [vmem:[#allocation93_spill] sm:$0xff] %v9053_v26  ;;  %v2696_v5 = vpop.f32.mrb[13].mxu1 }
 0x187   : > { %v9071_v44 = vpop.f32.mrb[14].mxu1  ;;  %v1501_v5 = vrot.slane %v8684_v22, 2  ;;  %v1154_v22 = vsel %vm1008_vm1, %v1151_v49, %v1153_v18  ;;  %v298_v49 = vld [vmem:[%s8058_s20 + $0x210] sm:$0xff]  ;;  %v9137_v54 = vsel %vm489_vm0, 0.0, %v9116_v35 }
 0x188   : > { %12290 = vst [vmem:[#allocation96_spill] sm:$0xff] %v9071_v44  ;;  %v2699_v26 = vpop.f32.mrb[15].mxu1  ;;  %v607_v17 = vrot.slane %v298_v49, 7  ;;  %v9141_v49 = vpack.c.bf16 %v9057_v40, %v9045_v53  ;;  %v1512_v53 = vrot.slane %v8731_v43, 2 }
 0x189   : > { %v1502_v20 = vsel %vm1421_vm2, %v1500_v57, %v1501_v5  ;;  %v1504_v19 = vsel %vm1421_vm2, %v1501_v5, %v1503_v58  ;;  %v9094_v26 = vsel %vm489_vm0, %v600_v11, %v602_v60  ;;  %v1157_v60 = vrot.slane %v9097_v25, 1 }
 0x18a   : > { %6386 = vmatmul.mubr.msk.bf16.gmra.mrb[120].mxu1 %vm8153_vm5, %v9068_v15  ;;  %3871 = vmatmul.mubr.bf16.gmra.mrb[56].mxu0 %v8669_v45  ;;  %v9101_v45 = vpack.c.bf16 %v9024_v34, %v8990_v32  ;;  %v297_v15 = vld [vmem:[%s8058_s20 + $0x208] sm:$0xff]  ;;  %v9110_v5 = vpack.c.bf16 %v1504_v19, %v1502_v20  ;;  %v1155_v11 = vrot.slane %v9094_v26, 1  ;;  %12298 = vst [vmem:[#allocation104_spill] sm:$0xff] %v9141_v49 }
 0x18b   : > { %2916 = vmatprep.mubr.bf16.mxu1 %v9073_v12  ;;  %3878 = vmatprep.mubr.bf16.mxu0 %v8675_v14  ;;  %v1507_v12 = vrot.slane %v8710_v16, 2  ;;  %v605_v56 = vrot.slane %v297_v15, 7 }
 0x18c   : > { %12293 = vst [vmem:[#allocation99_spill] sm:$0xff] %v9101_v45  ;;  %12296 = vst [vmem:[#allocation102_spill] sm:$0xff] %v9110_v5 }
 0x18d   : > { %v9089_v38 = vpop.f32.mrb[16].mxu1  ;;  %v9130_v20 = vsel %vm489_vm0, %v9116_v35, %v605_v56  ;;  %v9133_v19 = vsel %vm489_vm0, %v605_v56, %v607_v17  ;;  %v1159_v56 = vrot.slane %v9137_v54, 1 }
 0x18e   : > { %12292 = vst [vmem:[#allocation98_spill] sm:$0xff] %v9089_v38  ;;  %v2704_v44 = vpop.f32.mrb[17].mxu1  ;;  %v9108_v38 = vpack.c.bf16 %v1154_v22, %v1152_v13  ;;  %v1156_v13 = vsel %vm1008_vm1, %v1153_v18, %v1155_v11  ;;  %v1158_v22 = vsel %vm1008_vm1, %v1155_v11, %v1157_v60 }
 0x18f   : > { %v9106_v14 = vpop.f32.mrb[18].mxu1  ;;  %v1505_v44 = vrot.slane %v8707_v50, 2 }
 0x190   : > { %12294 = vst [vmem:[#allocation100_spill] sm:$0xff] %v9106_v14  ;;  %12295 = vst [vmem:[#allocation101_spill] sm:$0xff] %v9108_v38  ;;  %v2707_v57 = vpop.f32.mrb[19].mxu1  ;;  %v1510_v14 = vrot.slane %v8728_v0, 2 }
 0x191   : > { %v1506_v50 = vsel %vm1421_vm2, %v1503_v58, %v1505_v44  ;;  %v1508_v15 = vsel %vm1421_vm2, %v1505_v44, %v1507_v12  ;;  %v299_v58 = vld [vmem:[%s8058_s20 + $0x218] sm:$0xff]  ;;  %v9146_v12 = vpack.c.bf16 %v1158_v22, %v1156_v13  ;;  %v1160_v44 = vrot.slane %v9130_v20, 1  ;;  %v7726_v13 = vld [vmem:[#allocation5 + $0x1c0] sm:$0xff]  }
 0x192   : > { %2917 = vmatmul.mubr.bf16.gmra.mrb[124].mxu1 %v9101_v45  ;;  %3879 = vmatmul.mubr.bf16.gmra.mrb[60].mxu0 %v8693_v55  ;;  %v9148_v60 = vpack.c.bf16 %v1508_v15, %v1506_v50  ;;  %v609_v55 = vrot.slane %v299_v58, 7  ;;  %v1513_v50 = vsel %vm1421_vm2, %v1510_v14, %v1512_v53 }
 0x193   : > { %2924 = vmatprep.mubr.bf16.mxu1 %v9108_v38  ;;  %3886 = vmatprep.mubr.bf16.mxu0 %v9110_v5  ;;  %12300 = vst [vmem:[#allocation106_spill] sm:$0xff] %v9146_v12 }
 0x194   : > { %12301 = vst [vmem:[#allocation107_spill] sm:$0xff] %v9148_v60  ;;  %v9169_v15 = vsel %vm489_vm0, %v607_v17, %v609_v55  ;;  %v9172_v58 = vsel %vm489_vm0, %v609_v55, 0.0  ;;  %4288 = vmatpush1.bf16.msra.mxu0 %v7726_v13 }
 0x195   : > { %v9125_v16 = vpop.f32.mrb[20].mxu1  ;;  %4289 = vmatprep.subr.bf16.mxu0 %v12249_v8  ;;  %v1164_v55 = vrot.slane %v9169_v15, 1  ;;  %v1166_v13 = vrot.slane %v9172_v58, 1 }
 0x196   : > { %12297 = vst [vmem:[#allocation103_spill] sm:$0xff] %v9125_v16  ;;  %v2712_v18 = vpop.f32.mrb[21].mxu1  ;;  %v1162_v16 = vrot.slane %v9133_v19, 1 }
 0x197   : > { %v9144_v57 = vpop.f32.mrb[22].mxu1  ;;  %v1509_v18 = vrot.slane %v8734_v33, 2  ;;  %v1161_v33 = vsel %vm1008_vm1, %v1159_v56, %v1160_v44  ;;  %v300_v56 = vld [vmem:[%s8058_s20 + $0x220] sm:$0xff] }
 0x198   : > { %12299 = vst [vmem:[#allocation105_spill] sm:$0xff] %v9144_v57  ;;  %v2715_v11 = vpop.f32.mrb[23].mxu1  ;;  %v1163_v0 = vsel %vm1008_vm1, %v1160_v44, %v1162_v16  ;;  %v9176_v57 = vpack.c.bf16 %v9094_v26, %v9060_v10  ;;  %v301_v44 = vld [vmem:[%s8058_s20 + $0x228] sm:$0xff]  ;;  %v9192_v45 = vrot.slane %v300_v56, 7 }
 0x199   : > { %v1511_v22 = vsel %vm1421_vm2, %v1509_v18, %v1510_v14  ;;  %v9184_v14 = vpack.c.bf16 %v1163_v0, %v1161_v33  ;;  %v1165_v33 = vsel %vm1008_vm1, %v1162_v16, %v1164_v55  ;;  %v1167_v0 = vsel %vm1008_vm1, %v1164_v55, %v1166_v13 }
 0x19a   : > { %6390 = vmatmul.mubr.msk.bf16.gmra.mrb[128].mxu1 %vm8153_vm5, %v9141_v49  ;;  %3887 = vmatmul.mubr.bf16.gmra.mrb[64].mxu0 %v8716_v61  ;;  %12303 = vst [vmem:[#allocation109_spill] sm:$0xff] %v9176_v57  ;;  %v302_v61 = vld [vmem:[%s8058_s20 + $0x230] sm:$0xff]  ;;  %v1516_v49 = vrot.slane %v8759_v41, 2  ;;  %v9213_v56 = vsel %vm489_vm0, 0.0, %v9192_v45 }
 0x19b   : > { %2932 = vmatprep.mubr.bf16.mxu1 %v9146_v12  ;;  %3894 = vmatprep.mubr.bf16.mxu0 %v9148_v60  ;;  %12305 = vst [vmem:[#allocation111_spill] sm:$0xff] %v9184_v14  ;;  %v612_v60 = vrot.slane %v301_v44, 7  ;;  %v614_v5 = vrot.slane %v302_v61, 7  ;;  %v9217_v44 = vpack.c.bf16 %v9130_v20, %v9116_v35  ;;  %v1521_v35 = vrot.slane %v8783_v7, 2 }
 0x19d   : > { %v9164_v43 = vpop.f32.mrb[24].mxu1  ;;  %v9206_v61 = vsel %vm489_vm0, %v9192_v45, %v612_v60  ;;  %12308 = vst [vmem:[#allocation114_spill] sm:$0xff] %v9217_v44 }
 0x19e   : > { %12302 = vst [vmem:[#allocation108_spill] sm:$0xff] %v9164_v43  ;;  %v2720_v11 = vpop.f32.mrb[25].mxu1  ;;  %v9186_v43 = vpack.c.bf16 %v1513_v50, %v1511_v22  ;;  %v9209_v50 = vsel %vm489_vm0, %v612_v60, %v614_v5  ;;  %v1168_v60 = vrot.slane %v9213_v56, 1 }
 0x19f   : > { %v9182_v18 = vpop.f32.mrb[26].mxu1  ;;  %v1514_v11 = vrot.slane %v8756_v47, 2 }
 0x1a0   : > { %12304 = vst [vmem:[#allocation110_spill] sm:$0xff] %v9182_v18  ;;  %v2723_v17 = vpop.f32.mrb[27].mxu1  ;;  %12306 = vst [vmem:[#allocation112_spill] sm:$0xff] %v9186_v43  ;;  %v1519_v18 = vrot.slane %v8780_v52, 2 }
 0x1a1   : > { %v1515_v47 = vsel %vm1421_vm2, %v1512_v53, %v1514_v11  ;;  %v1517_v22 = vsel %vm1421_vm2, %v1514_v11, %v1516_v49  ;;  %v303_v53 = vld [vmem:[%s8058_s20 + $0x238] sm:$0xff]  ;;  %v9222_v49 = vpack.c.bf16 %v1167_v0, %v1165_v33  ;;  %v1169_v11 = vrot.slane %v9206_v61, 1 }
 0x1a2   : > { %2933 = vmatmul.mubr.bf16.gmra.mrb[132].mxu1 %v9176_v57  ;;  %3895 = vmatmul.mubr.bf16.gmra.mrb[68].mxu0 %v8741_v9  ;;  %v9224_v13 = vpack.c.bf16 %v1517_v22, %v1515_v47  ;;  %v1522_v0 = vsel %vm1421_vm2, %v1519_v18, %v1521_v35 }
 0x1a3   : > { %2940 = vmatprep.mubr.bf16.mxu1 %v9184_v14  ;;  %3902 = vmatprep.mubr.bf16.mxu0 %v9186_v43  ;;  %12310 = vst [vmem:[#allocation116_spill] sm:$0xff] %v9222_v49 }
 0x1a4   : > { %12311 = vst [vmem:[#allocation117_spill] sm:$0xff] %v9224_v13 }
 0x1a5   : > { %v9201_v41 = vpop.f32.mrb[28].mxu1 }
 0x1a6   : > { %12307 = vst [vmem:[#allocation113_spill] sm:$0xff] %v9201_v41  ;;  %v2728_v16 = vpop.f32.mrb[29].mxu1  ;;  %v1171_v41 = vrot.slane %v9209_v50, 1 }
 0x1a7   : > { %v9220_v17 = vpop.f32.mrb[30].mxu1  ;;  %v1518_v16 = vrot.slane %v8786_v24, 2  ;;  %v1170_v24 = vsel %vm1008_vm1, %v1168_v60, %v1169_v11  ;;  %v304_v60 = vld [vmem:[%s8058_s20 + $0x240] sm:$0xff] }
 0x1a8   : > { %12309 = vst [vmem:[#allocation115_spill] sm:$0xff] %v9220_v17  ;;  %v2731_v55 = vpop.f32.mrb[31].mxu1  ;;  %v616_v17 = vrot.slane %v303_v53, 7  ;;  %v1172_v52 = vsel %vm1008_vm1, %v1169_v11, %v1171_v41  ;;  %v306_v11 = vld [vmem:[%s8058_s20 + $0x250] sm:$0xff]  ;;  %v9267_v57 = vrot.slane %v304_v60, 7 }
 0x1a9   : > { %v1520_v7 = vsel %vm1421_vm2, %v1518_v16, %v1519_v18  ;;  %v9252_v55 = vpack.c.bf16 %v9169_v15, %v9133_v19  ;;  %v621_v43 = vrot.slane %v306_v11, 7  ;;  %v9292_v11 = vpack.c.bf16 %v9206_v61, %v9192_v45 }
 0x1aa   : > { %6394 = vmatmul.mubr.msk.bf16.gmra.mrb[136].mxu1 %vm8153_vm5, %v9217_v44  ;;  %3903 = vmatmul.mubr.bf16.gmra.mrb[72].mxu0 %v8769_v63  ;;  %v9245_v47 = vsel %vm489_vm0, %v614_v5, %v616_v17  ;;  %v9248_v22 = vsel %vm489_vm0, %v616_v17, 0.0  ;;  %v305_v63 = vld [vmem:[%s8058_s20 + $0x248] sm:$0xff]  ;;  %v9261_v18 = vpack.c.bf16 %v1522_v0, %v1520_v7  ;;  %v1525_v44 = vrot.slane %v8809_v46, 2 }
 0x1ab   : > { %2948 = vmatprep.mubr.bf16.mxu1 %v9222_v49  ;;  %3910 = vmatprep.mubr.bf16.mxu0 %v9224_v13  ;;  %12313 = vst [vmem:[#allocation119_spill] sm:$0xff] %v9252_v55  ;;  %v1173_v5 = vrot.slane %v9245_v47, 1  ;;  %v1175_v17 = vrot.slane %v9248_v22, 1  ;;  %v619_v13 = vrot.slane %v305_v63, 7  ;;  %v9288_v60 = vsel %vm489_vm0, 0.0, %v9267_v57  ;;  %12318 = vst [vmem:[#allocation124_spill] sm:$0xff] %v9292_v11 }
 0x1ac   : > { %12316 = vst [vmem:[#allocation122_spill] sm:$0xff] %v9261_v18  ;;  %v1530_v45 = vrot.slane %v8833_v36, 2 }
 0x1ad   : > { %v9240_v33 = vpop.f32.mrb[32].mxu1  ;;  %v9281_v7 = vsel %vm489_vm0, %v9267_v57, %v619_v13  ;;  %v9284_v0 = vsel %vm489_vm0, %v619_v13, %v621_v43  ;;  %v1177_v13 = vrot.slane %v9288_v60, 1 }
 0x1ae   : > { %12312 = vst [vmem:[#allocation118_spill] sm:$0xff] %v9240_v33  ;;  %v2736_v53 = vpop.f32.mrb[33].mxu1  ;;  %v9259_v33 = vpack.c.bf16 %v1172_v52, %v1170_v24  ;;  %v1174_v24 = vsel %vm1008_vm1, %v1171_v41, %v1173_v5  ;;  %v1176_v52 = vsel %vm1008_vm1, %v1173_v5, %v1175_v17 }
 0x1af   : > { %v9257_v9 = vpop.f32.mrb[34].mxu1  ;;  %v1523_v53 = vrot.slane %v8806_v1, 2 }
 0x1b0   : > { %12314 = vst [vmem:[#allocation120_spill] sm:$0xff] %v9257_v9  ;;  %12315 = vst [vmem:[#allocation121_spill] sm:$0xff] %v9259_v33  ;;  %v2739_v16 = vpop.f32.mrb[35].mxu1  ;;  %v1528_v9 = vrot.slane %v8830_v27, 2 }
 0x1b1   : > { %v1524_v1 = vsel %vm1421_vm2, %v1521_v35, %v1523_v53  ;;  %v1526_v63 = vsel %vm1421_vm2, %v1523_v53, %v1525_v44  ;;  %v307_v35 = vld [vmem:[%s8058_s20 + $0x258] sm:$0xff]  ;;  %v9297_v44 = vpack.c.bf16 %v1176_v52, %v1174_v24  ;;  %v1178_v53 = vrot.slane %v9281_v7, 1  ;;  %v7727_v24 = vld [vmem:[#allocation5 + $0x1c8] sm:$0xff]  }
 0x1b2   : > { %2949 = vmatmul.mubr.bf16.gmra.mrb[140].mxu1 %v9252_v55  ;;  %3911 = vmatmul.mubr.bf16.gmra.mrb[76].mxu0 %v8792_v37  ;;  %v9299_v17 = vpack.c.bf16 %v1526_v63, %v1524_v1  ;;  %v623_v37 = vrot.slane %v307_v35, 7  ;;  %v1531_v1 = vsel %vm1421_vm2, %v1528_v9, %v1530_v45 }
 0x1b3   : > { %2956 = vmatprep.mubr.bf16.mxu1 %v9259_v33  ;;  %3918 = vmatprep.mubr.bf16.mxu0 %v9261_v18  ;;  %12320 = vst [vmem:[#allocation126_spill] sm:$0xff] %v9297_v44 }
 0x1b4   : > { %12321 = vst [vmem:[#allocation127_spill] sm:$0xff] %v9299_v17  ;;  %v9320_v63 = vsel %vm489_vm0, %v621_v43, %v623_v37  ;;  %v9323_v35 = vsel %vm489_vm0, %v623_v37, 0.0  ;;  %4290 = vmatpush1.bf16.msra.mxu0 %v7727_v24 }
 0x1b5   : > { %v9276_v46 = vpop.f32.mrb[36].mxu1  ;;  %4291 = vmatprep.subr.bf16.mxu0 %v12249_v8  ;;  %v1182_v37 = vrot.slane %v9320_v63, 1  ;;  %v1184_v24 = vrot.slane %v9323_v35, 1 }
 0x1b6   : > { %12317 = vst [vmem:[#allocation123_spill] sm:$0xff] %v9276_v46  ;;  %v2744_v41 = vpop.f32.mrb[37].mxu1  ;;  %v1180_v46 = vrot.slane %v9284_v0, 1 }
 0x1b7   : > { %v9295_v16 = vpop.f32.mrb[38].mxu1  ;;  %v1527_v41 = vrot.slane %v8836_v4, 2  ;;  %v1179_v4 = vsel %vm1008_vm1, %v1177_v13, %v1178_v53  ;;  %v308_v13 = vld [vmem:[%s8058_s20 + $0x260] sm:$0xff] }
 0x1b8   : > { %12319 = vst [vmem:[#allocation125_spill] sm:$0xff] %v9295_v16  ;;  %v2747_v5 = vpop.f32.mrb[39].mxu1  ;;  %v1181_v27 = vsel %vm1008_vm1, %v1178_v53, %v1180_v46  ;;  %v9327_v16 = vpack.c.bf16 %v9245_v47, %v9209_v50  ;;  %v309_v53 = vld [vmem:[%s8058_s20 + $0x268] sm:$0xff]  ;;  %v9343_v55 = vrot.slane %v308_v13, 7 }
 0x1b9   : > { %v1529_v52 = vsel %vm1421_vm2, %v1527_v41, %v1528_v9  ;;  %v9335_v9 = vpack.c.bf16 %v1181_v27, %v1179_v4  ;;  %v1183_v4 = vsel %vm1008_vm1, %v1180_v46, %v1182_v37  ;;  %v1185_v27 = vsel %vm1008_vm1, %v1182_v37, %v1184_v24 }
 0x1ba   : > { %6398 = vmatmul.mubr.msk.bf16.gmra.mrb[144].mxu1 %vm8153_vm5, %v9292_v11  ;;  %3919 = vmatmul.mubr.bf16.gmra.mrb[80].mxu0 %v8819_v39  ;;  %12323 = vst [vmem:[#allocation129_spill] sm:$0xff] %v9327_v16  ;;  %v310_v39 = vld [vmem:[%s8058_s20 + $0x270] sm:$0xff]  ;;  %v1534_v11 = vrot.slane %v8859_v3, 2  ;;  %v9364_v13 = vsel %vm489_vm0, 0.0, %v9343_v55 }
 0x1bb   : > { %2964 = vmatprep.mubr.bf16.mxu1 %v9297_v44  ;;  %3926 = vmatprep.mubr.bf16.mxu0 %v9299_v17  ;;  %12325 = vst [vmem:[#allocation131_spill] sm:$0xff] %v9335_v9  ;;  %v626_v17 = vrot.slane %v309_v53, 7  ;;  %v628_v18 = vrot.slane %v310_v39, 7  ;;  %v9368_v53 = vpack.c.bf16 %v9281_v7, %v9267_v57  ;;  %v1539_v57 = vrot.slane %v8882_v29, 2 }
 0x1bd   : > { %v9315_v36 = vpop.f32.mrb[40].mxu1  ;;  %v9357_v39 = vsel %vm489_vm0, %v9343_v55, %v626_v17  ;;  %12328 = vst [vmem:[#allocation134_spill] sm:$0xff] %v9368_v53 }
 0x1be   : > { %12322 = vst [vmem:[#allocation128_spill] sm:$0xff] %v9315_v36  ;;  %v2752_v5 = vpop.f32.mrb[41].mxu1  ;;  %v9337_v36 = vpack.c.bf16 %v1531_v1, %v1529_v52  ;;  %v9360_v1 = vsel %vm489_vm0, %v626_v17, %v628_v18  ;;  %v1186_v17 = vrot.slane %v9364_v13, 1 }
 0x1bf   : > { %v9333_v41 = vpop.f32.mrb[42].mxu1  ;;  %v1532_v5 = vrot.slane %v8856_v59, 2 }
 0x1c0   : > { %12324 = vst [vmem:[#allocation130_spill] sm:$0xff] %v9333_v41  ;;  %v2755_v43 = vpop.f32.mrb[43].mxu1  ;;  %12326 = vst [vmem:[#allocation132_spill] sm:$0xff] %v9337_v36  ;;  %v1537_v41 = vrot.slane %v8879_v31, 2 }
 0x1c1   : > { %v1533_v59 = vsel %vm1421_vm2, %v1530_v45, %v1532_v5  ;;  %v1535_v52 = vsel %vm1421_vm2, %v1532_v5, %v1534_v11  ;;  %v311_v45 = vld [vmem:[%s8058_s20 + $0x278] sm:$0xff]  ;;  %v9373_v11 = vpack.c.bf16 %v1185_v27, %v1183_v4  ;;  %v1187_v5 = vrot.slane %v9357_v39, 1 }
 0x1c2   : > { %2965 = vmatmul.mubr.bf16.gmra.mrb[148].mxu1 %v9327_v16  ;;  %3927 = vmatmul.mubr.bf16.gmra.mrb[84].mxu0 %v8842_v2  ;;  %v9375_v24 = vpack.c.bf16 %v1535_v52, %v1533_v59  ;;  %v1540_v27 = vsel %vm1421_vm2, %v1537_v41, %v1539_v57 }
 0x1c3   : > { %2972 = vmatprep.mubr.bf16.mxu1 %v9335_v9  ;;  %3934 = vmatprep.mubr.bf16.mxu0 %v9337_v36  ;;  %12330 = vst [vmem:[#allocation136_spill] sm:$0xff] %v9373_v11 }
 0x1c4   : > { %12331 = vst [vmem:[#allocation137_spill] sm:$0xff] %v9375_v24 }
 0x1c5   : > { %v9352_v3 = vpop.f32.mrb[44].mxu1 }
 0x1c6   : > { %12327 = vst [vmem:[#allocation133_spill] sm:$0xff] %v9352_v3  ;;  %v2760_v46 = vpop.f32.mrb[45].mxu1  ;;  %v1189_v3 = vrot.slane %v9360_v1, 1 }
 0x1c7   : > { %v9371_v43 = vpop.f32.mrb[46].mxu1  ;;  %v1536_v46 = vrot.slane %v8885_v28, 2  ;;  %v1188_v28 = vsel %vm1008_vm1, %v1186_v17, %v1187_v5  ;;  %v312_v17 = vld [vmem:[%s8058_s20 + $0x280] sm:$0xff] }
 0x1c8   : > { %12329 = vst [vmem:[#allocation135_spill] sm:$0xff] %v9371_v43  ;;  %v2763_v37 = vpop.f32.mrb[47].mxu1  ;;  %v630_v43 = vrot.slane %v311_v45, 7  ;;  %v1190_v31 = vsel %vm1008_vm1, %v1187_v5, %v1189_v3  ;;  %v314_v5 = vld [vmem:[%s8058_s20 + $0x290] sm:$0xff] }
 0x1c9   : > { %v1538_v29 = vsel %vm1421_vm2, %v1536_v46, %v1537_v41  ;;  %v9403_v37 = vpack.c.bf16 %v9320_v63, %v9284_v0 }
 0x1ca   : > { %6402 = vmatmul.mubr.msk.bf16.gmra.mrb[152].mxu1 %vm8153_vm5, %v9368_v53  ;;  %3935 = vmatmul.mubr.bf16.gmra.mrb[88].mxu0 %v8868_v6  ;;  %v9396_v59 = vsel %vm489_vm0, %v628_v18, %v630_v43  ;;  %v9399_v52 = vsel %vm489_vm0, %v630_v43, 0.0  ;;  %v313_v6 = vld [vmem:[%s8058_s20 + $0x288] sm:$0xff]  ;;  %v9412_v41 = vpack.c.bf16 %v1540_v27, %v1538_v29 }
 0x1cb   : > { %2980 = vmatprep.mubr.bf16.mxu1 %v9373_v11  ;;  %3942 = vmatprep.mubr.bf16.mxu0 %v9375_v24  ;;  %12333 = vst [vmem:[#allocation139_spill] sm:$0xff] %v9399_v52  ;;  %12334 = vst [vmem:[#allocation140_spill] sm:$0xff] %v9403_v37  ;;  %v1191_v18 = vrot.slane %v9396_v59, 1  ;;  %v1193_v43 = vrot.slane %v9399_v52, 1  ;;  %v12338_v53 = vld [vmem:[#allocation72_spill] sm:$0xff]  ;;  %v9418_v24 = vrot.slane %v312_v17, 7 }
 0x1cc   : > { %12337 = vst [vmem:[#allocation143_spill] sm:$0xff] %v9412_v41  ;;  %v1543_v16 = vrot.slane %v12338_v53, 2  ;;  %v633_v36 = vrot.slane %v313_v6, 7  ;;  %v635_v11 = vrot.slane %v314_v5, 7 }
 0x1cd   : > { %v9391_v4 = vpop.f32.mrb[48].mxu1  ;;  %v1194_v29 = vsel %vm1008_vm1, %v1191_v18, %v1193_v43  ;;  %v9439_v5 = vsel %vm489_vm0, 0.0, %v9418_v24 }
 0x1ce   : > { %12332 = vst [vmem:[#allocation138_spill] sm:$0xff] %v9391_v4  ;;  %v2768_v45 = vpop.f32.mrb[49].mxu1  ;;  %v9410_v4 = vpack.c.bf16 %v1190_v31, %v1188_v28  ;;  %v12339_v28 = vld [vmem:[#allocation71_spill] sm:$0xff]  ;;  %v1192_v31 = vsel %vm1008_vm1, %v1189_v3, %v1191_v18  ;;  %v9432_v27 = vsel %vm489_vm0, %v9418_v24, %v633_v36  ;;  %v9435_v17 = vsel %vm489_vm0, %v633_v36, %v635_v11 }
 0x1cf   : > { %v9408_v2 = vpop.f32.mrb[50].mxu1  ;;  %v1541_v45 = vrot.slane %v8905_v48, 2  ;;  %12341 = vst [vmem:[#allocation144_spill] sm:$0xff] %v9439_v5  ;;  %v1195_v36 = vrot.slane %v9439_v5, 1 }
 0x1d0   : > { %12335 = vst [vmem:[#allocation141_spill] sm:$0xff] %v9408_v2  ;;  %12336 = vst [vmem:[#allocation142_spill] sm:$0xff] %v9410_v4  ;;  %v2771_v46 = vpop.f32.mrb[51].mxu1  ;;  %v1198_v2 = vrot.slane %v9435_v17, 1 }
 0x1d1   : > { %v1542_v48 = vsel %vm1421_vm2, %v1539_v57, %v1541_v45  ;;  %v1544_v6 = vsel %vm1421_vm2, %v1541_v45, %v1543_v16  ;;  %v9443_v46 = vpack.c.bf16 %v9357_v39, %v9343_v55  ;;  %v315_v57 = vld [vmem:[%s8058_s20 + $0x298] sm:$0xff]  ;;  %v9448_v16 = vpack.c.bf16 %v1194_v29, %v1192_v31  ;;  %v7728_v29 = vld [vmem:[#allocation5 + $0x1d0] sm:$0xff]  }
 0x1d2   : > { %2981 = vmatmul.mubr.bf16.gmra.mrb[156].mxu1 %v9403_v37  ;;  %3943 = vmatmul.mubr.bf16.gmra.mrb[92].mxu0 %v12339_v28  ;;  %v9450_v45 = vpack.c.bf16 %v1544_v6, %v1542_v48  ;;  %v12346_v28 = vld [vmem:[#allocation75_spill] sm:$0xff]  ;;  %v1546_v37 = vrot.slane %v8929_v21, 2  ;;  %v1548_v55 = vrot.slane %v8932_v30, 2  ;;  %v12347_v31 = vld [vmem:[#allocation74_spill] sm:$0xff] }
 0x1d3   : > { %2988 = vmatprep.mubr.bf16.mxu1 %v9410_v4  ;;  %3950 = vmatprep.mubr.bf16.mxu0 %v9412_v41  ;;  %12342 = vst [vmem:[#allocation145_spill] sm:$0xff] %v9443_v46  ;;  %12344 = vst [vmem:[#allocation147_spill] sm:$0xff] %v9448_v16  ;;  %v637_v41 = vrot.slane %v315_v57, 7 }
 0x1d4   : > { %12345 = vst [vmem:[#allocation148_spill] sm:$0xff] %v9450_v45  ;;  %v1549_v6 = vsel %vm1421_vm2, %v1546_v37, %v1548_v55  ;;  %4292 = vmatpush1.bf16.msra.mxu0 %v7728_v29  ;;  %v1550_v29 = vrot.slane %v8957_v23, 2 }
 0x1d5   : > { %v9427_v53 = vpop.f32.mrb[52].mxu1  ;;  %v9471_v57 = vsel %vm489_vm0, %v635_v11, %v637_v41  ;;  %4293 = vmatprep.subr.bf16.mxu0 %v12249_v8 }
 0x1d6   : > { %12340 = vst [vmem:[#allocation72_spill] sm:$0xff] %v9427_v53  ;;  %v2776_v3 = vpop.f32.mrb[53].mxu1  ;;  %v1196_v53 = vrot.slane %v9432_v27, 1  ;;  %v1551_v23 = vsel %vm1421_vm2, %v1548_v55, %v1550_v29  ;;  %v319_v55 = vld [vmem:[%s8058_s20 + $0x2b8] sm:$0xff] }
 0x1d7   : > { %v9446_v18 = vpop.f32.mrb[54].mxu1  ;;  %v1545_v3 = vrot.slane %v12346_v28, 2 }
 0x1d8   : > { %12343 = vst [vmem:[#allocation146_spill] sm:$0xff] %v9446_v18  ;;  %v2779_v43 = vpop.f32.mrb[55].mxu1  ;;  %v1197_v28 = vsel %vm1008_vm1, %v1195_v36, %v1196_v53  ;;  %v1199_v21 = vsel %vm1008_vm1, %v1196_v53, %v1198_v2  ;;  %v316_v36 = vld [vmem:[%s8058_s20 + $0x2a0] sm:$0xff]  ;;  %v317_v53 = vld [vmem:[%s8058_s20 + $0x2a8] sm:$0xff] }
 0x1d9   : > { %v1547_v48 = vsel %vm1421_vm2, %v1545_v3, %v1546_v37  ;;  %v9474_v43 = vsel %vm489_vm0, %v637_v41, 0.0  ;;  %v9486_v37 = vpack.c.bf16 %v1199_v21, %v1197_v28  ;;  %v1200_v41 = vrot.slane %v9471_v57, 1  ;;  %v12354_v28 = vld [vmem:[#allocation77_spill] sm:$0xff] }
 0x1da   : > { %6406 = vmatmul.mubr.msk.bf16.gmra.mrb[160].mxu1 %vm8153_vm5, %v9443_v46  ;;  %3951 = vmatmul.mubr.bf16.gmra.mrb[96].mxu0 %v12347_v31  ;;  %v9478_v31 = vpack.c.bf16 %v9396_v59, %v9360_v1  ;;  %v318_v46 = vld [vmem:[%s8058_s20 + $0x2b0] sm:$0xff]  ;;  %v9494_v4 = vrot.slane %v316_v36, 7  ;;  %v640_v5 = vrot.slane %v317_v53, 7 }
 0x1db   : > { %2996 = vmatprep.mubr.bf16.mxu1 %v9448_v16  ;;  %3958 = vmatprep.mubr.bf16.mxu0 %v9450_v45  ;;  %12351 = vst [vmem:[#allocation151_spill] sm:$0xff] %v9486_v37  ;;  %v12353_v45 = vld [vmem:[#allocation79_spill] sm:$0xff]  ;;  %v642_v52 = vrot.slane %v318_v46, 7  ;;  %v1201_v21 = vsel %vm1008_vm1, %v1198_v2, %v1200_v41 }
 0x1dc   : > { %12349 = vst [vmem:[#allocation149_spill] sm:$0xff] %v9478_v31  ;;  %v1552_v16 = vrot.slane %v12353_v45, 2  ;;  %v9508_v46 = vsel %vm489_vm0, %v9494_v4, %v640_v5  ;;  %v9515_v53 = vsel %vm489_vm0, 0.0, %v9494_v4 }
 0x1dd   : > { %v9466_v30 = vpop.f32.mrb[56].mxu1  ;;  %v9511_v36 = vsel %vm489_vm0, %v640_v5, %v642_v52  ;;  %v1204_v5 = vrot.slane %v9515_v53, 1 }
 0x1de   : > { %12348 = vst [vmem:[#allocation75_spill] sm:$0xff] %v9466_v30  ;;  %v2784_v18 = vpop.f32.mrb[57].mxu1  ;;  %v9488_v30 = vpack.c.bf16 %v1549_v6, %v1547_v48  ;;  %v1553_v6 = vsel %vm1421_vm2, %v1550_v29, %v1552_v16 }
 0x1df   : > { %v9484_v3 = vpop.f32.mrb[58].mxu1  ;;  %v1202_v18 = vrot.slane %v9474_v43, 1  ;;  %v9526_v29 = vpack.c.bf16 %v1553_v6, %v1551_v23 }
 0x1e0   : > { %12350 = vst [vmem:[#allocation150_spill] sm:$0xff] %v9484_v3  ;;  %v2787_v11 = vpop.f32.mrb[59].mxu1  ;;  %12352 = vst [vmem:[#allocation152_spill] sm:$0xff] %v9488_v30  ;;  %v1207_v3 = vrot.slane %v9511_v36, 1 }
 0x1e1   : > { %v1203_v48 = vsel %vm1008_vm1, %v1200_v41, %v1202_v18  ;;  %v9519_v11 = vpack.c.bf16 %v9432_v27, %v9418_v24  ;;  %12359 = vst [vmem:[#allocation156_spill] sm:$0xff] %v9526_v29  ;;  %v1555_v24 = vrot.slane %v8987_v62, 2 }
 0x1e2   : > { %2997 = vmatmul.mubr.bf16.gmra.mrb[164].mxu1 %v9478_v31  ;;  %3959 = vmatmul.mubr.bf16.gmra.mrb[100].mxu0 %v12354_v28  ;;  %v9524_v16 = vpack.c.bf16 %v1203_v48, %v1201_v21  ;;  %v644_v21 = vrot.slane %v319_v55, 7  ;;  %v12360_v48 = vld [vmem:[#allocation82_spill] sm:$0xff]  ;;  %v321_v28 = vld [vmem:[%s8058_s20 + $0x2c8] sm:$0xff] }
 0x1e3   : > { %3004 = vmatprep.mubr.bf16.mxu1 %v9486_v37  ;;  %3966 = vmatprep.mubr.bf16.mxu0 %v9488_v30  ;;  %12356 = vst [vmem:[#allocation153_spill] sm:$0xff] %v9519_v11  ;;  %v12364_v31 = vld [vmem:[#allocation88_spill] sm:$0xff]  ;;  %v647_v30 = vrot.slane %v321_v28, 7  ;;  %v12365_v37 = vld [vmem:[#allocation86_spill] sm:$0xff] }
 0x1e4   : > { %12358 = vst [vmem:[#allocation155_spill] sm:$0xff] %v9524_v16  ;;  %v9548_v55 = vsel %vm489_vm0, %v644_v21, 0.0 }
 0x1e5   : > { %v9503_v45 = vpop.f32.mrb[60].mxu1 }
 0x1e6   : > { %12355 = vst [vmem:[#allocation79_spill] sm:$0xff] %v9503_v45  ;;  %v2792_v2 = vpop.f32.mrb[61].mxu1  ;;  %v1205_v45 = vrot.slane %v9508_v46, 1 }
 0x1e7   : > { %v9522_v41 = vpop.f32.mrb[62].mxu1  ;;  %v1554_v2 = vrot.slane %v8994_v51, 2 }
 0x1e8   : > { %12357 = vst [vmem:[#allocation154_spill] sm:$0xff] %v9522_v41  ;;  %v2795_v18 = vpop.f32.mrb[63].mxu1  ;;  %v1557_v41 = vrot.slane %v8990_v32, 2  ;;  %v1206_v23 = vsel %vm1008_vm1, %v1204_v5, %v1205_v45  ;;  %v1208_v51 = vsel %vm1008_vm1, %v1205_v45, %v1207_v3  ;;  %v9545_v32 = vsel %vm489_vm0, %v642_v52, %v644_v21 }
 0x1e9   : > { %v1556_v62 = vsel %vm1421_vm2, %v1554_v2, %v1555_v24  ;;  %v9552_v18 = vpack.c.bf16 %v9471_v57, %v9435_v17  ;;  %v9557_v5 = vpack.c.bf16 %v1208_v51, %v1206_v23  ;;  %v1209_v2 = vrot.slane %v9545_v32, 1 }
 0x1ea   : > { %6410 = vmatmul.mubr.msk.bf16.gmra.mrb[168].mxu1 %vm8153_vm5, %v9519_v11  ;;  %3967 = vmatmul.mubr.bf16.gmra.mrb[104].mxu0 %v12360_v48  ;;  %v1558_v6 = vsel %vm1421_vm2, %v1555_v24, %v1557_v41  ;;  %v320_v48 = vld [vmem:[%s8058_s20 + $0x2c0] sm:$0xff]  ;;  %v322_v11 = vld [vmem:[%s8058_s20 + $0x2d0] sm:$0xff]  ;;  %v1211_v24 = vrot.slane %v9548_v55, 1  ;;  %v1559_v52 = vrot.slane %v9024_v34, 2  ;;  %v1561_v21 = vrot.slane %v12364_v31, 2 }
 0x1eb   : > { %3012 = vmatprep.mubr.bf16.mxu1 %v9524_v16  ;;  %3974 = vmatprep.mubr.bf16.mxu0 %v9526_v29  ;;  %12361 = vst [vmem:[#allocation157_spill] sm:$0xff] %v9552_v18  ;;  %12362 = vst [vmem:[#allocation158_spill] sm:$0xff] %v9557_v5  ;;  %v9559_v45 = vpack.c.bf16 %v1558_v6, %v1556_v62  ;;  %v646_v29 = vrot.slane %v320_v48, 7  ;;  %v649_v16 = vrot.slane %v322_v11, 7 }
 0x1ec   : > { %v1210_v23 = vsel %vm1008_vm1, %v1207_v3, %v1209_v2  ;;  %v1212_v51 = vsel %vm1008_vm1, %v1209_v2, %v1211_v24  ;;  %v1560_v34 = vsel %vm1421_vm2, %v1557_v41, %v1559_v52  ;;  %v1562_v31 = vsel %vm1421_vm2, %v1559_v52, %v1561_v21  ;;  %v323_v3 = vld [vmem:[%s8058_s20 + $0x2d8] sm:$0xff] }
 0x1ed   : > { %12363 = vst [vmem:[#allocation159_spill] sm:$0xff] %v9559_v45  ;;  %v9574_v48 = vsel %vm489_vm0, %v646_v29, %v647_v30  ;;  %v9577_v28 = vsel %vm489_vm0, %v647_v30, %v649_v16  ;;  %v9580_v11 = vsel %vm489_vm0, 0.0, %v646_v29  ;;  %v9584_v62 = vpack.c.bf16 %v9508_v46, %v9494_v4  ;;  %v12370_v30 = vld [vmem:[#allocation94_spill] sm:$0xff] }
 0x1ee   : > { %12366 = vst [vmem:[#allocation88_spill] sm:$0xff] %v9580_v11  ;;  %v9587_v6 = vpack.c.bf16 %v1212_v51, %v1210_v23  ;;  %v9589_v2 = vpack.c.bf16 %v1562_v31, %v1560_v34  ;;  %v1213_v41 = vrot.slane %v9580_v11, 1  ;;  %v1214_v24 = vrot.slane %v9574_v48, 1  ;;  %v12371_v23 = vld [vmem:[#allocation91_spill] sm:$0xff]  ;;  %v7729_v51 = vld [vmem:[#allocation5 + $0x1d8] sm:$0xff]   ;;  %v12375_v11 = vld [vmem:[#allocation97_spill] sm:$0xff] }
 0x1ef   : > { %12367 = vst [vmem:[#allocation160_spill] sm:$0xff] %v9584_v62  ;;  %v1216_v52 = vrot.slane %v9577_v28, 1  ;;  %v1563_v21 = vrot.slane %v12370_v30, 2  ;;  %v651_v4 = vrot.slane %v323_v3, 7  ;;  %4294 = vmatpush1.bf16.msra.mxu0 %v7729_v51  ;;  %v1570_v51 = vrot.slane %v9097_v25, 2 }
 0x1f0   : > { %12368 = vst [vmem:[#allocation161_spill] sm:$0xff] %v9587_v6  ;;  %12369 = vst [vmem:[#allocation162_spill] sm:$0xff] %v9589_v2  ;;  %v1215_v34 = vsel %vm1008_vm1, %v1213_v41, %v1214_v24  ;;  %v326_v41 = vld [vmem:[%s8058_s20 + $0x2f0] sm:$0xff]  ;;  %4295 = vmatprep.subr.bf16.mxu0 %v12249_v8 }
 0x1f1   : > { %v9608_v3 = vsel %vm489_vm0, %v649_v16, %v651_v4  ;;  %v9611_v30 = vsel %vm489_vm0, %v651_v4, 0.0  ;;  %v1568_v4 = vrot.slane %v9094_v26, 2 }
 0x1f2   : > { %3013 = vmatmul.mubr.bf16.gmra.mrb[172].mxu1 %v9552_v18  ;;  %3975 = vmatmul.mubr.bf16.gmra.mrb[108].mxu0 %v12365_v37  ;;  %v1564_v37 = vrot.slane %v9057_v40, 2  ;;  %v1566_v18 = vrot.slane %v9060_v10, 2  ;;  %v1217_v40 = vsel %vm1008_vm1, %v1214_v24, %v1216_v52  ;;  %v1220_v16 = vrot.slane %v9611_v30, 1 }
 0x1f3   : > { %3020 = vmatprep.mubr.bf16.mxu1 %v9557_v5  ;;  %3982 = vmatprep.mubr.bf16.mxu0 %v9559_v45  ;;  %v9621_v24 = vpack.c.bf16 %v1217_v40, %v1215_v34  ;;  %v656_v5 = vrot.slane %v326_v41, 7  ;;  %v1571_v25 = vsel %vm1421_vm2, %v1568_v4, %v1570_v51  ;;  %v327_v41 = vld [vmem:[%s8058_s20 + $0x2f8] sm:$0xff]  ;;  %v1573_v51 = vrot.slane %v9130_v20, 2 }
 0x1f4   : > { %v1565_v10 = vsel %vm1421_vm2, %v1563_v21, %v1564_v37  ;;  %v1567_v31 = vsel %vm1421_vm2, %v1564_v37, %v1566_v18  ;;  %v1218_v37 = vrot.slane %v9608_v3, 1  ;;  %v1569_v26 = vsel %vm1421_vm2, %v1566_v18, %v1568_v4 }
 0x1f5   : > { %12373 = vst [vmem:[#allocation163_spill] sm:$0xff] %v9621_v24  ;;  %v9623_v21 = vpack.c.bf16 %v1567_v31, %v1565_v10  ;;  %v9647_v31 = vpack.c.bf16 %v9574_v48, %v646_v29  ;;  %v1575_v29 = vrot.slane %v9133_v19, 2 }
 0x1f6   : > { %v1219_v34 = vsel %vm1008_vm1, %v1216_v52, %v1218_v37  ;;  %v1221_v40 = vsel %vm1008_vm1, %v1218_v37, %v1220_v16  ;;  %v9652_v37 = vpack.c.bf16 %v1571_v25, %v1569_v26  ;;  %v9678_v25 = vpack.c.bf16 %v9608_v3, %v9577_v28 }
 0x1f7   : > { %12374 = vst [vmem:[#allocation164_spill] sm:$0xff] %v9623_v21  ;;  %12376 = vst [vmem:[#allocation165_spill] sm:$0xff] %v9647_v31  ;;  %v9650_v52 = vpack.c.bf16 %v1221_v40, %v1219_v34  ;;  %v1576_v40 = vsel %vm1421_vm2, %v1573_v51, %v1575_v29 }
 0x1f8   : > { %12378 = vst [vmem:[#allocation167_spill] sm:$0xff] %v9652_v37  ;;  %12379 = vst [vmem:[#allocation168_spill] sm:$0xff] %v9678_v25 }
 0x1f9   : > { %12377 = vst [vmem:[#allocation166_spill] sm:$0xff] %v9650_v52 }
 0x1fa   : > { %6414 = vmatmul.mubr.msk.bf16.gmra.mrb[176].mxu1 %vm8153_vm5, %v9584_v62  ;;  %3983 = vmatmul.mubr.bf16.gmra.mrb[112].mxu0 %v12371_v23  ;;  %v9615_v23 = vpack.c.bf16 %v9545_v32, %v9511_v36  ;;  %v324_v62 = vld [vmem:[%s8058_s20 + $0x2e0] sm:$0xff] }
 0x1fb   : > { %3028 = vmatprep.mubr.bf16.mxu1 %v9587_v6  ;;  %3990 = vmatprep.mubr.bf16.mxu0 %v9589_v2  ;;  %v325_v2 = vld [vmem:[%s8058_s20 + $0x2e8] sm:$0xff]  ;;  %v653_v45 = vrot.slane %v324_v62, 7 }
 0x1fc   : > { %12372 = vst [vmem:[#allocation94_spill] sm:$0xff] %v9615_v23  ;;  %v654_v6 = vrot.slane %v325_v2, 7 }
 0x1fd   : > { %v9644_v10 = vsel %vm489_vm0, 0.0, %v653_v45 }
 0x1fe   : > { %v9638_v62 = vsel %vm489_vm0, %v653_v45, %v654_v6  ;;  %v9641_v2 = vsel %vm489_vm0, %v654_v6, %v656_v5  ;;  %v1222_v18 = vrot.slane %v9644_v10, 1  ;;  %v1572_v6 = vrot.slane %v9137_v54, 2 }
 0x1ff   : > { %v1223_v16 = vrot.slane %v9638_v62, 1  ;;  %v1225_v4 = vrot.slane %v9641_v2, 1 }
 0x200   : > { %v1574_v20 = vsel %vm1421_vm2, %v1572_v6, %v1573_v51 }
 0x201   : > { %v1224_v34 = vsel %vm1008_vm1, %v1222_v18, %v1223_v16  ;;  %v1226_v54 = vsel %vm1008_vm1, %v1223_v16, %v1225_v4  ;;  %v9685_v16 = vpack.c.bf16 %v1576_v40, %v1574_v20  ;;  %v9713_v40 = vpack.c.bf16 %v9638_v62, %v653_v45  ;;  %v7730_v45 = vld [vmem:[#allocation5 + $0x1e0] sm:$0xff]  }
 0x202   : > { %3029 = vmatmul.mubr.bf16.gmra.mrb[180].mxu1 %v9615_v23  ;;  %3991 = vmatmul.mubr.bf16.gmra.mrb[116].mxu0 %v12375_v11  ;;  %v658_v11 = vrot.slane %v327_v41, 7  ;;  %v328_v41 = vld [vmem:[%s8058_s20 + $0x300] sm:$0xff]  ;;  %v9683_v18 = vpack.c.bf16 %v1226_v54, %v1224_v34 }
 0x203   : > { %3036 = vmatprep.mubr.bf16.mxu1 %v9621_v24  ;;  %3998 = vmatprep.mubr.bf16.mxu0 %v9623_v21  ;;  %12381 = vst [vmem:[#allocation170_spill] sm:$0xff] %v9685_v16  ;;  %v9691_v23 = vrot.slane %v328_v41, 7  ;;  %12382 = vst [vmem:[#allocation171_spill] sm:$0xff] %v9713_v40 }
 0x204   : > { %v9671_v19 = vsel %vm489_vm0, %v656_v5, %v658_v11  ;;  %v9674_v26 = vsel %vm489_vm0, %v658_v11, 0.0  ;;  %12380 = vst [vmem:[#allocation169_spill] sm:$0xff] %v9683_v18  ;;  %v1577_v5 = vrot.slane %v9169_v15, 2  ;;  %v1579_v11 = vrot.slane %v9172_v58, 2  ;;  %4296 = vmatpush1.bf16.msra.mxu0 %v7730_v45 }
 0x205   : > { %v1227_v6 = vrot.slane %v9671_v19, 1  ;;  %v1229_v51 = vrot.slane %v9674_v26, 1  ;;  %v9710_v20 = vsel %vm489_vm0, 0.0, %v9691_v23  ;;  %4297 = vmatprep.subr.bf16.mxu0 %v12249_v8  ;;  %v1586_v45 = vrot.slane %v9245_v47, 2 }
 0x206   : > { %v1578_v15 = vsel %vm1421_vm2, %v1575_v29, %v1577_v5  ;;  %v1580_v58 = vsel %vm1421_vm2, %v1577_v5, %v1579_v11  ;;  %v1582_v11 = vrot.slane %v9206_v61, 2 }
 0x207   : > { %v1228_v34 = vsel %vm1008_vm1, %v1225_v4, %v1227_v6  ;;  %v1230_v54 = vsel %vm1008_vm1, %v1227_v6, %v1229_v51  ;;  %v331_v4 = vld [vmem:[%s8058_s20 + $0x318] sm:$0xff]  ;;  %v9718_v29 = vpack.c.bf16 %v1580_v58, %v1578_v15  ;;  %v1231_v6 = vrot.slane %v9710_v20, 1 }
 0x208   : > { %v9716_v41 = vpack.c.bf16 %v1230_v54, %v1228_v34  ;;  %v9731_v34 = vld [vmem:[#allocation5 + $0x200] sm:$0xff]  }
 0x209   : > { %12384 = vst [vmem:[#allocation173_spill] sm:$0xff] %v9718_v29  ;;  %12385 = vst [vmem:[#allocation174_spill] sm:$0xff] %v9731_v34  ;;  %6788 = vmatprep.subr.bf16.mxu1 %v9731_v34 }
 0x20a   : > { %6418 = vmatmul.mubr.msk.bf16.gmra.mrb[184].mxu1 %vm8153_vm5, %v9647_v31  ;;  %3999 = vmatmul.mubr.bf16.gmra.mrb[120].mxu0 %v9108_v38  ;;  %v329_v38 = vld [vmem:[%s8058_s20 + $0x308] sm:$0xff]  ;;  %v330_v31 = vld [vmem:[%s8058_s20 + $0x310] sm:$0xff]  ;;  %12383 = vst [vmem:[#allocation172_spill] sm:$0xff] %v9716_v41 }
 0x20b   : > { %3044 = vmatprep.mubr.bf16.mxu1 %v9650_v52  ;;  %4006 = vmatprep.mubr.bf16.mxu0 %v9652_v37  ;;  %v661_v37 = vrot.slane %v329_v38, 7  ;;  %v663_v21 = vrot.slane %v330_v31, 7 }
 0x20d   : > { %v9703_v38 = vsel %vm489_vm0, %v9691_v23, %v661_v37  ;;  %v9706_v31 = vsel %vm489_vm0, %v661_v37, %v663_v21  ;;  %v1581_v37 = vrot.slane %v9213_v56, 2 }
 0x20e   : > { %v1232_v51 = vrot.slane %v9703_v38, 1  ;;  %v1234_v5 = vrot.slane %v9706_v31, 1 }
 0x20f   : > { %v1583_v56 = vsel %vm1421_vm2, %v1581_v37, %v1582_v11 }
 0x210   : > { %v1233_v61 = vsel %vm1008_vm1, %v1231_v6, %v1232_v51  ;;  %v332_v6 = vld [vmem:[%s8058_s20 + $0x320] sm:$0xff] }
 0x212   : > { %3045 = vmatmul.mubr.bf16.gmra.mrb[188].mxu1 %v9678_v25  ;;  %4007 = vmatmul.mubr.bf16.gmra.mrb[124].mxu0 %v9146_v12  ;;  %v1584_v12 = vrot.slane %v9209_v50, 2  ;;  %v665_v25 = vrot.slane %v331_v4, 7  ;;  %v1235_v50 = vsel %vm1008_vm1, %v1232_v51, %v1234_v5  ;;  %v9747_v4 = vpack.c.bf16 %v9671_v19, %v9641_v2  ;;  %v334_v51 = vld [vmem:[%s8058_s20 + $0x330] sm:$0xff] }
 0x213   : > { %3052 = vmatprep.mubr.bf16.mxu1 %v9683_v18  ;;  %4014 = vmatprep.mubr.bf16.mxu0 %v9685_v16  ;;  %v9753_v37 = vpack.c.bf16 %v1235_v50, %v1233_v61  ;;  %v670_v34 = vrot.slane %v334_v51, 7 }
 0x214   : > { %v1585_v54 = vsel %vm1421_vm2, %v1582_v11, %v1584_v12  ;;  %v9739_v15 = vsel %vm489_vm0, %v663_v21, %v665_v25  ;;  %v9742_v58 = vsel %vm489_vm0, %v665_v25, 0.0  ;;  %12386 = vst [vmem:[#allocation175_spill] sm:$0xff] %v9747_v4  ;;  %v1587_v47 = vsel %vm1421_vm2, %v1584_v12, %v1586_v45 }
 0x215   : > { %12387 = vst [vmem:[#allocation176_spill] sm:$0xff] %v9753_v37  ;;  %v9755_v11 = vpack.c.bf16 %v1585_v54, %v1583_v56  ;;  %v1236_v21 = vrot.slane %v9739_v15, 1  ;;  %v1238_v25 = vrot.slane %v9742_v58, 1 }
 0x217   : > { %12388 = vst [vmem:[#allocation177_spill] sm:$0xff] %v9755_v11  ;;  %v1237_v61 = vsel %vm1008_vm1, %v1234_v5, %v1236_v21  ;;  %v1239_v50 = vsel %vm1008_vm1, %v1236_v21, %v1238_v25  ;;  %v335_v5 = vld [vmem:[%s8058_s20 + $0x338] sm:$0xff] }
 0x218   : > { %v9783_v51 = vpack.c.bf16 %v1239_v50, %v1237_v61 }
 0x21a   : > { %6422 = vmatmul.mubr.msk.bf16.gmra.mrb[192].mxu1 %vm8153_vm5, %v9713_v40  ;;  %4015 = vmatmul.mubr.bf16.gmra.mrb[128].mxu0 %v9184_v14  ;;  %v333_v14 = vld [vmem:[%s8058_s20 + $0x328] sm:$0xff]  ;;  %v1588_v40 = vrot.slane %v9248_v22, 2  ;;  %12390 = vst [vmem:[#allocation179_spill] sm:$0xff] %v9783_v51 }
 0x21b   : > { %3060 = vmatprep.mubr.bf16.mxu1 %v9716_v41  ;;  %4022 = vmatprep.mubr.bf16.mxu0 %v9718_v29  ;;  %v667_v29 = vrot.slane %v332_v6, 7  ;;  %v668_v16 = vrot.slane %v333_v14, 7  ;;  %v9780_v6 = vpack.c.bf16 %v9703_v38, %v9691_v23  ;;  %v1593_v23 = vrot.slane %v9284_v0, 2 }
 0x21c   : > { %v1589_v22 = vsel %vm1421_vm2, %v1586_v45, %v1588_v40  ;;  %v1591_v45 = vrot.slane %v9281_v7, 2 }
 0x21d   : > { %v9770_v56 = vsel %vm489_vm0, %v667_v29, %v668_v16  ;;  %v9773_v14 = vsel %vm489_vm0, %v668_v16, %v670_v34  ;;  %v9776_v54 = vsel %vm489_vm0, 0.0, %v667_v29  ;;  %12389 = vst [vmem:[#allocation178_spill] sm:$0xff] %v9780_v6  ;;  %v9785_v21 = vpack.c.bf16 %v1589_v22, %v1587_v47 }
 0x21e   : > { %v1240_v12 = vrot.slane %v9776_v54, 1  ;;  %v1241_v40 = vrot.slane %v9770_v56, 1  ;;  %v1243_v25 = vrot.slane %v9773_v14, 1  ;;  %v1590_v16 = vrot.slane %v9288_v60, 2 }
 0x21f   : > { %12391 = vst [vmem:[#allocation180_spill] sm:$0xff] %v9785_v21  ;;  %v1594_v50 = vsel %vm1421_vm2, %v1591_v45, %v1593_v23  ;;  %v9811_v22 = vpack.c.bf16 %v9739_v15, %v9706_v31 }
 0x220   : > { %v1242_v61 = vsel %vm1008_vm1, %v1240_v12, %v1241_v40  ;;  %v1244_v60 = vsel %vm1008_vm1, %v1241_v40, %v1243_v25  ;;  %v1592_v7 = vsel %vm1421_vm2, %v1590_v16, %v1591_v45 }
 0x221   : > { %12392 = vst [vmem:[#allocation181_spill] sm:$0xff] %v9811_v22  ;;  %v9816_v12 = vpack.c.bf16 %v1244_v60, %v1242_v61  ;;  %v9818_v40 = vpack.c.bf16 %v1594_v50, %v1592_v7  ;;  %v9842_v50 = vpack.c.bf16 %v9770_v56, %v667_v29 }
 0x222   : > { %3061 = vmatmul.mubr.bf16.gmra.mrb[196].mxu1 %v9747_v4  ;;  %4023 = vmatmul.mubr.bf16.gmra.mrb[132].mxu0 %v9222_v49  ;;  %v672_v49 = vrot.slane %v335_v5, 7  ;;  %v336_v5 = vld [vmem:[%s8058_s20 + $0x340] sm:$0xff] }
 0x223   : > { %3068 = vmatprep.mubr.bf16.mxu1 %v9753_v37  ;;  %4030 = vmatprep.mubr.bf16.mxu0 %v9755_v11  ;;  %12393 = vst [vmem:[#allocation182_spill] sm:$0xff] %v9816_v12  ;;  %12394 = vst [vmem:[#allocation183_spill] sm:$0xff] %v9818_v40  ;;  %v674_v4 = vrot.slane %v336_v5, 7  ;;  %v339_v5 = vld [vmem:[%s8058_s20 + $0x358] sm:$0xff] }
 0x224   : > { %v9804_v0 = vsel %vm489_vm0, %v670_v34, %v672_v49  ;;  %v9807_v47 = vsel %vm489_vm0, %v672_v49, 0.0  ;;  %v1595_v34 = vrot.slane %v9320_v63, 2  ;;  %v1597_v49 = vrot.slane %v9323_v35, 2  ;;  %12395 = vst [vmem:[#allocation184_spill] sm:$0xff] %v9842_v50 }
 0x225   : > { %v1245_v16 = vrot.slane %v9804_v0, 1  ;;  %v1247_v45 = vrot.slane %v9807_v47, 1  ;;  %v679_v29 = vrot.slane %v339_v5, 7  ;;  %v9873_v5 = vpack.c.bf16 %v9804_v0, %v9773_v14 }
 0x226   : > { %v1596_v63 = vsel %vm1421_vm2, %v1593_v23, %v1595_v34  ;;  %v1598_v35 = vsel %vm1421_vm2, %v1595_v34, %v1597_v49  ;;  %v1600_v49 = vrot.slane %v9357_v39, 2 }
 0x227   : > { %v1246_v61 = vsel %vm1008_vm1, %v1243_v25, %v1245_v16  ;;  %v1248_v60 = vsel %vm1008_vm1, %v1245_v16, %v1247_v45  ;;  %v9847_v16 = vpack.c.bf16 %v1598_v35, %v1596_v63  ;;  %v9869_v35 = vsel %vm489_vm0, %v679_v29, 0.0  ;;  %12398 = vst [vmem:[#allocation187_spill] sm:$0xff] %v9873_v5 }
 0x228   : > { %v9845_v25 = vpack.c.bf16 %v1248_v60, %v1246_v61  ;;  %v7732_v61 = vld [vmem:[#allocation5 + $0x1e8] sm:$0xff]  }
 0x229   : > { %12397 = vst [vmem:[#allocation186_spill] sm:$0xff] %v9847_v16  ;;  %4298 = vmatpush1.bf16.msra.mxu0 %v7732_v61  ;;  %v12401_v61 = vld [vmem:[#allocation139_spill] sm:$0xff] }
 0x22a   : > { %6426 = vmatmul.mubr.msk.bf16.gmra.mrb[200].mxu1 %vm8153_vm5, %v9780_v6  ;;  %4031 = vmatmul.mubr.bf16.gmra.mrb[136].mxu0 %v9259_v33  ;;  %v337_v33 = vld [vmem:[%s8058_s20 + $0x348] sm:$0xff]  ;;  %v338_v6 = vld [vmem:[%s8058_s20 + $0x350] sm:$0xff]  ;;  %12396 = vst [vmem:[#allocation185_spill] sm:$0xff] %v9845_v25 }
 0x22b   : > { %3076 = vmatprep.mubr.bf16.mxu1 %v9783_v51  ;;  %4038 = vmatprep.mubr.bf16.mxu0 %v9785_v21  ;;  %v675_v21 = vrot.slane %v337_v33, 7  ;;  %v677_v11 = vrot.slane %v338_v6, 7  ;;  %v9839_v6 = vsel %vm489_vm0, 0.0, %v674_v4 }
 0x22c   : > { %v1249_v23 = vrot.slane %v9839_v6, 1  ;;  %4299 = vmatprep.subr.bf16.mxu0 %v12249_v8 }
 0x22d   : > { %v9833_v7 = vsel %vm489_vm0, %v674_v4, %v675_v21  ;;  %v9836_v33 = vsel %vm489_vm0, %v675_v21, %v677_v11  ;;  %v1599_v21 = vrot.slane %v9364_v13, 2  ;;  %v9866_v63 = vsel %vm489_vm0, %v677_v11, %v679_v29 }
 0x22e   : > { %v1250_v45 = vrot.slane %v9833_v7, 1  ;;  %v1252_v34 = vrot.slane %v9836_v33, 1  ;;  %v1254_v11 = vrot.slane %v9866_v63, 1  ;;  %v1604_v29 = vrot.slane %v9396_v59, 2 }
 0x230   : > { %v1251_v13 = vsel %vm1008_vm1, %v1249_v23, %v1250_v45  ;;  %v1253_v39 = vsel %vm1008_vm1, %v1250_v45, %v1252_v34  ;;  %v342_v23 = vld [vmem:[%s8058_s20 + $0x370] sm:$0xff] }
 0x231   : > { %v9879_v45 = vpack.c.bf16 %v1253_v39, %v1251_v13  ;;  %v1255_v13 = vsel %vm1008_vm1, %v1252_v34, %v1254_v11 }
 0x232   : > { %3077 = vmatmul.mubr.bf16.gmra.mrb[204].mxu1 %v9811_v22  ;;  %4039 = vmatmul.mubr.bf16.gmra.mrb[140].mxu0 %v9297_v44  ;;  %v1602_v44 = vrot.slane %v9360_v1, 2  ;;  %v1601_v1 = vsel %vm1421_vm2, %v1599_v21, %v1600_v49  ;;  %v1606_v22 = vrot.slane %v12401_v61, 2  ;;  %v343_v61 = vld [vmem:[%s8058_s20 + $0x378] sm:$0xff] }
 0x233   : > { %3084 = vmatprep.mubr.bf16.mxu1 %v9816_v12  ;;  %4046 = vmatprep.mubr.bf16.mxu0 %v9818_v40  ;;  %12399 = vst [vmem:[#allocation188_spill] sm:$0xff] %v9879_v45  ;;  %v12402_v12 = vld [vmem:[#allocation136_spill] sm:$0xff] }
 0x234   : > { %v1603_v60 = vsel %vm1421_vm2, %v1600_v49, %v1602_v44  ;;  %v1256_v49 = vrot.slane %v9869_v35, 1  ;;  %v1605_v59 = vsel %vm1421_vm2, %v1602_v44, %v1604_v29 }
 0x235   : > { %v9881_v21 = vpack.c.bf16 %v1603_v60, %v1601_v1  ;;  %v1607_v1 = vsel %vm1421_vm2, %v1604_v29, %v1606_v22  ;;  %v12407_v29 = vld [vmem:[#allocation144_spill] sm:$0xff] }
 0x236   : > { %v1257_v39 = vsel %vm1008_vm1, %v1254_v11, %v1256_v49  ;;  %v9910_v11 = vpack.c.bf16 %v1607_v1, %v1605_v59 }
 0x237   : > { %12400 = vst [vmem:[#allocation189_spill] sm:$0xff] %v9881_v21  ;;  %v9908_v34 = vpack.c.bf16 %v1257_v39, %v1255_v13  ;;  %v12408_v13 = vld [vmem:[#allocation142_spill] sm:$0xff] }
 0x238   : > { %12406 = vst [vmem:[#allocation192_spill] sm:$0xff] %v9910_v11 }
 0x239   : > { %12405 = vst [vmem:[#allocation191_spill] sm:$0xff] %v9908_v34 }
 0x23a   : > { %6430 = vmatmul.mubr.msk.bf16.gmra.mrb[208].mxu1 %vm8153_vm5, %v9842_v50  ;;  %4047 = vmatmul.mubr.bf16.gmra.mrb[144].mxu0 %v9335_v9  ;;  %v340_v9 = vld [vmem:[%s8058_s20 + $0x360] sm:$0xff]  ;;  %v341_v50 = vld [vmem:[%s8058_s20 + $0x368] sm:$0xff] }
 0x23b   : > { %3092 = vmatprep.mubr.bf16.mxu1 %v9845_v25  ;;  %4054 = vmatprep.mubr.bf16.mxu0 %v9847_v16  ;;  %v681_v16 = vrot.slane %v340_v9, 7  ;;  %v682_v40 = vrot.slane %v341_v50, 7  ;;  %v684_v25 = vrot.slane %v342_v23, 7  ;;  %v9905_v23 = vpack.c.bf16 %v9833_v7, %v674_v4 }
 0x23c   : > { %v1611_v4 = vrot.slane %v9435_v17, 2 }
 0x23d   : > { %v9896_v9 = vsel %vm489_vm0, %v681_v16, %v682_v40  ;;  %v9899_v50 = vsel %vm489_vm0, %v682_v40, %v684_v25  ;;  %v9902_v60 = vsel %vm489_vm0, 0.0, %v681_v16  ;;  %12404 = vst [vmem:[#allocation190_spill] sm:$0xff] %v9905_v23  ;;  %v1608_v40 = vrot.slane %v12407_v29, 2 }
 0x23e   : > { %12403 = vst [vmem:[#allocation139_spill] sm:$0xff] %v9902_v60  ;;  %v1258_v44 = vrot.slane %v9902_v60, 1  ;;  %v1259_v22 = vrot.slane %v9896_v9, 1  ;;  %v1261_v49 = vrot.slane %v9899_v50, 1  ;;  %v9936_v29 = vpack.c.bf16 %v9866_v63, %v9836_v33  ;;  %v12412_v60 = vld [vmem:[#allocation147_spill] sm:$0xff] }
 0x240   : > { %v1260_v39 = vsel %vm1008_vm1, %v1258_v44, %v1259_v22  ;;  %v1262_v59 = vsel %vm1008_vm1, %v1259_v22, %v1261_v49  ;;  %12409 = vst [vmem:[#allocation144_spill] sm:$0xff] %v9936_v29 }
 0x241   : > { %v9941_v44 = vpack.c.bf16 %v1262_v59, %v1260_v39 }
 0x242   : > { %3093 = vmatmul.mubr.bf16.gmra.mrb[212].mxu1 %v9873_v5  ;;  %4055 = vmatmul.mubr.bf16.gmra.mrb[148].mxu0 %v12402_v12  ;;  %v1609_v12 = vrot.slane %v9432_v27, 2  ;;  %v686_v5 = vrot.slane %v343_v61, 7 }
 0x243   : > { %3100 = vmatprep.mubr.bf16.mxu1 %v9879_v45  ;;  %4062 = vmatprep.mubr.bf16.mxu0 %v9881_v21  ;;  %12410 = vst [vmem:[#allocation193_spill] sm:$0xff] %v9941_v44 }
 0x244   : > { %v1610_v27 = vsel %vm1421_vm2, %v1608_v40, %v1609_v12  ;;  %v1612_v1 = vsel %vm1421_vm2, %v1609_v12, %v1611_v4  ;;  %v9929_v17 = vsel %vm489_vm0, %v684_v25, %v686_v5  ;;  %v9932_v61 = vsel %vm489_vm0, %v686_v5, 0.0 }
 0x245   : > { %v9943_v22 = vpack.c.bf16 %v1612_v1, %v1610_v27  ;;  %v1263_v40 = vrot.slane %v9929_v17, 1  ;;  %v1265_v12 = vrot.slane %v9932_v61, 1  ;;  %v1613_v25 = vrot.slane %v9471_v57, 2  ;;  %v347_v1 = vld [vmem:[%s8058_s20 + $0x398] sm:$0xff] }
 0x246   : > { %v1615_v5 = vrot.slane %v9474_v43, 2  ;;  %v9967_v27 = vpack.c.bf16 %v9896_v9, %v681_v16  ;;  %v693_v16 = vrot.slane %v347_v1, 7 }
 0x247   : > { %12411 = vst [vmem:[#allocation194_spill] sm:$0xff] %v9943_v22  ;;  %v1264_v39 = vsel %vm1008_vm1, %v1261_v49, %v1263_v40  ;;  %v1266_v59 = vsel %vm1008_vm1, %v1263_v40, %v1265_v12  ;;  %v1614_v57 = vsel %vm1421_vm2, %v1611_v4, %v1613_v25 }
 0x248   : > { %v1616_v43 = vsel %vm1421_vm2, %v1613_v25, %v1615_v5  ;;  %12413 = vst [vmem:[#allocation195_spill] sm:$0xff] %v9967_v27  ;;  %v9970_v49 = vpack.c.bf16 %v1266_v59, %v1264_v39  ;;  %v1618_v5 = vrot.slane %v9508_v46, 2  ;;  %v12416_v39 = vld [vmem:[#allocation151_spill] sm:$0xff]  ;;  %v7734_v59 = vld [vmem:[#allocation5 + $0x1f0] sm:$0xff]   ;;  %v9994_v1 = vsel %vm489_vm0, %v693_v16, 0.0 }
 0x249   : > { %v9972_v40 = vpack.c.bf16 %v1616_v43, %v1614_v57  ;;  %4300 = vmatpush1.bf16.msra.mxu0 %v7734_v59  ;;  %v1624_v59 = vrot.slane %v9548_v55, 2 }
 0x24a   : > { %6434 = vmatmul.mubr.msk.bf16.gmra.mrb[216].mxu1 %vm8153_vm5, %v9905_v23  ;;  %4063 = vmatmul.mubr.bf16.gmra.mrb[152].mxu0 %v12408_v13  ;;  %v344_v13 = vld [vmem:[%s8058_s20 + $0x380] sm:$0xff]  ;;  %v345_v23 = vld [vmem:[%s8058_s20 + $0x388] sm:$0xff]  ;;  %12414 = vst [vmem:[#allocation196_spill] sm:$0xff] %v9970_v49 }
 0x24b   : > { %3108 = vmatprep.mubr.bf16.mxu1 %v9908_v34  ;;  %4070 = vmatprep.mubr.bf16.mxu0 %v9910_v11  ;;  %v346_v11 = vld [vmem:[%s8058_s20 + $0x390] sm:$0xff]  ;;  %v688_v21 = vrot.slane %v344_v13, 7  ;;  %v689_v34 = vrot.slane %v345_v23, 7  ;;  %12415 = vst [vmem:[#allocation197_spill] sm:$0xff] %v9972_v40 }
 0x24c   : > { %v691_v45 = vrot.slane %v346_v11, 7  ;;  %4301 = vmatprep.subr.bf16.mxu0 %v12249_v8 }
 0x24d   : > { %v9958_v13 = vsel %vm489_vm0, %v688_v21, %v689_v34  ;;  %v9964_v11 = vsel %vm489_vm0, 0.0, %v688_v21 }
 0x24e   : > { %v9961_v23 = vsel %vm489_vm0, %v689_v34, %v691_v45  ;;  %v1267_v4 = vrot.slane %v9964_v11, 1  ;;  %v1268_v12 = vrot.slane %v9958_v13, 1  ;;  %v1617_v34 = vrot.slane %v9515_v53, 2 }
 0x24f   : > { %v1270_v25 = vrot.slane %v9961_v23, 1  ;;  %v9991_v43 = vsel %vm489_vm0, %v691_v45, %v693_v16  ;;  %v1622_v16 = vrot.slane %v9545_v32, 2 }
 0x250   : > { %v1269_v53 = vsel %vm1008_vm1, %v1267_v4, %v1268_v12  ;;  %v350_v4 = vld [vmem:[%s8058_s20 + $0x3b0] sm:$0xff]  ;;  %v1272_v45 = vrot.slane %v9991_v43, 1 }
 0x251   : > { %v1271_v46 = vsel %vm1008_vm1, %v1268_v12, %v1270_v25  ;;  %v1625_v55 = vsel %vm1421_vm2, %v1622_v16, %v1624_v59  ;;  %v1627_v59 = vrot.slane %v9574_v48, 2 }
 0x252   : > { %3109 = vmatmul.mubr.bf16.gmra.mrb[220].mxu1 %v9936_v29  ;;  %4071 = vmatmul.mubr.bf16.gmra.mrb[156].mxu0 %v12412_v60  ;;  %v1620_v60 = vrot.slane %v9511_v36, 2  ;;  %v1619_v36 = vsel %vm1421_vm2, %v1617_v34, %v1618_v5  ;;  %v349_v29 = vld [vmem:[%s8058_s20 + $0x3a8] sm:$0xff]  ;;  %v10004_v12 = vpack.c.bf16 %v1271_v46, %v1269_v53  ;;  %v1273_v8 = vsel %vm1008_vm1, %v1270_v25, %v1272_v45 }
 0x253   : > { %3116 = vmatprep.mubr.bf16.mxu1 %v9941_v44  ;;  %4078 = vmatprep.mubr.bf16.mxu0 %v9943_v22  ;;  %v696_v22 = vrot.slane %v349_v29, 7  ;;  %v12420_v44 = vld [vmem:[#allocation155_spill] sm:$0xff] }
 0x254   : > { %v1621_v57 = vsel %vm1421_vm2, %v1618_v5, %v1620_v60  ;;  %12418 = vst [vmem:[#allocation199_spill] sm:$0xff] %v10004_v12  ;;  %v1274_v5 = vrot.slane %v9994_v1, 1  ;;  %v1623_v32 = vsel %vm1421_vm2, %v1620_v60, %v1622_v16  ;;  %v12424_v16 = vld [vmem:[#allocation88_spill] sm:$0xff] }
 0x255   : > { %v10006_v34 = vpack.c.bf16 %v1621_v57, %v1619_v36  ;;  %v10030_v36 = vpack.c.bf16 %v9958_v13, %v688_v21  ;;  %v351_v57 = vld [vmem:[%s8058_s20 + $0x3b8] sm:$0xff]  ;;  %v1629_v21 = vrot.slane %v9577_v28, 2 }
 0x256   : > { %v1275_v53 = vsel %vm1008_vm1, %v1272_v45, %v1274_v5 }
 0x257   : > { %12419 = vst [vmem:[#allocation200_spill] sm:$0xff] %v10006_v34  ;;  %12421 = vst [vmem:[#allocation201_spill] sm:$0xff] %v10030_v36  ;;  %v10033_v25 = vpack.c.bf16 %v1275_v53, %v1273_v8  ;;  %v12425_v8 = vld [vmem:[#allocation158_spill] sm:$0xff] }
 0x259   : > { %12422 = vst [vmem:[#allocation202_spill] sm:$0xff] %v10033_v25 }
 0x25a   : > { %6438 = vmatmul.mubr.msk.bf16.gmra.mrb[224].mxu1 %vm8153_vm5, %v9967_v27  ;;  %4079 = vmatmul.mubr.bf16.gmra.mrb[160].mxu0 %v12416_v39  ;;  %v9998_v39 = vpack.c.bf16 %v9929_v17, %v9899_v50  ;;  %v348_v27 = vld [vmem:[%s8058_s20 + $0x3a0] sm:$0xff] }
 0x25b   : > { %3124 = vmatprep.mubr.bf16.mxu1 %v9970_v49  ;;  %4086 = vmatprep.mubr.bf16.mxu0 %v9972_v40  ;;  %v695_v40 = vrot.slane %v348_v27, 7  ;;  %v698_v49 = vrot.slane %v350_v4, 7  ;;  %v10035_v4 = vpack.c.bf16 %v1625_v55, %v1623_v32  ;;  %v1630_v55 = vsel %vm1421_vm2, %v1627_v59, %v1629_v21 }
 0x25c   : > { %12417 = vst [vmem:[#allocation198_spill] sm:$0xff] %v9998_v39 }
 0x25d   : > { %v10021_v27 = vsel %vm489_vm0, %v695_v40, %v696_v22  ;;  %v10024_v29 = vsel %vm489_vm0, %v696_v22, %v698_v49  ;;  %v10027_v46 = vsel %vm489_vm0, 0.0, %v695_v40  ;;  %12423 = vst [vmem:[#allocation203_spill] sm:$0xff] %v10035_v4  ;;  %v1626_v22 = vrot.slane %v12424_v16, 2 }
 0x25e   : > { %v1276_v60 = vrot.slane %v10027_v46, 1  ;;  %v1277_v45 = vrot.slane %v10021_v27, 1  ;;  %v1279_v5 = vrot.slane %v10024_v29, 1  ;;  %v10061_v16 = vpack.c.bf16 %v9991_v43, %v9961_v23 }
 0x25f   : > { %v1628_v48 = vsel %vm1421_vm2, %v1626_v22, %v1627_v59 }
 0x260   : > { %v1278_v53 = vsel %vm1008_vm1, %v1276_v60, %v1277_v45  ;;  %v1280_v32 = vsel %vm1008_vm1, %v1277_v45, %v1279_v5  ;;  %12426 = vst [vmem:[#allocation88_spill] sm:$0xff] %v10061_v16  ;;  %v10068_v45 = vpack.c.bf16 %v1630_v55, %v1628_v48  ;;  %v10092_v48 = vpack.c.bf16 %v10021_v27, %v695_v40  ;;  %v355_v55 = vld [vmem:[%s8058_s20 + $0x3d8] sm:$0xff] }
 0x261   : > { %v10066_v60 = vpack.c.bf16 %v1280_v32, %v1278_v53  ;;  %v7735_v40 = vld [vmem:[#allocation5 + $0x1f8] sm:$0xff]  }
 0x262   : > { %3125 = vmatmul.mubr.bf16.gmra.mrb[228].mxu1 %v9998_v39  ;;  %4087 = vmatmul.mubr.bf16.gmra.mrb[164].mxu0 %v12420_v44  ;;  %v700_v44 = vrot.slane %v351_v57, 7  ;;  %v354_v39 = vld [vmem:[%s8058_s20 + $0x3d0] sm:$0xff]  ;;  %12428 = vst [vmem:[#allocation205_spill] sm:$0xff] %v10068_v45 }
 0x263   : > { %3132 = vmatprep.mubr.bf16.mxu1 %v10004_v12  ;;  %4094 = vmatprep.mubr.bf16.mxu0 %v10006_v34  ;;  %12427 = vst [vmem:[#allocation204_spill] sm:$0xff] %v10066_v60  ;;  %v12429_v12 = vld [vmem:[#allocation161_spill] sm:$0xff] }
 0x264   : > { %v10054_v28 = vsel %vm489_vm0, %v698_v49, %v700_v44  ;;  %v10057_v57 = vsel %vm489_vm0, %v700_v44, 0.0  ;;  %v1631_v49 = vrot.slane %v9608_v3, 2  ;;  %v1633_v44 = vrot.slane %v9611_v30, 2  ;;  %4302 = vmatpush1.bf16.msra.mxu0 %v7735_v40 }
 0x265   : > { %v1281_v22 = vrot.slane %v10054_v28, 1  ;;  %v1283_v59 = vrot.slane %v10057_v57, 1 }
 0x266   : > { %v1632_v3 = vsel %vm1421_vm2, %v1629_v21, %v1631_v49  ;;  %v1634_v30 = vsel %vm1421_vm2, %v1631_v49, %v1633_v44  ;;  %v1636_v44 = vrot.slane %v9638_v62, 2 }
 0x267   : > { %v1282_v53 = vsel %vm1008_vm1, %v1279_v5, %v1281_v22  ;;  %v1284_v32 = vsel %vm1008_vm1, %v1281_v22, %v1283_v59  ;;  %v10097_v22 = vpack.c.bf16 %v1634_v30, %v1632_v3  ;;  %v10123_v30 = vpack.c.bf16 %v10054_v28, %v10024_v29 }
 0x268   : > { %v10095_v5 = vpack.c.bf16 %v1284_v32, %v1282_v53 }
 0x269   : > { %12431 = vst [vmem:[#allocation207_spill] sm:$0xff] %v10097_v22 }
 0x26a   : > { %6442 = vmatmul.mubr.msk.bf16.gmra.mrb[232].mxu1 %vm8153_vm5, %v10030_v36  ;;  %4095 = vmatmul.mubr.bf16.gmra.mrb[168].mxu0 %v12425_v8  ;;  %v352_v8 = vld [vmem:[%s8058_s20 + $0x3c0] sm:$0xff]  ;;  %v353_v36 = vld [vmem:[%s8058_s20 + $0x3c8] sm:$0xff]  ;;  %12430 = vst [vmem:[#allocation206_spill] sm:$0xff] %v10095_v5 }
 0x26b   : > { %3140 = vmatprep.mubr.bf16.mxu1 %v10033_v25  ;;  %4102 = vmatprep.mubr.bf16.mxu0 %v10035_v4  ;;  %v702_v4 = vrot.slane %v352_v8, 7  ;;  %v703_v34 = vrot.slane %v353_v36, 7  ;;  %v705_v25 = vrot.slane %v354_v39, 7 }
 0x26d   : > { %v10083_v8 = vsel %vm489_vm0, %v702_v4, %v703_v34  ;;  %v10086_v39 = vsel %vm489_vm0, %v703_v34, %v705_v25  ;;  %v10089_v36 = vsel %vm489_vm0, 0.0, %v702_v4  ;;  %v1635_v34 = vrot.slane %v9644_v10, 2 }
 0x26e   : > { %v1285_v21 = vrot.slane %v10089_v36, 1  ;;  %v1286_v59 = vrot.slane %v10083_v8, 1  ;;  %v1288_v49 = vrot.slane %v10086_v39, 1 }
 0x26f   : > { %v1637_v62 = vsel %vm1421_vm2, %v1635_v34, %v1636_v44 }
 0x270   : > { %v1287_v53 = vsel %vm1008_vm1, %v1285_v21, %v1286_v59  ;;  %v1289_v10 = vsel %vm1008_vm1, %v1286_v59, %v1288_v49 }
 0x272   : > { %3141 = vmatmul.mubr.bf16.gmra.mrb[236].mxu1 %v10061_v16  ;;  %4103 = vmatmul.mubr.bf16.gmra.mrb[172].mxu0 %v12429_v12  ;;  %v1638_v12 = vrot.slane %v9641_v2, 2  ;;  %v707_v16 = vrot.slane %v355_v55, 7  ;;  %v10125_v55 = vpack.c.bf16 %v1289_v10, %v1287_v53 }
 0x273   : > { %3148 = vmatprep.mubr.bf16.mxu1 %v10066_v60  ;;  %4110 = vmatprep.mubr.bf16.mxu0 %v10068_v45 }
 0x274   : > { %v1639_v2 = vsel %vm1421_vm2, %v1636_v44, %v1638_v12  ;;  %v10116_v32 = vsel %vm489_vm0, %v705_v25, %v707_v16  ;;  %v10119_v3 = vsel %vm489_vm0, %v707_v16, 0.0  ;;  %12432 = vst [vmem:[#allocation208_spill] sm:$0xff] %v10125_v55  ;;  %v1640_v44 = vrot.slane %v9671_v19, 2 }
 0x275   : > { %v10127_v21 = vpack.c.bf16 %v1639_v2, %v1637_v62  ;;  %v1290_v59 = vrot.slane %v10116_v32, 1  ;;  %v1292_v34 = vrot.slane %v10119_v3, 1  ;;  %v1642_v25 = vrot.slane %v9674_v26, 2 }
 0x276   : > { %v1641_v53 = vsel %vm1421_vm2, %v1638_v12, %v1640_v44  ;;  %v10142_v19 = vpack.c.bf16 %v10083_v8, %v702_v4  ;;  %v1644_v2 = vrot.slane %v9710_v20, 2  ;;  %v10161_v20 = vpack.c.bf16 %v10116_v32, %v10086_v39 }
 0x277   : > { %12433 = vst [vmem:[#allocation209_spill] sm:$0xff] %v10127_v21  ;;  %v1291_v16 = vsel %vm1008_vm1, %v1288_v49, %v1290_v59  ;;  %v1293_v40 = vsel %vm1008_vm1, %v1290_v59, %v1292_v34  ;;  %v1643_v10 = vsel %vm1421_vm2, %v1640_v44, %v1642_v25  ;;  %v1651_v49 = vrot.slane %v9742_v58, 2  ;;  %v12437_v59 = vld [vmem:[#allocation58_spill] sm:$0xff] }
 0x278   : > { %v10144_v26 = vpack.c.bf16 %v1293_v40, %v1291_v16  ;;  %v10146_v62 = vpack.c.bf16 %v1643_v10, %v1641_v53  ;;  %v1654_v58 = vrot.slane %v9770_v56, 2  ;;  %v1656_v25 = vrot.slane %v9773_v14, 2  ;;  %v7733_v16 = vld [vmem:[#allocation5 + $0x208] sm:$0xff]   ;;  %v12440_v53 = vld [vmem:[#allocation174_spill] sm:$0xff] }
 0x279   : > { %v12439_v40 = vld [vmem:[#allocation92_spill] sm:$0xff]  ;;  %v1658_v14 = vrot.slane %v9804_v0, 2  ;;  %v1662_v0 = vrot.slane %v9839_v6, 2 }
 0x27a   : > { %6446 = vmatmul.mubr.msk.bf16.gmra.mrb[240].mxu1 %vm8153_vm5, %v10092_v48  ;;  %4111 = vmatmul.mubr.bf16.gmra.mrb[176].mxu0 %v9621_v24  ;;  %12434 = vst [vmem:[#allocation210_spill] sm:$0xff] %v10144_v26  ;;  %12435 = vst [vmem:[#allocation211_spill] sm:$0xff] %v10146_v62  ;;  %v1647_v24 = vrot.slane %v9706_v31, 2  ;;  %v1649_v31 = vrot.slane %v9739_v15, 2  ;;  %v1653_v15 = vrot.slane %v9776_v54, 2  ;;  %v12441_v10 = vld [vmem:[#allocation60_spill] sm:$0xff]  ;;  %v1657_v54 = vsel %vm1421_vm2, %v1654_v58, %v1656_v25 }
 0x27b   : > { %3156 = vmatprep.mubr.bf16.mxu1 %v10095_v5  ;;  %4118 = vmatprep.mubr.bf16.mxu0 %v10097_v22 }
 0x27c   : > { %v1652_v34 = vsel %vm1421_vm2, %v1649_v31, %v1651_v49  ;;  %v1659_v49 = vsel %vm1421_vm2, %v1656_v25, %v1658_v14 }
 0x282   : > { %3157 = vmatmul.mubr.bf16.gmra.mrb[244].mxu1 %v10123_v30  ;;  %4119 = vmatmul.mubr.bf16.gmra.mrb[180].mxu0 %v9650_v52  ;;  %v1645_v52 = vrot.slane %v9703_v38, 2 }
 0x283   : > { %3164 = vmatprep.mubr.bf16.mxu1 %v10125_v55  ;;  %4126 = vmatprep.mubr.bf16.mxu0 %v10127_v21 }
 0x284   : > { %v1646_v12 = vsel %vm1421_vm2, %v1644_v2, %v1645_v52  ;;  %v1648_v4 = vsel %vm1421_vm2, %v1645_v52, %v1647_v24  ;;  %v1650_v52 = vsel %vm1421_vm2, %v1647_v24, %v1649_v31  ;;  %v7736_v24 = vld [vmem:[#allocation5 + $0x210] sm:$0xff]   ;;  %v1655_v2 = vsel %vm1421_vm2, %v1653_v15, %v1654_v58  ;;  %v12444_v31 = vld [vmem:[#allocation62_spill] sm:$0xff] }
 0x285   : > { %v10163_v38 = vpack.c.bf16 %v1648_v4, %v1646_v12  ;;  %v10175_v44 = vpack.c.bf16 %v1652_v34, %v1650_v52  ;;  %v10187_v56 = vpack.c.bf16 %v1657_v54, %v1655_v2  ;;  %v1660_v12 = vrot.slane %v9807_v47, 2  ;;  %v12443_v4 = vld [vmem:[#allocation55_spill] sm:$0xff]  ;;  %v12446_v58 = vld [vmem:[#allocation102_spill] sm:$0xff] }
 0x286   : > { %v1663_v47 = vrot.slane %v9833_v7, 2  ;;  %v1665_v15 = vrot.slane %v9836_v33, 2  ;;  %v7737_v2 = vld [vmem:[#allocation5 + $0x218] sm:$0xff]   ;;  %v1667_v7 = vrot.slane %v9866_v63, 2  ;;  %v1669_v33 = vrot.slane %v9869_v35, 2  ;;  %v12450_v54 = vld [vmem:[#allocation107_spill] sm:$0xff] }
 0x287   : > { %12436 = vst [vmem:[#allocation212_spill] sm:$0xff] %v10163_v38  ;;  %12438 = vst [vmem:[#allocation58_spill] sm:$0xff] %v10175_v44  ;;  %v1661_v52 = vsel %vm1421_vm2, %v1658_v14, %v1660_v12  ;;  %v12451_v14 = vld [vmem:[#allocation185_spill] sm:$0xff]  ;;  %v12452_v12 = vld [vmem:[#allocation66_spill] sm:$0xff]  ;;  %v1672_v35 = vrot.slane %v9896_v9, 2  ;;  %v1678_v9 = vrot.slane %v9932_v61, 2 }
 0x288   : > { %12442 = vst [vmem:[#allocation92_spill] sm:$0xff] %v10187_v56  ;;  %v10199_v34 = vpack.c.bf16 %v1661_v52, %v1659_v49  ;;  %v1664_v25 = vsel %vm1421_vm2, %v1662_v0, %v1663_v47  ;;  %v1668_v49 = vsel %vm1421_vm2, %v1665_v15, %v1667_v7  ;;  %v1670_v52 = vsel %vm1421_vm2, %v1667_v7, %v1669_v33 }
 0x289   : > { %v10222_v0 = vpack.c.bf16 %v1670_v52, %v1668_v49  ;;  %v1676_v49 = vrot.slane %v9929_v17, 2  ;;  %v12459_v52 = vld [vmem:[#allocation117_spill] sm:$0xff]  ;;  %v1680_v17 = vrot.slane %v9964_v11, 2  ;;  %v1681_v61 = vrot.slane %v9958_v13, 2 }
 0x28a   : > { %6450 = vmatmul.mubr.msk.bf16.gmra.mrb[248].mxu1 %vm8153_vm5, %v10142_v19  ;;  %4127 = vmatmul.mubr.bf16.gmra.mrb[184].mxu0 %v9683_v18  ;;  %12445 = vst [vmem:[#allocation174_spill] sm:$0xff] %v10199_v34  ;;  %v1685_v11 = vrot.slane %v9991_v43, 2  ;;  %v1687_v13 = vrot.slane %v9994_v1, 2  ;;  %v1689_v43 = vrot.slane %v10027_v46, 2  ;;  %v1690_v1 = vrot.slane %v10021_v27, 2 }
 0x28b   : > { %3172 = vmatprep.mubr.bf16.mxu1 %v10144_v26  ;;  %4134 = vmatprep.mubr.bf16.mxu0 %v10146_v62  ;;  %12453 = vst [vmem:[#allocation55_spill] sm:$0xff] %v10222_v0  ;;  %v1694_v27 = vrot.slane %v10054_v28, 2 }
 0x292   : > { %3173 = vmatmul.mubr.bf16.gmra.mrb[252].mxu1 %v10161_v20  ;;  %4135 = vmatmul.mubr.bf16.gmra.mrb[188].mxu0 %v9716_v41 }
 0x293   : > { %6486 = vmatprep.mubr.msk.bf16.mxu1 %vm8153_vm5, %v12437_v59  ;;  %4142 = vmatprep.mubr.bf16.mxu0 %v10163_v38 }
 0x29a   : > { %3342 = vmatmul.mubr.bf16.vlgmr.msra.gmra.mrb[64].mxu1 %v12439_v40  ;;  %4143 = vmatmul.mubr.bf16.gmra.mrb[192].mxu0 %v9753_v37  ;;  %v7738_v37 = vld [vmem:[#allocation5 + $0x220] sm:$0xff]  }
 0x29b   : > { %6789 = vmatpush3.bf16.msra.mxu1 %v12440_v53  ;;  %3349 = vmatprep.mubr.bf16.mxu1 %v12441_v10  ;;  %v12448_v53 = vld [vmem:[#allocation64_spill] sm:$0xff] }
 0x29c   : > { %4150 = vmatprep.mubr.bf16.mxu0 %v10175_v44  ;;  %6790 = vmatprep.subr.bf16.mxu1 %v7733_v16 }
 0x29f   : > { %6791 = vmatpush3.bf16.msra.mxu1 %v7733_v16  ;;  %v12447_v16 = vld [vmem:[#allocation182_spill] sm:$0xff] }
 0x2a0   : > { %6792 = vmatprep.subr.bf16.mxu1 %v7736_v24 }
 0x2a2   : > { %3350 = vmatmul.mubr.bf16.gmra.mrb[68].mxu1 %v12443_v4  ;;  %4151 = vmatmul.mubr.bf16.gmra.mrb[196].mxu0 %v9783_v51  ;;  %v12473_v51 = vld [vmem:[#allocation80_spill] sm:$0xff] }
 0x2a3   : > { %6490 = vmatprep.mubr.msk.bf16.mxu1 %vm8153_vm5, %v12444_v31  ;;  %4158 = vmatprep.mubr.bf16.mxu0 %v10187_v56 }
 0x2a4   : > { %6793 = vmatpush3.bf16.msra.mxu1 %v7736_v24  ;;  %v1666_v24 = vsel %vm1421_vm2, %v1663_v47, %v1665_v15  ;;  %v12454_v47 = vld [vmem:[#allocation139_spill] sm:$0xff] }
 0x2a5   : > { %6794 = vmatprep.subr.bf16.mxu1 %v7737_v2  ;;  %v10210_v6 = vpack.c.bf16 %v1666_v24, %v1664_v25  ;;  %v1671_v63 = vrot.slane %v12454_v47, 2  ;;  %v12455_v25 = vld [vmem:[#allocation112_spill] sm:$0xff]  ;;  %v12461_v47 = vld [vmem:[#allocation70_spill] sm:$0xff] }
 0x2a6   : > { %v12456_v24 = vld [vmem:[#allocation188_spill] sm:$0xff] }
 0x2a7   : > { %12449 = vst [vmem:[#allocation60_spill] sm:$0xff] %v10210_v6  ;;  %v1673_v15 = vsel %vm1421_vm2, %v1671_v63, %v1672_v35 }
 0x2a8   : > { %6795 = vmatpush3.bf16.msra.mxu1 %v7737_v2  ;;  %v1674_v2 = vrot.slane %v9899_v50, 2  ;;  %v12460_v50 = vld [vmem:[#allocation191_spill] sm:$0xff] }
 0x2a9   : > { %6796 = vmatprep.subr.bf16.mxu1 %v7738_v37 }
 0x2aa   : > { %3358 = vmatmul.mubr.bf16.gmra.mrb[72].mxu1 %v12446_v58  ;;  %4159 = vmatmul.mubr.bf16.gmra.mrb[200].mxu0 %v12447_v16  ;;  %v1675_v7 = vsel %vm1421_vm2, %v1672_v35, %v1674_v2  ;;  %v1677_v63 = vsel %vm1421_vm2, %v1674_v2, %v1676_v49  ;;  %v1679_v35 = vsel %vm1421_vm2, %v1676_v49, %v1678_v9  ;;  %v12465_v16 = vld [vmem:[#allocation73_spill] sm:$0xff] }
 0x2ab   : > { %3365 = vmatprep.mubr.bf16.mxu1 %v12448_v53  ;;  %4166 = vmatprep.mubr.bf16.mxu0 %v10199_v34  ;;  %v10233_v33 = vpack.c.bf16 %v1675_v7, %v1673_v15  ;;  %v10245_v15 = vpack.c.bf16 %v1679_v35, %v1677_v63  ;;  %v1683_v7 = vrot.slane %v9961_v23, 2  ;;  %v1682_v2 = vsel %vm1421_vm2, %v1680_v17, %v1681_v61  ;;  %v12467_v63 = vld [vmem:[#allocation127_spill] sm:$0xff]  ;;  %v12468_v23 = vld [vmem:[#allocation196_spill] sm:$0xff] }
 0x2ac   : > { %v12469_v35 = vld [vmem:[#allocation76_spill] sm:$0xff]  ;;  %6797 = vmatpush3.bf16.msra.mxu1 %v7738_v37 }
 0x2ad   : > { %12458 = vst [vmem:[#allocation62_spill] sm:$0xff] %v10233_v33  ;;  %12462 = vst [vmem:[#allocation64_spill] sm:$0xff] %v10245_v15  ;;  %v1684_v49 = vsel %vm1421_vm2, %v1681_v61, %v1683_v7  ;;  %v1686_v17 = vsel %vm1421_vm2, %v1683_v7, %v1685_v11  ;;  %v1688_v61 = vsel %vm1421_vm2, %v1685_v11, %v1687_v13  ;;  %v12475_v13 = vld [vmem:[#allocation137_spill] sm:$0xff] }
 0x2ae   : > { %v10256_v9 = vpack.c.bf16 %v1684_v49, %v1682_v2  ;;  %v10268_v2 = vpack.c.bf16 %v1688_v61, %v1686_v17  ;;  %v1692_v49 = vrot.slane %v10024_v29, 2  ;;  %v1691_v7 = vsel %vm1421_vm2, %v1689_v43, %v1690_v1  ;;  %v12476_v17 = vld [vmem:[#allocation202_spill] sm:$0xff]  ;;  %v12477_v61 = vld [vmem:[#allocation84_spill] sm:$0xff] }
 0x2af   : > { %v1696_v29 = vrot.slane %v10057_v57, 2  ;;  %v1698_v57 = vrot.slane %v10089_v36, 2 }
 0x2b0   : > { %12466 = vst [vmem:[#allocation66_spill] sm:$0xff] %v10256_v9  ;;  %12470 = vst [vmem:[#allocation139_spill] sm:$0xff] %v10268_v2  ;;  %v1693_v11 = vsel %vm1421_vm2, %v1690_v1, %v1692_v49  ;;  %v1695_v37 = vsel %vm1421_vm2, %v1692_v49, %v1694_v27  ;;  %v1699_v1 = vrot.slane %v10083_v8, 2  ;;  %v1703_v8 = vrot.slane %v10116_v32, 2 }
 0x2b1   : > { %v10279_v46 = vpack.c.bf16 %v1693_v11, %v1691_v7  ;;  %v1697_v43 = vsel %vm1421_vm2, %v1694_v27, %v1696_v29  ;;  %v1701_v7 = vrot.slane %v10086_v39, 2  ;;  %v12478_v11 = vld [vmem:[#allocation143_spill] sm:$0xff]  ;;  %v1705_v39 = vrot.slane %v10119_v3, 2 }
 0x2b2   : > { %3366 = vmatmul.mubr.bf16.gmra.mrb[76].mxu1 %v12450_v54  ;;  %4167 = vmatmul.mubr.bf16.gmra.mrb[204].mxu0 %v12451_v14  ;;  %v12457_v14 = vld [vmem:[#allocation68_spill] sm:$0xff]  ;;  %v10291_v28 = vpack.c.bf16 %v1697_v43, %v1695_v37  ;;  %v1700_v49 = vsel %vm1421_vm2, %v1698_v57, %v1699_v1  ;;  %v356_v29 = vld [vmem:[%s8058_s20 + $0x3e0] sm:$0xff]  ;;  %v358_v43 = vld [vmem:[%s8058_s20 + $0x3f0] sm:$0xff] }
 0x2b3   : > { %6494 = vmatprep.mubr.msk.bf16.mxu1 %vm8153_vm5, %v12452_v12  ;;  %4174 = vmatprep.mubr.bf16.mxu0 %v10210_v6  ;;  %12474 = vst [vmem:[#allocation68_spill] sm:$0xff] %v10279_v46  ;;  %v1702_v27 = vsel %vm1421_vm2, %v1699_v1, %v1701_v7  ;;  %v357_v37 = vld [vmem:[%s8058_s20 + $0x3e8] sm:$0xff]  ;;  %v712_v18 = vrot.slane %v358_v43, 7  ;;  %v12481_v57 = vld [vmem:[#allocation95_spill] sm:$0xff]  ;;  %v1704_v1 = vsel %vm1421_vm2, %v1701_v7, %v1703_v8 }
 0x2b4   : > { %v10305_v36 = vpack.c.bf16 %v1702_v27, %v1700_v49  ;;  %v710_v41 = vrot.slane %v357_v37, 7  ;;  %v1706_v32 = vsel %vm1421_vm2, %v1703_v8, %v1705_v39  ;;  %v12484_v39 = vld [vmem:[#allocation99_spill] sm:$0xff]  ;;  %v12535_v54 = vld [vmem:[#allocation48_spill] sm:$0xff] }
 0x2b5   : > { %v10329_v37 = vpack.c.bf16 %v1706_v32, %v1704_v1 }
 0x2b6   : > { %v10324_v49 = vsel %vm489_vm0, %v710_v41, %v712_v18 }
 0x2b7   : > { %12482 = vst [vmem:[#allocation70_spill] sm:$0xff] %v10329_v37  ;;  %v1852_v7 = vrot.slane %v10324_v49, 2 }
 0x2ba   : > { %3374 = vmatmul.mubr.bf16.gmra.mrb[80].mxu1 %v12455_v25  ;;  %4175 = vmatmul.mubr.bf16.gmra.mrb[208].mxu0 %v12456_v24  ;;  %v12463_v24 = vld [vmem:[#allocation122_spill] sm:$0xff]  ;;  %v12531_v25 = vld [vmem:[#allocation45_spill] sm:$0xff] }
 0x2bb   : > { %3381 = vmatprep.mubr.bf16.mxu1 %v12457_v14  ;;  %4182 = vmatprep.mubr.bf16.mxu0 %v10222_v0 }
 0x2c2   : > { %3382 = vmatmul.mubr.bf16.gmra.mrb[84].mxu1 %v12459_v52  ;;  %4183 = vmatmul.mubr.bf16.gmra.mrb[212].mxu0 %v12460_v50  ;;  %v12464_v50 = vld [vmem:[#allocation193_spill] sm:$0xff]  ;;  %v12490_v52 = vld [vmem:[#allocation159_spill] sm:$0xff] }
 0x2c3   : > { %6498 = vmatprep.mubr.msk.bf16.mxu1 %vm8153_vm5, %v12461_v47  ;;  %4190 = vmatprep.mubr.bf16.mxu0 %v10233_v33 }
 0x2ca   : > { %3390 = vmatmul.mubr.bf16.gmra.mrb[88].mxu1 %v12463_v24  ;;  %4191 = vmatmul.mubr.bf16.gmra.mrb[216].mxu0 %v12464_v50  ;;  %v12471_v50 = vld [vmem:[#allocation132_spill] sm:$0xff] }
 0x2cb   : > { %3397 = vmatprep.mubr.bf16.mxu1 %v12465_v16  ;;  %4198 = vmatprep.mubr.bf16.mxu0 %v10245_v15  ;;  %v12486_v24 = vld [vmem:[#allocation156_spill] sm:$0xff] }
 0x2d2   : > { %3398 = vmatmul.mubr.bf16.gmra.mrb[92].mxu1 %v12467_v63  ;;  %4199 = vmatmul.mubr.bf16.gmra.mrb[220].mxu0 %v12468_v23  ;;  %v12472_v23 = vld [vmem:[#allocation199_spill] sm:$0xff] }
 0x2d3   : > { %6502 = vmatprep.mubr.msk.bf16.mxu1 %vm8153_vm5, %v12469_v35  ;;  %4206 = vmatprep.mubr.bf16.mxu0 %v10256_v9 }
 0x2da   : > { %3406 = vmatmul.mubr.bf16.gmra.mrb[96].mxu1 %v12471_v50  ;;  %4207 = vmatmul.mubr.bf16.gmra.mrb[224].mxu0 %v12472_v23  ;;  %v12480_v23 = vld [vmem:[#allocation148_spill] sm:$0xff] }
 0x2db   : > { %3413 = vmatprep.mubr.bf16.mxu1 %v12473_v51  ;;  %4214 = vmatprep.mubr.bf16.mxu0 %v10268_v2 }
 0x2e2   : > { %3414 = vmatmul.mubr.bf16.gmra.mrb[100].mxu1 %v12475_v13  ;;  %4215 = vmatmul.mubr.bf16.gmra.mrb[228].mxu0 %v12476_v17  ;;  %v12479_v17 = vld [vmem:[#allocation89_spill] sm:$0xff] }
 0x2e3   : > { %6506 = vmatprep.mubr.msk.bf16.mxu1 %vm8153_vm5, %v12477_v61  ;;  %4222 = vmatprep.mubr.bf16.mxu0 %v10279_v46 }
 0x2ea   : > { %3422 = vmatmul.mubr.bf16.gmra.mrb[104].mxu1 %v12478_v11  ;;  %4223 = vmatmul.mubr.bf16.gmra.mrb[232].mxu0 %v10066_v60  ;;  %v10310_v60 = vrot.slane %v356_v29, 7  ;;  %v359_v29 = vld [vmem:[%s8058_s20 + $0x3f8] sm:$0xff] }
 0x2eb   : > { %3429 = vmatprep.mubr.bf16.mxu1 %v12479_v17  ;;  %4230 = vmatprep.mubr.bf16.mxu0 %v10291_v28  ;;  %v714_v8 = vrot.slane %v359_v29, 7 }
 0x2ec   : > { %v10321_v3 = vsel %vm489_vm0, %v10310_v60, %v710_v41  ;;  %v910_v27 = vsel %vm489_vm0, 0.0, %v10310_v60 }
 0x2ed   : > { %v1849_v43 = vrot.slane %v910_v27, 2  ;;  %v10340_v1 = vsel %vm489_vm0, %v712_v18, %v714_v8  ;;  %v943_v32 = vsel %vm489_vm0, %v714_v8, 0.0  ;;  %v1836_v50 = vrot.slane %v910_v27, 1 }
 0x2ee   : > { %v1837_v29 = vrot.slane %v10321_v3, 1  ;;  %v1856_v63 = vrot.slane %v943_v32, 2 }
 0x2f0   : > { %v1838_v18 = vsel %vm1008_vm1, %v1836_v50, %v1837_v29  ;;  %v7739_v50 = vld [vmem:[#allocation5 + $0x228] sm:$0xff]  }
 0x2f1   : > { %6798 = vmatprep.subr.bf16.mxu1 %v7739_v50 }
 0x2f2   : > { %3430 = vmatmul.mubr.bf16.gmra.mrb[108].mxu1 %v12480_v23  ;;  %4231 = vmatmul.mubr.bf16.gmra.mrb[236].mxu0 %v10095_v5  ;;  %v1850_v5 = vrot.slane %v10321_v3, 2  ;;  %v12483_v23 = vld [vmem:[#allocation152_spill] sm:$0xff] }
 0x2f3   : > { %6510 = vmatprep.mubr.msk.bf16.mxu1 %vm8153_vm5, %v12481_v57  ;;  %4238 = vmatprep.mubr.bf16.mxu0 %v10305_v36 }
 0x2f4   : > { %v1851_v41 = vsel %vm1421_vm2, %v1849_v43, %v1850_v5  ;;  %v1853_v11 = vsel %vm1421_vm2, %v1850_v5, %v1852_v7  ;;  %v12487_v5 = vld [vmem:[#allocation104_spill] sm:$0xff]  ;;  %6799 = vmatpush3.bf16.msra.mxu1 %v7739_v50 }
 0x2f5   : > { %v10343_v13 = vpack.c.bf16 %v1853_v11, %v1851_v41  ;;  %v12502_v50 = vld [vmem:[#allocation124_spill] sm:$0xff] }
 0x2f7   : > { %12485 = vst [vmem:[#allocation73_spill] sm:$0xff] %v10343_v13 }
 0x2fa   : > { %3438 = vmatmul.mubr.bf16.gmra.mrb[112].mxu1 %v12483_v23  ;;  %4239 = vmatmul.mubr.bf16.gmra.mrb[240].mxu0 %v10125_v55  ;;  %v1839_v55 = vrot.slane %v10324_v49, 1  ;;  %v1854_v23 = vrot.slane %v10340_v1, 2 }
 0x2fb   : > { %3445 = vmatprep.mubr.bf16.mxu1 %v12484_v39  ;;  %4246 = vmatprep.mubr.bf16.mxu0 %v10329_v37 }
 0x2fc   : > { %v1840_v11 = vsel %vm1008_vm1, %v1837_v29, %v1839_v55  ;;  %v1855_v27 = vsel %vm1421_vm2, %v1852_v7, %v1854_v23  ;;  %v1857_v43 = vsel %vm1421_vm2, %v1854_v23, %v1856_v63  ;;  %v12493_v29 = vld [vmem:[#allocation162_spill] sm:$0xff] }
 0x2fd   : > { %v10358_v8 = vpack.c.bf16 %v1840_v11, %v1838_v18  ;;  %v10360_v41 = vpack.c.bf16 %v1857_v43, %v1855_v27  ;;  %v12495_v18 = vld [vmem:[#allocation18_spill] sm:$0xff]  ;;  %v12496_v11 = vld [vmem:[#allocation164_spill] sm:$0xff]  ;;  %v12501_v43 = vld [vmem:[#allocation17_spill] sm:$0xff] }
 0x2fe   : > { %v12497_v27 = vld [vmem:[#allocation16_spill] sm:$0xff] }
 0x2ff   : > { %12488 = vst [vmem:[#allocation76_spill] sm:$0xff] %v10358_v8  ;;  %12489 = vst [vmem:[#allocation80_spill] sm:$0xff] %v10360_v41 }
 0x302   : > { %3446 = vmatmul.mubr.bf16.gmra.mrb[116].mxu1 %v12486_v24  ;;  %4247 = vmatmul.mubr.bf16.gmra.mrb[244].mxu0 %v10144_v26  ;;  %v1841_v26 = vrot.slane %v10340_v1, 1  ;;  %v1843_v24 = vrot.slane %v943_v32, 1  ;;  %v12494_v32 = vld [vmem:[#allocation114_spill] sm:$0xff] }
 0x303   : > { %6514 = vmatprep.mubr.msk.bf16.mxu1 %vm8153_vm5, %v12487_v5  ;;  %4254 = vmatprep.mubr.bf16.mxu0 %v10343_v13  ;;  %v12491_v13 = vld [vmem:[#allocation109_spill] sm:$0xff] }
 0x304   : > { %v1842_v7 = vsel %vm1008_vm1, %v1839_v55, %v1841_v26  ;;  %v1844_v63 = vsel %vm1008_vm1, %v1841_v26, %v1843_v24  ;;  %v12498_v55 = vld [vmem:[#allocation119_spill] sm:$0xff]  ;;  %v12499_v26 = vld [vmem:[#allocation21_spill] sm:$0xff] }
 0x305   : > { %v10369_v23 = vpack.c.bf16 %v1844_v63, %v1842_v7  ;;  %v12500_v24 = vld [vmem:[#allocation167_spill] sm:$0xff]  ;;  %v12503_v7 = vld [vmem:[#allocation24_spill] sm:$0xff]  ;;  %v12504_v63 = vld [vmem:[#allocation170_spill] sm:$0xff] }
 0x307   : > { %12492 = vst [vmem:[#allocation84_spill] sm:$0xff] %v10369_v23 }
 0x30a   : > { %3454 = vmatmul.mubr.bf16.gmra.mrb[120].mxu1 %v12490_v52  ;;  %4255 = vmatmul.mubr.bf16.gmra.mrb[248].mxu0 %v10358_v8  ;;  %v12511_v8 = vld [vmem:[#allocation30_spill] sm:$0xff] }
 0x30b   : > { %3461 = vmatprep.mubr.bf16.mxu1 %v12491_v13  ;;  %4262 = vmatprep.mubr.bf16.mxu0 %v10360_v41  ;;  %v12507_v41 = vld [vmem:[#allocation27_spill] sm:$0xff]  ;;  %v12527_v52 = vld [vmem:[#allocation42_spill] sm:$0xff] }
 0x312   : > { %3462 = vmatmul.mubr.bf16.gmra.mrb[124].mxu1 %v12493_v29  ;;  %4263 = vmatmul.mubr.bf16.gmra.mrb[252].mxu0 %v10369_v23  ;;  %v12509_v23 = vld [vmem:[#allocation22_spill] sm:$0xff]  ;;  %v12522_v29 = vld [vmem:[#allocation149_spill] sm:$0xff] }
 0x313   : > { %6518 = vmatprep.mubr.msk.bf16.mxu1 %vm8153_vm5, %v12494_v32  ;;  %4303 = vmatprep.mubr.bf16.mxu0 %v12495_v18  ;;  %v12505_v18 = vld [vmem:[#allocation19_spill] sm:$0xff] }
 0x31a   : > { %3470 = vmatmul.mubr.bf16.gmra.mrb[128].mxu1 %v12496_v11  ;;  %6582 = vmatmul.mubr.msk.bf16.vlgmr.msra.gmra.mrb[0].mxu0 %vm8153_vm5, %v12497_v27  ;;  %v12506_v27 = vld [vmem:[#allocation129_spill] sm:$0xff] }
 0x31b   : > { %3477 = vmatprep.mubr.bf16.mxu1 %v12498_v55  ;;  %4311 = vmatprep.mubr.bf16.mxu0 %v12499_v26  ;;  %v12508_v26 = vld [vmem:[#allocation173_spill] sm:$0xff] }
 0x31c   : > { %v12518_v11 = vld [vmem:[#allocation145_spill] sm:$0xff] }
 0x322   : > { %3478 = vmatmul.mubr.bf16.gmra.mrb[132].mxu1 %v12500_v24  ;;  %4312 = vmatmul.mubr.bf16.gmra.mrb[4].mxu0 %v12501_v43  ;;  %v12510_v43 = vld [vmem:[#allocation134_spill] sm:$0xff]  ;;  %v7740_v24 = vld [vmem:[#allocation5 + $0x230] sm:$0xff]  }
 0x323   : > { %6522 = vmatprep.mubr.msk.bf16.mxu1 %vm8153_vm5, %v12502_v50  ;;  %4319 = vmatprep.mubr.bf16.mxu0 %v12503_v7  ;;  %v12512_v7 = vld [vmem:[#allocation177_spill] sm:$0xff] }
 0x324   : > { %6800 = vmatprep.subr.bf16.mxu1 %v7740_v24 }
 0x325   : > { %6801 = vmatpush3.bf16.msra.mxu1 %v7740_v24  ;;  %v12524_v24 = vld [vmem:[#allocation186_spill] sm:$0xff] }
 0x32a   : > { %3486 = vmatmul.mubr.bf16.gmra.mrb[136].mxu1 %v12504_v63  ;;  %6586 = vmatmul.mubr.msk.bf16.gmra.mrb[8].mxu0 %vm8153_vm5, %v12505_v18  ;;  %v12513_v63 = vld [vmem:[#allocation25_spill] sm:$0xff]  ;;  %v12514_v18 = vld [vmem:[#allocation140_spill] sm:$0xff] }
 0x32b   : > { %3493 = vmatprep.mubr.bf16.mxu1 %v12506_v27  ;;  %4327 = vmatprep.mubr.bf16.mxu0 %v12507_v41  ;;  %v12515_v41 = vld [vmem:[#allocation33_spill] sm:$0xff] }
 0x332   : > { %3494 = vmatmul.mubr.bf16.gmra.mrb[140].mxu1 %v12508_v26  ;;  %4328 = vmatmul.mubr.bf16.gmra.mrb[12].mxu0 %v12509_v23  ;;  %v12516_v23 = vld [vmem:[#allocation180_spill] sm:$0xff] }
 0x333   : > { %6526 = vmatprep.mubr.msk.bf16.mxu1 %vm8153_vm5, %v12510_v43  ;;  %4335 = vmatprep.mubr.bf16.mxu0 %v12511_v8  ;;  %v12517_v26 = vld [vmem:[#allocation28_spill] sm:$0xff] }
 0x334   : > { %v12519_v8 = vld [vmem:[#allocation36_spill] sm:$0xff] }
 0x33a   : > { %3502 = vmatmul.mubr.bf16.gmra.mrb[144].mxu1 %v12512_v7  ;;  %6590 = vmatmul.mubr.msk.bf16.gmra.mrb[16].mxu0 %vm8153_vm5, %v12513_v63  ;;  %v12520_v7 = vld [vmem:[#allocation183_spill] sm:$0xff] }
 0x33b   : > { %3509 = vmatprep.mubr.bf16.mxu1 %v12514_v18  ;;  %4343 = vmatprep.mubr.bf16.mxu0 %v12515_v41  ;;  %v12521_v63 = vld [vmem:[#allocation31_spill] sm:$0xff] }
 0x33c   : > { %v12523_v41 = vld [vmem:[#allocation39_spill] sm:$0xff] }
 0x342   : > { %3510 = vmatmul.mubr.bf16.gmra.mrb[148].mxu1 %v12516_v23  ;;  %4344 = vmatmul.mubr.bf16.gmra.mrb[20].mxu0 %v12517_v26  ;;  %v12525_v23 = vld [vmem:[#allocation34_spill] sm:$0xff]  ;;  %v12526_v26 = vld [vmem:[#allocation153_spill] sm:$0xff] }
 0x343   : > { %6530 = vmatprep.mubr.msk.bf16.mxu1 %vm8153_vm5, %v12518_v11  ;;  %4351 = vmatprep.mubr.bf16.mxu0 %v12519_v8  ;;  %v12528_v8 = vld [vmem:[#allocation189_spill] sm:$0xff] }
 0x34a   : > { %3518 = vmatmul.mubr.bf16.gmra.mrb[152].mxu1 %v12520_v7  ;;  %6594 = vmatmul.mubr.msk.bf16.gmra.mrb[24].mxu0 %vm8153_vm5, %v12521_v63  ;;  %v12529_v7 = vld [vmem:[#allocation37_spill] sm:$0xff] }
 0x34b   : > { %3525 = vmatprep.mubr.bf16.mxu1 %v12522_v29  ;;  %4359 = vmatprep.mubr.bf16.mxu0 %v12523_v41  ;;  %v12530_v63 = vld [vmem:[#allocation157_spill] sm:$0xff]  ;;  %v12532_v41 = vld [vmem:[#allocation192_spill] sm:$0xff] }
 0x352   : > { %3526 = vmatmul.mubr.bf16.gmra.mrb[156].mxu1 %v12524_v24  ;;  %4360 = vmatmul.mubr.bf16.gmra.mrb[28].mxu0 %v12525_v23  ;;  %v12533_v24 = vld [vmem:[#allocation40_spill] sm:$0xff] }
 0x353   : > { %6534 = vmatprep.mubr.msk.bf16.mxu1 %vm8153_vm5, %v12526_v26  ;;  %4367 = vmatprep.mubr.bf16.mxu0 %v12527_v52  ;;  %v12534_v23 = vld [vmem:[#allocation160_spill] sm:$0xff]  ;;  %v12536_v52 = vld [vmem:[#allocation194_spill] sm:$0xff]  ;;  %v12544_v26 = vld [vmem:[#allocation165_spill] sm:$0xff] }
 0x35a   : > { %3534 = vmatmul.mubr.bf16.gmra.mrb[160].mxu1 %v12528_v8  ;;  %6598 = vmatmul.mubr.msk.bf16.gmra.mrb[32].mxu0 %vm8153_vm5, %v12529_v7  ;;  %v12537_v8 = vld [vmem:[#allocation43_spill] sm:$0xff]  ;;  %v12538_v7 = vld [vmem:[#allocation94_spill] sm:$0xff] }
 0x35b   : > { %3541 = vmatprep.mubr.bf16.mxu1 %v12530_v63  ;;  %4375 = vmatprep.mubr.bf16.mxu0 %v12531_v25  ;;  %v7741_v63 = vld [vmem:[#allocation5 + $0x238] sm:$0xff]   ;;  %v12539_v25 = vld [vmem:[#allocation51_spill] sm:$0xff] }
 0x35c   : > { %6802 = vmatprep.subr.bf16.mxu1 %v7741_v63 }
 0x35d   : > { %6803 = vmatpush3.bf16.msra.mxu1 %v7741_v63  ;;  %v12548_v63 = vld [vmem:[#allocation200_spill] sm:$0xff] }
 0x362   : > { %3542 = vmatmul.mubr.bf16.gmra.mrb[164].mxu1 %v12532_v41  ;;  %4376 = vmatmul.mubr.bf16.gmra.mrb[36].mxu0 %v12533_v24 }
 0x363   : > { %6538 = vmatprep.mubr.msk.bf16.mxu1 %vm8153_vm5, %v12534_v23  ;;  %4383 = vmatprep.mubr.bf16.mxu0 %v12535_v54  ;;  %v12542_v54 = vld [vmem:[#allocation197_spill] sm:$0xff] }
 0x36a   : > { %3550 = vmatmul.mubr.bf16.gmra.mrb[168].mxu1 %v12536_v52  ;;  %6602 = vmatmul.mubr.msk.bf16.gmra.mrb[40].mxu0 %vm8153_vm5, %v12537_v8  ;;  %v12543_v52 = vld [vmem:[#allocation46_spill] sm:$0xff] }
 0x36b   : > { %3557 = vmatprep.mubr.bf16.mxu1 %v12538_v7  ;;  %4391 = vmatprep.mubr.bf16.mxu0 %v12539_v25  ;;  %v12545_v8 = vld [vmem:[#allocation54_spill] sm:$0xff] }
 0x36d   : > { %v10443_v41 = vpop.f32.mrb[64].mxu1 }
 0x36e   : > { %12540 = vst [vmem:[#allocation89_spill] sm:$0xff] %v10443_v41  ;;  %v3345_v24 = vpop.f32.mrb[65].mxu1 }
 0x36f   : > { %v10445_v58 = vpop.f32.mrb[66].mxu1 }
 0x370   : > { %12541 = vst [vmem:[#allocation95_spill] sm:$0xff] %v10445_v58  ;;  %v3348_v23 = vpop.f32.mrb[67].mxu1  ;;  %v12549_v58 = vld [vmem:[#allocation49_spill] sm:$0xff] }
 0x371   : > { %v12550_v23 = vld [vmem:[#allocation168_spill] sm:$0xff] }
 0x372   : > { %3558 = vmatmul.mubr.bf16.gmra.mrb[172].mxu1 %v12542_v54  ;;  %4392 = vmatmul.mubr.bf16.gmra.mrb[44].mxu0 %v12543_v52  ;;  %v12551_v52 = vld [vmem:[#allocation56_spill] sm:$0xff] }
 0x373   : > { %6542 = vmatprep.mubr.msk.bf16.mxu1 %vm8153_vm5, %v12544_v26  ;;  %4399 = vmatprep.mubr.bf16.mxu0 %v12545_v8 }
 0x375   : > { %v10453_v7 = vpop.f32.mrb[68].mxu1 }
 0x376   : > { %12546 = vst [vmem:[#allocation99_spill] sm:$0xff] %v10453_v7  ;;  %v3353_v25 = vpop.f32.mrb[69].mxu1 }
 0x377   : > { %v10455_v41 = vpop.f32.mrb[70].mxu1  ;;  %v12553_v25 = vld [vmem:[#allocation203_spill] sm:$0xff] }
 0x378   : > { %12547 = vst [vmem:[#allocation104_spill] sm:$0xff] %v10455_v41  ;;  %v3356_v24 = vpop.f32.mrb[71].mxu1  ;;  %v12554_v41 = vld [vmem:[#allocation52_spill] sm:$0xff] }
 0x379   : > { %v12555_v24 = vld [vmem:[#allocation171_spill] sm:$0xff] }
 0x37a   : > { %3566 = vmatmul.mubr.bf16.gmra.mrb[176].mxu1 %v12548_v63  ;;  %6606 = vmatmul.mubr.msk.bf16.gmra.mrb[48].mxu0 %vm8153_vm5, %v12549_v58  ;;  %v12556_v63 = vld [vmem:[#allocation57_spill] sm:$0xff] }
 0x37b   : > { %3573 = vmatprep.mubr.bf16.mxu1 %v12550_v23  ;;  %4407 = vmatprep.mubr.bf16.mxu0 %v12551_v52 }
 0x37d   : > { %v10463_v54 = vpop.f32.mrb[72].mxu1 }
 0x37e   : > { %12552 = vst [vmem:[#allocation109_spill] sm:$0xff] %v10463_v54  ;;  %v3361_v26 = vpop.f32.mrb[73].mxu1 }
 0x37f   : > { %v10465_v8 = vpop.f32.mrb[74].mxu1  ;;  %v12558_v26 = vld [vmem:[#allocation175_spill] sm:$0xff] }
 0x380   : > { %v3364_v7 = vpop.f32.mrb[75].mxu1 }
 0x382   : > { %3574 = vmatmul.mubr.bf16.gmra.mrb[180].mxu1 %v12553_v25  ;;  %4408 = vmatmul.mubr.bf16.gmra.mrb[52].mxu0 %v12554_v41  ;;  %v12559_v41 = vld [vmem:[#allocation59_spill] sm:$0xff] }
 0x383   : > { %6546 = vmatprep.mubr.msk.bf16.mxu1 %vm8153_vm5, %v12555_v24  ;;  %4415 = vmatprep.mubr.bf16.mxu0 %v12556_v63 }
 0x385   : > { %v10473_v58 = vpop.f32.mrb[76].mxu1 }
 0x386   : > { %12557 = vst [vmem:[#allocation114_spill] sm:$0xff] %v10473_v58  ;;  %v3369_v23 = vpop.f32.mrb[77].mxu1 }
 0x387   : > { %v10475_v52 = vpop.f32.mrb[78].mxu1  ;;  %v12562_v23 = vld [vmem:[#allocation61_spill] sm:$0xff] }
 0x388   : > { %v3372_v54 = vpop.f32.mrb[79].mxu1 }
 0x389   : > { %v12561_v54 = vld [vmem:[#allocation178_spill] sm:$0xff] }
 0x38a   : > { %3582 = vmatmul.mubr.bf16.gmra.mrb[184].mxu1 %v10068_v45  ;;  %6610 = vmatmul.mubr.msk.bf16.gmra.mrb[56].mxu0 %vm8153_vm5, %v12437_v59 }
 0x38b   : > { %3589 = vmatprep.mubr.bf16.mxu1 %v12558_v26  ;;  %4423 = vmatprep.mubr.bf16.mxu0 %v12559_v41 }
 0x38d   : > { %v10483_v7 = vpop.f32.mrb[80].mxu1 }
 0x38e   : > { %12560 = vst [vmem:[#allocation18_spill] sm:$0xff] %v10483_v7  ;;  %v3377_v25 = vpop.f32.mrb[81].mxu1 }
 0x38f   : > { %v10485_v63 = vpop.f32.mrb[82].mxu1  ;;  %v12564_v25 = vld [vmem:[#allocation181_spill] sm:$0xff] }
 0x390   : > { %v3380_v58 = vpop.f32.mrb[83].mxu1 }
 0x392   : > { %3590 = vmatmul.mubr.bf16.gmra.mrb[188].mxu1 %v10097_v22  ;;  %4424 = vmatmul.mubr.bf16.gmra.mrb[60].mxu0 %v12441_v10  ;;  %v12565_v10 = vld [vmem:[#allocation63_spill] sm:$0xff] }
 0x393   : > { %6550 = vmatprep.mubr.msk.bf16.mxu1 %vm8153_vm5, %v12561_v54  ;;  %4431 = vmatprep.mubr.bf16.mxu0 %v12562_v23 }
 0x395   : > { %v10493_v59 = vpop.f32.mrb[84].mxu1 }
 0x396   : > { %12563 = vst [vmem:[#allocation16_spill] sm:$0xff] %v10493_v59  ;;  %v3385_v45 = vpop.f32.mrb[85].mxu1 }
 0x397   : > { %v10495_v41 = vpop.f32.mrb[86].mxu1  ;;  %v12567_v45 = vld [vmem:[#allocation184_spill] sm:$0xff] }
 0x398   : > { %v3388_v7 = vpop.f32.mrb[87].mxu1 }
 0x399   : > { %v12568_v7 = vld [vmem:[#allocation65_spill] sm:$0xff] }
 0x39a   : > { %3598 = vmatmul.mubr.bf16.gmra.mrb[192].mxu1 %v10127_v21  ;;  %6614 = vmatmul.mubr.msk.bf16.gmra.mrb[64].mxu0 %vm8153_vm5, %v12444_v31 }
 0x39b   : > { %3605 = vmatprep.mubr.bf16.mxu1 %v12564_v25  ;;  %4439 = vmatprep.mubr.bf16.mxu0 %v12565_v10 }
 0x39d   : > { %v10503_v58 = vpop.f32.mrb[88].mxu1 }
 0x39e   : > { %12566 = vst [vmem:[#allocation119_spill] sm:$0xff] %v10503_v58  ;;  %v3393_v22 = vpop.f32.mrb[89].mxu1 }
 0x39f   : > { %v10505_v23 = vpop.f32.mrb[90].mxu1  ;;  %v12570_v22 = vld [vmem:[#allocation187_spill] sm:$0xff] }
 0x3a0   : > { %v3396_v59 = vpop.f32.mrb[91].mxu1 }
 0x3a2   : > { %3606 = vmatmul.mubr.bf16.gmra.mrb[196].mxu1 %v10146_v62  ;;  %4440 = vmatmul.mubr.bf16.gmra.mrb[68].mxu0 %v12448_v53  ;;  %v12571_v53 = vld [vmem:[#allocation67_spill] sm:$0xff] }
 0x3a3   : > { %6554 = vmatprep.mubr.msk.bf16.mxu1 %vm8153_vm5, %v12567_v45  ;;  %4447 = vmatprep.mubr.bf16.mxu0 %v12568_v7 }
 0x3a5   : > { %v10513_v31 = vpop.f32.mrb[92].mxu1 }
 0x3a6   : > { %12569 = vst [vmem:[#allocation21_spill] sm:$0xff] %v10513_v31  ;;  %v3401_v21 = vpop.f32.mrb[93].mxu1 }
 0x3a7   : > { %v10515_v10 = vpop.f32.mrb[94].mxu1  ;;  %v12573_v21 = vld [vmem:[#allocation190_spill] sm:$0xff] }
 0x3a8   : > { %v3404_v58 = vpop.f32.mrb[95].mxu1 }
 0x3a9   : > { %v12574_v58 = vld [vmem:[#allocation69_spill] sm:$0xff] }
 0x3aa   : > { %3614 = vmatmul.mubr.bf16.gmra.mrb[200].mxu1 %v10163_v38  ;;  %6618 = vmatmul.mubr.msk.bf16.gmra.mrb[72].mxu0 %vm8153_vm5, %v12452_v12 }
 0x3ab   : > { %3621 = vmatprep.mubr.bf16.mxu1 %v12570_v22  ;;  %4455 = vmatprep.mubr.bf16.mxu0 %v12571_v53 }
 0x3ad   : > { %v10523_v59 = vpop.f32.mrb[96].mxu1 }
 0x3ae   : > { %12572 = vst [vmem:[#allocation17_spill] sm:$0xff] %v10523_v59  ;;  %v3409_v62 = vpop.f32.mrb[97].mxu1 }
 0x3af   : > { %v10525_v7 = vpop.f32.mrb[98].mxu1  ;;  %v12576_v62 = vld [vmem:[#allocation144_spill] sm:$0xff] }
 0x3b0   : > { %v3412_v31 = vpop.f32.mrb[99].mxu1 }
 0x3b2   : > { %3622 = vmatmul.mubr.bf16.gmra.mrb[204].mxu1 %v10175_v44  ;;  %4456 = vmatmul.mubr.bf16.gmra.mrb[76].mxu0 %v12457_v14  ;;  %v12577_v14 = vld [vmem:[#allocation71_spill] sm:$0xff] }
 0x3b3   : > { %6558 = vmatprep.mubr.msk.bf16.mxu1 %vm8153_vm5, %v12573_v21  ;;  %4463 = vmatprep.mubr.bf16.mxu0 %v12574_v58 }
 0x3b5   : > { %v10533_v12 = vpop.f32.mrb[100].mxu1 }
 0x3b6   : > { %12575 = vst [vmem:[#allocation124_spill] sm:$0xff] %v10533_v12  ;;  %v3417_v38 = vpop.f32.mrb[101].mxu1 }
 0x3b7   : > { %v10535_v53 = vpop.f32.mrb[102].mxu1  ;;  %v12579_v38 = vld [vmem:[#allocation195_spill] sm:$0xff] }
 0x3b8   : > { %v3420_v59 = vpop.f32.mrb[103].mxu1 }
 0x3b9   : > { %v12580_v59 = vld [vmem:[#allocation74_spill] sm:$0xff] }
 0x3ba   : > { %3630 = vmatmul.mubr.bf16.gmra.mrb[208].mxu1 %v10187_v56  ;;  %6622 = vmatmul.mubr.msk.bf16.gmra.mrb[80].mxu0 %vm8153_vm5, %v12461_v47 }
 0x3bb   : > { %3637 = vmatprep.mubr.bf16.mxu1 %v12576_v62  ;;  %4471 = vmatprep.mubr.bf16.mxu0 %v12577_v14 }
 0x3bd   : > { %v10543_v31 = vpop.f32.mrb[104].mxu1 }
 0x3be   : > { %12578 = vst [vmem:[#allocation24_spill] sm:$0xff] %v10543_v31  ;;  %v3425_v44 = vpop.f32.mrb[105].mxu1 }
 0x3bf   : > { %v10545_v58 = vpop.f32.mrb[106].mxu1  ;;  %v12582_v44 = vld [vmem:[#allocation198_spill] sm:$0xff] }
 0x3c0   : > { %v3428_v12 = vpop.f32.mrb[107].mxu1 }
 0x3c2   : > { %3638 = vmatmul.mubr.bf16.gmra.mrb[212].mxu1 %v10199_v34  ;;  %4472 = vmatmul.mubr.bf16.gmra.mrb[84].mxu0 %v12465_v16  ;;  %v12583_v16 = vld [vmem:[#allocation77_spill] sm:$0xff] }
 0x3c3   : > { %6562 = vmatprep.mubr.msk.bf16.mxu1 %vm8153_vm5, %v12579_v38  ;;  %4479 = vmatprep.mubr.bf16.mxu0 %v12580_v59 }
 0x3c5   : > { %v10553_v47 = vpop.f32.mrb[108].mxu1 }
 0x3c6   : > { %12581 = vst [vmem:[#allocation19_spill] sm:$0xff] %v10553_v47  ;;  %v3433_v56 = vpop.f32.mrb[109].mxu1 }
 0x3c7   : > { %v10555_v14 = vpop.f32.mrb[110].mxu1  ;;  %v12585_v56 = vld [vmem:[#allocation201_spill] sm:$0xff] }
 0x3c8   : > { %v3436_v31 = vpop.f32.mrb[111].mxu1 }
 0x3c9   : > { %v12586_v31 = vld [vmem:[#allocation82_spill] sm:$0xff] }
 0x3ca   : > { %3646 = vmatmul.mubr.bf16.gmra.mrb[216].mxu1 %v10210_v6  ;;  %6626 = vmatmul.mubr.msk.bf16.gmra.mrb[88].mxu0 %vm8153_vm5, %v12469_v35 }
 0x3cb   : > { %3653 = vmatprep.mubr.bf16.mxu1 %v12582_v44  ;;  %4487 = vmatprep.mubr.bf16.mxu0 %v12583_v16 }
 0x3cd   : > { %v10563_v12 = vpop.f32.mrb[112].mxu1 }
 0x3ce   : > { %12584 = vst [vmem:[#allocation129_spill] sm:$0xff] %v10563_v12  ;;  %v3441_v34 = vpop.f32.mrb[113].mxu1 }
 0x3cf   : > { %v10565_v59 = vpop.f32.mrb[114].mxu1  ;;  %v12588_v34 = vld [vmem:[#allocation88_spill] sm:$0xff] }
 0x3d0   : > { %v3444_v47 = vpop.f32.mrb[115].mxu1 }
 0x3d2   : > { %3654 = vmatmul.mubr.bf16.gmra.mrb[220].mxu1 %v10222_v0  ;;  %4488 = vmatmul.mubr.bf16.gmra.mrb[92].mxu0 %v12473_v51  ;;  %v12589_v51 = vld [vmem:[#allocation86_spill] sm:$0xff] }
 0x3d3   : > { %6566 = vmatprep.mubr.msk.bf16.mxu1 %vm8153_vm5, %v12585_v56  ;;  %4495 = vmatprep.mubr.bf16.mxu0 %v12586_v31 }
 0x3d5   : > { %v10573_v35 = vpop.f32.mrb[116].mxu1 }
 0x3d6   : > { %12587 = vst [vmem:[#allocation27_spill] sm:$0xff] %v10573_v35  ;;  %v3449_v6 = vpop.f32.mrb[117].mxu1 }
 0x3d7   : > { %v10575_v16 = vpop.f32.mrb[118].mxu1  ;;  %v12592_v6 = vld [vmem:[#allocation91_spill] sm:$0xff] }
 0x3d8   : > { %v3452_v12 = vpop.f32.mrb[119].mxu1 }
 0x3da   : > { %3662 = vmatmul.mubr.bf16.gmra.mrb[224].mxu1 %v10233_v33  ;;  %6630 = vmatmul.mubr.msk.bf16.gmra.mrb[96].mxu0 %vm8153_vm5, %v12477_v61 }
 0x3db   : > { %3669 = vmatprep.mubr.bf16.mxu1 %v12588_v34  ;;  %4503 = vmatprep.mubr.bf16.mxu0 %v12589_v51 }
 0x3dd   : > { %v10583_v47 = vpop.f32.mrb[120].mxu1 }
 0x3de   : > { %12590 = vst [vmem:[#allocation22_spill] sm:$0xff] %v10583_v47  ;;  %v3457_v0 = vpop.f32.mrb[121].mxu1 }
 0x3df   : > { %v10585_v31 = vpop.f32.mrb[122].mxu1  ;;  %v12595_v0 = vld [vmem:[#allocation97_spill] sm:$0xff] }
 0x3e0   : > { %12591 = vst [vmem:[#allocation134_spill] sm:$0xff] %v10585_v31  ;;  %v3460_v35 = vpop.f32.mrb[123].mxu1  ;;  %v12598_v31 = vld [vmem:[#allocation81_spill] sm:$0xff] }
 0x3e2   : > { %3670 = vmatmul.mubr.bf16.gmra.mrb[228].mxu1 %v10245_v15  ;;  %4504 = vmatmul.mubr.bf16.gmra.mrb[100].mxu0 %v12479_v17  ;;  %v12596_v15 = vld [vmem:[#allocation78_spill] sm:$0xff] }
 0x3e3   : > { %6570 = vmatprep.mubr.msk.bf16.mxu1 %vm8153_vm5, %v10092_v48  ;;  %4511 = vmatprep.mubr.bf16.mxu0 %v12592_v6 }
 0x3e5   : > { %v10593_v61 = vpop.f32.mrb[124].mxu1 }
 0x3e6   : > { %12593 = vst [vmem:[#allocation30_spill] sm:$0xff] %v10593_v61  ;;  %v3465_v12 = vpop.f32.mrb[125].mxu1 }
 0x3e7   : > { %v10595_v51 = vpop.f32.mrb[126].mxu1 }
 0x3e8   : > { %12594 = vst [vmem:[#allocation25_spill] sm:$0xff] %v10595_v51  ;;  %v3468_v33 = vpop.f32.mrb[127].mxu1 }
 0x3ea   : > { %3678 = vmatmul.mubr.bf16.gmra.mrb[232].mxu1 %v10256_v9  ;;  %6634 = vmatmul.mubr.msk.bf16.gmra.mrb[104].mxu0 %vm8153_vm5, %v12481_v57 }
 0x3eb   : > { %3685 = vmatprep.mubr.bf16.mxu1 %v10123_v30  ;;  %4519 = vmatprep.mubr.bf16.mxu0 %v12595_v0  ;;  %v12600_v0 = vld [vmem:[#allocation101_spill] sm:$0xff] }
 0x3ed   : > { %v10603_v17 = vpop.f32.mrb[128].mxu1  ;;  %v4305_v35 = vpop.f32.mrb[0].mxu0 }
 0x3ee   : > { %v3473_v6 = vpop.f32.mrb[129].mxu1  ;;  %v10606_v61 = vadd.f32 %v4305_v35, %v12596_v15  ;;  %v4307_v12 = vpop.f32.mrb[1].mxu0 }
 0x3ef   : > { %v10608_v51 = vpop.f32.mrb[130].mxu1  ;;  %v4308_v33 = vpop.f32.mrb[2].mxu0  ;;  %v12602_v12 = vld [vmem:[#allocation83_spill] sm:$0xff] }
 0x3f0   : > { %12597 = vst [vmem:[#allocation140_spill] sm:$0xff] %v10608_v51  ;;  %v3476_v9 = vpop.f32.mrb[131].mxu1  ;;  %v10611_v47 = vadd.f32 %v4308_v33, %v12598_v31  ;;  %v4310_v57 = vpop.f32.mrb[3].mxu0 }
 0x3f2   : > { %12599 = vst [vmem:[#allocation33_spill] sm:$0xff] %v10611_v47  ;;  %3686 = vmatmul.mubr.bf16.gmra.mrb[236].mxu1 %v10268_v2  ;;  %4520 = vmatmul.mubr.bf16.gmra.mrb[108].mxu0 %v12484_v39  ;;  %v12604_v47 = vld [vmem:[#allocation85_spill] sm:$0xff] }
 0x3f3   : > { %6574 = vmatprep.mubr.msk.bf16.mxu1 %vm8153_vm5, %v10142_v19  ;;  %4527 = vmatprep.mubr.bf16.mxu0 %v12600_v0  ;;  %v12605_v0 = vld [vmem:[#allocation106_spill] sm:$0xff] }
 0x3f5   : > { %v10619_v15 = vpop.f32.mrb[132].mxu1  ;;  %v4313_v35 = vpop.f32.mrb[4].mxu0 }
 0x3f6   : > { %12601 = vst [vmem:[#allocation28_spill] sm:$0xff] %v10619_v15  ;;  %v3481_v6 = vpop.f32.mrb[133].mxu1  ;;  %v10622_v9 = vadd.f32 %v4313_v35, %v12602_v12  ;;  %v4315_v31 = vpop.f32.mrb[5].mxu0  ;;  %v12609_v15 = vld [vmem:[#allocation90_spill] sm:$0xff] }
 0x3f7   : > { %v10624_v33 = vpop.f32.mrb[134].mxu1  ;;  %v4316_v57 = vpop.f32.mrb[6].mxu0  ;;  %v12607_v31 = vld [vmem:[#allocation87_spill] sm:$0xff] }
 0x3f8   : > { %12603 = vst [vmem:[#allocation145_spill] sm:$0xff] %v10624_v33  ;;  %v3484_v2 = vpop.f32.mrb[135].mxu1  ;;  %v10627_v39 = vadd.f32 %v4316_v57, %v12604_v47  ;;  %v4318_v51 = vpop.f32.mrb[7].mxu0 }
 0x3f9   : > { %v10644_v51 = vpack.c.bf16 %v10321_v3, %v10310_v60 }
 0x3fa   : > { %3694 = vmatmul.mubr.bf16.gmra.mrb[240].mxu1 %v10279_v46  ;;  %6638 = vmatmul.mubr.msk.bf16.gmra.mrb[112].mxu0 %vm8153_vm5, %v12487_v5 }
 0x3fb   : > { %3701 = vmatprep.mubr.bf16.mxu1 %v10161_v20  ;;  %4535 = vmatprep.mubr.bf16.mxu0 %v12605_v0 }
 0x3fd   : > { %v10635_v35 = vpop.f32.mrb[136].mxu1  ;;  %v4321_v6 = vpop.f32.mrb[8].mxu0 }
 0x3fe   : > { %12606 = vst [vmem:[#allocation36_spill] sm:$0xff] %v10635_v35  ;;  %v3489_v12 = vpop.f32.mrb[137].mxu1  ;;  %v10638_v2 = vadd.f32 %v4321_v6, %v12607_v31  ;;  %v4323_v47 = vpop.f32.mrb[9].mxu0  ;;  %v12610_v6 = vld [vmem:[#allocation111_spill] sm:$0xff]  ;;  %v12612_v31 = vld [vmem:[#allocation93_spill] sm:$0xff] }
 0x3ff   : > { %v10640_v57 = vpop.f32.mrb[138].mxu1  ;;  %v4324_v33 = vpop.f32.mrb[10].mxu0 }
 0x400   : > { %12608 = vst [vmem:[#allocation31_spill] sm:$0xff] %v10640_v57  ;;  %v3492_v5 = vpop.f32.mrb[139].mxu1  ;;  %v10647_v46 = vadd.f32 %v4324_v33, %v12609_v15  ;;  %v4326_v0 = vpop.f32.mrb[11].mxu0  ;;  %v12615_v57 = vld [vmem:[#allocation96_spill] sm:$0xff] }
 0x401   : > { %v10664_v5 = vpack.c.bf16 %v10340_v1, %v10324_v49 }
 0x402   : > { %3702 = vmatmul.mubr.bf16.gmra.mrb[244].mxu1 %v10291_v28  ;;  %4536 = vmatmul.mubr.bf16.gmra.mrb[116].mxu0 %v12491_v13 }
 0x403   : > { %6578 = vmatprep.mubr.msk.bf16.mxu1 %vm8153_vm5, %v10644_v51  ;;  %4543 = vmatprep.mubr.bf16.mxu0 %v12610_v6  ;;  %12614 = vst [vmem:[#allocation34_spill] sm:$0xff] %v10664_v5 }
 0x405   : > { %v10655_v12 = vpop.f32.mrb[140].mxu1  ;;  %v4329_v60 = vpop.f32.mrb[12].mxu0 }
 0x406   : > { %12611 = vst [vmem:[#allocation149_spill] sm:$0xff] %v10655_v12  ;;  %v3497_v3 = vpop.f32.mrb[141].mxu1  ;;  %v10658_v47 = vadd.f32 %v4329_v60, %v12612_v31  ;;  %v4331_v15 = vpop.f32.mrb[13].mxu0  ;;  %v12616_v60 = vld [vmem:[#allocation116_spill] sm:$0xff]  ;;  %v12618_v31 = vld [vmem:[#allocation98_spill] sm:$0xff] }
 0x407   : > { %v10660_v33 = vpop.f32.mrb[142].mxu1  ;;  %v4332_v13 = vpop.f32.mrb[14].mxu0 }
 0x408   : > { %12613 = vst [vmem:[#allocation39_spill] sm:$0xff] %v10660_v33  ;;  %v3500_v0 = vpop.f32.mrb[143].mxu1  ;;  %v10667_v35 = vadd.f32 %v4332_v13, %v12615_v57  ;;  %v4334_v6 = vpop.f32.mrb[15].mxu0  ;;  %v12620_v33 = vld [vmem:[#allocation100_spill] sm:$0xff] }
 0x40a   : > { %3710 = vmatmul.mubr.bf16.gmra.mrb[248].mxu1 %v10305_v36  ;;  %6642 = vmatmul.mubr.msk.bf16.gmra.mrb[120].mxu0 %vm8153_vm5, %v12494_v32 }
 0x40b   : > { %3717 = vmatprep.mubr.bf16.mxu1 %v10664_v5  ;;  %4551 = vmatprep.mubr.bf16.mxu0 %v12616_v60  ;;  %v12622_v60 = vld [vmem:[#allocation20_spill] sm:$0xff] }
 0x40d   : > { %v10675_v3 = vpop.f32.mrb[144].mxu1  ;;  %v4337_v49 = vpop.f32.mrb[16].mxu0 }
 0x40e   : > { %12617 = vst [vmem:[#allocation42_spill] sm:$0xff] %v10675_v3  ;;  %v3505_v1 = vpop.f32.mrb[145].mxu1  ;;  %v10678_v15 = vadd.f32 %v4337_v49, %v12618_v31  ;;  %v4339_v57 = vpop.f32.mrb[17].mxu0  ;;  %v12623_v3 = vld [vmem:[#allocation121_spill] sm:$0xff] }
 0x40f   : > { %v10680_v13 = vpop.f32.mrb[146].mxu1  ;;  %v4340_v0 = vpop.f32.mrb[18].mxu0  ;;  %v12625_v57 = vld [vmem:[#allocation103_spill] sm:$0xff] }
 0x410   : > { %12619 = vst [vmem:[#allocation37_spill] sm:$0xff] %v10680_v13  ;;  %v3508_v6 = vpop.f32.mrb[147].mxu1  ;;  %v10683_v12 = vadd.f32 %v4340_v0, %v12620_v33  ;;  %v4342_v32 = vpop.f32.mrb[19].mxu0 }
 0x411   : > { %v12627_v32 = vld [vmem:[#allocation105_spill] sm:$0xff] }
 0x412   : > { %12621 = vst [vmem:[#allocation45_spill] sm:$0xff] %v10683_v12  ;;  %3718 = vmatmul.mubr.bf16.gmra.mrb[252].mxu1 %v10329_v37  ;;  %4552 = vmatmul.mubr.bf16.gmra.mrb[124].mxu0 %v12498_v55  ;;  %v12629_v12 = vld [vmem:[#allocation23_spill] sm:$0xff] }
 0x413   : > { %6804 = vmatprep.mubr.bf16.mxu1 %v12622_v60  ;;  %4559 = vmatprep.mubr.bf16.mxu0 %v12623_v3  ;;  %v12630_v3 = vld [vmem:[#allocation26_spill] sm:$0xff] }
 0x414   : > { %v12631_v60 = vld [vmem:[#allocation126_spill] sm:$0xff] }
 0x415   : > { %v10689_v1 = vpop.f32.mrb[148].mxu1  ;;  %v4345_v49 = vpop.f32.mrb[20].mxu0 }
 0x416   : > { %12624 = vst [vmem:[#allocation40_spill] sm:$0xff] %v10689_v1  ;;  %v3513_v31 = vpop.f32.mrb[149].mxu1  ;;  %v10692_v13 = vadd.f32 %v4345_v49, %v12625_v57  ;;  %v4347_v6 = vpop.f32.mrb[21].mxu0 }
 0x417   : > { %v10694_v5 = vpop.f32.mrb[150].mxu1  ;;  %v4348_v33 = vpop.f32.mrb[22].mxu0  ;;  %v12633_v6 = vld [vmem:[#allocation108_spill] sm:$0xff] }
 0x418   : > { %12626 = vst [vmem:[#allocation48_spill] sm:$0xff] %v10694_v5  ;;  %v3516_v0 = vpop.f32.mrb[151].mxu1  ;;  %v10697_v37 = vadd.f32 %v4348_v33, %v12627_v32  ;;  %v4350_v55 = vpop.f32.mrb[23].mxu0  ;;  %v12635_v5 = vld [vmem:[#allocation110_spill] sm:$0xff] }
 0x41a   : > { %12628 = vst [vmem:[#allocation43_spill] sm:$0xff] %v10697_v37  ;;  %6805 = vmatmul.mubr.bf16.vlgmr.msra.gmra.mrb[0].mxu1 %v12629_v12  ;;  %6646 = vmatmul.mubr.msk.bf16.gmra.mrb[128].mxu0 %vm8153_vm5, %v12502_v50  ;;  %v12637_v37 = vld [vmem:[#allocation29_spill] sm:$0xff] }
 0x41b   : > { %6808 = vmatprep.mubr.bf16.mxu1 %v12630_v3  ;;  %4567 = vmatprep.mubr.bf16.mxu0 %v12631_v60  ;;  %v12638_v3 = vld [vmem:[#allocation32_spill] sm:$0xff]  ;;  %v12639_v60 = vld [vmem:[#allocation131_spill] sm:$0xff] }
 0x41d   : > { %v10705_v49 = vpop.f32.mrb[152].mxu1  ;;  %v4353_v31 = vpop.f32.mrb[24].mxu0 }
 0x41e   : > { %12632 = vst [vmem:[#allocation51_spill] sm:$0xff] %v10705_v49  ;;  %v3521_v57 = vpop.f32.mrb[153].mxu1  ;;  %v10708_v0 = vadd.f32 %v4353_v31, %v12633_v6  ;;  %v4355_v33 = vpop.f32.mrb[25].mxu0 }
 0x41f   : > { %v10710_v32 = vpop.f32.mrb[154].mxu1  ;;  %v4356_v55 = vpop.f32.mrb[26].mxu0  ;;  %v12641_v33 = vld [vmem:[#allocation113_spill] sm:$0xff] }
 0x420   : > { %12634 = vst [vmem:[#allocation46_spill] sm:$0xff] %v10710_v32  ;;  %v3524_v12 = vpop.f32.mrb[155].mxu1  ;;  %v10713_v1 = vadd.f32 %v4356_v55, %v12635_v5  ;;  %v4358_v50 = vpop.f32.mrb[27].mxu0 }
 0x421   : > { %v12643_v50 = vld [vmem:[#allocation115_spill] sm:$0xff] }
 0x422   : > { %12636 = vst [vmem:[#allocation54_spill] sm:$0xff] %v10713_v1  ;;  %6809 = vmatmul.mubr.bf16.gmra.mrb[4].mxu1 %v12637_v37  ;;  %4568 = vmatmul.mubr.bf16.gmra.mrb[132].mxu0 %v12506_v27  ;;  %v12645_v1 = vld [vmem:[#allocation35_spill] sm:$0xff] }
 0x423   : > { %6812 = vmatprep.mubr.bf16.mxu1 %v12638_v3  ;;  %4575 = vmatprep.mubr.bf16.mxu0 %v12639_v60  ;;  %v12646_v3 = vld [vmem:[#allocation38_spill] sm:$0xff]  ;;  %v12647_v60 = vld [vmem:[#allocation136_spill] sm:$0xff] }
 0x425   : > { %v10719_v57 = vpop.f32.mrb[156].mxu1  ;;  %v4361_v31 = vpop.f32.mrb[28].mxu0 }
 0x426   : > { %12640 = vst [vmem:[#allocation49_spill] sm:$0xff] %v10719_v57  ;;  %v3529_v6 = vpop.f32.mrb[157].mxu1  ;;  %v10722_v32 = vadd.f32 %v4361_v31, %v12641_v33  ;;  %v4363_v12 = vpop.f32.mrb[29].mxu0 }
 0x427   : > { %v10724_v49 = vpop.f32.mrb[158].mxu1  ;;  %v4364_v5 = vpop.f32.mrb[30].mxu0  ;;  %v12649_v12 = vld [vmem:[#allocation118_spill] sm:$0xff] }
 0x428   : > { %12642 = vst [vmem:[#allocation56_spill] sm:$0xff] %v10724_v49  ;;  %v3532_v55 = vpop.f32.mrb[159].mxu1  ;;  %v10727_v37 = vadd.f32 %v4364_v5, %v12643_v50  ;;  %v4366_v27 = vpop.f32.mrb[31].mxu0  ;;  %v12651_v49 = vld [vmem:[#allocation120_spill] sm:$0xff] }
 0x42a   : > { %12644 = vst [vmem:[#allocation52_spill] sm:$0xff] %v10727_v37  ;;  %6813 = vmatmul.mubr.bf16.gmra.mrb[8].mxu1 %v12645_v1  ;;  %6650 = vmatmul.mubr.msk.bf16.gmra.mrb[136].mxu0 %vm8153_vm5, %v12510_v43  ;;  %v12653_v37 = vld [vmem:[#allocation41_spill] sm:$0xff] }
 0x42b   : > { %6816 = vmatprep.mubr.bf16.mxu1 %v12646_v3  ;;  %4583 = vmatprep.mubr.bf16.mxu0 %v12647_v60  ;;  %v12654_v3 = vld [vmem:[#allocation44_spill] sm:$0xff]  ;;  %v12655_v60 = vld [vmem:[#allocation142_spill] sm:$0xff] }
 0x42d   : > { %v10735_v31 = vpop.f32.mrb[160].mxu1  ;;  %v4369_v6 = vpop.f32.mrb[32].mxu0 }
 0x42e   : > { %12648 = vst [vmem:[#allocation171_spill] sm:$0xff] %v10735_v31  ;;  %v3537_v33 = vpop.f32.mrb[161].mxu1  ;;  %v10738_v55 = vadd.f32 %v4369_v6, %v12649_v12  ;;  %v4371_v5 = vpop.f32.mrb[33].mxu0 }
 0x42f   : > { %v10740_v50 = vpop.f32.mrb[162].mxu1  ;;  %v4372_v27 = vpop.f32.mrb[34].mxu0  ;;  %v12657_v5 = vld [vmem:[#allocation123_spill] sm:$0xff] }
 0x430   : > { %12650 = vst [vmem:[#allocation57_spill] sm:$0xff] %v10740_v50  ;;  %v3540_v1 = vpop.f32.mrb[163].mxu1  ;;  %v10743_v57 = vadd.f32 %v4372_v27, %v12651_v49  ;;  %v4374_v43 = vpop.f32.mrb[35].mxu0 }
 0x431   : > { %v12659_v43 = vld [vmem:[#allocation125_spill] sm:$0xff] }
 0x432   : > { %12652 = vst [vmem:[#allocation175_spill] sm:$0xff] %v10743_v57  ;;  %6817 = vmatmul.mubr.bf16.gmra.mrb[12].mxu1 %v12653_v37  ;;  %4584 = vmatmul.mubr.bf16.gmra.mrb[140].mxu0 %v12514_v18  ;;  %v12661_v57 = vld [vmem:[#allocation47_spill] sm:$0xff] }
 0x433   : > { %6820 = vmatprep.mubr.bf16.mxu1 %v12654_v3  ;;  %4591 = vmatprep.mubr.bf16.mxu0 %v12655_v60  ;;  %v12662_v3 = vld [vmem:[#allocation50_spill] sm:$0xff]  ;;  %v12663_v60 = vld [vmem:[#allocation147_spill] sm:$0xff] }
 0x435   : > { %v10749_v33 = vpop.f32.mrb[164].mxu1  ;;  %v4377_v6 = vpop.f32.mrb[36].mxu0 }
 0x436   : > { %12656 = vst [vmem:[#allocation59_spill] sm:$0xff] %v10749_v33  ;;  %v3545_v12 = vpop.f32.mrb[165].mxu1  ;;  %v10752_v50 = vadd.f32 %v4377_v6, %v12657_v5  ;;  %v4379_v1 = vpop.f32.mrb[37].mxu0 }
 0x437   : > { %v10754_v31 = vpop.f32.mrb[166].mxu1  ;;  %v4380_v49 = vpop.f32.mrb[38].mxu0  ;;  %v12665_v1 = vld [vmem:[#allocation128_spill] sm:$0xff] }
 0x438   : > { %12658 = vst [vmem:[#allocation178_spill] sm:$0xff] %v10754_v31  ;;  %v3548_v27 = vpop.f32.mrb[167].mxu1  ;;  %v10757_v37 = vadd.f32 %v4380_v49, %v12659_v43  ;;  %v4382_v18 = vpop.f32.mrb[39].mxu0  ;;  %v12667_v31 = vld [vmem:[#allocation130_spill] sm:$0xff] }
 0x43a   : > { %12660 = vst [vmem:[#allocation61_spill] sm:$0xff] %v10757_v37  ;;  %6821 = vmatmul.mubr.bf16.gmra.mrb[16].mxu1 %v12661_v57  ;;  %6654 = vmatmul.mubr.msk.bf16.gmra.mrb[144].mxu0 %vm8153_vm5, %v12518_v11  ;;  %v12669_v37 = vld [vmem:[#allocation53_spill] sm:$0xff] }
 0x43b   : > { %6824 = vmatprep.mubr.bf16.mxu1 %v12662_v3  ;;  %4599 = vmatprep.mubr.bf16.mxu0 %v12663_v60  ;;  %v12670_v3 = vld [vmem:[#allocation151_spill] sm:$0xff] }
 0x43d   : > { %v10765_v6 = vpop.f32.mrb[168].mxu1  ;;  %v4385_v12 = vpop.f32.mrb[40].mxu0 }
 0x43e   : > { %12664 = vst [vmem:[#allocation181_spill] sm:$0xff] %v10765_v6  ;;  %v3553_v5 = vpop.f32.mrb[169].mxu1  ;;  %v10768_v27 = vadd.f32 %v4385_v12, %v12665_v1  ;;  %v4387_v49 = vpop.f32.mrb[41].mxu0  ;;  %v12672_v1 = vld [vmem:[#allocation133_spill] sm:$0xff] }
 0x43f   : > { %v10770_v43 = vpop.f32.mrb[170].mxu1  ;;  %v4388_v18 = vpop.f32.mrb[42].mxu0 }
 0x440   : > { %12666 = vst [vmem:[#allocation63_spill] sm:$0xff] %v10770_v43  ;;  %v3556_v57 = vpop.f32.mrb[171].mxu1  ;;  %v10773_v33 = vadd.f32 %v4388_v18, %v12667_v31  ;;  %v4390_v11 = vpop.f32.mrb[43].mxu0 }
 0x441   : > { %v12674_v11 = vld [vmem:[#allocation135_spill] sm:$0xff] }
 0x442   : > { %12668 = vst [vmem:[#allocation184_spill] sm:$0xff] %v10773_v33  ;;  %6825 = vmatmul.mubr.bf16.gmra.mrb[20].mxu1 %v12669_v37  ;;  %4600 = vmatmul.mubr.bf16.gmra.mrb[148].mxu0 %v12522_v29  ;;  %v12684_v33 = vld [vmem:[#allocation107_spill] sm:$0xff] }
 0x443   : > { %6828 = vmatprep.mubr.bf16.mxu1 %v12439_v40  ;;  %4607 = vmatprep.mubr.bf16.mxu0 %v12670_v3  ;;  %v12675_v40 = vld [vmem:[#allocation153_spill] sm:$0xff]  ;;  %v12676_v3 = vld [vmem:[#allocation102_spill] sm:$0xff] }
 0x445   : > { %v10779_v60 = vpop.f32.mrb[172].mxu1  ;;  %v4393_v12 = vpop.f32.mrb[44].mxu0 }
 0x446   : > { %12671 = vst [vmem:[#allocation65_spill] sm:$0xff] %v10779_v60  ;;  %v3561_v5 = vpop.f32.mrb[173].mxu1  ;;  %v10782_v49 = vadd.f32 %v4393_v12, %v12672_v1  ;;  %v4395_v57 = vpop.f32.mrb[45].mxu0  ;;  %v12682_v60 = vld [vmem:[#allocation141_spill] sm:$0xff] }
 0x447   : > { %v10784_v43 = vpop.f32.mrb[174].mxu1  ;;  %v4396_v31 = vpop.f32.mrb[46].mxu0  ;;  %v12677_v5 = vld [vmem:[#allocation155_spill] sm:$0xff] }
 0x448   : > { %12673 = vst [vmem:[#allocation187_spill] sm:$0xff] %v10784_v43  ;;  %v3564_v18 = vpop.f32.mrb[175].mxu1  ;;  %v10787_v37 = vadd.f32 %v4396_v31, %v12674_v11  ;;  %v4398_v29 = vpop.f32.mrb[47].mxu0  ;;  %v12679_v43 = vld [vmem:[#allocation138_spill] sm:$0xff] }
 0x44a   : > { %6829 = vmatmul.mubr.bf16.gmra.mrb[24].mxu1 %v12443_v4  ;;  %6658 = vmatmul.mubr.msk.bf16.gmra.mrb[152].mxu0 %vm8153_vm5, %v12675_v40 }
 0x44b   : > { %6832 = vmatprep.mubr.bf16.mxu1 %v12676_v3  ;;  %4615 = vmatprep.mubr.bf16.mxu0 %v12677_v5  ;;  %v12685_v3 = vld [vmem:[#allocation157_spill] sm:$0xff]  ;;  %v12686_v5 = vld [vmem:[#allocation112_spill] sm:$0xff] }
 0x44d   : > { %v10795_v12 = vpop.f32.mrb[176].mxu1  ;;  %v4401_v1 = vpop.f32.mrb[48].mxu0 }
 0x44e   : > { %12678 = vst [vmem:[#allocation67_spill] sm:$0xff] %v10795_v12  ;;  %v3569_v57 = vpop.f32.mrb[177].mxu1  ;;  %v10798_v18 = vadd.f32 %v4401_v1, %v12679_v43  ;;  %v4403_v31 = vpop.f32.mrb[49].mxu0  ;;  %v12687_v12 = vld [vmem:[#allocation158_spill] sm:$0xff] }
 0x44f   : > { %v10800_v11 = vpop.f32.mrb[178].mxu1  ;;  %v4404_v29 = vpop.f32.mrb[50].mxu0  ;;  %v12689_v31 = vld [vmem:[#allocation72_spill] sm:$0xff] }
 0x450   : > { %12680 = vst [vmem:[#allocation190_spill] sm:$0xff] %v10798_v18  ;;  %12681 = vst [vmem:[#allocation69_spill] sm:$0xff] %v10800_v11  ;;  %v3572_v4 = vpop.f32.mrb[179].mxu1  ;;  %v10803_v6 = vadd.f32 %v4404_v29, %v12682_v60  ;;  %v4406_v40 = vpop.f32.mrb[51].mxu0 }
 0x451   : > { %v12692_v40 = vld [vmem:[#allocation146_spill] sm:$0xff] }
 0x452   : > { %12683 = vst [vmem:[#allocation144_spill] sm:$0xff] %v10803_v6  ;;  %6833 = vmatmul.mubr.bf16.gmra.mrb[28].mxu1 %v12684_v33  ;;  %4616 = vmatmul.mubr.bf16.gmra.mrb[156].mxu0 %v12685_v3  ;;  %v12694_v6 = vld [vmem:[#allocation117_spill] sm:$0xff] }
 0x453   : > { %6836 = vmatprep.mubr.bf16.mxu1 %v12686_v5  ;;  %4623 = vmatprep.mubr.bf16.mxu0 %v12687_v12  ;;  %v12695_v5 = vld [vmem:[#allocation160_spill] sm:$0xff]  ;;  %v12696_v12 = vld [vmem:[#allocation122_spill] sm:$0xff] }
 0x455   : > { %v10809_v57 = vpop.f32.mrb[180].mxu1  ;;  %v4409_v43 = vpop.f32.mrb[52].mxu0 }
 0x456   : > { %12688 = vst [vmem:[#allocation71_spill] sm:$0xff] %v10809_v57  ;;  %v3577_v1 = vpop.f32.mrb[181].mxu1  ;;  %v10812_v11 = vadd.f32 %v4409_v43, %v12689_v31  ;;  %v4411_v4 = vpop.f32.mrb[53].mxu0  ;;  %v12702_v57 = vld [vmem:[#allocation150_spill] sm:$0xff] }
 0x457   : > { %v10814_v18 = vpop.f32.mrb[182].mxu1  ;;  %v4412_v60 = vpop.f32.mrb[54].mxu0  ;;  %v12697_v1 = vld [vmem:[#allocation161_spill] sm:$0xff] }
 0x458   : > { %12690 = vst [vmem:[#allocation195_spill] sm:$0xff] %v10812_v11  ;;  %12691 = vst [vmem:[#allocation74_spill] sm:$0xff] %v10814_v18  ;;  %v3580_v29 = vpop.f32.mrb[183].mxu1  ;;  %v10817_v33 = vadd.f32 %v4412_v60, %v12692_v40  ;;  %v4414_v3 = vpop.f32.mrb[55].mxu0  ;;  %v12699_v18 = vld [vmem:[#allocation75_spill] sm:$0xff] }
 0x459   : > { %v12704_v11 = vld [vmem:[#allocation127_spill] sm:$0xff] }
 0x45a   : > { %12693 = vst [vmem:[#allocation198_spill] sm:$0xff] %v10817_v33  ;;  %6837 = vmatmul.mubr.bf16.gmra.mrb[32].mxu1 %v12694_v6  ;;  %6662 = vmatmul.mubr.msk.bf16.gmra.mrb[160].mxu0 %vm8153_vm5, %v12695_v5 }
 0x45b   : > { %6840 = vmatprep.mubr.bf16.mxu1 %v12696_v12  ;;  %4631 = vmatprep.mubr.bf16.mxu0 %v12697_v1  ;;  %v12705_v12 = vld [vmem:[#allocation94_spill] sm:$0xff]  ;;  %v12706_v1 = vld [vmem:[#allocation132_spill] sm:$0xff] }
 0x45d   : > { %v10825_v43 = vpop.f32.mrb[184].mxu1  ;;  %v4417_v31 = vpop.f32.mrb[56].mxu0 }
 0x45e   : > { %12698 = vst [vmem:[#allocation77_spill] sm:$0xff] %v10825_v43  ;;  %v3585_v4 = vpop.f32.mrb[185].mxu1  ;;  %v10828_v29 = vadd.f32 %v4417_v31, %v12699_v18  ;;  %v4419_v60 = vpop.f32.mrb[57].mxu0  ;;  %v12707_v43 = vld [vmem:[#allocation163_spill] sm:$0xff] }
 0x45f   : > { %v10830_v40 = vpop.f32.mrb[186].mxu1  ;;  %v4420_v3 = vpop.f32.mrb[58].mxu0  ;;  %v12709_v60 = vld [vmem:[#allocation79_spill] sm:$0xff] }
 0x460   : > { %12700 = vst [vmem:[#allocation201_spill] sm:$0xff] %v10828_v29  ;;  %12701 = vst [vmem:[#allocation82_spill] sm:$0xff] %v10830_v40  ;;  %v3588_v6 = vpop.f32.mrb[187].mxu1  ;;  %v10833_v33 = vadd.f32 %v4420_v3, %v12702_v57  ;;  %v4422_v5 = vpop.f32.mrb[59].mxu0 }
 0x461   : > { %v12712_v5 = vld [vmem:[#allocation154_spill] sm:$0xff] }
 0x462   : > { %12703 = vst [vmem:[#allocation88_spill] sm:$0xff] %v10833_v33  ;;  %6841 = vmatmul.mubr.bf16.gmra.mrb[36].mxu1 %v12704_v11  ;;  %4632 = vmatmul.mubr.bf16.gmra.mrb[164].mxu0 %v12705_v12  ;;  %v12714_v33 = vld [vmem:[#allocation137_spill] sm:$0xff] }
 0x463   : > { %6844 = vmatprep.mubr.bf16.mxu1 %v12706_v1  ;;  %4639 = vmatprep.mubr.bf16.mxu0 %v12707_v43  ;;  %v12715_v1 = vld [vmem:[#allocation165_spill] sm:$0xff]  ;;  %v12716_v43 = vld [vmem:[#allocation143_spill] sm:$0xff] }
 0x465   : > { %v10839_v4 = vpop.f32.mrb[188].mxu1  ;;  %v4425_v18 = vpop.f32.mrb[60].mxu0 }
 0x466   : > { %12708 = vst [vmem:[#allocation86_spill] sm:$0xff] %v10839_v4  ;;  %v3593_v31 = vpop.f32.mrb[189].mxu1  ;;  %v10842_v40 = vadd.f32 %v4425_v18, %v12709_v60  ;;  %v4427_v6 = vpop.f32.mrb[61].mxu0  ;;  %v12722_v4 = vld [vmem:[#allocation95_spill] sm:$0xff] }
 0x467   : > { %v10844_v29 = vpop.f32.mrb[190].mxu1  ;;  %v4428_v57 = vpop.f32.mrb[62].mxu0  ;;  %v12717_v31 = vld [vmem:[#allocation166_spill] sm:$0xff] }
 0x468   : > { %12710 = vst [vmem:[#allocation91_spill] sm:$0xff] %v10842_v40  ;;  %12711 = vst [vmem:[#allocation97_spill] sm:$0xff] %v10844_v29  ;;  %v3596_v3 = vpop.f32.mrb[191].mxu1  ;;  %v10847_v11 = vadd.f32 %v4428_v57, %v12712_v5  ;;  %v4430_v12 = vpop.f32.mrb[63].mxu0  ;;  %v12719_v29 = vld [vmem:[#allocation89_spill] sm:$0xff]  ;;  %v12724_v40 = vld [vmem:[#allocation148_spill] sm:$0xff] }
 0x46a   : > { %12713 = vst [vmem:[#allocation78_spill] sm:$0xff] %v10847_v11  ;;  %6845 = vmatmul.mubr.bf16.gmra.mrb[40].mxu1 %v12714_v33  ;;  %6666 = vmatmul.mubr.msk.bf16.gmra.mrb[168].mxu0 %vm8153_vm5, %v12715_v1 }
 0x46b   : > { %6848 = vmatprep.mubr.bf16.mxu1 %v12716_v43  ;;  %4647 = vmatprep.mubr.bf16.mxu0 %v12717_v31  ;;  %v12725_v43 = vld [vmem:[#allocation168_spill] sm:$0xff] }
 0x46c   : > { %v12726_v31 = vld [vmem:[#allocation152_spill] sm:$0xff] }
 0x46d   : > { %v10855_v18 = vpop.f32.mrb[192].mxu1  ;;  %v4433_v60 = vpop.f32.mrb[64].mxu0 }
 0x46e   : > { %12718 = vst [vmem:[#allocation81_spill] sm:$0xff] %v10855_v18  ;;  %v3601_v6 = vpop.f32.mrb[193].mxu1  ;;  %v10858_v3 = vadd.f32 %v4433_v60, %v12719_v29  ;;  %v4435_v57 = vpop.f32.mrb[65].mxu0  ;;  %v12727_v18 = vld [vmem:[#allocation169_spill] sm:$0xff] }
 0x46f   : > { %v10860_v5 = vpop.f32.mrb[194].mxu1  ;;  %v4436_v12 = vpop.f32.mrb[66].mxu0  ;;  %v12729_v57 = vld [vmem:[#allocation99_spill] sm:$0xff] }
 0x470   : > { %12720 = vst [vmem:[#allocation101_spill] sm:$0xff] %v10858_v3  ;;  %12721 = vst [vmem:[#allocation83_spill] sm:$0xff] %v10860_v5  ;;  %v3604_v33 = vpop.f32.mrb[195].mxu1  ;;  %v10863_v11 = vadd.f32 %v4436_v12, %v12722_v4  ;;  %v4438_v1 = vpop.f32.mrb[67].mxu0 }
 0x471   : > { %v12731_v1 = vld [vmem:[#allocation104_spill] sm:$0xff] }
 0x472   : > { %12723 = vst [vmem:[#allocation85_spill] sm:$0xff] %v10863_v11  ;;  %6849 = vmatmul.mubr.bf16.gmra.mrb[44].mxu1 %v12724_v40  ;;  %4648 = vmatmul.mubr.bf16.gmra.mrb[172].mxu0 %v12725_v43  ;;  %v12732_v11 = vld [vmem:[#allocation156_spill] sm:$0xff] }
 0x473   : > { %6852 = vmatprep.mubr.bf16.mxu1 %v12726_v31  ;;  %4655 = vmatprep.mubr.bf16.mxu0 %v12727_v18  ;;  %v12733_v18 = vld [vmem:[#allocation159_spill] sm:$0xff]  ;;  %v12734_v31 = vld [vmem:[#allocation172_spill] sm:$0xff] }
 0x475   : > { %v10869_v6 = vpop.f32.mrb[196].mxu1  ;;  %v4441_v29 = vpop.f32.mrb[68].mxu0 }
 0x476   : > { %12728 = vst [vmem:[#allocation106_spill] sm:$0xff] %v10869_v6  ;;  %v3609_v60 = vpop.f32.mrb[197].mxu1  ;;  %v10872_v5 = vadd.f32 %v4441_v29, %v12729_v57  ;;  %v4443_v33 = vpop.f32.mrb[69].mxu0  ;;  %v12738_v6 = vld [vmem:[#allocation162_spill] sm:$0xff] }
 0x477   : > { %v10874_v3 = vpop.f32.mrb[198].mxu1  ;;  %v4444_v4 = vpop.f32.mrb[70].mxu0  ;;  %v12736_v33 = vld [vmem:[#allocation109_spill] sm:$0xff] }
 0x478   : > { %12730 = vst [vmem:[#allocation87_spill] sm:$0xff] %v10874_v3  ;;  %v3612_v12 = vpop.f32.mrb[199].mxu1  ;;  %v10877_v40 = vadd.f32 %v4444_v4, %v12731_v1  ;;  %v4446_v43 = vpop.f32.mrb[71].mxu0 }
 0x47a   : > { %6853 = vmatmul.mubr.bf16.gmra.mrb[48].mxu1 %v12732_v11  ;;  %6670 = vmatmul.mubr.msk.bf16.gmra.mrb[176].mxu0 %vm8153_vm5, %v12555_v24 }
 0x47b   : > { %6856 = vmatprep.mubr.bf16.mxu1 %v12733_v18  ;;  %4663 = vmatprep.mubr.bf16.mxu0 %v12734_v31  ;;  %v12739_v18 = vld [vmem:[#allocation164_spill] sm:$0xff] }
 0x47c   : > { %v12740_v31 = vld [vmem:[#allocation176_spill] sm:$0xff] }
 0x47d   : > { %v10885_v29 = vpop.f32.mrb[200].mxu1  ;;  %v4449_v60 = vpop.f32.mrb[72].mxu0 }
 0x47e   : > { %12735 = vst [vmem:[#allocation90_spill] sm:$0xff] %v10885_v29  ;;  %v3617_v57 = vpop.f32.mrb[201].mxu1  ;;  %v10888_v12 = vadd.f32 %v4449_v60, %v12736_v33  ;;  %v4451_v4 = vpop.f32.mrb[73].mxu0 }
 0x47f   : > { %v10890_v1 = vpop.f32.mrb[202].mxu1  ;;  %v4452_v43 = vpop.f32.mrb[74].mxu0  ;;  %v12742_v4 = vld [vmem:[#allocation114_spill] sm:$0xff] }
 0x480   : > { %12737 = vst [vmem:[#allocation111_spill] sm:$0xff] %v10890_v1  ;;  %v3620_v11 = vpop.f32.mrb[203].mxu1  ;;  %v10893_v3 = vadd.f32 %v4452_v43, %v10465_v8  ;;  %v4454_v24 = vpop.f32.mrb[75].mxu0 }
 0x481   : > { %v12744_v24 = vld [vmem:[#allocation167_spill] sm:$0xff] }
 0x482   : > { %6857 = vmatmul.mubr.bf16.gmra.mrb[52].mxu1 %v12738_v6  ;;  %4664 = vmatmul.mubr.bf16.gmra.mrb[180].mxu0 %v12558_v26 }
 0x483   : > { %6860 = vmatprep.mubr.bf16.mxu1 %v12739_v18  ;;  %4671 = vmatprep.mubr.bf16.mxu0 %v12740_v31  ;;  %v12745_v18 = vld [vmem:[#allocation170_spill] sm:$0xff]  ;;  %v12746_v31 = vld [vmem:[#allocation179_spill] sm:$0xff] }
 0x485   : > { %v10899_v57 = vpop.f32.mrb[204].mxu1  ;;  %v4457_v60 = vpop.f32.mrb[76].mxu0 }
 0x486   : > { %12741 = vst [vmem:[#allocation93_spill] sm:$0xff] %v10899_v57  ;;  %v3625_v33 = vpop.f32.mrb[205].mxu1  ;;  %v10902_v1 = vadd.f32 %v4457_v60, %v12742_v4  ;;  %v4459_v11 = vpop.f32.mrb[77].mxu0  ;;  %v12750_v57 = vld [vmem:[#allocation173_spill] sm:$0xff] }
 0x487   : > { %v10904_v29 = vpop.f32.mrb[206].mxu1  ;;  %v4460_v8 = vpop.f32.mrb[78].mxu0  ;;  %v12748_v11 = vld [vmem:[#allocation18_spill] sm:$0xff] }
 0x488   : > { %12743 = vst [vmem:[#allocation96_spill] sm:$0xff] %v10904_v29  ;;  %v3628_v43 = vpop.f32.mrb[207].mxu1  ;;  %v10907_v6 = vadd.f32 %v4460_v8, %v10475_v52  ;;  %v4462_v26 = vpop.f32.mrb[79].mxu0 }
 0x48a   : > { %6861 = vmatmul.mubr.bf16.gmra.mrb[56].mxu1 %v12744_v24  ;;  %6674 = vmatmul.mubr.msk.bf16.gmra.mrb[184].mxu0 %vm8153_vm5, %v12561_v54 }
 0x48b   : > { %6864 = vmatprep.mubr.bf16.mxu1 %v12745_v18  ;;  %4679 = vmatprep.mubr.bf16.mxu0 %v12746_v31  ;;  %v12751_v18 = vld [vmem:[#allocation177_spill] sm:$0xff]  ;;  %v12752_v31 = vld [vmem:[#allocation182_spill] sm:$0xff] }
 0x48d   : > { %v10915_v60 = vpop.f32.mrb[208].mxu1  ;;  %v4465_v33 = vpop.f32.mrb[80].mxu0 }
 0x48e   : > { %12747 = vst [vmem:[#allocation116_spill] sm:$0xff] %v10915_v60  ;;  %v3633_v4 = vpop.f32.mrb[209].mxu1  ;;  %v10918_v43 = vadd.f32 %v4465_v33, %v12748_v11  ;;  %v4467_v52 = vpop.f32.mrb[81].mxu0 }
 0x48f   : > { %v10920_v8 = vpop.f32.mrb[210].mxu1  ;;  %v4468_v26 = vpop.f32.mrb[82].mxu0  ;;  %v12754_v52 = vld [vmem:[#allocation16_spill] sm:$0xff] }
 0x490   : > { %12749 = vst [vmem:[#allocation98_spill] sm:$0xff] %v10920_v8  ;;  %v3636_v24 = vpop.f32.mrb[211].mxu1  ;;  %v10923_v29 = vadd.f32 %v4468_v26, %v10485_v63  ;;  %v4470_v54 = vpop.f32.mrb[83].mxu0 }
 0x491   : > { %v12756_v54 = vld [vmem:[#allocation180_spill] sm:$0xff] }
 0x492   : > { %6865 = vmatmul.mubr.bf16.gmra.mrb[60].mxu1 %v12750_v57  ;;  %4680 = vmatmul.mubr.bf16.gmra.mrb[188].mxu0 %v12564_v25 }
 0x493   : > { %6868 = vmatprep.mubr.bf16.mxu1 %v12751_v18  ;;  %4687 = vmatprep.mubr.bf16.mxu0 %v12752_v31  ;;  %v12757_v18 = vld [vmem:[#allocation183_spill] sm:$0xff]  ;;  %v12758_v31 = vld [vmem:[#allocation185_spill] sm:$0xff] }
 0x495   : > { %v10929_v4 = vpop.f32.mrb[212].mxu1  ;;  %v4473_v33 = vpop.f32.mrb[84].mxu0 }
 0x496   : > { %12753 = vst [vmem:[#allocation100_spill] sm:$0xff] %v10929_v4  ;;  %v3641_v11 = vpop.f32.mrb[213].mxu1  ;;  %v10932_v8 = vadd.f32 %v4473_v33, %v12754_v52  ;;  %v4475_v24 = vpop.f32.mrb[85].mxu0  ;;  %v12762_v4 = vld [vmem:[#allocation186_spill] sm:$0xff] }
 0x497   : > { %v10934_v60 = vpop.f32.mrb[214].mxu1  ;;  %v4476_v63 = vpop.f32.mrb[86].mxu0  ;;  %v12760_v24 = vld [vmem:[#allocation119_spill] sm:$0xff] }
 0x498   : > { %12755 = vst [vmem:[#allocation20_spill] sm:$0xff] %v10934_v60  ;;  %v3644_v26 = vpop.f32.mrb[215].mxu1  ;;  %v10937_v57 = vadd.f32 %v4476_v63, %v10495_v41  ;;  %v4478_v25 = vpop.f32.mrb[87].mxu0 }
 0x49a   : > { %6869 = vmatmul.mubr.bf16.gmra.mrb[64].mxu1 %v12756_v54  ;;  %6678 = vmatmul.mubr.msk.bf16.gmra.mrb[192].mxu0 %vm8153_vm5, %v12567_v45 }
 0x49b   : > { %6872 = vmatprep.mubr.bf16.mxu1 %v12757_v18  ;;  %4695 = vmatprep.mubr.bf16.mxu0 %v12758_v31  ;;  %v12763_v18 = vld [vmem:[#allocation189_spill] sm:$0xff]  ;;  %v12764_v31 = vld [vmem:[#allocation188_spill] sm:$0xff] }
 0x49d   : > { %v10945_v33 = vpop.f32.mrb[216].mxu1  ;;  %v4481_v11 = vpop.f32.mrb[88].mxu0 }
 0x49e   : > { %12759 = vst [vmem:[#allocation121_spill] sm:$0xff] %v10945_v33  ;;  %v3649_v52 = vpop.f32.mrb[217].mxu1  ;;  %v10948_v26 = vadd.f32 %v4481_v11, %v12760_v24  ;;  %v4483_v41 = vpop.f32.mrb[89].mxu0 }
 0x49f   : > { %v10950_v63 = vpop.f32.mrb[218].mxu1  ;;  %v4484_v25 = vpop.f32.mrb[90].mxu0  ;;  %v12766_v41 = vld [vmem:[#allocation21_spill] sm:$0xff] }
 0x4a0   : > { %12761 = vst [vmem:[#allocation103_spill] sm:$0xff] %v10950_v63  ;;  %v3652_v54 = vpop.f32.mrb[219].mxu1  ;;  %v10953_v60 = vadd.f32 %v4484_v25, %v10505_v23  ;;  %v4486_v45 = vpop.f32.mrb[91].mxu0 }
 0x4a1   : > { %v12768_v45 = vld [vmem:[#allocation192_spill] sm:$0xff] }
 0x4a2   : > { %6873 = vmatmul.mubr.bf16.gmra.mrb[68].mxu1 %v12762_v4  ;;  %4696 = vmatmul.mubr.bf16.gmra.mrb[196].mxu0 %v12570_v22 }
 0x4a3   : > { %6876 = vmatprep.mubr.bf16.mxu1 %v12763_v18  ;;  %4703 = vmatprep.mubr.bf16.mxu0 %v12764_v31  ;;  %v12769_v18 = vld [vmem:[#allocation194_spill] sm:$0xff]  ;;  %v12770_v31 = vld [vmem:[#allocation191_spill] sm:$0xff] }
 0x4a5   : > { %v10959_v52 = vpop.f32.mrb[220].mxu1  ;;  %v4489_v11 = vpop.f32.mrb[92].mxu0 }
 0x4a6   : > { %12765 = vst [vmem:[#allocation105_spill] sm:$0xff] %v10959_v52  ;;  %v3657_v24 = vpop.f32.mrb[221].mxu1  ;;  %v10962_v63 = vadd.f32 %v4489_v11, %v12766_v41  ;;  %v4491_v54 = vpop.f32.mrb[93].mxu0  ;;  %v12774_v52 = vld [vmem:[#allocation197_spill] sm:$0xff] }
 0x4a7   : > { %v10964_v33 = vpop.f32.mrb[222].mxu1  ;;  %v4492_v23 = vpop.f32.mrb[94].mxu0  ;;  %v12772_v54 = vld [vmem:[#allocation17_spill] sm:$0xff] }
 0x4a8   : > { %12767 = vst [vmem:[#allocation23_spill] sm:$0xff] %v10964_v33  ;;  %v3660_v25 = vpop.f32.mrb[223].mxu1  ;;  %v10967_v4 = vadd.f32 %v4492_v23, %v10515_v10  ;;  %v4494_v22 = vpop.f32.mrb[95].mxu0 }
 0x4aa   : > { %6877 = vmatmul.mubr.bf16.gmra.mrb[72].mxu1 %v12768_v45  ;;  %6682 = vmatmul.mubr.msk.bf16.gmra.mrb[200].mxu0 %vm8153_vm5, %v12573_v21 }
 0x4ab   : > { %6880 = vmatprep.mubr.bf16.mxu1 %v12769_v18  ;;  %4711 = vmatprep.mubr.bf16.mxu0 %v12770_v31  ;;  %v12775_v18 = vld [vmem:[#allocation200_spill] sm:$0xff]  ;;  %v12776_v31 = vld [vmem:[#allocation193_spill] sm:$0xff] }
 0x4ad   : > { %v10975_v11 = vpop.f32.mrb[224].mxu1  ;;  %v4497_v24 = vpop.f32.mrb[96].mxu0 }
 0x4ae   : > { %12771 = vst [vmem:[#allocation26_spill] sm:$0xff] %v10975_v11  ;;  %v3665_v41 = vpop.f32.mrb[225].mxu1  ;;  %v10978_v25 = vadd.f32 %v4497_v24, %v12772_v54  ;;  %v4499_v10 = vpop.f32.mrb[97].mxu0 }
 0x4af   : > { %v10980_v23 = vpop.f32.mrb[226].mxu1  ;;  %v4500_v22 = vpop.f32.mrb[98].mxu0  ;;  %v12778_v10 = vld [vmem:[#allocation124_spill] sm:$0xff] }
 0x4b0   : > { %12773 = vst [vmem:[#allocation126_spill] sm:$0xff] %v10980_v23  ;;  %v3668_v45 = vpop.f32.mrb[227].mxu1  ;;  %v10983_v33 = vadd.f32 %v4500_v22, %v10525_v7  ;;  %v4502_v21 = vpop.f32.mrb[99].mxu0 }
 0x4b1   : > { %v12780_v21 = vld [vmem:[#allocation203_spill] sm:$0xff] }
 0x4b2   : > { %6881 = vmatmul.mubr.bf16.gmra.mrb[76].mxu1 %v12774_v52  ;;  %4712 = vmatmul.mubr.bf16.gmra.mrb[204].mxu0 %v12576_v62 }
 0x4b3   : > { %6884 = vmatprep.mubr.bf16.mxu1 %v12775_v18  ;;  %4719 = vmatprep.mubr.bf16.mxu0 %v12776_v31  ;;  %v12781_v18 = vld [vmem:[#allocation205_spill] sm:$0xff]  ;;  %v12782_v31 = vld [vmem:[#allocation196_spill] sm:$0xff] }
 0x4b5   : > { %v10989_v41 = vpop.f32.mrb[228].mxu1  ;;  %v4505_v24 = vpop.f32.mrb[100].mxu0 }
 0x4b6   : > { %12777 = vst [vmem:[#allocation108_spill] sm:$0xff] %v10989_v41  ;;  %v3673_v54 = vpop.f32.mrb[229].mxu1  ;;  %v10992_v23 = vadd.f32 %v4505_v24, %v12778_v10  ;;  %v4507_v45 = vpop.f32.mrb[101].mxu0  ;;  %v12786_v41 = vld [vmem:[#allocation207_spill] sm:$0xff] }
 0x4b7   : > { %v10994_v11 = vpop.f32.mrb[230].mxu1  ;;  %v4508_v7 = vpop.f32.mrb[102].mxu0  ;;  %v12784_v45 = vld [vmem:[#allocation24_spill] sm:$0xff] }
 0x4b8   : > { %12779 = vst [vmem:[#allocation110_spill] sm:$0xff] %v10994_v11  ;;  %v3676_v22 = vpop.f32.mrb[231].mxu1  ;;  %v10997_v52 = vadd.f32 %v4508_v7, %v10535_v53  ;;  %v4510_v62 = vpop.f32.mrb[103].mxu0 }
 0x4ba   : > { %6885 = vmatmul.mubr.bf16.gmra.mrb[80].mxu1 %v12780_v21  ;;  %6686 = vmatmul.mubr.msk.bf16.gmra.mrb[208].mxu0 %vm8153_vm5, %v12579_v38 }
 0x4bb   : > { %6888 = vmatprep.mubr.bf16.mxu1 %v12781_v18  ;;  %4727 = vmatprep.mubr.bf16.mxu0 %v12782_v31  ;;  %v12787_v18 = vld [vmem:[#allocation209_spill] sm:$0xff]  ;;  %v12788_v31 = vld [vmem:[#allocation199_spill] sm:$0xff] }
 0x4bd   : > { %v11005_v24 = vpop.f32.mrb[232].mxu1  ;;  %v4513_v54 = vpop.f32.mrb[104].mxu0 }
 0x4be   : > { %12783 = vst [vmem:[#allocation29_spill] sm:$0xff] %v11005_v24  ;;  %v3681_v10 = vpop.f32.mrb[233].mxu1  ;;  %v11008_v22 = vadd.f32 %v4513_v54, %v12784_v45  ;;  %v4515_v53 = vpop.f32.mrb[105].mxu0 }
 0x4bf   : > { %v11010_v7 = vpop.f32.mrb[234].mxu1  ;;  %v4516_v62 = vpop.f32.mrb[106].mxu0  ;;  %v12790_v53 = vld [vmem:[#allocation19_spill] sm:$0xff] }
 0x4c0   : > { %12785 = vst [vmem:[#allocation32_spill] sm:$0xff] %v11010_v7  ;;  %v3684_v21 = vpop.f32.mrb[235].mxu1  ;;  %v11013_v11 = vadd.f32 %v4516_v62, %v10545_v58  ;;  %v4518_v38 = vpop.f32.mrb[107].mxu0 }
 0x4c1   : > { %v12792_v38 = vld [vmem:[#allocation211_spill] sm:$0xff] }
 0x4c2   : > { %6889 = vmatmul.mubr.bf16.gmra.mrb[84].mxu1 %v12786_v41  ;;  %4728 = vmatmul.mubr.bf16.gmra.mrb[212].mxu0 %v12582_v44 }
 0x4c3   : > { %6892 = vmatprep.mubr.bf16.mxu1 %v12787_v18  ;;  %4735 = vmatprep.mubr.bf16.mxu0 %v12788_v31  ;;  %v12793_v18 = vld [vmem:[#allocation212_spill] sm:$0xff]  ;;  %v12794_v31 = vld [vmem:[#allocation202_spill] sm:$0xff] }
 0x4c5   : > { %v11019_v10 = vpop.f32.mrb[236].mxu1  ;;  %v4521_v54 = vpop.f32.mrb[108].mxu0 }
 0x4c6   : > { %12789 = vst [vmem:[#allocation131_spill] sm:$0xff] %v11019_v10  ;;  %v3689_v45 = vpop.f32.mrb[237].mxu1  ;;  %v11022_v7 = vadd.f32 %v4521_v54, %v12790_v53  ;;  %v4523_v21 = vpop.f32.mrb[109].mxu0  ;;  %v12799_v10 = vld [vmem:[#allocation58_spill] sm:$0xff] }
 0x4c7   : > { %v11024_v24 = vpop.f32.mrb[238].mxu1  ;;  %v4524_v58 = vpop.f32.mrb[110].mxu0  ;;  %v12796_v21 = vld [vmem:[#allocation129_spill] sm:$0xff] }
 0x4c8   : > { %12791 = vst [vmem:[#allocation113_spill] sm:$0xff] %v11024_v24  ;;  %v3692_v62 = vpop.f32.mrb[239].mxu1  ;;  %v11027_v41 = vadd.f32 %v4524_v58, %v10555_v14  ;;  %v4526_v44 = vpop.f32.mrb[111].mxu0 }
 0x4ca   : > { %6893 = vmatmul.mubr.bf16.gmra.mrb[88].mxu1 %v12792_v38  ;;  %6690 = vmatmul.mubr.msk.bf16.gmra.mrb[216].mxu0 %vm8153_vm5, %v12585_v56 }
 0x4cb   : > { %6896 = vmatprep.mubr.bf16.mxu1 %v12793_v18  ;;  %4743 = vmatprep.mubr.bf16.mxu0 %v12794_v31  ;;  %v12800_v18 = vld [vmem:[#allocation92_spill] sm:$0xff] }
 0x4cc   : > { %v12801_v31 = vld [vmem:[#allocation204_spill] sm:$0xff] }
 0x4cd   : > { %v11035_v54 = vpop.f32.mrb[240].mxu1  ;;  %v4529_v45 = vpop.f32.mrb[112].mxu0 }
 0x4ce   : > { %12795 = vst [vmem:[#allocation115_spill] sm:$0xff] %v11035_v54  ;;  %v3697_v53 = vpop.f32.mrb[241].mxu1  ;;  %v11038_v62 = vadd.f32 %v4529_v45, %v12796_v21  ;;  %v4531_v14 = vpop.f32.mrb[113].mxu0 }
 0x4cf   : > { %v11040_v58 = vpop.f32.mrb[242].mxu1  ;;  %v4532_v44 = vpop.f32.mrb[114].mxu0  ;;  %v12803_v14 = vld [vmem:[#allocation27_spill] sm:$0xff] }
 0x4d0   : > { %12797 = vst [vmem:[#allocation35_spill] sm:$0xff] %v11040_v58  ;;  %v3700_v38 = vpop.f32.mrb[243].mxu1  ;;  %v11043_v24 = vadd.f32 %v4532_v44, %v10565_v59  ;;  %v4534_v56 = vpop.f32.mrb[115].mxu0 }
 0x4d1   : > { %v12806_v56 = vld [vmem:[#allocation174_spill] sm:$0xff] }
 0x4d2   : > { %12798 = vst [vmem:[#allocation38_spill] sm:$0xff] %v11043_v24  ;;  %6897 = vmatmul.mubr.bf16.gmra.mrb[92].mxu1 %v12799_v10  ;;  %4744 = vmatmul.mubr.bf16.gmra.mrb[220].mxu0 %v12588_v34  ;;  %v12815_v24 = vld [vmem:[#allocation55_spill] sm:$0xff] }
 0x4d3   : > { %6900 = vmatprep.mubr.bf16.mxu1 %v12800_v18  ;;  %4751 = vmatprep.mubr.bf16.mxu0 %v12801_v31  ;;  %v12807_v18 = vld [vmem:[#allocation60_spill] sm:$0xff]  ;;  %v12808_v31 = vld [vmem:[#allocation206_spill] sm:$0xff] }
 0x4d5   : > { %v11049_v53 = vpop.f32.mrb[244].mxu1  ;;  %v4537_v45 = vpop.f32.mrb[116].mxu0 }
 0x4d6   : > { %12802 = vst [vmem:[#allocation136_spill] sm:$0xff] %v11049_v53  ;;  %v3705_v21 = vpop.f32.mrb[245].mxu1  ;;  %v11052_v58 = vadd.f32 %v4537_v45, %v12803_v14  ;;  %v4539_v38 = vpop.f32.mrb[117].mxu0 }
 0x4d7   : > { %v11054_v54 = vpop.f32.mrb[246].mxu1  ;;  %v4540_v59 = vpop.f32.mrb[118].mxu0  ;;  %v12810_v38 = vld [vmem:[#allocation22_spill] sm:$0xff] }
 0x4d8   : > { %12804 = vst [vmem:[#allocation118_spill] sm:$0xff] %v11054_v54  ;;  %v3708_v44 = vpop.f32.mrb[247].mxu1  ;;  %v11057_v10 = vadd.f32 %v4540_v59, %v10575_v16  ;;  %v4542_v34 = vpop.f32.mrb[119].mxu0  ;;  %v12813_v54 = vld [vmem:[#allocation134_spill] sm:$0xff] }
 0x4da   : > { %12805 = vst [vmem:[#allocation120_spill] sm:$0xff] %v11057_v10  ;;  %6901 = vmatmul.mubr.bf16.gmra.mrb[96].mxu1 %v12806_v56  ;;  %6694 = vmatmul.mubr.msk.bf16.gmra.mrb[224].mxu0 %vm8153_vm5, %v10092_v48 }
 0x4db   : > { %6904 = vmatprep.mubr.bf16.mxu1 %v12807_v18  ;;  %4759 = vmatprep.mubr.bf16.mxu0 %v12808_v31  ;;  %v12816_v18 = vld [vmem:[#allocation62_spill] sm:$0xff]  ;;  %v12817_v31 = vld [vmem:[#allocation208_spill] sm:$0xff] }
 0x4dd   : > { %v11065_v45 = vpop.f32.mrb[248].mxu1  ;;  %v4545_v21 = vpop.f32.mrb[120].mxu0 }
 0x4de   : > { %12809 = vst [vmem:[#allocation41_spill] sm:$0xff] %v11065_v45  ;;  %v3713_v14 = vpop.f32.mrb[249].mxu1  ;;  %v11068_v44 = vadd.f32 %v4545_v21, %v12810_v38  ;;  %v4547_v16 = vpop.f32.mrb[121].mxu0 }
 0x4df   : > { %v11070_v59 = vpop.f32.mrb[250].mxu1  ;;  %v4548_v34 = vpop.f32.mrb[122].mxu0  ;;  %v12819_v16 = vld [vmem:[#allocation30_spill] sm:$0xff] }
 0x4e0   : > { %12811 = vst [vmem:[#allocation44_spill] sm:$0xff] %v11068_v44  ;;  %12812 = vst [vmem:[#allocation142_spill] sm:$0xff] %v11070_v59  ;;  %v3716_v56 = vpop.f32.mrb[251].mxu1  ;;  %v11073_v53 = vadd.f32 %v4548_v34, %v12813_v54  ;;  %v4550_v48 = vpop.f32.mrb[123].mxu0 }
 0x4e1   : > { %v12822_v48 = vld [vmem:[#allocation25_spill] sm:$0xff] }
 0x4e2   : > { %12814 = vst [vmem:[#allocation123_spill] sm:$0xff] %v11073_v53  ;;  %6905 = vmatmul.mubr.bf16.gmra.mrb[100].mxu1 %v12815_v24  ;;  %4760 = vmatmul.mubr.bf16.gmra.mrb[228].mxu0 %v10123_v30  ;;  %v12824_v53 = vld [vmem:[#allocation64_spill] sm:$0xff] }
 0x4e3   : > { %6908 = vmatprep.mubr.bf16.mxu1 %v12816_v18  ;;  %4767 = vmatprep.mubr.bf16.mxu0 %v12817_v31  ;;  %v12825_v18 = vld [vmem:[#allocation66_spill] sm:$0xff] }
 0x4e4   : > { %v12826_v31 = vld [vmem:[#allocation210_spill] sm:$0xff] }
 0x4e5   : > { %v11079_v14 = vpop.f32.mrb[252].mxu1  ;;  %v4553_v21 = vpop.f32.mrb[124].mxu0 }
 0x4e6   : > { %12818 = vst [vmem:[#allocation125_spill] sm:$0xff] %v11079_v14  ;;  %v3721_v38 = vpop.f32.mrb[253].mxu1  ;;  %v11082_v59 = vadd.f32 %v4553_v21, %v12819_v16  ;;  %v4555_v56 = vpop.f32.mrb[125].mxu0 }
 0x4e7   : > { %v11084_v45 = vpop.f32.mrb[254].mxu1  ;;  %v4556_v54 = vpop.f32.mrb[126].mxu0  ;;  %v11098_v38 = vld [vmem:[%s11890_s2] ss:$0 sm:$0xff] }
 0x4e8   : > { %12820 = vst [vmem:[#allocation47_spill] sm:$0xff] %v11082_v59  ;;  %12821 = vst [vmem:[#allocation50_spill] sm:$0xff] %v11084_v45  ;;  %v3724_v34 = vpop.f32.mrb[255].mxu1  ;;  %v11087_v24 = vadd.f32 %v4556_v54, %v12822_v48  ;;  %v4558_v30 = vpop.f32.mrb[127].mxu0 }
 0x4ea   : > { %12823 = vst [vmem:[#allocation147_spill] sm:$0xff] %v11087_v24  ;;  %6909 = vmatmul.mubr.bf16.gmra.mrb[104].mxu1 %v12824_v53  ;;  %6698 = vmatmul.mubr.msk.bf16.gmra.mrb[232].mxu0 %vm8153_vm5, %v10142_v19  ;;  %v11107_v19 = vld [vmem:[%s11891_s3] ss:$0 sm:$0xff] }
 0x4eb   : > { %6912 = vmatprep.mubr.bf16.mxu1 %v12825_v18  ;;  %4775 = vmatprep.mubr.bf16.mxu0 %v12826_v31 }
 0x4ed   : > { %v6806_v21 = vpop.f32.mrb[0].mxu1  ;;  %v4561_v16 = vpop.f32.mrb[128].mxu0 }
 0x4ee   : > { %v4859_v56 = vadd.f32 %v10622_v9, %v6806_v21  ;;  %v4850_v54 = vpop.f32.mrb[1].mxu1  ;;  %v11102_v53 = vadd.f32 %v4561_v16, %v10603_v17  ;;  %v4563_v34 = vpop.f32.mrb[129].mxu0  ;;  %v12828_v21 = vld [vmem:[#allocation140_spill] sm:$0xff] }
 0x4ef   : > { %v4851_v48 = vadd.f32 %v10606_v61, %v4850_v54  ;;  %v6807_v30 = vpop.f32.mrb[2].mxu1  ;;  %v4564_v31 = vpop.f32.mrb[130].mxu0  ;;  %v12831_v61 = vld [vmem:[#allocation139_spill] sm:$0xff] }
 0x4f0   : > { %12827 = vst [vmem:[#allocation128_spill] sm:$0xff] %v11102_v53  ;;  %v5370_v18 = vmul.f32 %v11098_v38, %v4859_v56  ;;  %v4862_v45 = vadd.f32 %v10627_v39, %v6807_v30  ;;  %v4853_v14 = vpop.f32.mrb[3].mxu1  ;;  %v11114_v17 = vadd.f32 %v4564_v31, %v12828_v21  ;;  %v4566_v16 = vpop.f32.mrb[131].mxu0  ;;  %v12830_v53 = vld [vmem:[#allocation33_spill] sm:$0xff]  ;;  %v12832_v39 = vld [vmem:[#allocation68_spill] sm:$0xff] }
 0x4f1   : > { %v5368_v9 = vmul.f32 %v11098_v38, %v4851_v48  ;;  %v4854_v24 = vadd.f32 %v12830_v53, %v4853_v14  ;;  %v12833_v14 = vld [vmem:[#allocation76_spill] sm:$0xff] }
 0x4f2   : > { %12829 = vst [vmem:[#allocation130_spill] sm:$0xff] %v11114_v17  ;;  %v5505_v44 = vadd.f32 %v11107_v19, %v5370_v18  ;;  %v5371_v34 = vmul.f32 %v11098_v38, %v4862_v45  ;;  %6913 = vmatmul.mubr.bf16.gmra.mrb[108].mxu1 %v12831_v61  ;;  %4776 = vmatmul.mubr.bf16.gmra.mrb[236].mxu0 %v10161_v20  ;;  %v12834_v61 = vld [vmem:[#allocation28_spill] sm:$0xff] }
 0x4f3   : > { %v5503_v56 = vadd.f32 %v11107_v19, %v5368_v9  ;;  %v5369_v54 = vmul.f32 %v11098_v38, %v4854_v24  ;;  %6916 = vmatprep.mubr.bf16.mxu1 %v12832_v39  ;;  %4783 = vmatprep.mubr.bf16.mxu0 %v12833_v14 }
 0x4f4   : > { %vm5633_vm6 = vcmp.gt.f32.partialorder %v5505_v44, 0.0  ;;  %v5761_v48 = vmul.f32 0.1, %v5505_v44  ;;  %v5506_v30 = vadd.f32 %v11107_v19, %v5371_v34 }
 0x4f5   : > { %vm5631_vm7 = vcmp.gt.f32.partialorder %v5503_v56, 0.0  ;;  %v5759_v53 = vmul.f32 0.1, %v5503_v56  ;;  %v5504_v45 = vadd.f32 %v11107_v19, %v5369_v54  ;;  %v6810_v18 = vpop.f32.mrb[4].mxu1  ;;  %v4569_v24 = vpop.f32.mrb[132].mxu0 }
 0x4f6   : > { %v5889_v31 = vsel %vm5633_vm6, %v5505_v44, %v5761_v48  ;;  %vm5634_vm8 = vcmp.gt.f32.partialorder %v5506_v30, 0.0  ;;  %v5762_v9 = vmul.f32 0.1, %v5506_v30  ;;  %v4875_v20 = vadd.f32 %v10658_v47, %v6810_v18  ;;  %v4866_v21 = vpop.f32.mrb[5].mxu1  ;;  %v4571_v44 = vpop.f32.mrb[133].mxu0 }
 0x4f7   : > { %6017 = vst [vmem:[%s11130_s29 + $0x10] sm:$0xff] %v5889_v31  ;;  %v5887_v16 = vsel %vm5631_vm7, %v5503_v56, %v5759_v53  ;;  %vm5632_vm9 = vcmp.gt.f32.partialorder %v5504_v45, 0.0  ;;  %v5760_v34 = vmul.f32 0.1, %v5504_v45  ;;  %v11134_v54 = vadd.f32 %v4569_v24, %v12834_v61  ;;  %v6811_v39 = vpop.f32.mrb[6].mxu1  ;;  %v4572_v18 = vpop.f32.mrb[134].mxu0 }
 0x4f8   : > { %6015 = vst [vmem:[%s11130_s29] sm:$0xff] %v5887_v16  ;;  %v5890_v48 = vsel %vm5634_vm8, %v5506_v30, %v5762_v9  ;;  %v5374_v47 = vmul.f32 %v11098_v38, %v4875_v20  ;;  %v4867_v14 = vadd.f32 %v10638_v2, %v4866_v21  ;;  %v4878_v17 = vadd.f32 %v10667_v35, %v6811_v39  ;;  %v4869_v59 = vpop.f32.mrb[7].mxu1  ;;  %v12835_v53 = vld [vmem:[#allocation145_spill] sm:$0xff]  ;;  %v4574_v10 = vpop.f32.mrb[135].mxu0  ;;  %v12837_v61 = vld [vmem:[#allocation36_spill] sm:$0xff] }
 0x4f9   : > { %6018 = vst [vmem:[%s11130_s29 + $0x18] sm:$0xff] %v5890_v48  ;;  %v5888_v56 = vsel %vm5632_vm9, %v5504_v45, %v5760_v34  ;;  %v11142_v31 = vadd.f32 %v4572_v18, %v12835_v53  ;;  %v4870_v24 = vadd.f32 %v10647_v46, %v4869_v59  ;;  %v12836_v59 = vld [vmem:[#allocation84_spill] sm:$0xff] }
 0x4fa   : > { %6016 = vst [vmem:[%s11130_s29 + $0x8] sm:$0xff] %v5888_v56  ;;  %v5509_v16 = vadd.f32 %v11107_v19, %v5374_v47  ;;  %v5372_v30 = vmul.f32 %v11098_v38, %v4867_v14  ;;  %v5375_v9 = vmul.f32 %v11098_v38, %v4878_v17  ;;  %6917 = vmatmul.mubr.bf16.gmra.mrb[112].mxu1 %v10291_v28 }
 0x4fb   : > { %v5373_v35 = vmul.f32 %v11098_v38, %v4870_v24  ;;  %6702 = vmatmul.mubr.msk.bf16.gmra.mrb[240].mxu0 %vm8153_vm5, %v10644_v51  ;;  %6920 = vmatprep.mubr.bf16.mxu1 %v10305_v36 }
 0x4fc   : > { %vm5637_vm10 = vcmp.gt.f32.partialorder %v5509_v16, 0.0  ;;  %v5765_v46 = vmul.f32 0.1, %v5509_v16  ;;  %v5507_v2 = vadd.f32 %v11107_v19, %v5372_v30  ;;  %v5510_v10 = vadd.f32 %v11107_v19, %v5375_v9  ;;  %4791 = vmatprep.mubr.bf16.mxu0 %v12836_v59  ;;  %v12839_v9 = vld [vmem:[#allocation43_spill] sm:$0xff] }
 0x4fd   : > { %v5508_v17 = vadd.f32 %v11107_v19, %v5373_v35  ;;  %v6814_v28 = vpop.f32.mrb[8].mxu1  ;;  %v4577_v21 = vpop.f32.mrb[136].mxu0 }
 0x4fe   : > { %v5893_v45 = vsel %vm5637_vm10, %v5509_v16, %v5765_v46  ;;  %vm5635_vm11 = vcmp.gt.f32.partialorder %v5507_v2, 0.0  ;;  %v5763_v20 = vmul.f32 0.1, %v5507_v2  ;;  %vm5638_vm12 = vcmp.gt.f32.partialorder %v5510_v10, 0.0  ;;  %v4882_v51 = vpop.f32.mrb[9].mxu1  ;;  %v4579_v39 = vpop.f32.mrb[137].mxu0 }
 0x4ff   : > { %6021 = vst [vmem:[%s11130_s29 + $0x30] sm:$0xff] %v5893_v45  ;;  %v5766_v36 = vmul.f32 0.1, %v5510_v10  ;;  %vm5636_vm13 = vcmp.gt.f32.partialorder %v5508_v17, 0.0  ;;  %v5764_v34 = vmul.f32 0.1, %v5508_v17  ;;  %v11161_v44 = vadd.f32 %v4577_v21, %v12837_v61 }
 0x500   : > { %v5891_v48 = vsel %vm5635_vm11, %v5507_v2, %v5763_v20  ;;  %v4891_v47 = vadd.f32 %v10692_v13, %v6814_v28  ;;  %v4883_v14 = vadd.f32 %v10678_v15, %v4882_v51  ;;  %v4580_v18 = vpop.f32.mrb[138].mxu0  ;;  %v6815_v56 = vpop.f32.mrb[10].mxu1  ;;  %v12838_v16 = vld [vmem:[#allocation31_spill] sm:$0xff]  ;;  %v12840_v28 = vld [vmem:[#allocation45_spill] sm:$0xff]  ;;  %v12841_v45 = vld [vmem:[#allocation70_spill] sm:$0xff] }
 0x501   : > { %6019 = vst [vmem:[%s11130_s29 + $0x20] sm:$0xff] %v5891_v48  ;;  %v5894_v53 = vsel %vm5638_vm12, %v5510_v10, %v5766_v36  ;;  %v5892_v24 = vsel %vm5636_vm13, %v5508_v17, %v5764_v34  ;;  %v11167_v30 = vadd.f32 %v4580_v18, %v12838_v16  ;;  %v4894_v35 = vadd.f32 %v12839_v9, %v6815_v56  ;;  %v4582_v46 = vpop.f32.mrb[139].mxu0  ;;  %v4885_v59 = vpop.f32.mrb[11].mxu1  ;;  %v12842_v17 = vld [vmem:[#allocation34_spill] sm:$0xff]  ;;  %v12843_v20 = vld [vmem:[#allocation73_spill] sm:$0xff]  ;;  %v12844_v34 = vld [vmem:[#allocation11_spill] sm:$0xff] }
 0x502   : > { %6022 = vst [vmem:[%s11130_s29 + $0x38] sm:$0xff] %v5894_v53  ;;  %6020 = vst [vmem:[%s11130_s29 + $0x28] sm:$0xff] %v5892_v24  ;;  %v5378_v2 = vmul.f32 %v11098_v38, %v4891_v47  ;;  %v5376_v13 = vmul.f32 %v11098_v38, %v4883_v14  ;;  %v4886_v15 = vadd.f32 %v12840_v28, %v4885_v59  ;;  %6921 = vmatmul.mubr.bf16.gmra.mrb[116].mxu1 %v12841_v45 }
 0x503   : > { %v5379_v10 = vmul.f32 %v11098_v38, %v4894_v35  ;;  %4792 = vmatmul.mubr.bf16.gmra.mrb[244].mxu0 %v12842_v17  ;;  %6924 = vmatprep.mubr.bf16.mxu1 %v12843_v20  ;;  %v12845_v35 = vld [vmem:[#allocation149_spill] sm:$0xff]  ;;  %v12846_v20 = vld [vmem:[#allocation39_spill] sm:$0xff] }
 0x504   : > { %v5513_v21 = vadd.f32 %v11107_v19, %v5378_v2  ;;  %v5511_v51 = vadd.f32 %v11107_v19, %v5376_v13  ;;  %v5377_v36 = vmul.f32 %v11098_v38, %v4886_v15  ;;  %4799 = vmatprep.mubr.bf16.mxu0 %v12844_v34  ;;  %v12848_v34 = vld [vmem:[#allocation54_spill] sm:$0xff] }
 0x505   : > { %v5514_v61 = vadd.f32 %v11107_v19, %v5379_v10  ;;  %v6818_v39 = vpop.f32.mrb[12].mxu1  ;;  %v4585_v56 = vpop.f32.mrb[140].mxu0 }
 0x506   : > { %vm5641_vm14 = vcmp.gt.f32.partialorder %v5513_v21, 0.0  ;;  %v5769_v48 = vmul.f32 0.1, %v5513_v21  ;;  %vm5639_vm15 = vcmp.gt.f32.partialorder %v5511_v51, 0.0  ;;  %v5767_v47 = vmul.f32 0.1, %v5511_v51 }
 0x507   : > { %vm5642_vm0 = vcmp.gt.f32.partialorder %v5514_v61, 0.0  ;;  %v5770_v14 = vmul.f32 0.1, %v5514_v61  ;;  %v5512_v18 = vadd.f32 %v11107_v19, %v5377_v36  ;;  %v4907_v53 = vadd.f32 %v10722_v32, %v6818_v39  ;;  %v4898_v24 = vpop.f32.mrb[13].mxu1  ;;  %v4587_v59 = vpop.f32.mrb[141].mxu0 }
 0x508   : > { %v5897_v16 = vsel %vm5641_vm14, %v5513_v21, %v5769_v48  ;;  %v5895_v9 = vsel %vm5639_vm15, %v5511_v51, %v5767_v47  ;;  %v11187_v46 = vadd.f32 %v4585_v56, %v12845_v35  ;;  %v4899_v2 = vadd.f32 %v10708_v0, %v4898_v24  ;;  %v6819_v13 = vpop.f32.mrb[14].mxu1  ;;  %v4588_v32 = vpop.f32.mrb[142].mxu0  ;;  %v12847_v51 = vld [vmem:[#allocation52_spill] sm:$0xff] }
 0x509   : > { %6025 = vst [vmem:[%s11130_s29 + $0x50] sm:$0xff] %v5897_v16  ;;  %6023 = vst [vmem:[%s11130_s29 + $0x40] sm:$0xff] %v5895_v9  ;;  %v5898_v28 = vsel %vm5642_vm0, %v5514_v61, %v5770_v14  ;;  %vm5640_vm1 = vcmp.gt.f32.partialorder %v5512_v18, 0.0  ;;  %v5768_v15 = vmul.f32 0.1, %v5512_v18  ;;  %v5382_v45 = vmul.f32 %v11098_v38, %v4907_v53  ;;  %v4901_v10 = vpop.f32.mrb[15].mxu1 }
 0x50a   : > { %6026 = vst [vmem:[%s11130_s29 + $0x58] sm:$0xff] %v5898_v28  ;;  %v5380_v17 = vmul.f32 %v11098_v38, %v4899_v2  ;;  %v11196_v21 = vadd.f32 %v4588_v32, %v12846_v20  ;;  %v4910_v36 = vadd.f32 %v12847_v51, %v6819_v13  ;;  %v4590_v0 = vpop.f32.mrb[143].mxu0  ;;  %v4902_v39 = vadd.f32 %v12848_v34, %v4901_v10  ;;  %v12849_v48 = vld [vmem:[#allocation80_spill] sm:$0xff]  ;;  %v12850_v14 = vld [vmem:[#allocation14_spill] sm:$0xff]  ;;  %v12852_v9 = vld [vmem:[#allocation13_spill] sm:$0xff] }
 0x50b   : > { %6925 = vmatmul.mubr.bf16.gmra.mrb[120].mxu1 %v12849_v48  ;;  %v5896_v61 = vsel %vm5640_vm1, %v5512_v18, %v5768_v15  ;;  %v5517_v47 = vadd.f32 %v11107_v19, %v5382_v45  ;;  %6706 = vmatmul.mubr.msk.bf16.gmra.mrb[248].mxu0 %vm8153_vm5, %v12850_v14  ;;  %v12851_v56 = vld [vmem:[#allocation12_spill] sm:$0xff]  ;;  %v12853_v45 = vld [vmem:[#allocation42_spill] sm:$0xff] }
 0x50c   : > { %6928 = vmatprep.mubr.bf16.mxu1 %v12851_v56  ;;  %6024 = vst [vmem:[%s11130_s29 + $0x48] sm:$0xff] %v5896_v61  ;;  %v5515_v53 = vadd.f32 %v11107_v19, %v5380_v17  ;;  %v5383_v24 = vmul.f32 %v11098_v38, %v4910_v36  ;;  %v5381_v16 = vmul.f32 %v11098_v38, %v4902_v39 }
 0x50d   : > { %4807 = vmatprep.mubr.bf16.mxu0 %v12852_v9  ;;  %vm5645_vm2 = vcmp.gt.f32.partialorder %v5517_v47, 0.0  ;;  %v5773_v18 = vmul.f32 0.1, %v5517_v47  ;;  %v6822_v35 = vpop.f32.mrb[16].mxu1  ;;  %v4593_v13 = vpop.f32.mrb[144].mxu0  ;;  %v12856_v9 = vld [vmem:[#allocation175_spill] sm:$0xff] }
 0x50e   : > { %vm5643_vm3 = vcmp.gt.f32.partialorder %v5515_v53, 0.0  ;;  %v5771_v59 = vmul.f32 0.1, %v5515_v53  ;;  %v5518_v42 = vadd.f32 %v11107_v19, %v5383_v24  ;;  %v5516_v2 = vadd.f32 %v11107_v19, %v5381_v16  ;;  %v4914_v28 = vpop.f32.mrb[17].mxu1  ;;  %v4595_v17 = vpop.f32.mrb[145].mxu0  ;;  %v12855_v16 = vld [vmem:[#allocation61_spill] sm:$0xff] }
 0x50f   : > { %v5901_v15 = vsel %vm5645_vm2, %v5517_v47, %v5773_v18  ;;  %v11214_v32 = vadd.f32 %v4593_v13, %v12853_v45  ;;  %v4923_v10 = vadd.f32 %v10752_v50, %v6822_v35  ;;  %v4915_v20 = vadd.f32 %v10738_v55, %v4914_v28  ;;  %v6823_v51 = vpop.f32.mrb[18].mxu1  ;;  %v4596_v34 = vpop.f32.mrb[146].mxu0  ;;  %v12854_v50 = vld [vmem:[#allocation37_spill] sm:$0xff]  ;;  %v12857_v35 = vld [vmem:[#allocation15_spill] sm:$0xff] }
 0x510   : > { %6029 = vst [vmem:[%s11130_s29 + $0x70] sm:$0xff] %v5901_v15  ;;  %v5899_v36 = vsel %vm5643_vm3, %v5515_v53, %v5771_v59  ;;  %vm5646_vm4 = vcmp.gt.f32.partialorder %v5518_v42, 0.0  ;;  %v5774_v0 = vmul.f32 0.1, %v5518_v42  ;;  %vm5644_vm5 = vcmp.gt.f32.partialorder %v5516_v2, 0.0  ;;  %v4917_v39 = vpop.f32.mrb[19].mxu1 }
 0x511   : > { %6027 = vst [vmem:[%s11130_s29 + $0x60] sm:$0xff] %v5899_v36  ;;  %v5772_v48 = vmul.f32 0.1, %v5516_v2  ;;  %v5386_v61 = vmul.f32 %v11098_v38, %v4923_v10  ;;  %v5384_v47 = vmul.f32 %v11098_v38, %v4915_v20  ;;  %v11223_v56 = vadd.f32 %v4596_v34, %v12854_v50  ;;  %v4598_v55 = vpop.f32.mrb[147].mxu0 }
 0x512   : > { %v5902_v24 = vsel %vm5646_vm4, %v5518_v42, %v5774_v0  ;;  %v4926_v53 = vadd.f32 %v12855_v16, %v6823_v51  ;;  %v4918_v18 = vadd.f32 %v12856_v9, %v4917_v39 }
 0x513   : > { %6929 = vmatmul.mubr.bf16.gmra.mrb[124].mxu1 %v12857_v35  ;;  %6030 = vst [vmem:[%s11130_s29 + $0x78] sm:$0xff] %v5902_v24  ;;  %v5900_v59 = vsel %vm5644_vm5, %v5516_v2, %v5772_v48  ;;  %v5521_v13 = vadd.f32 %v11107_v19, %v5386_v61  ;;  %v5519_v28 = vadd.f32 %v11107_v19, %v5384_v47  ;;  %v12859_v35 = vld [vmem:[#allocation48_spill] sm:$0xff] }
 0x514   : > { %4808 = vmatmul.mubr.bf16.gmra.mrb[252].mxu0 %v12850_v14  ;;  %6028 = vst [vmem:[%s11130_s29 + $0x68] sm:$0xff] %v5900_v59  ;;  %v5387_v15 = vmul.f32 %v11098_v38, %v4926_v53  ;;  %v5385_v42 = vmul.f32 %v11098_v38, %v4918_v18  ;;  %v12858_v14 = vld [vmem:[#allocation40_spill] sm:$0xff] }
 0x515   : > { %vm5649_vm6 = vcmp.gt.f32.partialorder %v5521_v13, 0.0  ;;  %v5777_v45 = vmul.f32 0.1, %v5521_v13  ;;  %vm5647_vm7 = vcmp.gt.f32.partialorder %v5519_v28, 0.0  ;;  %v5775_v10 = vmul.f32 0.1, %v5519_v28 }
 0x516   : > { %v5522_v17 = vadd.f32 %v11107_v19, %v5387_v15  ;;  %v5520_v2 = vadd.f32 %v11107_v19, %v5385_v42  ;;  %v4601_v20 = vpop.f32.mrb[148].mxu0  ;;  %v6826_v51 = vpop.f32.mrb[20].mxu1 }
 0x517   : > { %v5905_v36 = vsel %vm5649_vm6, %v5521_v13, %v5777_v45  ;;  %v5903_v0 = vsel %vm5647_vm7, %v5519_v28, %v5775_v10  ;;  %v11238_v34 = vadd.f32 %v4601_v20, %v12858_v14  ;;  %v4939_v39 = vadd.f32 %v10782_v49, %v6826_v51  ;;  %v4603_v48 = vpop.f32.mrb[149].mxu0  ;;  %v4930_v61 = vpop.f32.mrb[21].mxu1  ;;  %v12860_v45 = vld [vmem:[#allocation184_spill] sm:$0xff] }
 0x518   : > { %6033 = vst [vmem:[%s11130_s29 + $0x90] sm:$0xff] %v5905_v36  ;;  %6031 = vst [vmem:[%s11130_s29 + $0x80] sm:$0xff] %v5903_v0  ;;  %vm5650_vm8 = vcmp.gt.f32.partialorder %v5522_v17, 0.0  ;;  %v5778_v47 = vmul.f32 0.1, %v5522_v17  ;;  %vm5648_vm9 = vcmp.gt.f32.partialorder %v5520_v2, 0.0  ;;  %v4931_v24 = vadd.f32 %v10768_v27, %v4930_v61 }
 0x519   : > { %v5776_v50 = vmul.f32 0.1, %v5520_v2  ;;  %v5390_v55 = vmul.f32 %v11098_v38, %v4939_v39  ;;  %v4604_v16 = vpop.f32.mrb[150].mxu0  ;;  %v6827_v53 = vpop.f32.mrb[22].mxu1  ;;  %v12861_v0 = vld [vmem:[#allocation195_spill] sm:$0xff] }
 0x51a   : > { %v5906_v9 = vsel %vm5650_vm8, %v5522_v17, %v5778_v47  ;;  %v11246_v49 = vadd.f32 %v4604_v16, %v12859_v35  ;;  %v4942_v59 = vadd.f32 %v10787_v37, %v6827_v53  ;;  %v4606_v13 = vpop.f32.mrb[151].mxu0  ;;  %v4933_v28 = vpop.f32.mrb[23].mxu1  ;;  %v5388_v42 = vmul.f32 %v11098_v38, %v4931_v24  ;;  %v12862_v16 = vld [vmem:[#allocation51_spill] sm:$0xff] }
 0x51b   : > { %v5904_v18 = vsel %vm5648_vm9, %v5520_v2, %v5776_v50  ;;  %6034 = vst [vmem:[%s11130_s29 + $0x98] sm:$0xff] %v5906_v9  ;;  %v5525_v15 = vadd.f32 %v11107_v19, %v5390_v55  ;;  %v4934_v10 = vadd.f32 %v12860_v45, %v4933_v28  ;;  %v12863_v28 = vld [vmem:[#allocation190_spill] sm:$0xff] }
 0x51c   : > { %6032 = vst [vmem:[%s11130_s29 + $0x88] sm:$0xff] %v5904_v18  ;;  %v5391_v27 = vmul.f32 %v11098_v38, %v4942_v59  ;;  %v5523_v2 = vadd.f32 %v11107_v19, %v5388_v42 }
 0x51d   : > { %vm5653_vm10 = vcmp.gt.f32.partialorder %v5525_v15, 0.0  ;;  %v5781_v17 = vmul.f32 0.1, %v5525_v15  ;;  %v5389_v20 = vmul.f32 %v11098_v38, %v4934_v10  ;;  %v6830_v37 = vpop.f32.mrb[24].mxu1  ;;  %v4609_v36 = vpop.f32.mrb[152].mxu0 }
 0x51e   : > { %v5526_v51 = vadd.f32 %v11107_v19, %v5391_v27  ;;  %v4955_v14 = vadd.f32 %v12861_v0, %v6830_v37  ;;  %v4946_v39 = vpop.f32.mrb[25].mxu1  ;;  %vm5651_vm11 = vcmp.gt.f32.partialorder %v5523_v2, 0.0  ;;  %v5779_v61 = vmul.f32 0.1, %v5523_v2  ;;  %v4611_v50 = vpop.f32.mrb[153].mxu0  ;;  %v12864_v27 = vld [vmem:[#allocation46_spill] sm:$0xff] }
 0x51f   : > { %v5909_v48 = vsel %vm5653_vm10, %v5525_v15, %v5781_v17  ;;  %v5524_v47 = vadd.f32 %v11107_v19, %v5389_v20  ;;  %v6831_v55 = vpop.f32.mrb[26].mxu1  ;;  %v11262_v53 = vadd.f32 %v4609_v36, %v12862_v16  ;;  %v4612_v18 = vpop.f32.mrb[154].mxu0  ;;  %v4947_v15 = vadd.f32 %v12863_v28, %v4946_v39  ;;  %v12865_v20 = vld [vmem:[#allocation198_spill] sm:$0xff] }
 0x520   : > { %6037 = vst [vmem:[%s11130_s29 + $0xb0] sm:$0xff] %v5909_v48  ;;  %vm5654_vm12 = vcmp.gt.f32.partialorder %v5526_v51, 0.0  ;;  %v5782_v24 = vmul.f32 0.1, %v5526_v51  ;;  %v5394_v9 = vmul.f32 %v11098_v38, %v4955_v14  ;;  %v4949_v35 = vpop.f32.mrb[27].mxu1  ;;  %v5907_v59 = vsel %vm5651_vm11, %v5523_v2, %v5779_v61  ;;  %v4614_v42 = vpop.f32.mrb[155].mxu0 }
 0x521   : > { %vm5652_vm13 = vcmp.gt.f32.partialorder %v5524_v47, 0.0  ;;  %v5780_v13 = vmul.f32 0.1, %v5524_v47  ;;  %6035 = vst [vmem:[%s11130_s29 + $0xa0] sm:$0xff] %v5907_v59  ;;  %v11269_v17 = vadd.f32 %v4612_v18, %v12864_v27  ;;  %v4958_v37 = vadd.f32 %v12865_v20, %v6831_v55  ;;  %v12866_v2 = vld [vmem:[#allocation144_spill] sm:$0xff]  ;;  %v12869_v27 = vld [vmem:[#allocation201_spill] sm:$0xff] }
 0x522   : > { %v5910_v45 = vsel %vm5654_vm12, %v5526_v51, %v5782_v24  ;;  %v5529_v10 = vadd.f32 %v11107_v19, %v5394_v9  ;;  %v5392_v0 = vmul.f32 %v11098_v38, %v4947_v15  ;;  %v4950_v14 = vadd.f32 %v12866_v2, %v4949_v35  ;;  %v12867_v9 = vld [vmem:[#allocation91_spill] sm:$0xff] }
 0x523   : > { %6038 = vst [vmem:[%s11130_s29 + $0xb8] sm:$0xff] %v5910_v45  ;;  %v5908_v36 = vsel %vm5652_vm13, %v5524_v47, %v5780_v13  ;;  %v5395_v48 = vmul.f32 %v11098_v38, %v4958_v37  ;;  %v12868_v13 = vld [vmem:[#allocation49_spill] sm:$0xff] }
 0x524   : > { %6036 = vst [vmem:[%s11130_s29 + $0xa8] sm:$0xff] %v5908_v36  ;;  %vm5657_vm14 = vcmp.gt.f32.partialorder %v5529_v10, 0.0  ;;  %v5785_v39 = vmul.f32 0.1, %v5529_v10  ;;  %v5527_v51 = vadd.f32 %v11107_v19, %v5392_v0  ;;  %v5393_v61 = vmul.f32 %v11098_v38, %v4950_v14  ;;  %v12870_v14 = vld [vmem:[#allocation56_spill] sm:$0xff] }
 0x525   : > { %v6834_v50 = vpop.f32.mrb[28].mxu1  ;;  %v5530_v55 = vadd.f32 %v11107_v19, %v5395_v48  ;;  %v4617_v16 = vpop.f32.mrb[156].mxu0 }
 0x526   : > { %v5913_v24 = vsel %vm5657_vm14, %v5529_v10, %v5785_v39  ;;  %v4971_v47 = vadd.f32 %v12867_v9, %v6834_v50  ;;  %v4962_v18 = vpop.f32.mrb[29].mxu1  ;;  %vm5655_vm15 = vcmp.gt.f32.partialorder %v5527_v51, 0.0  ;;  %v5783_v35 = vmul.f32 0.1, %v5527_v51  ;;  %v4619_v15 = vpop.f32.mrb[157].mxu0 }
 0x527   : > { %6041 = vst [vmem:[%s11130_s29 + $0xd0] sm:$0xff] %v5913_v24  ;;  %v5528_v59 = vadd.f32 %v11107_v19, %v5393_v61  ;;  %v11284_v28 = vadd.f32 %v4617_v16, %v12868_v13  ;;  %v6835_v42 = vpop.f32.mrb[30].mxu1  ;;  %vm5658_vm0 = vcmp.gt.f32.partialorder %v5530_v55, 0.0  ;;  %v5786_v45 = vmul.f32 0.1, %v5530_v55  ;;  %v4620_v37 = vpop.f32.mrb[158].mxu0 }
 0x528   : > { %v5398_v10 = vmul.f32 %v11098_v38, %v4971_v47  ;;  %v4963_v20 = vadd.f32 %v12869_v27, %v4962_v18  ;;  %v4965_v36 = vpop.f32.mrb[31].mxu1  ;;  %v5911_v0 = vsel %vm5655_vm15, %v5527_v51, %v5783_v35  ;;  %v11289_v39 = vadd.f32 %v4620_v37, %v12870_v14  ;;  %v4622_v48 = vpop.f32.mrb[159].mxu0  ;;  %v12871_v16 = vld [vmem:[#allocation78_spill] sm:$0xff]  ;;  %v12872_v18 = vld [vmem:[#allocation88_spill] sm:$0xff] }
 0x529   : > { %vm5656_vm1 = vcmp.gt.f32.partialorder %v5528_v59, 0.0  ;;  %v5784_v2 = vmul.f32 0.1, %v5528_v59  ;;  %6039 = vst [vmem:[%s11130_s29 + $0xc0] sm:$0xff] %v5911_v0  ;;  %v5914_v61 = vsel %vm5658_vm0, %v5530_v55, %v5786_v45  ;;  %v4974_v9 = vadd.f32 %v12871_v16, %v6835_v42  ;;  %v12874_v48 = vld [vmem:[#allocation101_spill] sm:$0xff] }
 0x52a   : > { %v5533_v50 = vadd.f32 %v11107_v19, %v5398_v10  ;;  %v5396_v24 = vmul.f32 %v11098_v38, %v4963_v20  ;;  %6042 = vst [vmem:[%s11130_s29 + $0xd8] sm:$0xff] %v5914_v61  ;;  %v4966_v13 = vadd.f32 %v12872_v18, %v4965_v36  ;;  %v12873_v36 = vld [vmem:[#allocation171_spill] sm:$0xff] }
 0x52b   : > { %v5912_v47 = vsel %vm5656_vm1, %v5528_v59, %v5784_v2  ;;  %v5399_v15 = vmul.f32 %v11098_v38, %v4974_v9 }
 0x52c   : > { %6040 = vst [vmem:[%s11130_s29 + $0xc8] sm:$0xff] %v5912_v47  ;;  %vm5661_vm2 = vcmp.gt.f32.partialorder %v5533_v50, 0.0  ;;  %v5789_v51 = vmul.f32 0.1, %v5533_v50  ;;  %v5531_v35 = vadd.f32 %v11107_v19, %v5396_v24  ;;  %v5397_v55 = vmul.f32 %v11098_v38, %v4966_v13 }
 0x52d   : > { %v6838_v45 = vpop.f32.mrb[32].mxu1  ;;  %v5534_v42 = vadd.f32 %v11107_v19, %v5399_v15  ;;  %v4625_v20 = vpop.f32.mrb[160].mxu0 }
 0x52e   : > { %v5917_v10 = vsel %vm5661_vm2, %v5533_v50, %v5789_v51  ;;  %vm5659_vm3 = vcmp.gt.f32.partialorder %v5531_v35, 0.0  ;;  %v5787_v27 = vmul.f32 0.1, %v5531_v35  ;;  %v4978_v59 = vpop.f32.mrb[33].mxu1  ;;  %v5532_v37 = vadd.f32 %v11107_v19, %v5397_v55  ;;  %v4627_v14 = vpop.f32.mrb[161].mxu0 }
 0x52f   : > { %6045 = vst [vmem:[%s11130_s29 + $0xf0] sm:$0xff] %v5917_v10  ;;  %v11305_v0 = vadd.f32 %v4625_v20, %v12873_v36  ;;  %v4987_v2 = vadd.f32 %v10872_v5, %v6838_v45  ;;  %v4979_v61 = vadd.f32 %v12874_v48, %v4978_v59  ;;  %v6839_v24 = vpop.f32.mrb[34].mxu1  ;;  %vm5662_vm4 = vcmp.gt.f32.partialorder %v5534_v42, 0.0  ;;  %v4628_v9 = vpop.f32.mrb[162].mxu0  ;;  %v12875_v45 = vld [vmem:[#allocation57_spill] sm:$0xff] }
 0x530   : > { %v5915_v50 = vsel %vm5659_vm3, %v5531_v35, %v5787_v27  ;;  %v5790_v16 = vmul.f32 0.1, %v5534_v42  ;;  %v4990_v47 = vadd.f32 %v10877_v40, %v6839_v24  ;;  %v4981_v18 = vpop.f32.mrb[35].mxu1  ;;  %vm5660_vm5 = vcmp.gt.f32.partialorder %v5532_v37, 0.0  ;;  %v4630_v15 = vpop.f32.mrb[163].mxu0  ;;  %v12876_v27 = vld [vmem:[#allocation85_spill] sm:$0xff] }
 0x531   : > { %6043 = vst [vmem:[%s11130_s29 + $0xe0] sm:$0xff] %v5915_v50  ;;  %v5788_v13 = vmul.f32 0.1, %v5532_v37  ;;  %v5402_v51 = vmul.f32 %v11098_v38, %v4987_v2  ;;  %v5400_v5 = vmul.f32 %v11098_v38, %v4979_v61  ;;  %v11314_v10 = vadd.f32 %v4628_v9, %v12875_v45 }
 0x532   : > { %v5918_v55 = vsel %vm5662_vm4, %v5534_v42, %v5790_v16  ;;  %v5403_v35 = vmul.f32 %v11098_v38, %v4990_v47  ;;  %v4982_v20 = vadd.f32 %v12876_v27, %v4981_v18  ;;  %v12877_v47 = vld [vmem:[#allocation59_spill] sm:$0xff] }
 0x533   : > { %6046 = vst [vmem:[%s11130_s29 + $0xf8] sm:$0xff] %v5918_v55  ;;  %v5916_v40 = vsel %vm5660_vm5, %v5532_v37, %v5788_v13  ;;  %v5537_v59 = vadd.f32 %v11107_v19, %v5402_v51  ;;  %v5535_v36 = vadd.f32 %v11107_v19, %v5400_v5 }
 0x534   : > { %6044 = vst [vmem:[%s11130_s29 + $0xe8] sm:$0xff] %v5916_v40  ;;  %v5538_v2 = vadd.f32 %v11107_v19, %v5403_v35  ;;  %v5401_v14 = vmul.f32 %v11098_v38, %v4982_v20  ;;  %v12878_v40 = vld [vmem:[#allocation178_spill] sm:$0xff] }
 0x535   : > { %vm5665_vm6 = vcmp.gt.f32.partialorder %v5537_v59, 0.0  ;;  %v5793_v42 = vmul.f32 0.1, %v5537_v59  ;;  %vm5663_vm7 = vcmp.gt.f32.partialorder %v5535_v36, 0.0  ;;  %v5791_v48 = vmul.f32 0.1, %v5535_v36 }
 0x536   : > { %vm5666_vm8 = vcmp.gt.f32.partialorder %v5538_v2, 0.0  ;;  %v5794_v61 = vmul.f32 0.1, %v5538_v2  ;;  %v5536_v24 = vadd.f32 %v11107_v19, %v5401_v14  ;;  %v4633_v37 = vpop.f32.mrb[164].mxu0  ;;  %v6842_v50 = vpop.f32.mrb[36].mxu1 }
 0x537   : > { %v5921_v16 = vsel %vm5665_vm6, %v5537_v59, %v5793_v42  ;;  %v5919_v9 = vsel %vm5663_vm7, %v5535_v36, %v5791_v48  ;;  %v11326_v18 = vadd.f32 %v4633_v37, %v12877_v47  ;;  %v5003_v13 = vadd.f32 %v10902_v1, %v6842_v50  ;;  %v4635_v51 = vpop.f32.mrb[165].mxu0  ;;  %v4994_v5 = vpop.f32.mrb[37].mxu1 }
 0x538   : > { %6049 = vst [vmem:[%s11130_s29 + $0x110] sm:$0xff] %v5921_v16  ;;  %6047 = vst [vmem:[%s11130_s29 + $0x100] sm:$0xff] %v5919_v9  ;;  %v5922_v15 = vsel %vm5666_vm8, %v5538_v2, %v5794_v61  ;;  %vm5664_vm9 = vcmp.gt.f32.partialorder %v5536_v24, 0.0  ;;  %v5792_v55 = vmul.f32 0.1, %v5536_v24  ;;  %v4995_v45 = vadd.f32 %v10888_v12, %v4994_v5  ;;  %v4636_v35 = vpop.f32.mrb[166].mxu0 }
 0x539   : > { %v6843_v27 = vpop.f32.mrb[38].mxu1  ;;  %6050 = vst [vmem:[%s11130_s29 + $0x118] sm:$0xff] %v5922_v15  ;;  %v5406_v20 = vmul.f32 %v11098_v38, %v5003_v13  ;;  %v11335_v59 = vadd.f32 %v4636_v35, %v12878_v40  ;;  %v4638_v36 = vpop.f32.mrb[167].mxu0 }
 0x53a   : > { %v5006_v1 = vadd.f32 %v10907_v6, %v6843_v27  ;;  %v4997_v14 = vpop.f32.mrb[39].mxu1  ;;  %v5920_v42 = vsel %vm5664_vm9, %v5536_v24, %v5792_v55  ;;  %v5404_v48 = vmul.f32 %v11098_v38, %v4995_v45  ;;  %v12879_v55 = vld [vmem:[#allocation181_spill] sm:$0xff] }
 0x53b   : > { %v4998_v2 = vadd.f32 %v10893_v3, %v4997_v14  ;;  %6048 = vst [vmem:[%s11130_s29 + $0x108] sm:$0xff] %v5920_v42  ;;  %v5541_v12 = vadd.f32 %v11107_v19, %v5406_v20 }
 0x53c   : > { %v5407_v61 = vmul.f32 %v11098_v38, %v5006_v1  ;;  %v5539_v37 = vadd.f32 %v11107_v19, %v5404_v48  ;;  %v12880_v48 = vld [vmem:[#allocation63_spill] sm:$0xff] }
 0x53d   : > { %v5405_v50 = vmul.f32 %v11098_v38, %v4998_v2  ;;  %vm5669_vm10 = vcmp.gt.f32.partialorder %v5541_v12, 0.0  ;;  %v5797_v16 = vmul.f32 0.1, %v5541_v12  ;;  %v6846_v9 = vpop.f32.mrb[40].mxu1  ;;  %v4641_v3 = vpop.f32.mrb[168].mxu0 }
 0x53e   : > { %v5542_v6 = vadd.f32 %v11107_v19, %v5407_v61  ;;  %vm5667_vm11 = vcmp.gt.f32.partialorder %v5539_v37, 0.0  ;;  %v5795_v24 = vmul.f32 0.1, %v5539_v37  ;;  %v5019_v13 = vadd.f32 %v10932_v8, %v6846_v9  ;;  %v5010_v51 = vpop.f32.mrb[41].mxu1  ;;  %v4643_v35 = vpop.f32.mrb[169].mxu0 }
 0x53f   : > { %v5540_v47 = vadd.f32 %v11107_v19, %v5405_v50  ;;  %v5925_v5 = vsel %vm5669_vm10, %v5541_v12, %v5797_v16  ;;  %v11349_v45 = vadd.f32 %v4641_v3, %v12879_v55  ;;  %v6847_v27 = vpop.f32.mrb[42].mxu1  ;;  %v4644_v36 = vpop.f32.mrb[170].mxu0  ;;  %v5011_v42 = vadd.f32 %v10918_v43, %v5010_v51 }
 0x540   : > { %vm5670_vm12 = vcmp.gt.f32.partialorder %v5542_v6, 0.0  ;;  %v5798_v15 = vmul.f32 0.1, %v5542_v6  ;;  %6053 = vst [vmem:[%s11130_s29 + $0x130] sm:$0xff] %v5925_v5  ;;  %v5923_v20 = vsel %vm5667_vm11, %v5539_v37, %v5795_v24  ;;  %v5410_v1 = vmul.f32 %v11098_v38, %v5019_v13  ;;  %v5013_v14 = vpop.f32.mrb[43].mxu1  ;;  %v4646_v61 = vpop.f32.mrb[171].mxu0 }
 0x541   : > { %vm5668_vm13 = vcmp.gt.f32.partialorder %v5540_v47, 0.0  ;;  %v5796_v40 = vmul.f32 0.1, %v5540_v47  ;;  %6051 = vst [vmem:[%s11130_s29 + $0x120] sm:$0xff] %v5923_v20  ;;  %v11356_v2 = vadd.f32 %v4644_v36, %v12880_v48  ;;  %v5022_v12 = vadd.f32 %v10937_v57, %v6847_v27  ;;  %v12881_v20 = vld [vmem:[#allocation65_spill] sm:$0xff] }
 0x542   : > { %v5926_v8 = vsel %vm5670_vm12, %v5542_v6, %v5798_v15  ;;  %v5545_v37 = vadd.f32 %v11107_v19, %v5410_v1  ;;  %v5014_v16 = vadd.f32 %v10923_v29, %v5013_v14  ;;  %v5408_v9 = vmul.f32 %v11098_v38, %v5011_v42 }
 0x543   : > { %6054 = vst [vmem:[%s11130_s29 + $0x138] sm:$0xff] %v5926_v8  ;;  %v5924_v50 = vsel %vm5668_vm13, %v5540_v47, %v5796_v40  ;;  %v5411_v6 = vmul.f32 %v11098_v38, %v5022_v12 }
 0x544   : > { %6052 = vst [vmem:[%s11130_s29 + $0x128] sm:$0xff] %v5924_v50  ;;  %vm5673_vm14 = vcmp.gt.f32.partialorder %v5545_v37, 0.0  ;;  %v5801_v43 = vmul.f32 0.1, %v5545_v37  ;;  %v5409_v24 = vmul.f32 %v11098_v38, %v5014_v16  ;;  %v5543_v3 = vadd.f32 %v11107_v19, %v5408_v9  ;;  %v12882_v16 = vld [vmem:[#allocation187_spill] sm:$0xff] }
 0x545   : > { %v5546_v57 = vadd.f32 %v11107_v19, %v5411_v6  ;;  %v6850_v13 = vpop.f32.mrb[44].mxu1  ;;  %v4649_v5 = vpop.f32.mrb[172].mxu0 }
 0x546   : > { %v5929_v47 = vsel %vm5673_vm14, %v5545_v37, %v5801_v43  ;;  %v5544_v51 = vadd.f32 %v11107_v19, %v5409_v24  ;;  %v5035_v29 = vadd.f32 %v10962_v63, %v6850_v13  ;;  %v5026_v15 = vpop.f32.mrb[45].mxu1  ;;  %vm5671_vm15 = vcmp.gt.f32.partialorder %v5543_v3, 0.0  ;;  %v4651_v36 = vpop.f32.mrb[173].mxu0 }
 0x547   : > { %6057 = vst [vmem:[%s11130_s29 + $0x150] sm:$0xff] %v5929_v47  ;;  %v5799_v55 = vmul.f32 0.1, %v5543_v3  ;;  %vm5674_vm0 = vcmp.gt.f32.partialorder %v5546_v57, 0.0  ;;  %v5802_v35 = vmul.f32 0.1, %v5546_v57  ;;  %v11372_v40 = vadd.f32 %v4649_v5, %v12881_v20 }
 0x548   : > { %vm5672_vm1 = vcmp.gt.f32.partialorder %v5544_v51, 0.0  ;;  %v5800_v27 = vmul.f32 0.1, %v5544_v51  ;;  %v5414_v1 = vmul.f32 %v11098_v38, %v5035_v29  ;;  %v6851_v14 = vpop.f32.mrb[46].mxu1  ;;  %v5027_v42 = vadd.f32 %v10948_v26, %v5026_v15  ;;  %v4652_v48 = vpop.f32.mrb[174].mxu0  ;;  %v12883_v20 = vld [vmem:[#allocation67_spill] sm:$0xff] }
 0x549   : > { %v5927_v8 = vsel %vm5671_vm15, %v5543_v3, %v5799_v55  ;;  %v5930_v63 = vsel %vm5674_vm0, %v5546_v57, %v5802_v35  ;;  %v5038_v12 = vadd.f32 %v10967_v4, %v6851_v14  ;;  %v5029_v61 = vpop.f32.mrb[47].mxu1  ;;  %v11381_v9 = vadd.f32 %v4652_v48, %v12882_v16  ;;  %v4654_v6 = vpop.f32.mrb[175].mxu0  ;;  %v12884_v16 = vld [vmem:[#allocation69_spill] sm:$0xff] }
 0x54a   : > { %6055 = vst [vmem:[%s11130_s29 + $0x140] sm:$0xff] %v5927_v8  ;;  %6058 = vst [vmem:[%s11130_s29 + $0x158] sm:$0xff] %v5930_v63  ;;  %v5928_v50 = vsel %vm5672_vm1, %v5544_v51, %v5800_v27  ;;  %v5549_v37 = vadd.f32 %v11107_v19, %v5414_v1  ;;  %v5030_v43 = vadd.f32 %v10953_v60, %v5029_v61 }
 0x54b   : > { %6056 = vst [vmem:[%s11130_s29 + $0x148] sm:$0xff] %v5928_v50  ;;  %v5412_v24 = vmul.f32 %v11098_v38, %v5027_v42  ;;  %v5415_v26 = vmul.f32 %v11098_v38, %v5038_v12 }
 0x54c   : > { %vm5677_vm2 = vcmp.gt.f32.partialorder %v5549_v37, 0.0  ;;  %v5805_v4 = vmul.f32 0.1, %v5549_v37  ;;  %v5413_v3 = vmul.f32 %v11098_v38, %v5030_v43 }
 0x54d   : > { %v5547_v57 = vadd.f32 %v11107_v19, %v5412_v24  ;;  %v5550_v13 = vadd.f32 %v11107_v19, %v5415_v26  ;;  %v6854_v47 = vpop.f32.mrb[48].mxu1  ;;  %v4657_v29 = vpop.f32.mrb[176].mxu0 }
 0x54e   : > { %v5933_v51 = vsel %vm5677_vm2, %v5549_v37, %v5805_v4  ;;  %v5548_v5 = vadd.f32 %v11107_v19, %v5413_v3  ;;  %v5051_v60 = vadd.f32 %v10992_v23, %v6854_v47  ;;  %v5042_v15 = vpop.f32.mrb[49].mxu1  ;;  %v11394_v1 = vadd.f32 %v4657_v29, %v12883_v20  ;;  %v4659_v14 = vpop.f32.mrb[177].mxu0 }
 0x54f   : > { %6061 = vst [vmem:[%s11130_s29 + $0x170] sm:$0xff] %v5933_v51  ;;  %vm5675_vm3 = vcmp.gt.f32.partialorder %v5547_v57, 0.0  ;;  %v5803_v55 = vmul.f32 0.1, %v5547_v57  ;;  %vm5678_vm4 = vcmp.gt.f32.partialorder %v5550_v13, 0.0  ;;  %v6855_v8 = vpop.f32.mrb[50].mxu1  ;;  %v5043_v42 = vadd.f32 %v10978_v25, %v5042_v15 }
 0x550   : > { %v5806_v35 = vmul.f32 0.1, %v5550_v13  ;;  %vm5676_vm5 = vcmp.gt.f32.partialorder %v5548_v5, 0.0  ;;  %v5804_v27 = vmul.f32 0.1, %v5548_v5  ;;  %v5418_v36 = vmul.f32 %v11098_v38, %v5051_v60  ;;  %v4660_v48 = vpop.f32.mrb[178].mxu0 }
 0x551   : > { %v5931_v63 = vsel %vm5675_vm3, %v5547_v57, %v5803_v55  ;;  %v5054_v12 = vadd.f32 %v10997_v52, %v6855_v8  ;;  %v5045_v61 = vpop.f32.mrb[51].mxu1  ;;  %v11403_v6 = vadd.f32 %v4660_v48, %v12884_v16  ;;  %v4662_v43 = vpop.f32.mrb[179].mxu0  ;;  %v5416_v26 = vmul.f32 %v11098_v38, %v5043_v42  ;;  %v12885_v55 = vld [vmem:[#allocation71_spill] sm:$0xff] }
 0x552   : > { %v5934_v23 = vsel %vm5678_vm4, %v5550_v13, %v5806_v35  ;;  %6059 = vst [vmem:[%s11130_s29 + $0x160] sm:$0xff] %v5931_v63  ;;  %v5932_v50 = vsel %vm5676_vm5, %v5548_v5, %v5804_v27  ;;  %v5553_v37 = vadd.f32 %v11107_v19, %v5418_v36  ;;  %v5046_v24 = vadd.f32 %v10983_v33, %v5045_v61 }
 0x553   : > { %6062 = vst [vmem:[%s11130_s29 + $0x178] sm:$0xff] %v5934_v23  ;;  %6060 = vst [vmem:[%s11130_s29 + $0x168] sm:$0xff] %v5932_v50  ;;  %v5419_v25 = vmul.f32 %v11098_v38, %v5054_v12  ;;  %v5551_v3 = vadd.f32 %v11107_v19, %v5416_v26  ;;  %v11431_v12 = vld [vmem:[%s11891_s3] ss:$0 sm:$0xff]  ;;  %v12886_v50 = vld [vmem:[#allocation74_spill] sm:$0xff] }
 0x554   : > { %vm5681_vm6 = vcmp.gt.f32.partialorder %v5553_v37, 0.0  ;;  %v5809_v52 = vmul.f32 0.1, %v5553_v37  ;;  %v5417_v4 = vmul.f32 %v11098_v38, %v5046_v24 }
 0x555   : > { %v5554_v57 = vadd.f32 %v11107_v19, %v5419_v25  ;;  %v6858_v13 = vpop.f32.mrb[52].mxu1  ;;  %v4665_v5 = vpop.f32.mrb[180].mxu0  ;;  %vm5679_vm7 = vcmp.gt.f32.partialorder %v5551_v3, 0.0  ;;  %v5807_v60 = vmul.f32 0.1, %v5551_v3 }
 0x556   : > { %v5937_v47 = vsel %vm5681_vm6, %v5553_v37, %v5809_v52  ;;  %v5552_v51 = vadd.f32 %v11107_v19, %v5417_v4  ;;  %v5067_v33 = vadd.f32 %v11022_v7, %v6858_v13  ;;  %v5058_v29 = vpop.f32.mrb[53].mxu1  ;;  %v11416_v35 = vadd.f32 %v4665_v5, %v12885_v55  ;;  %v11421_v19 = vld [vmem:[%s11890_s2] ss:$0 sm:$0xff]  ;;  %v4667_v27 = vpop.f32.mrb[181].mxu0 }
 0x557   : > { %6065 = vst [vmem:[%s11130_s29 + $0x190] sm:$0xff] %v5937_v47  ;;  %vm5682_vm8 = vcmp.gt.f32.partialorder %v5554_v57, 0.0  ;;  %v5810_v15 = vmul.f32 0.1, %v5554_v57  ;;  %v6859_v20 = vpop.f32.mrb[54].mxu1  ;;  %v5935_v36 = vsel %vm5679_vm7, %v5551_v3, %v5807_v60  ;;  %v5059_v8 = vadd.f32 %v11008_v22, %v5058_v29  ;;  %v4668_v63 = vpop.f32.mrb[182].mxu0 }
 0x558   : > { %vm5680_vm9 = vcmp.gt.f32.partialorder %v5552_v51, 0.0  ;;  %v5808_v38 = vmul.f32 0.1, %v5552_v51  ;;  %v5422_v7 = vmul.f32 %v11421_v19, %v5067_v33  ;;  %v5070_v23 = vadd.f32 %v11027_v41, %v6859_v20  ;;  %v5061_v42 = vpop.f32.mrb[55].mxu1  ;;  %6063 = vst [vmem:[%s11130_s29 + $0x180] sm:$0xff] %v5935_v36  ;;  %v4670_v16 = vpop.f32.mrb[183].mxu0 }
 0x559   : > { %v5938_v14 = vsel %vm5682_vm8, %v5554_v57, %v5810_v15  ;;  %v11435_v37 = vadd.f32 %v4668_v63, %v12886_v50  ;;  %v5062_v22 = vadd.f32 %v11013_v11, %v5061_v42  ;;  %v5420_v41 = vmul.f32 %v11421_v19, %v5059_v8  ;;  %v12887_v29 = vld [vmem:[#allocation77_spill] sm:$0xff]  ;;  %v12888_v36 = vld [vmem:[#allocation120_spill] sm:$0xff]  ;;  %v12889_v42 = vld [vmem:[#allocation82_spill] sm:$0xff] }
 0x55a   : > { %6066 = vst [vmem:[%s11130_s29 + $0x198] sm:$0xff] %v5938_v14  ;;  %v5936_v48 = vsel %vm5680_vm9, %v5552_v51, %v5808_v38  ;;  %v5557_v61 = vadd.f32 %v11431_v12, %v5422_v7  ;;  %v5423_v43 = vmul.f32 %v11421_v19, %v5070_v23  ;;  %v12890_v50 = vld [vmem:[#allocation38_spill] sm:$0xff] }
 0x55b   : > { %6064 = vst [vmem:[%s11130_s29 + $0x188] sm:$0xff] %v5936_v48  ;;  %v5421_v26 = vmul.f32 %v11421_v19, %v5062_v22  ;;  %v5555_v25 = vadd.f32 %v11431_v12, %v5420_v41 }
 0x55c   : > { %vm5685_vm10 = vcmp.gt.f32.partialorder %v5557_v61, 0.0  ;;  %v5813_v24 = vmul.f32 0.1, %v5557_v61  ;;  %v5558_v52 = vadd.f32 %v11431_v12, %v5423_v43 }
 0x55d   : > { %v6862_v4 = vpop.f32.mrb[56].mxu1  ;;  %v5556_v57 = vadd.f32 %v11431_v12, %v5421_v26  ;;  %v4673_v13 = vpop.f32.mrb[184].mxu0  ;;  %vm5683_vm11 = vcmp.gt.f32.partialorder %v5555_v25, 0.0  ;;  %v5811_v51 = vmul.f32 0.1, %v5555_v25 }
 0x55e   : > { %v5941_v3 = vsel %vm5685_vm10, %v5557_v61, %v5813_v24  ;;  %v5083_v11 = vadd.f32 %v11052_v58, %v6862_v4  ;;  %v5074_v47 = vpop.f32.mrb[57].mxu1  ;;  %vm5686_vm12 = vcmp.gt.f32.partialorder %v5558_v52, 0.0  ;;  %v5814_v5 = vmul.f32 0.1, %v5558_v52  ;;  %v4675_v38 = vpop.f32.mrb[185].mxu0 }
 0x55f   : > { %6069 = vst [vmem:[%s11130_s29 + $0x1b0] sm:$0xff] %v5941_v3  ;;  %vm5684_vm13 = vcmp.gt.f32.partialorder %v5556_v57, 0.0  ;;  %v5812_v33 = vmul.f32 0.1, %v5556_v57  ;;  %v11448_v60 = vadd.f32 %v4673_v13, %v12887_v29  ;;  %v6863_v55 = vpop.f32.mrb[58].mxu1  ;;  %v5939_v7 = vsel %vm5683_vm11, %v5555_v25, %v5811_v51  ;;  %v4676_v20 = vpop.f32.mrb[186].mxu0 }
 0x560   : > { %v5426_v15 = vmul.f32 %v11421_v19, %v5083_v11  ;;  %v5942_v58 = vsel %vm5686_vm12, %v5558_v52, %v5814_v5  ;;  %v5075_v27 = vadd.f32 %v11038_v62, %v5074_v47  ;;  %v5086_v14 = vadd.f32 %v12888_v36, %v6863_v55  ;;  %v5077_v8 = vpop.f32.mrb[59].mxu1  ;;  %6067 = vst [vmem:[%s11130_s29 + $0x1a0] sm:$0xff] %v5939_v7  ;;  %v4678_v61 = vpop.f32.mrb[187].mxu0 }
 0x561   : > { %6070 = vst [vmem:[%s11130_s29 + $0x1b8] sm:$0xff] %v5942_v58  ;;  %v5940_v63 = vsel %vm5684_vm13, %v5556_v57, %v5812_v33  ;;  %v11457_v48 = vadd.f32 %v4676_v20, %v12889_v42  ;;  %v5078_v16 = vadd.f32 %v12890_v50, %v5077_v8  ;;  %v12891_v57 = vld [vmem:[#allocation47_spill] sm:$0xff]  ;;  %v12892_v33 = vld [vmem:[#allocation86_spill] sm:$0xff]  ;;  %v12895_v61 = vld [vmem:[#allocation97_spill] sm:$0xff] }
 0x562   : > { %v5561_v23 = vadd.f32 %v11431_v12, %v5426_v15  ;;  %6068 = vst [vmem:[%s11130_s29 + $0x1a8] sm:$0xff] %v5940_v63  ;;  %v5424_v22 = vmul.f32 %v11421_v19, %v5075_v27  ;;  %v5427_v62 = vmul.f32 %v11421_v19, %v5086_v14  ;;  %v12893_v27 = vld [vmem:[#allocation44_spill] sm:$0xff]  ;;  %v12894_v14 = vld [vmem:[#allocation147_spill] sm:$0xff] }
 0x563   : > { %v5425_v43 = vmul.f32 %v11421_v19, %v5078_v16 }
 0x564   : > { %vm5689_vm14 = vcmp.gt.f32.partialorder %v5561_v23, 0.0  ;;  %v5817_v41 = vmul.f32 0.1, %v5561_v23  ;;  %v5559_v24 = vadd.f32 %v11431_v12, %v5424_v22  ;;  %v5562_v26 = vadd.f32 %v11431_v12, %v5427_v62  ;;  %v12896_v22 = vld [vmem:[#allocation123_spill] sm:$0xff] }
 0x565   : > { %v6866_v25 = vpop.f32.mrb[60].mxu1  ;;  %v5560_v4 = vadd.f32 %v11431_v12, %v5425_v43  ;;  %v4681_v3 = vpop.f32.mrb[188].mxu0 }
 0x566   : > { %v5945_v52 = vsel %vm5689_vm14, %v5561_v23, %v5817_v41  ;;  %v5099_v13 = vadd.f32 %v12891_v57, %v6866_v25  ;;  %v5090_v11 = vpop.f32.mrb[61].mxu1  ;;  %vm5687_vm15 = vcmp.gt.f32.partialorder %v5559_v24, 0.0  ;;  %v5815_v47 = vmul.f32 0.1, %v5559_v24  ;;  %v4683_v38 = vpop.f32.mrb[189].mxu0 }
 0x567   : > { %6073 = vst [vmem:[%s11130_s29 + $0x1d0] sm:$0xff] %v5945_v52  ;;  %vm5690_vm0 = vcmp.gt.f32.partialorder %v5562_v26, 0.0  ;;  %v5818_v51 = vmul.f32 0.1, %v5562_v26  ;;  %vm5688_vm1 = vcmp.gt.f32.partialorder %v5560_v4, 0.0  ;;  %v11470_v29 = vadd.f32 %v4681_v3, %v12892_v33  ;;  %v6867_v55 = vpop.f32.mrb[62].mxu1 }
 0x568   : > { %v5816_v5 = vmul.f32 0.1, %v5560_v4  ;;  %v5430_v15 = vmul.f32 %v11421_v19, %v5099_v13  ;;  %v5943_v7 = vsel %vm5687_vm15, %v5559_v24, %v5815_v47  ;;  %v5091_v20 = vadd.f32 %v12893_v27, %v5090_v11  ;;  %v4684_v36 = vpop.f32.mrb[190].mxu0  ;;  %v5093_v63 = vpop.f32.mrb[63].mxu1 }
 0x569   : > { %v5946_v58 = vsel %vm5690_vm0, %v5562_v26, %v5818_v51  ;;  %v5102_v8 = vadd.f32 %v12894_v14, %v6867_v55  ;;  %6071 = vst [vmem:[%s11130_s29 + $0x1c0] sm:$0xff] %v5943_v7  ;;  %v11479_v50 = vadd.f32 %v4684_v36, %v12895_v61  ;;  %v4686_v16 = vpop.f32.mrb[191].mxu0  ;;  %v5094_v62 = vadd.f32 %v12896_v22, %v5093_v63  ;;  %v12899_v61 = vld [vmem:[#allocation83_spill] sm:$0xff] }
 0x56a   : > { %6074 = vst [vmem:[%s11130_s29 + $0x1d8] sm:$0xff] %v5946_v58  ;;  %v5944_v23 = vsel %vm5688_vm1, %v5560_v4, %v5816_v5  ;;  %v5565_v42 = vadd.f32 %v11431_v12, %v5430_v15  ;;  %v5428_v41 = vmul.f32 %v11421_v19, %v5091_v20  ;;  %v12897_v15 = vld [vmem:[#allocation81_spill] sm:$0xff]  ;;  %v12898_v20 = vld [vmem:[#allocation128_spill] sm:$0xff] }
 0x56b   : > { %6072 = vst [vmem:[%s11130_s29 + $0x1c8] sm:$0xff] %v5944_v23  ;;  %v5431_v43 = vmul.f32 %v11421_v19, %v5102_v8  ;;  %v5429_v26 = vmul.f32 %v11421_v19, %v5094_v62  ;;  %v12900_v62 = vld [vmem:[#allocation130_spill] sm:$0xff] }
 0x56c   : > { %vm5693_vm2 = vcmp.gt.f32.partialorder %v5565_v42, 0.0  ;;  %v5821_v24 = vmul.f32 0.1, %v5565_v42  ;;  %v5563_v25 = vadd.f32 %v11431_v12, %v5428_v41 }
 0x56d   : > { %v5566_v52 = vadd.f32 %v11431_v12, %v5431_v43  ;;  %v6870_v4 = vpop.f32.mrb[64].mxu1  ;;  %v5564_v57 = vadd.f32 %v11431_v12, %v5429_v26  ;;  %v4689_v13 = vpop.f32.mrb[192].mxu0 }
 0x56e   : > { %v5949_v3 = vsel %vm5693_vm2, %v5565_v42, %v5821_v24  ;;  %v5115_v11 = vadd.f32 %v11134_v54, %v6870_v4  ;;  %v5106_v47 = vpop.f32.mrb[65].mxu1  ;;  %vm5691_vm3 = vcmp.gt.f32.partialorder %v5563_v25, 0.0  ;;  %v5819_v51 = vmul.f32 0.1, %v5563_v25  ;;  %v4691_v7 = vpop.f32.mrb[193].mxu0 }
 0x56f   : > { %6077 = vst [vmem:[%s11130_s29 + $0x1f0] sm:$0xff] %v5949_v3  ;;  %vm5694_vm4 = vcmp.gt.f32.partialorder %v5566_v52, 0.0  ;;  %v5822_v5 = vmul.f32 0.1, %v5566_v52  ;;  %vm5692_vm5 = vcmp.gt.f32.partialorder %v5564_v57, 0.0  ;;  %v11492_v38 = vadd.f32 %v4689_v13, %v12897_v15  ;;  %v6871_v58 = vpop.f32.mrb[66].mxu1 }
 0x570   : > { %v5820_v33 = vmul.f32 0.1, %v5564_v57  ;;  %v5434_v55 = vmul.f32 %v11421_v19, %v5115_v11  ;;  %v5947_v27 = vsel %vm5691_vm3, %v5563_v25, %v5819_v51  ;;  %v5107_v36 = vadd.f32 %v12898_v20, %v5106_v47  ;;  %v4692_v14 = vpop.f32.mrb[194].mxu0  ;;  %v5109_v63 = vpop.f32.mrb[67].mxu1  ;;  %v12901_v15 = vld [vmem:[#allocation106_spill] sm:$0xff] }
 0x571   : > { %v5950_v54 = vsel %vm5694_vm4, %v5566_v52, %v5822_v5  ;;  %v5118_v8 = vadd.f32 %v11142_v31, %v6871_v58  ;;  %6075 = vst [vmem:[%s11130_s29 + $0x1e0] sm:$0xff] %v5947_v27  ;;  %v11501_v16 = vadd.f32 %v4692_v14, %v12899_v61  ;;  %v4694_v22 = vpop.f32.mrb[195].mxu0  ;;  %v5110_v41 = vadd.f32 %v12900_v62, %v5109_v63 }
 0x572   : > { %6078 = vst [vmem:[%s11130_s29 + $0x1f8] sm:$0xff] %v5950_v54  ;;  %v5948_v23 = vsel %vm5692_vm5, %v5564_v57, %v5820_v33  ;;  %v5569_v42 = vadd.f32 %v11431_v12, %v5434_v55  ;;  %v5432_v43 = vmul.f32 %v11421_v19, %v5107_v36 }
 0x573   : > { %6076 = vst [vmem:[%s11130_s29 + $0x1e8] sm:$0xff] %v5948_v23  ;;  %v5435_v24 = vmul.f32 %v11421_v19, %v5118_v8  ;;  %v5433_v26 = vmul.f32 %v11421_v19, %v5110_v41 }
 0x574   : > { %vm5697_vm6 = vcmp.gt.f32.partialorder %v5569_v42, 0.0  ;;  %v5825_v31 = vmul.f32 0.1, %v5569_v42  ;;  %v5567_v25 = vadd.f32 %v11431_v12, %v5432_v43 }
 0x575   : > { %v5570_v52 = vadd.f32 %v11431_v12, %v5435_v24  ;;  %v6874_v4 = vpop.f32.mrb[68].mxu1  ;;  %v5568_v57 = vadd.f32 %v11431_v12, %v5433_v26  ;;  %v4697_v13 = vpop.f32.mrb[196].mxu0 }
 0x576   : > { %v5953_v3 = vsel %vm5697_vm6, %v5569_v42, %v5825_v31  ;;  %v5131_v11 = vadd.f32 %v11187_v46, %v6874_v4  ;;  %v5122_v47 = vpop.f32.mrb[69].mxu1  ;;  %vm5695_vm7 = vcmp.gt.f32.partialorder %v5567_v25, 0.0  ;;  %v5823_v51 = vmul.f32 0.1, %v5567_v25  ;;  %v4699_v58 = vpop.f32.mrb[197].mxu0  ;;  %v12902_v42 = vld [vmem:[#allocation87_spill] sm:$0xff] }
 0x577   : > { %6081 = vst [vmem:[%s11130_s29 + $0x210] sm:$0xff] %v5953_v3  ;;  %vm5698_vm8 = vcmp.gt.f32.partialorder %v5570_v52, 0.0  ;;  %v5826_v5 = vmul.f32 0.1, %v5570_v52  ;;  %vm5696_vm9 = vcmp.gt.f32.partialorder %v5568_v57, 0.0  ;;  %v11514_v55 = vadd.f32 %v4697_v13, %v12901_v15  ;;  %v6875_v27 = vpop.f32.mrb[70].mxu1 }
 0x578   : > { %v5824_v33 = vmul.f32 0.1, %v5568_v57  ;;  %v5438_v7 = vmul.f32 %v11421_v19, %v5131_v11  ;;  %v5951_v54 = vsel %vm5695_vm7, %v5567_v25, %v5823_v51  ;;  %v5123_v20 = vadd.f32 %v11161_v44, %v5122_v47  ;;  %v4700_v36 = vpop.f32.mrb[198].mxu0  ;;  %v5125_v8 = vpop.f32.mrb[71].mxu1  ;;  %v12903_v47 = vld [vmem:[#allocation90_spill] sm:$0xff] }
 0x579   : > { %v5954_v46 = vsel %vm5698_vm8, %v5570_v52, %v5826_v5  ;;  %v5134_v14 = vadd.f32 %v11196_v21, %v6875_v27  ;;  %6079 = vst [vmem:[%s11130_s29 + $0x200] sm:$0xff] %v5951_v54  ;;  %v11523_v61 = vadd.f32 %v4700_v36, %v12902_v42  ;;  %v4702_v22 = vpop.f32.mrb[199].mxu0  ;;  %v5126_v62 = vadd.f32 %v11167_v30, %v5125_v8 }
 0x57a   : > { %6082 = vst [vmem:[%s11130_s29 + $0x218] sm:$0xff] %v5954_v46  ;;  %v5952_v63 = vsel %vm5696_vm9, %v5568_v57, %v5824_v33  ;;  %v5573_v23 = vadd.f32 %v11431_v12, %v5438_v7  ;;  %v5436_v41 = vmul.f32 %v11421_v19, %v5123_v20 }
 0x57b   : > { %6080 = vst [vmem:[%s11130_s29 + $0x208] sm:$0xff] %v5952_v63  ;;  %v5439_v44 = vmul.f32 %v11421_v19, %v5134_v14  ;;  %v5437_v43 = vmul.f32 %v11421_v19, %v5126_v62  ;;  %v12904_v14 = vld [vmem:[#allocation111_spill] sm:$0xff] }
 0x57c   : > { %vm5701_vm10 = vcmp.gt.f32.partialorder %v5573_v23, 0.0  ;;  %v5829_v21 = vmul.f32 0.1, %v5573_v23  ;;  %v5571_v24 = vadd.f32 %v11431_v12, %v5436_v41 }
 0x57d   : > { %v5574_v31 = vadd.f32 %v11431_v12, %v5439_v44  ;;  %v6878_v26 = vpop.f32.mrb[72].mxu1  ;;  %v5572_v52 = vadd.f32 %v11431_v12, %v5437_v43  ;;  %v4705_v4 = vpop.f32.mrb[200].mxu0 }
 0x57e   : > { %v5957_v25 = vsel %vm5701_vm10, %v5573_v23, %v5829_v21  ;;  %v5147_v30 = vadd.f32 %v11238_v34, %v6878_v26  ;;  %v5138_v3 = vpop.f32.mrb[73].mxu1  ;;  %vm5699_vm11 = vcmp.gt.f32.partialorder %v5571_v24, 0.0  ;;  %v5827_v57 = vmul.f32 0.1, %v5571_v24  ;;  %v4707_v33 = vpop.f32.mrb[201].mxu0 }
 0x57f   : > { %6085 = vst [vmem:[%s11130_s29 + $0x230] sm:$0xff] %v5957_v25  ;;  %vm5702_vm12 = vcmp.gt.f32.partialorder %v5574_v31, 0.0  ;;  %v5830_v13 = vmul.f32 0.1, %v5574_v31  ;;  %vm5700_vm13 = vcmp.gt.f32.partialorder %v5572_v52, 0.0  ;;  %v11536_v51 = vadd.f32 %v4705_v4, %v12903_v47  ;;  %v6879_v15 = vpop.f32.mrb[74].mxu1 }
 0x580   : > { %v5828_v11 = vmul.f32 0.1, %v5572_v52  ;;  %v5442_v5 = vmul.f32 %v11421_v19, %v5147_v30  ;;  %v5955_v7 = vsel %vm5699_vm11, %v5571_v24, %v5827_v57  ;;  %v5139_v58 = vadd.f32 %v11214_v32, %v5138_v3  ;;  %v4708_v27 = vpop.f32.mrb[202].mxu0  ;;  %v5141_v46 = vpop.f32.mrb[75].mxu1  ;;  %v12905_v4 = vld [vmem:[#allocation93_spill] sm:$0xff] }
 0x581   : > { %v5958_v34 = vsel %vm5702_vm12, %v5574_v31, %v5830_v13  ;;  %v5150_v54 = vadd.f32 %v11246_v49, %v6879_v15  ;;  %6083 = vst [vmem:[%s11130_s29 + $0x220] sm:$0xff] %v5955_v7  ;;  %v11545_v8 = vadd.f32 %v4708_v27, %v12904_v14  ;;  %v4710_v63 = vpop.f32.mrb[203].mxu0  ;;  %v5142_v23 = vadd.f32 %v11223_v56, %v5141_v46 }
 0x582   : > { %6086 = vst [vmem:[%s11130_s29 + $0x238] sm:$0xff] %v5958_v34  ;;  %v5956_v20 = vsel %vm5700_vm13, %v5572_v52, %v5828_v11  ;;  %v5577_v36 = vadd.f32 %v11431_v12, %v5442_v5  ;;  %v5440_v42 = vmul.f32 %v11421_v19, %v5139_v58  ;;  %v12906_v58 = vld [vmem:[#allocation96_spill] sm:$0xff] }
 0x583   : > { %6084 = vst [vmem:[%s11130_s29 + $0x228] sm:$0xff] %v5956_v20  ;;  %v5443_v32 = vmul.f32 %v11421_v19, %v5150_v54  ;;  %v5441_v22 = vmul.f32 %v11421_v19, %v5142_v23 }
 0x584   : > { %vm5705_vm14 = vcmp.gt.f32.partialorder %v5577_v36, 0.0  ;;  %v5833_v49 = vmul.f32 0.1, %v5577_v36  ;;  %v5575_v62 = vadd.f32 %v11431_v12, %v5440_v42 }
 0x585   : > { %v5578_v41 = vadd.f32 %v11431_v12, %v5443_v32  ;;  %v6882_v44 = vpop.f32.mrb[76].mxu1  ;;  %v5576_v43 = vadd.f32 %v11431_v12, %v5441_v22  ;;  %v4713_v24 = vpop.f32.mrb[204].mxu0 }
 0x586   : > { %v5961_v21 = vsel %vm5705_vm14, %v5577_v36, %v5833_v49  ;;  %v5163_v56 = vadd.f32 %v11284_v28, %v6882_v44  ;;  %v5154_v31 = vpop.f32.mrb[77].mxu1  ;;  %vm5703_vm15 = vcmp.gt.f32.partialorder %v5575_v62, 0.0  ;;  %v5831_v26 = vmul.f32 0.1, %v5575_v62  ;;  %v4715_v57 = vpop.f32.mrb[205].mxu0 }
 0x587   : > { %6089 = vst [vmem:[%s11130_s29 + $0x250] sm:$0xff] %v5961_v21  ;;  %vm5706_vm0 = vcmp.gt.f32.partialorder %v5578_v41, 0.0  ;;  %v5834_v25 = vmul.f32 0.1, %v5578_v41  ;;  %vm5704_vm1 = vcmp.gt.f32.partialorder %v5576_v43, 0.0  ;;  %v11558_v30 = vadd.f32 %v4713_v24, %v12905_v4  ;;  %v6883_v13 = vpop.f32.mrb[78].mxu1 }
 0x588   : > { %v5832_v52 = vmul.f32 0.1, %v5576_v43  ;;  %v5446_v3 = vmul.f32 %v11421_v19, %v5163_v56  ;;  %v5959_v11 = vsel %vm5703_vm15, %v5575_v62, %v5831_v26  ;;  %v5155_v47 = vadd.f32 %v11262_v53, %v5154_v31  ;;  %v4716_v5 = vpop.f32.mrb[206].mxu0  ;;  %v5157_v15 = vpop.f32.mrb[79].mxu1  ;;  %v12907_v21 = vld [vmem:[#allocation116_spill] sm:$0xff] }
 0x589   : > { %v5962_v28 = vsel %vm5706_vm0, %v5578_v41, %v5834_v25  ;;  %v5166_v33 = vadd.f32 %v11289_v39, %v6883_v13  ;;  %6087 = vst [vmem:[%s11130_s29 + $0x240] sm:$0xff] %v5959_v11  ;;  %v11567_v27 = vadd.f32 %v4716_v5, %v12906_v58  ;;  %v4718_v54 = vpop.f32.mrb[207].mxu0  ;;  %v5158_v46 = vadd.f32 %v11269_v17, %v5157_v15  ;;  %v12908_v11 = vld [vmem:[#allocation98_spill] sm:$0xff] }
 0x58a   : > { %6090 = vst [vmem:[%s11130_s29 + $0x258] sm:$0xff] %v5962_v28  ;;  %v5960_v7 = vsel %vm5704_vm1, %v5576_v43, %v5832_v52  ;;  %v5581_v34 = vadd.f32 %v11431_v12, %v5446_v3  ;;  %v5444_v20 = vmul.f32 %v11421_v19, %v5155_v47 }
 0x58b   : > { %6088 = vst [vmem:[%s11130_s29 + $0x248] sm:$0xff] %v5960_v7  ;;  %v5447_v53 = vmul.f32 %v11421_v19, %v5166_v33  ;;  %v5445_v36 = vmul.f32 %v11421_v19, %v5158_v46 }
 0x58c   : > { %vm5709_vm2 = vcmp.gt.f32.partialorder %v5581_v34, 0.0  ;;  %v5837_v39 = vmul.f32 0.1, %v5581_v34  ;;  %v5579_v14 = vadd.f32 %v11431_v12, %v5444_v20 }
 0x58d   : > { %v5582_v63 = vadd.f32 %v11431_v12, %v5447_v53  ;;  %v6886_v23 = vpop.f32.mrb[80].mxu1  ;;  %v5580_v32 = vadd.f32 %v11431_v12, %v5445_v36  ;;  %v4721_v49 = vpop.f32.mrb[208].mxu0 }
 0x58e   : > { %v5965_v42 = vsel %vm5709_vm2, %v5581_v34, %v5837_v39  ;;  %v5179_v17 = vadd.f32 %v11326_v18, %v6886_v23  ;;  %v5170_v22 = vpop.f32.mrb[81].mxu1  ;;  %vm5707_vm3 = vcmp.gt.f32.partialorder %v5579_v14, 0.0  ;;  %v5835_v62 = vmul.f32 0.1, %v5579_v14  ;;  %v4723_v56 = vpop.f32.mrb[209].mxu0 }
 0x58f   : > { %6093 = vst [vmem:[%s11130_s29 + $0x270] sm:$0xff] %v5965_v42  ;;  %vm5710_vm4 = vcmp.gt.f32.partialorder %v5582_v63, 0.0  ;;  %v5838_v41 = vmul.f32 0.1, %v5582_v63  ;;  %vm5708_vm5 = vcmp.gt.f32.partialorder %v5580_v32, 0.0  ;;  %v11580_v43 = vadd.f32 %v4721_v49, %v12907_v21  ;;  %v6887_v31 = vpop.f32.mrb[82].mxu1 }
 0x590   : > { %v5836_v44 = vmul.f32 0.1, %v5580_v32  ;;  %v5450_v24 = vmul.f32 %v11421_v19, %v5179_v17  ;;  %v5963_v26 = vsel %vm5707_vm3, %v5579_v14, %v5835_v62  ;;  %v5171_v25 = vadd.f32 %v11305_v0, %v5170_v22  ;;  %v4724_v52 = vpop.f32.mrb[210].mxu0  ;;  %v5173_v3 = vpop.f32.mrb[83].mxu1  ;;  %v12910_v56 = vld [vmem:[#allocation20_spill] sm:$0xff] }
 0x591   : > { %v5966_v18 = vsel %vm5710_vm4, %v5582_v63, %v5838_v41  ;;  %v5182_v4 = vadd.f32 %v11335_v59, %v6887_v31  ;;  %6091 = vst [vmem:[%s11130_s29 + $0x260] sm:$0xff] %v5963_v26  ;;  %v11589_v28 = vadd.f32 %v4724_v52, %v12908_v11  ;;  %v4726_v47 = vpop.f32.mrb[211].mxu0  ;;  %v5174_v5 = vadd.f32 %v11314_v10, %v5173_v3  ;;  %v12909_v63 = vld [vmem:[#allocation100_spill] sm:$0xff] }
 0x592   : > { %6094 = vst [vmem:[%s11130_s29 + $0x278] sm:$0xff] %v5966_v18  ;;  %v5964_v57 = vsel %vm5708_vm5, %v5580_v32, %v5836_v44  ;;  %v5585_v13 = vadd.f32 %v11431_v12, %v5450_v24  ;;  %v5448_v33 = vmul.f32 %v11421_v19, %v5171_v25 }
 0x593   : > { %6092 = vst [vmem:[%s11130_s29 + $0x268] sm:$0xff] %v5964_v57  ;;  %v5451_v0 = vmul.f32 %v11421_v19, %v5182_v4  ;;  %v5449_v15 = vmul.f32 %v11421_v19, %v5174_v5 }
 0x594   : > { %vm5713_vm6 = vcmp.gt.f32.partialorder %v5585_v13, 0.0  ;;  %v5841_v59 = vmul.f32 0.1, %v5585_v13  ;;  %v5583_v7 = vadd.f32 %v11431_v12, %v5448_v33 }
 0x595   : > { %v5586_v34 = vadd.f32 %v11431_v12, %v5451_v0  ;;  %v6890_v58 = vpop.f32.mrb[84].mxu1  ;;  %v5584_v46 = vadd.f32 %v11431_v12, %v5449_v15  ;;  %v4729_v20 = vpop.f32.mrb[212].mxu0  ;;  %v12911_v15 = vld [vmem:[#allocation121_spill] sm:$0xff] }
 0x596   : > { %v5969_v54 = vsel %vm5713_vm6, %v5585_v13, %v5841_v59  ;;  %v5195_v10 = vadd.f32 %v11372_v40, %v6890_v58  ;;  %v5186_v53 = vpop.f32.mrb[85].mxu1  ;;  %vm5711_vm7 = vcmp.gt.f32.partialorder %v5583_v7, 0.0  ;;  %v5839_v39 = vmul.f32 0.1, %v5583_v7  ;;  %v4731_v32 = vpop.f32.mrb[213].mxu0 }
 0x597   : > { %6097 = vst [vmem:[%s11130_s29 + $0x290] sm:$0xff] %v5969_v54  ;;  %vm5714_vm8 = vcmp.gt.f32.partialorder %v5586_v34, 0.0  ;;  %v5842_v36 = vmul.f32 0.1, %v5586_v34  ;;  %vm5712_vm9 = vcmp.gt.f32.partialorder %v5584_v46, 0.0  ;;  %v11602_v23 = vadd.f32 %v4729_v20, %v12909_v63  ;;  %v6891_v49 = vpop.f32.mrb[86].mxu1 }
 0x598   : > { %v5840_v14 = vmul.f32 0.1, %v5584_v46  ;;  %v5454_v42 = vmul.f32 %v11421_v19, %v5195_v10  ;;  %v5967_v17 = vsel %vm5711_vm7, %v5583_v7, %v5839_v39  ;;  %v5187_v22 = vadd.f32 %v11349_v45, %v5186_v53  ;;  %v4732_v62 = vpop.f32.mrb[214].mxu0  ;;  %v5189_v44 = vpop.f32.mrb[87].mxu1  ;;  %v12912_v63 = vld [vmem:[#allocation103_spill] sm:$0xff] }
 0x599   : > { %v5970_v40 = vsel %vm5714_vm8, %v5586_v34, %v5842_v36  ;;  %v5198_v41 = vadd.f32 %v11381_v9, %v6891_v49  ;;  %6095 = vst [vmem:[%s11130_s29 + $0x280] sm:$0xff] %v5967_v17  ;;  %v11611_v31 = vadd.f32 %v4732_v62, %v12910_v56  ;;  %v4734_v26 = vpop.f32.mrb[215].mxu0  ;;  %v5190_v18 = vadd.f32 %v11356_v2, %v5189_v44 }
 0x59a   : > { %6098 = vst [vmem:[%s11130_s29 + $0x298] sm:$0xff] %v5970_v40  ;;  %v5968_v21 = vsel %vm5712_vm9, %v5584_v46, %v5840_v14  ;;  %v5589_v24 = vadd.f32 %v11431_v12, %v5454_v42  ;;  %v5452_v25 = vmul.f32 %v11421_v19, %v5187_v22 }
 0x59b   : > { %6096 = vst [vmem:[%s11130_s29 + $0x288] sm:$0xff] %v5968_v21  ;;  %v5455_v45 = vmul.f32 %v11421_v19, %v5198_v41  ;;  %v5453_v52 = vmul.f32 %v11421_v19, %v5190_v18 }
 0x59c   : > { %vm5717_vm10 = vcmp.gt.f32.partialorder %v5589_v24, 0.0  ;;  %v5845_v9 = vmul.f32 0.1, %v5589_v24  ;;  %v5587_v4 = vadd.f32 %v11431_v12, %v5452_v25 }
 0x59d   : > { %v5590_v3 = vadd.f32 %v11431_v12, %v5455_v45  ;;  %v6894_v57 = vpop.f32.mrb[88].mxu1  ;;  %v5588_v11 = vadd.f32 %v11431_v12, %v5453_v52  ;;  %v4737_v47 = vpop.f32.mrb[216].mxu0  ;;  %v12913_v45 = vld [vmem:[#allocation105_spill] sm:$0xff] }
 0x59e   : > { %v5973_v13 = vsel %vm5717_vm10, %v5589_v24, %v5845_v9  ;;  %v5211_v2 = vadd.f32 %v11416_v35, %v6894_v57  ;;  %v5202_v5 = vpop.f32.mrb[89].mxu1  ;;  %vm5715_vm11 = vcmp.gt.f32.partialorder %v5587_v4, 0.0  ;;  %v5843_v33 = vmul.f32 0.1, %v5587_v4  ;;  %v4739_v58 = vpop.f32.mrb[217].mxu0 }
 0x59f   : > { %6101 = vst [vmem:[%s11130_s29 + $0x2b0] sm:$0xff] %v5973_v13  ;;  %vm5718_vm12 = vcmp.gt.f32.partialorder %v5590_v3, 0.0  ;;  %v5846_v0 = vmul.f32 0.1, %v5590_v3  ;;  %vm5716_vm13 = vcmp.gt.f32.partialorder %v5588_v11, 0.0  ;;  %v11624_v7 = vadd.f32 %v4737_v47, %v12911_v15  ;;  %v6895_v54 = vpop.f32.mrb[90].mxu1 }
 0x5a0   : > { %v5844_v59 = vmul.f32 0.1, %v5588_v11  ;;  %v5458_v34 = vmul.f32 %v11421_v19, %v5211_v2  ;;  %v5971_v46 = vsel %vm5715_vm11, %v5587_v4, %v5843_v33  ;;  %v5203_v20 = vadd.f32 %v11394_v1, %v5202_v5  ;;  %v4740_v10 = vpop.f32.mrb[218].mxu0  ;;  %v5205_v39 = vpop.f32.mrb[91].mxu1 }
 0x5a1   : > { %v5974_v35 = vsel %vm5718_vm12, %v5590_v3, %v5846_v0  ;;  %v5214_v53 = vadd.f32 %v11435_v37, %v6895_v54  ;;  %6099 = vst [vmem:[%s11130_s29 + $0x2a0] sm:$0xff] %v5971_v46  ;;  %v11633_v42 = vadd.f32 %v4740_v10, %v12912_v63  ;;  %v4742_v32 = vpop.f32.mrb[219].mxu0  ;;  %v5206_v49 = vadd.f32 %v11403_v6, %v5205_v39  ;;  %v12914_v0 = vld [vmem:[#allocation23_spill] sm:$0xff] }
 0x5a2   : > { %6102 = vst [vmem:[%s11130_s29 + $0x2b8] sm:$0xff] %v5974_v35  ;;  %v5972_v36 = vsel %vm5716_vm13, %v5588_v11, %v5844_v59  ;;  %v5593_v14 = vadd.f32 %v11431_v12, %v5458_v34  ;;  %v5456_v17 = vmul.f32 %v11421_v19, %v5203_v20 }
 0x5a3   : > { %6100 = vst [vmem:[%s11130_s29 + $0x2a8] sm:$0xff] %v5972_v36  ;;  %v5459_v1 = vmul.f32 %v11421_v19, %v5214_v53  ;;  %v5457_v40 = vmul.f32 %v11421_v19, %v5206_v49  ;;  %v12915_v49 = vld [vmem:[#allocation26_spill] sm:$0xff] }
 0x5a4   : > { %vm5721_vm14 = vcmp.gt.f32.partialorder %v5593_v14, 0.0  ;;  %v5849_v37 = vmul.f32 0.1, %v5593_v14  ;;  %v5591_v22 = vadd.f32 %v11431_v12, %v5456_v17 }
 0x5a5   : > { %v5594_v62 = vadd.f32 %v11431_v12, %v5459_v1  ;;  %v6898_v41 = vpop.f32.mrb[92].mxu1  ;;  %v5592_v21 = vadd.f32 %v11431_v12, %v5457_v40  ;;  %v4745_v24 = vpop.f32.mrb[220].mxu0 }
 0x5a6   : > { %v5977_v44 = vsel %vm5721_vm14, %v5593_v14, %v5849_v37  ;;  %v5227_v6 = vadd.f32 %v11470_v29, %v6898_v41  ;;  %v5218_v56 = vpop.f32.mrb[93].mxu1  ;;  %vm5719_vm15 = vcmp.gt.f32.partialorder %v5591_v22, 0.0  ;;  %v5847_v26 = vmul.f32 0.1, %v5591_v22  ;;  %v4747_v4 = vpop.f32.mrb[221].mxu0 }
 0x5a7   : > { %6105 = vst [vmem:[%s11130_s29 + $0x2d0] sm:$0xff] %v5977_v44  ;;  %vm5722_vm0 = vcmp.gt.f32.partialorder %v5594_v62, 0.0  ;;  %v5850_v18 = vmul.f32 0.1, %v5594_v62  ;;  %vm5720_vm1 = vcmp.gt.f32.partialorder %v5592_v21, 0.0  ;;  %v11646_v9 = vadd.f32 %v4745_v24, %v12913_v45  ;;  %v6899_v3 = vpop.f32.mrb[94].mxu1 }
 0x5a8   : > { %v5848_v25 = vmul.f32 0.1, %v5592_v21  ;;  %v5462_v52 = vmul.f32 %v11421_v19, %v5227_v6  ;;  %v5975_v57 = vsel %vm5719_vm15, %v5591_v22, %v5847_v26  ;;  %v5219_v13 = vadd.f32 %v11448_v60, %v5218_v56  ;;  %v4748_v11 = vpop.f32.mrb[222].mxu0  ;;  %v5221_v2 = vpop.f32.mrb[95].mxu1  ;;  %v12916_v56 = vld [vmem:[#allocation126_spill] sm:$0xff] }
 0x5a9   : > { %v5978_v29 = vsel %vm5722_vm0, %v5594_v62, %v5850_v18  ;;  %v5230_v47 = vadd.f32 %v11479_v50, %v6899_v3  ;;  %6103 = vst [vmem:[%s11130_s29 + $0x2c0] sm:$0xff] %v5975_v57  ;;  %v11655_v59 = vadd.f32 %v4748_v11, %v12914_v0  ;;  %v4750_v15 = vpop.f32.mrb[223].mxu0  ;;  %v5222_v34 = vadd.f32 %v11457_v48, %v5221_v2  ;;  %v12917_v0 = vld [vmem:[#allocation108_spill] sm:$0xff] }
 0x5aa   : > { %6106 = vst [vmem:[%s11130_s29 + $0x2d8] sm:$0xff] %v5978_v29  ;;  %v5976_v5 = vsel %vm5720_vm1, %v5592_v21, %v5848_v25  ;;  %v5597_v33 = vadd.f32 %v11431_v12, %v5462_v52  ;;  %v5460_v58 = vmul.f32 %v11421_v19, %v5219_v13 }
 0x5ab   : > { %6104 = vst [vmem:[%s11130_s29 + $0x2c8] sm:$0xff] %v5976_v5  ;;  %v5463_v60 = vmul.f32 %v11421_v19, %v5230_v47  ;;  %v5461_v54 = vmul.f32 %v11421_v19, %v5222_v34 }
 0x5ac   : > { %vm5725_vm2 = vcmp.gt.f32.partialorder %v5597_v33, 0.0  ;;  %v5853_v50 = vmul.f32 0.1, %v5597_v33  ;;  %v5595_v46 = vadd.f32 %v11431_v12, %v5460_v58 }
 0x5ad   : > { %v5598_v35 = vadd.f32 %v11431_v12, %v5463_v60  ;;  %v6902_v20 = vpop.f32.mrb[96].mxu1  ;;  %v5596_v53 = vadd.f32 %v11431_v12, %v5461_v54  ;;  %v4753_v39 = vpop.f32.mrb[224].mxu0 }
 0x5ae   : > { %v5981_v10 = vsel %vm5725_vm2, %v5597_v33, %v5853_v50  ;;  %v5243_v48 = vadd.f32 %v11514_v55, %v6902_v20  ;;  %v5234_v36 = vpop.f32.mrb[97].mxu1  ;;  %vm5723_vm3 = vcmp.gt.f32.partialorder %v5595_v46, 0.0  ;;  %v5851_v14 = vmul.f32 0.1, %v5595_v46  ;;  %v4755_v37 = vpop.f32.mrb[225].mxu0 }
 0x5af   : > { %6109 = vst [vmem:[%s11130_s29 + $0x2f0] sm:$0xff] %v5981_v10  ;;  %vm5726_vm4 = vcmp.gt.f32.partialorder %v5598_v35, 0.0  ;;  %v5854_v63 = vmul.f32 0.1, %v5598_v35  ;;  %vm5724_vm5 = vcmp.gt.f32.partialorder %v5596_v53, 0.0  ;;  %v11668_v17 = vadd.f32 %v4753_v39, %v12915_v49  ;;  %v6903_v40 = vpop.f32.mrb[98].mxu1 }
 0x5b0   : > { %v5852_v32 = vmul.f32 0.1, %v5596_v53  ;;  %v5466_v1 = vmul.f32 %v11421_v19, %v5243_v48  ;;  %v5979_v22 = vsel %vm5723_vm3, %v5595_v46, %v5851_v14  ;;  %v5235_v62 = vadd.f32 %v11492_v38, %v5234_v36  ;;  %v4756_v41 = vpop.f32.mrb[226].mxu0  ;;  %v5237_v21 = vpop.f32.mrb[99].mxu1  ;;  %v12918_v39 = vld [vmem:[#allocation110_spill] sm:$0xff] }
 0x5b1   : > { %v5982_v55 = vsel %vm5726_vm4, %v5598_v35, %v5854_v63  ;;  %v5246_v44 = vadd.f32 %v11523_v61, %v6903_v40  ;;  %6107 = vst [vmem:[%s11130_s29 + $0x2e0] sm:$0xff] %v5979_v22  ;;  %v11677_v26 = vadd.f32 %v4756_v41, %v12916_v56  ;;  %v4758_v18 = vpop.f32.mrb[227].mxu0  ;;  %v5238_v25 = vadd.f32 %v11501_v16, %v5237_v21 }
 0x5b2   : > { %6110 = vst [vmem:[%s11130_s29 + $0x2f8] sm:$0xff] %v5982_v55  ;;  %v5980_v24 = vsel %vm5724_vm5, %v5596_v53, %v5852_v32  ;;  %v5601_v6 = vadd.f32 %v11431_v12, %v5466_v1  ;;  %v5464_v45 = vmul.f32 %v11421_v19, %v5235_v62 }
 0x5b3   : > { %6108 = vst [vmem:[%s11130_s29 + $0x2e8] sm:$0xff] %v5980_v24  ;;  %v5467_v38 = vmul.f32 %v11421_v19, %v5246_v44  ;;  %v5465_v52 = vmul.f32 %v11421_v19, %v5238_v25  ;;  %v12919_v24 = vld [vmem:[#allocation29_spill] sm:$0xff] }
 0x5b4   : > { %vm5729_vm6 = vcmp.gt.f32.partialorder %v5601_v6, 0.0  ;;  %v5857_v61 = vmul.f32 0.1, %v5601_v6  ;;  %v5599_v4 = vadd.f32 %v11431_v12, %v5464_v45 }
 0x5b5   : > { %v5602_v3 = vadd.f32 %v11431_v12, %v5467_v38  ;;  %v6906_v57 = vpop.f32.mrb[100].mxu1  ;;  %v5600_v13 = vadd.f32 %v11431_v12, %v5465_v52  ;;  %v4761_v11 = vpop.f32.mrb[228].mxu0 }
 0x5b6   : > { %v5985_v29 = vsel %vm5729_vm6, %v5601_v6, %v5857_v61  ;;  %v5259_v16 = vadd.f32 %v11558_v30, %v6906_v57  ;;  %v5250_v47 = vpop.f32.mrb[101].mxu1  ;;  %vm5727_vm7 = vcmp.gt.f32.partialorder %v5599_v4, 0.0  ;;  %v5855_v2 = vmul.f32 0.1, %v5599_v4  ;;  %v4763_v58 = vpop.f32.mrb[229].mxu0 }
 0x5b7   : > { %6113 = vst [vmem:[%s11130_s29 + $0x310] sm:$0xff] %v5985_v29  ;;  %vm5730_vm8 = vcmp.gt.f32.partialorder %v5602_v3, 0.0  ;;  %v5858_v5 = vmul.f32 0.1, %v5602_v3  ;;  %vm5728_vm9 = vcmp.gt.f32.partialorder %v5600_v13, 0.0  ;;  %v11690_v15 = vadd.f32 %v4761_v11, %v12917_v0  ;;  %v6907_v60 = vpop.f32.mrb[102].mxu1 }
 0x5b8   : > { %v5856_v33 = vmul.f32 0.1, %v5600_v13  ;;  %v5470_v34 = vmul.f32 %v11421_v19, %v5259_v16  ;;  %v5983_v50 = vsel %vm5727_vm7, %v5599_v4, %v5855_v2  ;;  %v5251_v54 = vadd.f32 %v11536_v51, %v5250_v47  ;;  %v4764_v46 = vpop.f32.mrb[230].mxu0  ;;  %v5253_v20 = vpop.f32.mrb[103].mxu1  ;;  %v12920_v29 = vld [vmem:[#allocation32_spill] sm:$0xff] }
 0x5b9   : > { %v5986_v30 = vsel %vm5730_vm8, %v5602_v3, %v5858_v5  ;;  %v5262_v35 = vadd.f32 %v11567_v27, %v6907_v60  ;;  %6111 = vst [vmem:[%s11130_s29 + $0x300] sm:$0xff] %v5983_v50  ;;  %v11699_v48 = vadd.f32 %v4764_v46, %v12918_v39  ;;  %v4766_v36 = vpop.f32.mrb[231].mxu0  ;;  %v5254_v14 = vadd.f32 %v11545_v8, %v5253_v20 }
 0x5ba   : > { %6114 = vst [vmem:[%s11130_s29 + $0x318] sm:$0xff] %v5986_v30  ;;  %v5984_v10 = vsel %vm5728_vm9, %v5600_v13, %v5856_v33  ;;  %v5605_v53 = vadd.f32 %v11431_v12, %v5470_v34  ;;  %v5468_v63 = vmul.f32 %v11421_v19, %v5251_v54 }
 0x5bb   : > { %6112 = vst [vmem:[%s11130_s29 + $0x308] sm:$0xff] %v5984_v10  ;;  %v5471_v51 = vmul.f32 %v11421_v19, %v5262_v35  ;;  %v5469_v32 = vmul.f32 %v11421_v19, %v5254_v14  ;;  %v12921_v35 = vld [vmem:[#allocation131_spill] sm:$0xff] }
 0x5bc   : > { %vm5733_vm10 = vcmp.gt.f32.partialorder %v5605_v53, 0.0  ;;  %v5861_v27 = vmul.f32 0.1, %v5605_v53  ;;  %v5603_v49 = vadd.f32 %v11431_v12, %v5468_v63 }
 0x5bd   : > { %v5606_v1 = vadd.f32 %v11431_v12, %v5471_v51  ;;  %v6910_v37 = vpop.f32.mrb[104].mxu1  ;;  %v5604_v22 = vadd.f32 %v11431_v12, %v5469_v32  ;;  %v4769_v55 = vpop.f32.mrb[232].mxu0  ;;  %v11749_v32 = vld [vmem:[%s11891_s3] ss:$0 sm:$0xff] }
 0x5be   : > { %v5989_v40 = vsel %vm5733_vm10, %v5605_v53, %v5861_v27  ;;  %v5275_v8 = vadd.f32 %v11602_v23, %v6910_v37  ;;  %v5266_v62 = vpop.f32.mrb[105].mxu1  ;;  %vm5731_vm11 = vcmp.gt.f32.partialorder %v5603_v49, 0.0  ;;  %v5859_v41 = vmul.f32 0.1, %v5603_v49  ;;  %v4771_v18 = vpop.f32.mrb[233].mxu0 }
 0x5bf   : > { %6117 = vst [vmem:[%s11130_s29 + $0x330] sm:$0xff] %v5989_v40  ;;  %vm5734_vm12 = vcmp.gt.f32.partialorder %v5606_v1, 0.0  ;;  %v5862_v44 = vmul.f32 0.1, %v5606_v1  ;;  %vm5732_vm13 = vcmp.gt.f32.partialorder %v5604_v22, 0.0  ;;  %v11712_v6 = vadd.f32 %v4769_v55, %v12919_v24  ;;  %v6911_v25 = vpop.f32.mrb[106].mxu1 }
 0x5c0   : > { %v5860_v21 = vmul.f32 0.1, %v5604_v22  ;;  %v5474_v56 = vmul.f32 %v11421_v19, %v5275_v8  ;;  %v5987_v45 = vsel %vm5731_vm11, %v5603_v49, %v5859_v41  ;;  %v5267_v38 = vadd.f32 %v11580_v43, %v5266_v62  ;;  %v4772_v61 = vpop.f32.mrb[234].mxu0  ;;  %v5269_v4 = vpop.f32.mrb[107].mxu1  ;;  %v11729_v43 = vld [vmem:[%s11890_s2] ss:$0 sm:$0xff] }
 0x5c1   : > { %v5990_v23 = vsel %vm5734_vm12, %v5606_v1, %v5862_v44  ;;  %v5278_v52 = vadd.f32 %v11611_v31, %v6911_v25  ;;  %6115 = vst [vmem:[%s11130_s29 + $0x320] sm:$0xff] %v5987_v45  ;;  %v11721_v13 = vadd.f32 %v4772_v61, %v12920_v29  ;;  %v4774_v11 = vpop.f32.mrb[235].mxu0  ;;  %v5270_v16 = vadd.f32 %v11589_v28, %v5269_v4  ;;  %v12922_v1 = vld [vmem:[#allocation113_spill] sm:$0xff] }
 0x5c2   : > { %6118 = vst [vmem:[%s11130_s29 + $0x338] sm:$0xff] %v5990_v23  ;;  %v5988_v3 = vsel %vm5732_vm13, %v5604_v22, %v5860_v21  ;;  %v5609_v57 = vadd.f32 %v11431_v12, %v5474_v56  ;;  %v5472_v47 = vmul.f32 %v11421_v19, %v5267_v38  ;;  %v12923_v38 = vld [vmem:[#allocation115_spill] sm:$0xff] }
 0x5c3   : > { %6116 = vst [vmem:[%s11130_s29 + $0x328] sm:$0xff] %v5988_v3  ;;  %v5475_v31 = vmul.f32 %v11729_v43, %v5278_v52  ;;  %v5473_v5 = vmul.f32 %v11729_v43, %v5270_v16 }
 0x5c4   : > { %vm5737_vm14 = vcmp.gt.f32.partialorder %v5609_v57, 0.0  ;;  %v5865_v2 = vmul.f32 0.1, %v5609_v57  ;;  %v5607_v33 = vadd.f32 %v11431_v12, %v5472_v47 }
 0x5c5   : > { %v5610_v0 = vadd.f32 %v11431_v12, %v5475_v31  ;;  %v6914_v28 = vpop.f32.mrb[108].mxu1  ;;  %v5608_v58 = vadd.f32 %v11431_v12, %v5473_v5  ;;  %v4777_v19 = vpop.f32.mrb[236].mxu0  ;;  %v12924_v5 = vld [vmem:[#allocation35_spill] sm:$0xff] }
 0x5c6   : > { %v5993_v34 = vsel %vm5737_vm14, %v5609_v57, %v5865_v2  ;;  %v5291_v60 = vadd.f32 %v11646_v9, %v6914_v28  ;;  %v5282_v50 = vpop.f32.mrb[109].mxu1  ;;  %vm5735_vm15 = vcmp.gt.f32.partialorder %v5607_v33, 0.0  ;;  %v5863_v30 = vmul.f32 0.1, %v5607_v33  ;;  %v4779_v53 = vpop.f32.mrb[237].mxu0 }
 0x5c7   : > { %6121 = vst [vmem:[%s11130_s29 + $0x350] sm:$0xff] %v5993_v34  ;;  %vm5738_vm0 = vcmp.gt.f32.partialorder %v5610_v0, 0.0  ;;  %v5866_v54 = vmul.f32 0.1, %v5610_v0  ;;  %vm5736_vm1 = vcmp.gt.f32.partialorder %v5608_v58, 0.0  ;;  %v11739_v20 = vadd.f32 %v4777_v19, %v12921_v35  ;;  %v6915_v12 = vpop.f32.mrb[110].mxu1 }
 0x5c8   : > { %v5864_v46 = vmul.f32 0.1, %v5608_v58  ;;  %v5478_v10 = vmul.f32 %v11729_v43, %v5291_v60  ;;  %v5991_v39 = vsel %vm5735_vm15, %v5607_v33, %v5863_v30  ;;  %v5283_v36 = vadd.f32 %v11624_v7, %v5282_v50  ;;  %v4780_v14 = vpop.f32.mrb[238].mxu0  ;;  %v5285_v51 = vpop.f32.mrb[111].mxu1 }
 0x5c9   : > { %v5994_v9 = vsel %vm5738_vm0, %v5610_v0, %v5866_v54  ;;  %v5294_v63 = vadd.f32 %v11655_v59, %v6915_v12  ;;  %6119 = vst [vmem:[%s11130_s29 + $0x340] sm:$0xff] %v5991_v39  ;;  %v11753_v37 = vadd.f32 %v4780_v14, %v12922_v1  ;;  %v4782_v40 = vpop.f32.mrb[239].mxu0  ;;  %v5286_v7 = vadd.f32 %v11633_v42, %v5285_v51  ;;  %v12925_v39 = vld [vmem:[#allocation136_spill] sm:$0xff] }
 0x5ca   : > { %6122 = vst [vmem:[%s11130_s29 + $0x358] sm:$0xff] %v5994_v9  ;;  %v5992_v27 = vsel %vm5736_vm1, %v5608_v58, %v5864_v46  ;;  %v5613_v49 = vadd.f32 %v11749_v32, %v5478_v10  ;;  %v5476_v59 = vmul.f32 %v11729_v43, %v5283_v36 }
 0x5cb   : > { %6120 = vst [vmem:[%s11130_s29 + $0x348] sm:$0xff] %v5992_v27  ;;  %v5479_v22 = vmul.f32 %v11729_v43, %v5294_v63  ;;  %v5477_v8 = vmul.f32 %v11729_v43, %v5286_v7 }
 0x5cc   : > { %vm5741_vm2 = vcmp.gt.f32.partialorder %v5613_v49, 0.0  ;;  %v5869_v55 = vmul.f32 0.1, %v5613_v49  ;;  %v5611_v62 = vadd.f32 %v11749_v32, %v5476_v59 }
 0x5cd   : > { %v5614_v41 = vadd.f32 %v11749_v32, %v5479_v22  ;;  %v6918_v44 = vpop.f32.mrb[112].mxu1  ;;  %v5612_v24 = vadd.f32 %v11749_v32, %v5477_v8  ;;  %v12926_v22 = vld [vmem:[#allocation118_spill] sm:$0xff] }
 0x5ce   : > { %v5997_v21 = vsel %vm5741_vm2, %v5613_v49, %v5869_v55  ;;  %v4785_v56 = vpop.f32.mrb[240].mxu0  ;;  %v5307_v42 = vadd.f32 %v11690_v15, %v6918_v44  ;;  %v5298_v18 = vpop.f32.mrb[113].mxu1  ;;  %vm5739_vm3 = vcmp.gt.f32.partialorder %v5611_v62, 0.0  ;;  %v5867_v25 = vmul.f32 0.1, %v5611_v62 }
 0x5cf   : > { %6125 = vst [vmem:[%s11130_s29 + $0x370] sm:$0xff] %v5997_v21  ;;  %vm5742_vm4 = vcmp.gt.f32.partialorder %v5614_v41, 0.0  ;;  %v5870_v45 = vmul.f32 0.1, %v5614_v41  ;;  %vm5740_vm5 = vcmp.gt.f32.partialorder %v5612_v24, 0.0  ;;  %v11766_v61 = vadd.f32 %v4785_v56, %v12923_v38  ;;  %v4787_v4 = vpop.f32.mrb[241].mxu0 }
 0x5d0   : > { %v5868_v23 = vmul.f32 0.1, %v5612_v24  ;;  %v5482_v52 = vmul.f32 %v11729_v43, %v5307_v42  ;;  %v6919_v3 = vpop.f32.mrb[114].mxu1  ;;  %v5995_v57 = vsel %vm5739_vm3, %v5611_v62, %v5867_v25  ;;  %v5299_v29 = vadd.f32 %v11668_v17, %v5298_v18  ;;  %v4788_v11 = vpop.f32.mrb[242].mxu0  ;;  %v12927_v4 = vld [vmem:[#allocation41_spill] sm:$0xff] }
 0x5d1   : > { %v5998_v15 = vsel %vm5742_vm4, %v5614_v41, %v5870_v45  ;;  %v5310_v16 = vadd.f32 %v11699_v48, %v6919_v3  ;;  %v5301_v47 = vpop.f32.mrb[115].mxu1  ;;  %6123 = vst [vmem:[%s11130_s29 + $0x360] sm:$0xff] %v5995_v57  ;;  %v11775_v33 = vadd.f32 %v4788_v11, %v12924_v5  ;;  %v4790_v0 = vpop.f32.mrb[243].mxu0 }
 0x5d2   : > { %6126 = vst [vmem:[%s11130_s29 + $0x378] sm:$0xff] %v5998_v15  ;;  %v5996_v31 = vsel %vm5740_vm5, %v5612_v24, %v5868_v23  ;;  %v5617_v2 = vadd.f32 %v11749_v32, %v5482_v52  ;;  %v5302_v28 = vadd.f32 %v11677_v26, %v5301_v47  ;;  %v5480_v34 = vmul.f32 %v11729_v43, %v5299_v29 }
 0x5d3   : > { %6124 = vst [vmem:[%s11130_s29 + $0x368] sm:$0xff] %v5996_v31  ;;  %v5483_v17 = vmul.f32 %v11729_v43, %v5310_v16 }
 0x5d4   : > { %vm5745_vm6 = vcmp.gt.f32.partialorder %v5617_v2, 0.0  ;;  %v5873_v48 = vmul.f32 0.1, %v5617_v2  ;;  %v5481_v58 = vmul.f32 %v11729_v43, %v5302_v28  ;;  %v5615_v19 = vadd.f32 %v11749_v32, %v5480_v34  ;;  %v12928_v34 = vld [vmem:[#allocation142_spill] sm:$0xff] }
 0x5d5   : > { %v5618_v60 = vadd.f32 %v11749_v32, %v5483_v17  ;;  %v6922_v50 = vpop.f32.mrb[116].mxu1 }
 0x5d6   : > { %v6001_v30 = vsel %vm5745_vm6, %v5617_v2, %v5873_v48  ;;  %v5616_v54 = vadd.f32 %v11749_v32, %v5481_v58  ;;  %v4793_v46 = vpop.f32.mrb[244].mxu0  ;;  %v5323_v26 = vadd.f32 %v11739_v20, %v6922_v50  ;;  %v5314_v35 = vpop.f32.mrb[117].mxu1  ;;  %vm5743_vm7 = vcmp.gt.f32.partialorder %v5615_v19, 0.0 }
 0x5d7   : > { %6129 = vst [vmem:[%s11130_s29 + $0x390] sm:$0xff] %v6001_v30  ;;  %v5871_v10 = vmul.f32 0.1, %v5615_v19  ;;  %vm5746_vm8 = vcmp.gt.f32.partialorder %v5618_v60, 0.0  ;;  %v5874_v53 = vmul.f32 0.1, %v5618_v60  ;;  %v7086_v9 = vadd.f32 %v4793_v46, %v12925_v39 }
 0x5d8   : > { %vm5744_vm9 = vcmp.gt.f32.partialorder %v5616_v54, 0.0  ;;  %v5872_v12 = vmul.f32 0.1, %v5616_v54  ;;  %v5486_v36 = vmul.f32 %v11729_v43, %v5323_v26  ;;  %v4795_v14 = vpop.f32.mrb[245].mxu0  ;;  %v6923_v63 = vpop.f32.mrb[118].mxu1  ;;  %v5315_v20 = vadd.f32 %v11712_v6, %v5314_v35 }
 0x5d9   : > { %v5999_v51 = vsel %vm5743_vm7, %v5615_v19, %v5871_v10  ;;  %v6002_v27 = vsel %vm5746_vm8, %v5618_v60, %v5874_v53  ;;  %v4796_v49 = vpop.f32.mrb[246].mxu0  ;;  %v5326_v1 = vadd.f32 %v11753_v37, %v6923_v63  ;;  %v5317_v40 = vpop.f32.mrb[119].mxu1 }
 0x5da   : > { %6127 = vst [vmem:[%s11130_s29 + $0x380] sm:$0xff] %v5999_v51  ;;  %6130 = vst [vmem:[%s11130_s29 + $0x398] sm:$0xff] %v6002_v27  ;;  %v6000_v7 = vsel %vm5744_vm9, %v5616_v54, %v5872_v12  ;;  %v5621_v59 = vadd.f32 %v11749_v32, %v5486_v36  ;;  %v7087_v55 = vadd.f32 %v4796_v49, %v12926_v22  ;;  %v4798_v8 = vpop.f32.mrb[247].mxu0  ;;  %v12930_v22 = vld [vmem:[#allocation50_spill] sm:$0xff] }
 0x5db   : > { %v5318_v62 = vadd.f32 %v11721_v13, %v5317_v40  ;;  %6128 = vst [vmem:[%s11130_s29 + $0x388] sm:$0xff] %v6000_v7  ;;  %v5484_v41 = vmul.f32 %v11729_v43, %v5315_v20  ;;  %v5487_v6 = vmul.f32 %v11729_v43, %v5326_v1 }
 0x5dc   : > { %vm5749_vm10 = vcmp.gt.f32.partialorder %v5621_v59, 0.0  ;;  %v5877_v44 = vmul.f32 0.1, %v5621_v59 }
 0x5dd   : > { %v5485_v37 = vmul.f32 %v11729_v43, %v5318_v62  ;;  %v5619_v21 = vadd.f32 %v11749_v32, %v5484_v41  ;;  %v5622_v24 = vadd.f32 %v11749_v32, %v5487_v6 }
 0x5de   : > { %v6926_v56 = vpop.f32.mrb[120].mxu1  ;;  %v6005_v42 = vsel %vm5749_vm10, %v5621_v59, %v5877_v44  ;;  %v4801_v25 = vpop.f32.mrb[248].mxu0 }
 0x5df   : > { %v5620_v18 = vadd.f32 %v11749_v32, %v5485_v37  ;;  %v5339_v45 = vadd.f32 %v7086_v9, %v6926_v56  ;;  %v5330_v13 = vpop.f32.mrb[121].mxu1  ;;  %6133 = vst [vmem:[%s11130_s29 + $0x3b0] sm:$0xff] %v6005_v42  ;;  %vm5747_vm11 = vcmp.gt.f32.partialorder %v5619_v21, 0.0  ;;  %v5875_v23 = vmul.f32 0.1, %v5619_v21  ;;  %v4803_v15 = vpop.f32.mrb[249].mxu0 }
 0x5e0   : > { %vm5750_vm12 = vcmp.gt.f32.partialorder %v5622_v24, 0.0  ;;  %v5878_v38 = vmul.f32 0.1, %v5622_v24  ;;  %v7088_v3 = vadd.f32 %v4801_v25, %v12927_v4  ;;  %v6927_v29 = vpop.f32.mrb[122].mxu1  ;;  %v5331_v47 = vadd.f32 %v11766_v61, %v5330_v13  ;;  %v4804_v31 = vpop.f32.mrb[250].mxu0  ;;  %v12929_v9 = vld [vmem:[#allocation125_spill] sm:$0xff] }
 0x5e1   : > { %vm5748_vm13 = vcmp.gt.f32.partialorder %v5620_v18, 0.0  ;;  %v5876_v52 = vmul.f32 0.1, %v5620_v18  ;;  %v5490_v57 = vmul.f32 %v11729_v43, %v5339_v45  ;;  %v6003_v11 = vsel %vm5747_vm11, %v5619_v21, %v5875_v23  ;;  %v5333_v5 = vpop.f32.mrb[123].mxu1  ;;  %v4806_v48 = vpop.f32.mrb[251].mxu0 }
 0x5e2   : > { %v6006_v16 = vsel %vm5750_vm12, %v5622_v24, %v5878_v38  ;;  %v5342_v2 = vadd.f32 %v7087_v55, %v6927_v29  ;;  %6131 = vst [vmem:[%s11130_s29 + $0x3a0] sm:$0xff] %v6003_v11  ;;  %v7089_v17 = vadd.f32 %v4804_v31, %v12928_v34  ;;  %v5334_v58 = vadd.f32 %v11775_v33, %v5333_v5 }
 0x5e3   : > { %6134 = vst [vmem:[%s11130_s29 + $0x3b8] sm:$0xff] %v6006_v16  ;;  %v6004_v0 = vsel %vm5748_vm13, %v5620_v18, %v5876_v52  ;;  %v5625_v28 = vadd.f32 %v11749_v32, %v5490_v57  ;;  %v5488_v19 = vmul.f32 %v11729_v43, %v5331_v47 }
 0x5e4   : > { %6132 = vst [vmem:[%s11130_s29 + $0x3a8] sm:$0xff] %v6004_v0  ;;  %v5491_v60 = vmul.f32 %v11729_v43, %v5342_v2  ;;  %v5489_v50 = vmul.f32 %v11729_v43, %v5334_v58 }
 0x5e5   : > { %vm5753_vm14 = vcmp.gt.f32.partialorder %v5625_v28, 0.0  ;;  %v5881_v61 = vmul.f32 0.1, %v5625_v28  ;;  %v5623_v30 = vadd.f32 %v11749_v32, %v5488_v19 }
 0x5e6   : > { %v5626_v54 = vadd.f32 %v11749_v32, %v5491_v60  ;;  %v6930_v46 = vpop.f32.mrb[124].mxu1  ;;  %v5624_v35 = vadd.f32 %v11749_v32, %v5489_v50 }
 0x5e7   : > { %v6009_v26 = vsel %vm5753_vm14, %v5625_v28, %v5881_v61  ;;  %v4809_v10 = vpop.f32.mrb[252].mxu0  ;;  %v5346_v53 = vpop.f32.mrb[125].mxu1  ;;  %vm5751_vm15 = vcmp.gt.f32.partialorder %v5623_v30, 0.0  ;;  %v5879_v33 = vmul.f32 0.1, %v5623_v30 }
 0x5e8   : > { %6137 = vst [vmem:[%s11130_s29 + $0x3d0] sm:$0xff] %v6009_v26  ;;  %vm5754_vm0 = vcmp.gt.f32.partialorder %v5626_v54, 0.0  ;;  %v5882_v12 = vmul.f32 0.1, %v5626_v54  ;;  %vm5752_vm1 = vcmp.gt.f32.partialorder %v5624_v35, 0.0  ;;  %v7090_v36 = vadd.f32 %v4809_v10, %v12929_v9  ;;  %v4811_v14 = vpop.f32.mrb[253].mxu0 }
 0x5e9   : > { %v5880_v39 = vmul.f32 0.1, %v5624_v35  ;;  %v5347_v63 = vadd.f32 %v7088_v3, %v5346_v53  ;;  %v6931_v51 = vpop.f32.mrb[126].mxu1  ;;  %v6007_v27 = vsel %vm5751_vm15, %v5623_v30, %v5879_v33  ;;  %v4812_v49 = vpop.f32.mrb[254].mxu0 }
 0x5ea   : > { %v6010_v20 = vsel %vm5754_vm0, %v5626_v54, %v5882_v12  ;;  %v5349_v1 = vpop.f32.mrb[127].mxu1  ;;  %6135 = vst [vmem:[%s11130_s29 + $0x3c0] sm:$0xff] %v6007_v27  ;;  %v5355_v7 = vadd.f32 %v7090_v36, %v6930_v46  ;;  %v7091_v55 = vadd.f32 %v4812_v49, %v12930_v22  ;;  %v4814_v8 = vpop.f32.mrb[255].mxu0 }
 0x5eb   : > { %6138 = vst [vmem:[%s11130_s29 + $0x3d8] sm:$0xff] %v6010_v20  ;;  %v6008_v40 = vsel %vm5752_vm1, %v5624_v35, %v5880_v39  ;;  %v5492_v59 = vmul.f32 %v11729_v43, %v5347_v63  ;;  %v5350_v62 = vadd.f32 %v7089_v17, %v5349_v1 }
 0x5ec   : > { %6136 = vst [vmem:[%s11130_s29 + $0x3c8] sm:$0xff] %v6008_v40  ;;  %v5494_v41 = vmul.f32 %v11729_v43, %v5355_v7  ;;  %v5358_v44 = vadd.f32 %v7091_v55, %v6931_v51 }
 0x5ed   : > { %v5627_v6 = vadd.f32 %v11749_v32, %v5492_v59  ;;  %v5493_v37 = vmul.f32 %v11729_v43, %v5350_v62 }
 0x5ee   : > { %v5629_v21 = vadd.f32 %v11749_v32, %v5494_v41  ;;  %v5495_v56 = vmul.f32 %v11729_v43, %v5358_v44 }
 0x5ef   : > { %vm5755_vm2 = vcmp.gt.f32.partialorder %v5627_v6, 0.0  ;;  %v5883_v24 = vmul.f32 0.1, %v5627_v6  ;;  %v5628_v42 = vadd.f32 %v11749_v32, %v5493_v37 }
 0x5f0   : > { %vm5757_vm3 = vcmp.gt.f32.partialorder %v5629_v21, 0.0  ;;  %v5885_v18 = vmul.f32 0.1, %v5629_v21  ;;  %v5630_v45 = vadd.f32 %v11749_v32, %v5495_v56 }
 0x5f1   : > { %v6011_v25 = vsel %vm5755_vm2, %v5627_v6, %v5883_v24  ;;  %vm5756_vm4 = vcmp.gt.f32.partialorder %v5628_v42, 0.0  ;;  %v5884_v13 = vmul.f32 0.1, %v5628_v42 }
 0x5f2   : > { %6139 = vst [vmem:[%s11130_s29 + $0x3e0] sm:$0xff] %v6011_v25  ;;  %v6013_v23 = vsel %vm5757_vm3, %v5629_v21, %v5885_v18  ;;  %vm5758_vm5 = vcmp.gt.f32.partialorder %v5630_v45, 0.0  ;;  %v5886_v43 = vmul.f32 0.1, %v5630_v45 }
 0x5f3   : > { %6141 = vst [vmem:[%s11130_s29 + $0x3f0] sm:$0xff] %v6013_v23  ;;  %v6012_v38 = vsel %vm5756_vm4, %v5628_v42, %v5884_v13 }
 0x5f4   : > { %v6014_v32 = vsel %vm5758_vm5, %v5630_v45, %v5886_v43  ;;  %6140 = vst [vmem:[%s11130_s29 + $0x3e8] sm:$0xff] %v6012_v38 }
 0x5f5   : > { %6142 = vst [vmem:[%s11130_s29 + $0x3f8] sm:$0xff] %v6014_v32 }
 0x5f6   : > { %7817 = shalt.err (!%p7814_p7)
}
 0x5f7   : > { %s7818_s29 = scalar_lea.hbm %s11839_s19, 16384  ;;  %s7822_s26 = scalar_lea.hbm %s11892_s4, 32768 }
 0x5f8   : > { %p7819_p9 = scmp.ne.s32.totalorder %s11839_s19, %s7818_s29  ;;  %p7823_p5 = scmp.lt.u32.totalorder %s11839_s19, %s11892_s4 }
 0x5f9   : > { %p7824_p11 = scmp.lt.u32.totalorder %s7822_s26, %s7818_s29  ;;  %p7826_p4 = scmp.lt.u32.totalorder %s7818_s29, %s11839_s19 }
 0x5fa   : > { %p7820_p2 = pnand %p7819_p9, %p8004_p12 }
 0x5fb   : > { %p7825_p1 = por %p7824_p11, %p7823_p5 }
 0x5fc   : > { %p7821_p0 = pneg %p7820_p2 }
 0x5fd   : > { %p7827_p6 = por %p7826_p4, %p7825_p1 }
 0x5ff   : > { %p7828_p8 = pnand %p7827_p6, %p7821_p0 }
 0x601   : > { %7831 = shalt.err (!%p7828_p8)
}
 0x602   : > { %s7886_s11 = smov 128   ;;  %s7887_s13 = smov 8  }
 0x603   : > { %7610 = dma.vmem_to_hbm [thread:$0]  (%p8004_p12), %s11841_s14, 16384, %s11839_s19, %s6144_s23, %s7886_s11, %s7886_s11, %s7887_s13  }
 0x604 PF: > { %s6172_s20 = sand.u32 1, %s7862_s15   ;;  %p12931_p10 = scmp.ne.s32.totalorder %s12189_s22, 0 }
 0x605   : > { %p12932_p13 = scmp.ge.s32.totalorder %s7874_s18, 2  ;;  %s6173_s21 = scalar_lea.sflag [#allocation4], %s6172_s20 }
 0x607   : > { %p7621_p3 = pnand %p12932_p13, %p12931_p10 }
 0x609   : > { %7857 = dma.done.wait (!%p7621_p3), %s6173_s21, 16384  }
 0x60a   : > { %7859 = vsyncadd (!%p7621_p3), %s6173_s21, 4294950912  ;;  %p18_p7 = scmp.ge.s32.totalorder %s7969_s27, 4   ;;  %s12933_s15 = smov %s7866_s16 }
 0x60b   : > { %s12934_s16 = smov %s7870_s17  ;;  %s12935_s17 = smov %s8000_s24 }
 0x60c   : > { %s12936_s18 = smov %s7969_s27  ;;  %20 = sbr.rel (!%p18_p7) target bundleno = 6 (0x6), region = 85 }
 0x613   :  { %6178 = vsyncpa [#allocation3], 1 }
 0x614   :  { %6180 = vsyncpa [#allocation3 + $0x1], 1 }
 0x615   :  { %6181 = vsyncpa [#allocation6], 1 }
 0x616   :  { %6182 = vsyncpa [#allocation4], 1 }
 0x617   :  { %6184 = vsyncpa [#allocation4 + $0x1], 1 }

</bundles_post_ra>
